<compile_context>
chip_gen: v5e
topology: v5e:2x2
jax: 0.10.0
libtpu: 0.0.40
codegen_flags: <defaults>
</compile_context>

<pallas_src>
import jax
import jax.numpy as jnp
import numpy as np
from jax.experimental import pallas as pl
from jax.experimental.pallas import tpu as pltpu

C_IN = 514           # in/out channels of every conv layer (M * F)
C_PAD = 640          # 5 * 128, lane-aligned channel padding (activations / N)
C_K = 640            # contraction-dim padding of pw / fc1 weights (see header)
HID = 256            # fc hidden
N_OUT = 10           # fc output
N_OUT_PAD = 128      # lane-aligned fc output padding
N_LAYERS = 4
KSIZE = 5
BN_EPS = 1e-5


def _shift_rows(v, s):
    """Return w with w[r, :] = v[r + s, :], zero-padded outside [0, R)."""
    if s == 0:
        return v
    R = v.shape[0]
    z = jnp.zeros((abs(s), v.shape[1]), v.dtype)
    if s > 0:
        return jnp.concatenate([v[s:, :], z], axis=0)
    return jnp.concatenate([z, v[:R + s, :]], axis=0)


def jungmin5_kernel(x_ref, mask_ref, dw_w_ref, dw_b_ref, pw_w_ref,
                    bn_scale_ref, bn_shift_ref, fc1_w_ref, fc1_b_ref,
                    fc2_w_ref, fc2_b_ref, o_ref):
    h = x_ref[...]                                   # (B*T, C_PAD) f32
    for l in range(N_LAYERS):
        w_dw = dw_w_ref[l]                           # (KSIZE, C_PAD) f32
        # depthwise Conv1d(k=5, pad=2): out[t,c] = sum_k w[k,c] * x[t+k-2, c]
        acc = jnp.zeros_like(h)
        for k in range(KSIZE):
            s = k - 2
            tap = _shift_rows(h, s)
            if s != 0:
                tap = tap * mask_ref[k]              # zero cross-batch rows
            acc = acc + tap * w_dw[k:k + 1, :]
        acc = acc + dw_b_ref[l]                      # (1, C_PAD) broadcast
        # pointwise 1x1 conv: bf16 operands on the MXU, f32 accumulation,
        # then folded BatchNorm (+ pointwise bias) and ReLU in f32 on the VPU.
        a16 = acc[:, :C_K].astype(jnp.bfloat16)
        y = jnp.dot(a16, pw_w_ref[l], preferred_element_type=jnp.float32)
        y = y * bn_scale_ref[l] + bn_shift_ref[l]
        h = jnp.maximum(y, 0.0)
    # fc head: Linear(514,256) -> ReLU -> Linear(256,10), bf16 on the MXU.
    z = jnp.dot(h[:, :C_K].astype(jnp.bfloat16), fc1_w_ref[...],
                preferred_element_type=jnp.float32)
    z = jnp.maximum(z + fc1_b_ref[...], 0.0).astype(jnp.bfloat16)
    out = jnp.dot(z, fc2_w_ref[...], preferred_element_type=jnp.float32)
    o_ref[...] = out + fc2_b_ref[...]


def jungmin5_forward(x, p):
    B, M, T, Fm = x.shape
    assert M * Fm == C_IN
    R = B * T
    # PyTorch: x.permute(0,1,3,2).reshape(B, M*F, T) -> (B, C, T); we go on to
    # channels-last and fold the batch into the row axis: (B*T, C_PAD).
    h = jnp.transpose(x, (0, 1, 3, 2)).reshape(B, C_IN, T)
    h = jnp.transpose(h, (0, 2, 1)).reshape(R, C_IN)
    h = jnp.pad(h, ((0, 0), (0, C_PAD - C_IN)))           # (B*T, C_PAD)

    # Per-tap validity masks for the folded row axis: row r is batch r//T at
    # time t = r % T; tap k reads t + (k-2), which must stay inside [0, T).
    t_loc = np.arange(R) % T
    tap_mask = np.stack(
        [((t_loc + (k - 2) >= 0) & (t_loc + (k - 2) < T)).astype(np.float32)
         for k in range(KSIZE)], axis=0)[:, :, None]       # (KSIZE, B*T, 1)
    tap_mask = jnp.asarray(tap_mask)

    args = (h, tap_mask, p['dw_w_p'], p['dw_b_p'], p['pw_w_p'],
            p['bn_scale_p'], p['bn_shift_p'],
            p['fc1_w_p'], p['fc1_b_p'], p['fc2_w_p'], p['fc2_b_p'])

    def full(a):
        return pl.BlockSpec(a.shape, lambda i, _n=a.ndim: (0,) * _n)

    flops = 2 * R * (N_LAYERS * (KSIZE * C_PAD + C_K * C_PAD)
                     + C_K * HID + HID * N_OUT_PAD)
    bytes_accessed = sum(int(np.prod(a.shape)) * a.dtype.itemsize for a in args)
    bytes_accessed += R * N_OUT_PAD * 4

    out = pl.pallas_call(
        jungmin5_kernel,
        out_shape=jax.ShapeDtypeStruct((R, N_OUT_PAD), jnp.float32),
        grid=(1,),
        in_specs=[full(a) for a in args],
        out_specs=pl.BlockSpec((R, N_OUT_PAD), lambda i: (0, 0)),
        compiler_params=pltpu.CompilerParams(
            dimension_semantics=("arbitrary",),
            vmem_limit_bytes=32 << 20),
        cost_estimate=pl.CostEstimate(
            flops=int(flops), transcendentals=0,
            bytes_accessed=int(bytes_accessed)),
    )(*args)
    return out[:, :N_OUT].reshape(B, T, N_OUT)


def make_params(key):
    ks = list(jax.random.split(key, 16))
    it = iter(ks)
    nrm = lambda shape, s: s * jax.random.normal(next(it), shape, jnp.float32)

    dw_w = nrm((N_LAYERS, KSIZE, C_IN), 0.2)     # depthwise weights (tap, chan)
    dw_b = nrm((N_LAYERS, C_IN), 0.1)
    pw_w = nrm((N_LAYERS, C_IN, C_IN), 0.04)     # pointwise, stored (Cin, Cout)
    pw_b = nrm((N_LAYERS, C_IN), 0.1)
    gamma = 1.0 + nrm((N_LAYERS, C_IN), 0.1)
    beta = nrm((N_LAYERS, C_IN), 0.1)
    mean = nrm((N_LAYERS, C_IN), 0.1)
    var = 1.0 + jnp.abs(nrm((N_LAYERS, C_IN), 0.1))
    fc1_w = nrm((C_IN, HID), 0.05)               # stored (in, out)
    fc1_b = nrm((HID,), 0.1)
    fc2_w = nrm((HID, N_OUT), 0.05)
    fc2_b = nrm((N_OUT,), 0.1)

    # fold BN (+ pointwise bias) into per-channel scale/shift (eval-mode BN)
    inv = gamma / jnp.sqrt(var + BN_EPS)
    bn_scale = inv
    bn_shift = beta + (pw_b - mean) * inv

    def pad_ax(a, axis, target):
        pads = [(0, 0)] * a.ndim
        pads[axis] = (0, target - a.shape[axis])
        return jnp.pad(a, pads)   # zero padding keeps padded lanes inert

    return dict(
        # unpadded (reference)
        dw_w=dw_w, dw_b=dw_b, pw_w=pw_w, pw_b=pw_b,
        gamma=gamma, beta=beta, mean=mean, var=var,
        fc1_w=fc1_w, fc1_b=fc1_b, fc2_w=fc2_w, fc2_b=fc2_b,
        # padded, kernel-ready.  MXU weights in bf16 (halves weight DMA);
        # padded lanes of scale/shift stay exactly 0 so padded channels stay 0.
        dw_w_p=pad_ax(dw_w, 2, C_PAD),
        dw_b_p=pad_ax(dw_b, 1, C_PAD).reshape(N_LAYERS, 1, C_PAD),
        pw_w_p=pad_ax(pad_ax(pw_w, 1, C_K), 2, C_PAD).astype(jnp.bfloat16),
        bn_scale_p=pad_ax(bn_scale, 1, C_PAD).reshape(N_LAYERS, 1, C_PAD),
        bn_shift_p=pad_ax(bn_shift, 1, C_PAD).reshape(N_LAYERS, 1, C_PAD),
        fc1_w_p=pad_ax(fc1_w, 0, C_K).astype(jnp.bfloat16),
        fc1_b_p=fc1_b.reshape(1, HID),
        fc2_w_p=pad_ax(fc2_w, 1, N_OUT_PAD).astype(jnp.bfloat16),
        fc2_b_p=pad_ax(fc2_b, 0, N_OUT_PAD).reshape(1, N_OUT_PAD),
    )


def ref_forward(x, p):
    """Pure-JAX reference (BN eval mode), matmul operands rounded to bf16 to
    mirror the kernel's MXU quantization (accumulation stays f32)."""
    B, M, T, Fm = x.shape
    bf = lambda a: a.astype(jnp.bfloat16).astype(jnp.float32)
    h = jnp.transpose(x, (0, 1, 3, 2)).reshape(B, C_IN, T)
    h = jnp.transpose(h, (0, 2, 1))                        # (B, T, C)
    for l in range(N_LAYERS):
        hp = jnp.pad(h, ((0, 0), (2, 2), (0, 0)))
        acc = jnp.zeros_like(h)
        for k in range(KSIZE):
            acc = acc + hp[:, k:k + T, :] * p['dw_w'][l, k][None, None, :]
        acc = acc + p['dw_b'][l][None, None, :]
        y = jnp.einsum('btc,cd->btd', bf(acc), bf(p['pw_w'][l]),
                       precision=jax.lax.Precision.HIGHEST) + p['pw_b'][l]
        y = (y - p['mean'][l]) / jnp.sqrt(p['var'][l] + BN_EPS) \
            * p['gamma'][l] + p['beta'][l]
        h = jnp.maximum(y, 0.0)
    z = jnp.maximum(jnp.dot(bf(h), bf(p['fc1_w']),
                            precision=jax.lax.Precision.HIGHEST)
                    + p['fc1_b'], 0.0)
    return jnp.dot(bf(z), bf(p['fc2_w']),
                   precision=jax.lax.Precision.HIGHEST) + p['fc2_b']


if __name__ == "__main__":
    key = jax.random.PRNGKey(0)
    kx, kp = jax.random.split(key)
    B, M, T, Fm = 2, 2, 16, 257        # M * F = 514 = conv channels
    x = jax.random.normal(kx, (B, M, T, Fm), jnp.float32)
    params = make_params(kp)

    fwd = jax.jit(jungmin5_forward)
    out = jax.block_until_ready(fwd(x, params))
    assert out.shape == (B, T, N_OUT)

    ref = ref_forward(x, params)
    np.testing.assert_allclose(np.asarray(out), np.asarray(ref),
                               rtol=2e-3, atol=2e-3)
    print("KERNEL_OK")
</pallas_src>

<mosaic_0001>
module attributes {stable_mosaic.version = 11 : i64} {
  func.func @jungmin5_kernel(%arg0: i32, %arg1: memref<32x640xf32, #tpu.memory_space<vmem>>, %arg2: memref<5x32x1xf32, #tpu.memory_space<vmem>>, %arg3: memref<4x5x640xf32, #tpu.memory_space<vmem>>, %arg4: memref<4x1x640xf32, #tpu.memory_space<vmem>>, %arg5: memref<4x640x640xbf16, #tpu.memory_space<vmem>>, %arg6: memref<4x1x640xf32, #tpu.memory_space<vmem>>, %arg7: memref<4x1x640xf32, #tpu.memory_space<vmem>>, %arg8: memref<640x256xbf16, #tpu.memory_space<vmem>>, %arg9: memref<1x256xf32, #tpu.memory_space<vmem>>, %arg10: memref<256x128xbf16, #tpu.memory_space<vmem>>, %arg11: memref<1x128xf32, #tpu.memory_space<vmem>>, %arg12: memref<32x128xf32, #tpu.memory_space<vmem>>) attributes {dimension_semantics = [#tpu.dimension_semantics<arbitrary>], iteration_bounds = array<i64: 1>, scalar_prefetch = 0 : i64, scratch_operands = 0 : i64, tpu.core_type = #tpu.core_type<tc>, window_params = [{pipeline_mode = #tpu.pipeline_mode<synchronous>, transform_indices = @transform_0, window_bounds = array<i64: 32, 640>}, {pipeline_mode = #tpu.pipeline_mode<synchronous>, transform_indices = @transform_1, window_bounds = array<i64: 5, 32, 1>}, {pipeline_mode = #tpu.pipeline_mode<synchronous>, transform_indices = @transform_2, window_bounds = array<i64: 4, 5, 640>}, {pipeline_mode = #tpu.pipeline_mode<synchronous>, transform_indices = @transform_3, window_bounds = array<i64: 4, 1, 640>}, {pipeline_mode = #tpu.pipeline_mode<synchronous>, transform_indices = @transform_4, window_bounds = array<i64: 4, 640, 640>}, {pipeline_mode = #tpu.pipeline_mode<synchronous>, transform_indices = @transform_5, window_bounds = array<i64: 4, 1, 640>}, {pipeline_mode = #tpu.pipeline_mode<synchronous>, transform_indices = @transform_6, window_bounds = array<i64: 4, 1, 640>}, {pipeline_mode = #tpu.pipeline_mode<synchronous>, transform_indices = @transform_7, window_bounds = array<i64: 640, 256>}, {pipeline_mode = #tpu.pipeline_mode<synchronous>, transform_indices = @transform_8, window_bounds = array<i64: 1, 256>}, {pipeline_mode = #tpu.pipeline_mode<synchronous>, transform_indices = @transform_9, window_bounds = array<i64: 256, 128>}, {pipeline_mode = #tpu.pipeline_mode<synchronous>, transform_indices = @transform_10, window_bounds = array<i64: 1, 128>}, {pipeline_mode = #tpu.pipeline_mode<synchronous>, transform_indices = @transform_11, window_bounds = array<i64: 32, 128>}]} {
    %c0 = arith.constant 0 : index
    %c0_0 = arith.constant 0 : index
    %0 = vector.load %arg1[%c0, %c0_0] : memref<32x640xf32, #tpu.memory_space<vmem>>, vector<32x640xf32>
    %c0_1 = arith.constant 0 : index
    %c0_2 = arith.constant 0 : index
    %c0_3 = arith.constant 0 : index
    %1 = vector.load %arg3[%c0_1, %c0_2, %c0_3] : memref<4x5x640xf32, #tpu.memory_space<vmem>>, vector<1x5x640xf32>
    %2 = vector.shape_cast %1 : vector<1x5x640xf32> to vector<5x640xf32>
    %cst = arith.constant 0.000000e+00 : f32
    %3 = vector.broadcast %cst : f32 to vector<32x640xf32>
    %cst_4 = arith.constant 0.000000e+00 : f32
    %4 = vector.broadcast %cst_4 : f32 to vector<2x640xf32>
    %5 = vector.extract_strided_slice %0 {offsets = [0, 0], sizes = [30, 640], strides = [1, 1]} : vector<32x640xf32> to vector<30x640xf32>
    %6 = tpu.concatenate %4, %5 in 0 : vector<2x640xf32>, vector<30x640xf32> -> vector<32x640xf32>
    %c0_5 = arith.constant 0 : index
    %c0_6 = arith.constant 0 : index
    %c0_7 = arith.constant 0 : index
    %7 = vector.load %arg2[%c0_5, %c0_6, %c0_7] : memref<5x32x1xf32, #tpu.memory_space<vmem>>, vector<1x32x1xf32>
    %8 = vector.shape_cast %7 : vector<1x32x1xf32> to vector<32x1xf32>
    %9 = vector.broadcast %8 : vector<32x1xf32> to vector<32x640xf32>
    %10 = arith.mulf %6, %9 : vector<32x640xf32>
    %11 = vector.extract_strided_slice %2 {offsets = [0, 0], sizes = [1, 640], strides = [1, 1]} : vector<5x640xf32> to vector<1x640xf32>
    %12 = vector.broadcast %11 : vector<1x640xf32> to vector<32x640xf32>
    %13 = arith.mulf %10, %12 : vector<32x640xf32>
    %14 = arith.addf %3, %13 : vector<32x640xf32>
    %cst_8 = arith.constant 0.000000e+00 : f32
    %15 = vector.broadcast %cst_8 : f32 to vector<1x640xf32>
    %16 = vector.extract_strided_slice %0 {offsets = [0, 0], sizes = [31, 640], strides = [1, 1]} : vector<32x640xf32> to vector<31x640xf32>
    %17 = tpu.concatenate %15, %16 in 0 : vector<1x640xf32>, vector<31x640xf32> -> vector<32x640xf32>
    %c1 = arith.constant 1 : index
    %c0_9 = arith.constant 0 : index
    %c0_10 = arith.constant 0 : index
    %18 = vector.load %arg2[%c1, %c0_9, %c0_10] : memref<5x32x1xf32, #tpu.memory_space<vmem>>, vector<1x32x1xf32>
    %19 = vector.shape_cast %18 : vector<1x32x1xf32> to vector<32x1xf32>
    %20 = vector.broadcast %19 : vector<32x1xf32> to vector<32x640xf32>
    %21 = arith.mulf %17, %20 : vector<32x640xf32>
    %22 = vector.extract_strided_slice %2 {offsets = [1, 0], sizes = [1, 640], strides = [1, 1]} : vector<5x640xf32> to vector<1x640xf32>
    %23 = vector.broadcast %22 : vector<1x640xf32> to vector<32x640xf32>
    %24 = arith.mulf %21, %23 : vector<32x640xf32>
    %25 = arith.addf %14, %24 : vector<32x640xf32>
    %26 = vector.extract_strided_slice %2 {offsets = [2, 0], sizes = [1, 640], strides = [1, 1]} : vector<5x640xf32> to vector<1x640xf32>
    %27 = vector.broadcast %26 : vector<1x640xf32> to vector<32x640xf32>
    %28 = arith.mulf %0, %27 : vector<32x640xf32>
    %29 = arith.addf %25, %28 : vector<32x640xf32>
    %cst_11 = arith.constant 0.000000e+00 : f32
    %30 = vector.broadcast %cst_11 : f32 to vector<1x640xf32>
    %31 = vector.extract_strided_slice %0 {offsets = [1, 0], sizes = [31, 640], strides = [1, 1]} : vector<32x640xf32> to vector<31x640xf32>
    %32 = tpu.concatenate %31, %30 in 0 : vector<31x640xf32>, vector<1x640xf32> -> vector<32x640xf32>
    %c3 = arith.constant 3 : index
    %c0_12 = arith.constant 0 : index
    %c0_13 = arith.constant 0 : index
    %33 = vector.load %arg2[%c3, %c0_12, %c0_13] : memref<5x32x1xf32, #tpu.memory_space<vmem>>, vector<1x32x1xf32>
    %34 = vector.shape_cast %33 : vector<1x32x1xf32> to vector<32x1xf32>
    %35 = vector.broadcast %34 : vector<32x1xf32> to vector<32x640xf32>
    %36 = arith.mulf %32, %35 : vector<32x640xf32>
    %37 = vector.extract_strided_slice %2 {offsets = [3, 0], sizes = [1, 640], strides = [1, 1]} : vector<5x640xf32> to vector<1x640xf32>
    %38 = vector.broadcast %37 : vector<1x640xf32> to vector<32x640xf32>
    %39 = arith.mulf %36, %38 : vector<32x640xf32>
    %40 = arith.addf %29, %39 : vector<32x640xf32>
    %cst_14 = arith.constant 0.000000e+00 : f32
    %41 = vector.broadcast %cst_14 : f32 to vector<2x640xf32>
    %42 = vector.extract_strided_slice %0 {offsets = [2, 0], sizes = [30, 640], strides = [1, 1]} : vector<32x640xf32> to vector<30x640xf32>
    %43 = tpu.concatenate %42, %41 in 0 : vector<30x640xf32>, vector<2x640xf32> -> vector<32x640xf32>
    %c4 = arith.constant 4 : index
    %c0_15 = arith.constant 0 : index
    %c0_16 = arith.constant 0 : index
    %44 = vector.load %arg2[%c4, %c0_15, %c0_16] : memref<5x32x1xf32, #tpu.memory_space<vmem>>, vector<1x32x1xf32>
    %45 = vector.shape_cast %44 : vector<1x32x1xf32> to vector<32x1xf32>
    %46 = vector.broadcast %45 : vector<32x1xf32> to vector<32x640xf32>
    %47 = arith.mulf %43, %46 : vector<32x640xf32>
    %48 = vector.extract_strided_slice %2 {offsets = [4, 0], sizes = [1, 640], strides = [1, 1]} : vector<5x640xf32> to vector<1x640xf32>
    %49 = vector.broadcast %48 : vector<1x640xf32> to vector<32x640xf32>
    %50 = arith.mulf %47, %49 : vector<32x640xf32>
    %51 = arith.addf %40, %50 : vector<32x640xf32>
    %c0_17 = arith.constant 0 : index
    %c0_18 = arith.constant 0 : index
    %c0_19 = arith.constant 0 : index
    %52 = vector.load %arg4[%c0_17, %c0_18, %c0_19] : memref<4x1x640xf32, #tpu.memory_space<vmem>>, vector<1x1x640xf32>
    %53 = vector.shape_cast %52 : vector<1x1x640xf32> to vector<1x640xf32>
    %54 = vector.broadcast %53 : vector<1x640xf32> to vector<32x640xf32>
    %55 = arith.addf %51, %54 : vector<32x640xf32>
    %56 = arith.truncf %55 : vector<32x640xf32> to vector<32x640xbf16>
    %c0_20 = arith.constant 0 : index
    %c0_21 = arith.constant 0 : index
    %c0_22 = arith.constant 0 : index
    %57 = vector.load %arg5[%c0_20, %c0_21, %c0_22] : memref<4x640x640xbf16, #tpu.memory_space<vmem>>, vector<1x640x640xbf16>
    %58 = vector.shape_cast %57 : vector<1x640x640xbf16> to vector<640x640xbf16>
    %cst_23 = arith.constant dense<0.000000e+00> : vector<32x640xf32>
    %59 = tpu.matmul %56, %58, %cst_23 {dimension_numbers = #tpu.dot_dimension_numbers<[1], [0], [0], [1], [0, 0, 1, 1], [], []>} : vector<32x640xbf16>, vector<640x640xbf16>, vector<32x640xf32> -> vector<32x640xf32>
    %c0_24 = arith.constant 0 : index
    %c0_25 = arith.constant 0 : index
    %c0_26 = arith.constant 0 : index
    %60 = vector.load %arg6[%c0_24, %c0_25, %c0_26] : memref<4x1x640xf32, #tpu.memory_space<vmem>>, vector<1x1x640xf32>
    %61 = vector.shape_cast %60 : vector<1x1x640xf32> to vector<1x640xf32>
    %62 = vector.broadcast %61 : vector<1x640xf32> to vector<32x640xf32>
    %63 = arith.mulf %59, %62 : vector<32x640xf32>
    %c0_27 = arith.constant 0 : index
    %c0_28 = arith.constant 0 : index
    %c0_29 = arith.constant 0 : index
    %64 = vector.load %arg7[%c0_27, %c0_28, %c0_29] : memref<4x1x640xf32, #tpu.memory_space<vmem>>, vector<1x1x640xf32>
    %65 = vector.shape_cast %64 : vector<1x1x640xf32> to vector<1x640xf32>
    %66 = vector.broadcast %65 : vector<1x640xf32> to vector<32x640xf32>
    %67 = arith.addf %63, %66 : vector<32x640xf32>
    %cst_30 = arith.constant 0.000000e+00 : f32
    %68 = vector.broadcast %cst_30 : f32 to vector<32x640xf32>
    %69 = arith.maximumf %67, %68 : vector<32x640xf32>
    %c1_31 = arith.constant 1 : index
    %c0_32 = arith.constant 0 : index
    %c0_33 = arith.constant 0 : index
    %70 = vector.load %arg3[%c1_31, %c0_32, %c0_33] : memref<4x5x640xf32, #tpu.memory_space<vmem>>, vector<1x5x640xf32>
    %71 = vector.shape_cast %70 : vector<1x5x640xf32> to vector<5x640xf32>
    %cst_34 = arith.constant 0.000000e+00 : f32
    %72 = vector.broadcast %cst_34 : f32 to vector<32x640xf32>
    %cst_35 = arith.constant 0.000000e+00 : f32
    %73 = vector.broadcast %cst_35 : f32 to vector<2x640xf32>
    %74 = vector.extract_strided_slice %69 {offsets = [0, 0], sizes = [30, 640], strides = [1, 1]} : vector<32x640xf32> to vector<30x640xf32>
    %75 = tpu.concatenate %73, %74 in 0 : vector<2x640xf32>, vector<30x640xf32> -> vector<32x640xf32>
    %c0_36 = arith.constant 0 : index
    %c0_37 = arith.constant 0 : index
    %c0_38 = arith.constant 0 : index
    %76 = vector.load %arg2[%c0_36, %c0_37, %c0_38] : memref<5x32x1xf32, #tpu.memory_space<vmem>>, vector<1x32x1xf32>
    %77 = vector.shape_cast %76 : vector<1x32x1xf32> to vector<32x1xf32>
    %78 = vector.broadcast %77 : vector<32x1xf32> to vector<32x640xf32>
    %79 = arith.mulf %75, %78 : vector<32x640xf32>
    %80 = vector.extract_strided_slice %71 {offsets = [0, 0], sizes = [1, 640], strides = [1, 1]} : vector<5x640xf32> to vector<1x640xf32>
    %81 = vector.broadcast %80 : vector<1x640xf32> to vector<32x640xf32>
    %82 = arith.mulf %79, %81 : vector<32x640xf32>
    %83 = arith.addf %72, %82 : vector<32x640xf32>
    %cst_39 = arith.constant 0.000000e+00 : f32
    %84 = vector.broadcast %cst_39 : f32 to vector<1x640xf32>
    %85 = vector.extract_strided_slice %69 {offsets = [0, 0], sizes = [31, 640], strides = [1, 1]} : vector<32x640xf32> to vector<31x640xf32>
    %86 = tpu.concatenate %84, %85 in 0 : vector<1x640xf32>, vector<31x640xf32> -> vector<32x640xf32>
    %c1_40 = arith.constant 1 : index
    %c0_41 = arith.constant 0 : index
    %c0_42 = arith.constant 0 : index
    %87 = vector.load %arg2[%c1_40, %c0_41, %c0_42] : memref<5x32x1xf32, #tpu.memory_space<vmem>>, vector<1x32x1xf32>
    %88 = vector.shape_cast %87 : vector<1x32x1xf32> to vector<32x1xf32>
    %89 = vector.broadcast %88 : vector<32x1xf32> to vector<32x640xf32>
    %90 = arith.mulf %86, %89 : vector<32x640xf32>
    %91 = vector.extract_strided_slice %71 {offsets = [1, 0], sizes = [1, 640], strides = [1, 1]} : vector<5x640xf32> to vector<1x640xf32>
    %92 = vector.broadcast %91 : vector<1x640xf32> to vector<32x640xf32>
    %93 = arith.mulf %90, %92 : vector<32x640xf32>
    %94 = arith.addf %83, %93 : vector<32x640xf32>
    %95 = vector.extract_strided_slice %71 {offsets = [2, 0], sizes = [1, 640], strides = [1, 1]} : vector<5x640xf32> to vector<1x640xf32>
    %96 = vector.broadcast %95 : vector<1x640xf32> to vector<32x640xf32>
    %97 = arith.mulf %69, %96 : vector<32x640xf32>
    %98 = arith.addf %94, %97 : vector<32x640xf32>
    %cst_43 = arith.constant 0.000000e+00 : f32
    %99 = vector.broadcast %cst_43 : f32 to vector<1x640xf32>
    %100 = vector.extract_strided_slice %69 {offsets = [1, 0], sizes = [31, 640], strides = [1, 1]} : vector<32x640xf32> to vector<31x640xf32>
    %101 = tpu.concatenate %100, %99 in 0 : vector<31x640xf32>, vector<1x640xf32> -> vector<32x640xf32>
    %c3_44 = arith.constant 3 : index
    %c0_45 = arith.constant 0 : index
    %c0_46 = arith.constant 0 : index
    %102 = vector.load %arg2[%c3_44, %c0_45, %c0_46] : memref<5x32x1xf32, #tpu.memory_space<vmem>>, vector<1x32x1xf32>
    %103 = vector.shape_cast %102 : vector<1x32x1xf32> to vector<32x1xf32>
    %104 = vector.broadcast %103 : vector<32x1xf32> to vector<32x640xf32>
    %105 = arith.mulf %101, %104 : vector<32x640xf32>
    %106 = vector.extract_strided_slice %71 {offsets = [3, 0], sizes = [1, 640], strides = [1, 1]} : vector<5x640xf32> to vector<1x640xf32>
    %107 = vector.broadcast %106 : vector<1x640xf32> to vector<32x640xf32>
    %108 = arith.mulf %105, %107 : vector<32x640xf32>
    %109 = arith.addf %98, %108 : vector<32x640xf32>
    %cst_47 = arith.constant 0.000000e+00 : f32
    %110 = vector.broadcast %cst_47 : f32 to vector<2x640xf32>
    %111 = vector.extract_strided_slice %69 {offsets = [2, 0], sizes = [30, 640], strides = [1, 1]} : vector<32x640xf32> to vector<30x640xf32>
    %112 = tpu.concatenate %111, %110 in 0 : vector<30x640xf32>, vector<2x640xf32> -> vector<32x640xf32>
    %c4_48 = arith.constant 4 : index
    %c0_49 = arith.constant 0 : index
    %c0_50 = arith.constant 0 : index
    %113 = vector.load %arg2[%c4_48, %c0_49, %c0_50] : memref<5x32x1xf32, #tpu.memory_space<vmem>>, vector<1x32x1xf32>
    %114 = vector.shape_cast %113 : vector<1x32x1xf32> to vector<32x1xf32>
    %115 = vector.broadcast %114 : vector<32x1xf32> to vector<32x640xf32>
    %116 = arith.mulf %112, %115 : vector<32x640xf32>
    %117 = vector.extract_strided_slice %71 {offsets = [4, 0], sizes = [1, 640], strides = [1, 1]} : vector<5x640xf32> to vector<1x640xf32>
    %118 = vector.broadcast %117 : vector<1x640xf32> to vector<32x640xf32>
    %119 = arith.mulf %116, %118 : vector<32x640xf32>
    %120 = arith.addf %109, %119 : vector<32x640xf32>
    %c1_51 = arith.constant 1 : index
    %c0_52 = arith.constant 0 : index
    %c0_53 = arith.constant 0 : index
    %121 = vector.load %arg4[%c1_51, %c0_52, %c0_53] : memref<4x1x640xf32, #tpu.memory_space<vmem>>, vector<1x1x640xf32>
    %122 = vector.shape_cast %121 : vector<1x1x640xf32> to vector<1x640xf32>
    %123 = vector.broadcast %122 : vector<1x640xf32> to vector<32x640xf32>
    %124 = arith.addf %120, %123 : vector<32x640xf32>
    %125 = arith.truncf %124 : vector<32x640xf32> to vector<32x640xbf16>
    %c1_54 = arith.constant 1 : index
    %c0_55 = arith.constant 0 : index
    %c0_56 = arith.constant 0 : index
    %126 = vector.load %arg5[%c1_54, %c0_55, %c0_56] : memref<4x640x640xbf16, #tpu.memory_space<vmem>>, vector<1x640x640xbf16>
    %127 = vector.shape_cast %126 : vector<1x640x640xbf16> to vector<640x640xbf16>
    %cst_57 = arith.constant dense<0.000000e+00> : vector<32x640xf32>
    %128 = tpu.matmul %125, %127, %cst_57 {dimension_numbers = #tpu.dot_dimension_numbers<[1], [0], [0], [1], [0, 0, 1, 1], [], []>} : vector<32x640xbf16>, vector<640x640xbf16>, vector<32x640xf32> -> vector<32x640xf32>
    %c1_58 = arith.constant 1 : index
    %c0_59 = arith.constant 0 : index
    %c0_60 = arith.constant 0 : index
    %129 = vector.load %arg6[%c1_58, %c0_59, %c0_60] : memref<4x1x640xf32, #tpu.memory_space<vmem>>, vector<1x1x640xf32>
    %130 = vector.shape_cast %129 : vector<1x1x640xf32> to vector<1x640xf32>
    %131 = vector.broadcast %130 : vector<1x640xf32> to vector<32x640xf32>
    %132 = arith.mulf %128, %131 : vector<32x640xf32>
    %c1_61 = arith.constant 1 : index
    %c0_62 = arith.constant 0 : index
    %c0_63 = arith.constant 0 : index
    %133 = vector.load %arg7[%c1_61, %c0_62, %c0_63] : memref<4x1x640xf32, #tpu.memory_space<vmem>>, vector<1x1x640xf32>
    %134 = vector.shape_cast %133 : vector<1x1x640xf32> to vector<1x640xf32>
    %135 = vector.broadcast %134 : vector<1x640xf32> to vector<32x640xf32>
    %136 = arith.addf %132, %135 : vector<32x640xf32>
    %cst_64 = arith.constant 0.000000e+00 : f32
    %137 = vector.broadcast %cst_64 : f32 to vector<32x640xf32>
    %138 = arith.maximumf %136, %137 : vector<32x640xf32>
    %c2 = arith.constant 2 : index
    %c0_65 = arith.constant 0 : index
    %c0_66 = arith.constant 0 : index
    %139 = vector.load %arg3[%c2, %c0_65, %c0_66] : memref<4x5x640xf32, #tpu.memory_space<vmem>>, vector<1x5x640xf32>
    %140 = vector.shape_cast %139 : vector<1x5x640xf32> to vector<5x640xf32>
    %cst_67 = arith.constant 0.000000e+00 : f32
    %141 = vector.broadcast %cst_67 : f32 to vector<32x640xf32>
    %cst_68 = arith.constant 0.000000e+00 : f32
    %142 = vector.broadcast %cst_68 : f32 to vector<2x640xf32>
    %143 = vector.extract_strided_slice %138 {offsets = [0, 0], sizes = [30, 640], strides = [1, 1]} : vector<32x640xf32> to vector<30x640xf32>
    %144 = tpu.concatenate %142, %143 in 0 : vector<2x640xf32>, vector<30x640xf32> -> vector<32x640xf32>
    %c0_69 = arith.constant 0 : index
    %c0_70 = arith.constant 0 : index
    %c0_71 = arith.constant 0 : index
    %145 = vector.load %arg2[%c0_69, %c0_70, %c0_71] : memref<5x32x1xf32, #tpu.memory_space<vmem>>, vector<1x32x1xf32>
    %146 = vector.shape_cast %145 : vector<1x32x1xf32> to vector<32x1xf32>
    %147 = vector.broadcast %146 : vector<32x1xf32> to vector<32x640xf32>
    %148 = arith.mulf %144, %147 : vector<32x640xf32>
    %149 = vector.extract_strided_slice %140 {offsets = [0, 0], sizes = [1, 640], strides = [1, 1]} : vector<5x640xf32> to vector<1x640xf32>
    %150 = vector.broadcast %149 : vector<1x640xf32> to vector<32x640xf32>
    %151 = arith.mulf %148, %150 : vector<32x640xf32>
    %152 = arith.addf %141, %151 : vector<32x640xf32>
    %cst_72 = arith.constant 0.000000e+00 : f32
    %153 = vector.broadcast %cst_72 : f32 to vector<1x640xf32>
    %154 = vector.extract_strided_slice %138 {offsets = [0, 0], sizes = [31, 640], strides = [1, 1]} : vector<32x640xf32> to vector<31x640xf32>
    %155 = tpu.concatenate %153, %154 in 0 : vector<1x640xf32>, vector<31x640xf32> -> vector<32x640xf32>
    %c1_73 = arith.constant 1 : index
    %c0_74 = arith.constant 0 : index
    %c0_75 = arith.constant 0 : index
    %156 = vector.load %arg2[%c1_73, %c0_74, %c0_75] : memref<5x32x1xf32, #tpu.memory_space<vmem>>, vector<1x32x1xf32>
    %157 = vector.shape_cast %156 : vector<1x32x1xf32> to vector<32x1xf32>
    %158 = vector.broadcast %157 : vector<32x1xf32> to vector<32x640xf32>
    %159 = arith.mulf %155, %158 : vector<32x640xf32>
    %160 = vector.extract_strided_slice %140 {offsets = [1, 0], sizes = [1, 640], strides = [1, 1]} : vector<5x640xf32> to vector<1x640xf32>
    %161 = vector.broadcast %160 : vector<1x640xf32> to vector<32x640xf32>
    %162 = arith.mulf %159, %161 : vector<32x640xf32>
    %163 = arith.addf %152, %162 : vector<32x640xf32>
    %164 = vector.extract_strided_slice %140 {offsets = [2, 0], sizes = [1, 640], strides = [1, 1]} : vector<5x640xf32> to vector<1x640xf32>
    %165 = vector.broadcast %164 : vector<1x640xf32> to vector<32x640xf32>
    %166 = arith.mulf %138, %165 : vector<32x640xf32>
    %167 = arith.addf %163, %166 : vector<32x640xf32>
    %cst_76 = arith.constant 0.000000e+00 : f32
    %168 = vector.broadcast %cst_76 : f32 to vector<1x640xf32>
    %169 = vector.extract_strided_slice %138 {offsets = [1, 0], sizes = [31, 640], strides = [1, 1]} : vector<32x640xf32> to vector<31x640xf32>
    %170 = tpu.concatenate %169, %168 in 0 : vector<31x640xf32>, vector<1x640xf32> -> vector<32x640xf32>
    %c3_77 = arith.constant 3 : index
    %c0_78 = arith.constant 0 : index
    %c0_79 = arith.constant 0 : index
    %171 = vector.load %arg2[%c3_77, %c0_78, %c0_79] : memref<5x32x1xf32, #tpu.memory_space<vmem>>, vector<1x32x1xf32>
    %172 = vector.shape_cast %171 : vector<1x32x1xf32> to vector<32x1xf32>
    %173 = vector.broadcast %172 : vector<32x1xf32> to vector<32x640xf32>
    %174 = arith.mulf %170, %173 : vector<32x640xf32>
    %175 = vector.extract_strided_slice %140 {offsets = [3, 0], sizes = [1, 640], strides = [1, 1]} : vector<5x640xf32> to vector<1x640xf32>
    %176 = vector.broadcast %175 : vector<1x640xf32> to vector<32x640xf32>
    %177 = arith.mulf %174, %176 : vector<32x640xf32>
    %178 = arith.addf %167, %177 : vector<32x640xf32>
    %cst_80 = arith.constant 0.000000e+00 : f32
    %179 = vector.broadcast %cst_80 : f32 to vector<2x640xf32>
    %180 = vector.extract_strided_slice %138 {offsets = [2, 0], sizes = [30, 640], strides = [1, 1]} : vector<32x640xf32> to vector<30x640xf32>
    %181 = tpu.concatenate %180, %179 in 0 : vector<30x640xf32>, vector<2x640xf32> -> vector<32x640xf32>
    %c4_81 = arith.constant 4 : index
    %c0_82 = arith.constant 0 : index
    %c0_83 = arith.constant 0 : index
    %182 = vector.load %arg2[%c4_81, %c0_82, %c0_83] : memref<5x32x1xf32, #tpu.memory_space<vmem>>, vector<1x32x1xf32>
    %183 = vector.shape_cast %182 : vector<1x32x1xf32> to vector<32x1xf32>
    %184 = vector.broadcast %183 : vector<32x1xf32> to vector<32x640xf32>
    %185 = arith.mulf %181, %184 : vector<32x640xf32>
    %186 = vector.extract_strided_slice %140 {offsets = [4, 0], sizes = [1, 640], strides = [1, 1]} : vector<5x640xf32> to vector<1x640xf32>
    %187 = vector.broadcast %186 : vector<1x640xf32> to vector<32x640xf32>
    %188 = arith.mulf %185, %187 : vector<32x640xf32>
    %189 = arith.addf %178, %188 : vector<32x640xf32>
    %c2_84 = arith.constant 2 : index
    %c0_85 = arith.constant 0 : index
    %c0_86 = arith.constant 0 : index
    %190 = vector.load %arg4[%c2_84, %c0_85, %c0_86] : memref<4x1x640xf32, #tpu.memory_space<vmem>>, vector<1x1x640xf32>
    %191 = vector.shape_cast %190 : vector<1x1x640xf32> to vector<1x640xf32>
    %192 = vector.broadcast %191 : vector<1x640xf32> to vector<32x640xf32>
    %193 = arith.addf %189, %192 : vector<32x640xf32>
    %194 = arith.truncf %193 : vector<32x640xf32> to vector<32x640xbf16>
    %c2_87 = arith.constant 2 : index
    %c0_88 = arith.constant 0 : index
    %c0_89 = arith.constant 0 : index
    %195 = vector.load %arg5[%c2_87, %c0_88, %c0_89] : memref<4x640x640xbf16, #tpu.memory_space<vmem>>, vector<1x640x640xbf16>
    %196 = vector.shape_cast %195 : vector<1x640x640xbf16> to vector<640x640xbf16>
    %cst_90 = arith.constant dense<0.000000e+00> : vector<32x640xf32>
    %197 = tpu.matmul %194, %196, %cst_90 {dimension_numbers = #tpu.dot_dimension_numbers<[1], [0], [0], [1], [0, 0, 1, 1], [], []>} : vector<32x640xbf16>, vector<640x640xbf16>, vector<32x640xf32> -> vector<32x640xf32>
    %c2_91 = arith.constant 2 : index
    %c0_92 = arith.constant 0 : index
    %c0_93 = arith.constant 0 : index
    %198 = vector.load %arg6[%c2_91, %c0_92, %c0_93] : memref<4x1x640xf32, #tpu.memory_space<vmem>>, vector<1x1x640xf32>
    %199 = vector.shape_cast %198 : vector<1x1x640xf32> to vector<1x640xf32>
    %200 = vector.broadcast %199 : vector<1x640xf32> to vector<32x640xf32>
    %201 = arith.mulf %197, %200 : vector<32x640xf32>
    %c2_94 = arith.constant 2 : index
    %c0_95 = arith.constant 0 : index
    %c0_96 = arith.constant 0 : index
    %202 = vector.load %arg7[%c2_94, %c0_95, %c0_96] : memref<4x1x640xf32, #tpu.memory_space<vmem>>, vector<1x1x640xf32>
    %203 = vector.shape_cast %202 : vector<1x1x640xf32> to vector<1x640xf32>
    %204 = vector.broadcast %203 : vector<1x640xf32> to vector<32x640xf32>
    %205 = arith.addf %201, %204 : vector<32x640xf32>
    %cst_97 = arith.constant 0.000000e+00 : f32
    %206 = vector.broadcast %cst_97 : f32 to vector<32x640xf32>
    %207 = arith.maximumf %205, %206 : vector<32x640xf32>
    %c3_98 = arith.constant 3 : index
    %c0_99 = arith.constant 0 : index
    %c0_100 = arith.constant 0 : index
    %208 = vector.load %arg3[%c3_98, %c0_99, %c0_100] : memref<4x5x640xf32, #tpu.memory_space<vmem>>, vector<1x5x640xf32>
    %209 = vector.shape_cast %208 : vector<1x5x640xf32> to vector<5x640xf32>
    %cst_101 = arith.constant 0.000000e+00 : f32
    %210 = vector.broadcast %cst_101 : f32 to vector<32x640xf32>
    %cst_102 = arith.constant 0.000000e+00 : f32
    %211 = vector.broadcast %cst_102 : f32 to vector<2x640xf32>
    %212 = vector.extract_strided_slice %207 {offsets = [0, 0], sizes = [30, 640], strides = [1, 1]} : vector<32x640xf32> to vector<30x640xf32>
    %213 = tpu.concatenate %211, %212 in 0 : vector<2x640xf32>, vector<30x640xf32> -> vector<32x640xf32>
    %c0_103 = arith.constant 0 : index
    %c0_104 = arith.constant 0 : index
    %c0_105 = arith.constant 0 : index
    %214 = vector.load %arg2[%c0_103, %c0_104, %c0_105] : memref<5x32x1xf32, #tpu.memory_space<vmem>>, vector<1x32x1xf32>
    %215 = vector.shape_cast %214 : vector<1x32x1xf32> to vector<32x1xf32>
    %216 = vector.broadcast %215 : vector<32x1xf32> to vector<32x640xf32>
    %217 = arith.mulf %213, %216 : vector<32x640xf32>
    %218 = vector.extract_strided_slice %209 {offsets = [0, 0], sizes = [1, 640], strides = [1, 1]} : vector<5x640xf32> to vector<1x640xf32>
    %219 = vector.broadcast %218 : vector<1x640xf32> to vector<32x640xf32>
    %220 = arith.mulf %217, %219 : vector<32x640xf32>
    %221 = arith.addf %210, %220 : vector<32x640xf32>
    %cst_106 = arith.constant 0.000000e+00 : f32
    %222 = vector.broadcast %cst_106 : f32 to vector<1x640xf32>
    %223 = vector.extract_strided_slice %207 {offsets = [0, 0], sizes = [31, 640], strides = [1, 1]} : vector<32x640xf32> to vector<31x640xf32>
    %224 = tpu.concatenate %222, %223 in 0 : vector<1x640xf32>, vector<31x640xf32> -> vector<32x640xf32>
    %c1_107 = arith.constant 1 : index
    %c0_108 = arith.constant 0 : index
    %c0_109 = arith.constant 0 : index
    %225 = vector.load %arg2[%c1_107, %c0_108, %c0_109] : memref<5x32x1xf32, #tpu.memory_space<vmem>>, vector<1x32x1xf32>
    %226 = vector.shape_cast %225 : vector<1x32x1xf32> to vector<32x1xf32>
    %227 = vector.broadcast %226 : vector<32x1xf32> to vector<32x640xf32>
    %228 = arith.mulf %224, %227 : vector<32x640xf32>
    %229 = vector.extract_strided_slice %209 {offsets = [1, 0], sizes = [1, 640], strides = [1, 1]} : vector<5x640xf32> to vector<1x640xf32>
    %230 = vector.broadcast %229 : vector<1x640xf32> to vector<32x640xf32>
    %231 = arith.mulf %228, %230 : vector<32x640xf32>
    %232 = arith.addf %221, %231 : vector<32x640xf32>
    %233 = vector.extract_strided_slice %209 {offsets = [2, 0], sizes = [1, 640], strides = [1, 1]} : vector<5x640xf32> to vector<1x640xf32>
    %234 = vector.broadcast %233 : vector<1x640xf32> to vector<32x640xf32>
    %235 = arith.mulf %207, %234 : vector<32x640xf32>
    %236 = arith.addf %232, %235 : vector<32x640xf32>
    %cst_110 = arith.constant 0.000000e+00 : f32
    %237 = vector.broadcast %cst_110 : f32 to vector<1x640xf32>
    %238 = vector.extract_strided_slice %207 {offsets = [1, 0], sizes = [31, 640], strides = [1, 1]} : vector<32x640xf32> to vector<31x640xf32>
    %239 = tpu.concatenate %238, %237 in 0 : vector<31x640xf32>, vector<1x640xf32> -> vector<32x640xf32>
    %c3_111 = arith.constant 3 : index
    %c0_112 = arith.constant 0 : index
    %c0_113 = arith.constant 0 : index
    %240 = vector.load %arg2[%c3_111, %c0_112, %c0_113] : memref<5x32x1xf32, #tpu.memory_space<vmem>>, vector<1x32x1xf32>
    %241 = vector.shape_cast %240 : vector<1x32x1xf32> to vector<32x1xf32>
    %242 = vector.broadcast %241 : vector<32x1xf32> to vector<32x640xf32>
    %243 = arith.mulf %239, %242 : vector<32x640xf32>
    %244 = vector.extract_strided_slice %209 {offsets = [3, 0], sizes = [1, 640], strides = [1, 1]} : vector<5x640xf32> to vector<1x640xf32>
    %245 = vector.broadcast %244 : vector<1x640xf32> to vector<32x640xf32>
    %246 = arith.mulf %243, %245 : vector<32x640xf32>
    %247 = arith.addf %236, %246 : vector<32x640xf32>
    %cst_114 = arith.constant 0.000000e+00 : f32
    %248 = vector.broadcast %cst_114 : f32 to vector<2x640xf32>
    %249 = vector.extract_strided_slice %207 {offsets = [2, 0], sizes = [30, 640], strides = [1, 1]} : vector<32x640xf32> to vector<30x640xf32>
    %250 = tpu.concatenate %249, %248 in 0 : vector<30x640xf32>, vector<2x640xf32> -> vector<32x640xf32>
    %c4_115 = arith.constant 4 : index
    %c0_116 = arith.constant 0 : index
    %c0_117 = arith.constant 0 : index
    %251 = vector.load %arg2[%c4_115, %c0_116, %c0_117] : memref<5x32x1xf32, #tpu.memory_space<vmem>>, vector<1x32x1xf32>
    %252 = vector.shape_cast %251 : vector<1x32x1xf32> to vector<32x1xf32>
    %253 = vector.broadcast %252 : vector<32x1xf32> to vector<32x640xf32>
    %254 = arith.mulf %250, %253 : vector<32x640xf32>
    %255 = vector.extract_strided_slice %209 {offsets = [4, 0], sizes = [1, 640], strides = [1, 1]} : vector<5x640xf32> to vector<1x640xf32>
    %256 = vector.broadcast %255 : vector<1x640xf32> to vector<32x640xf32>
    %257 = arith.mulf %254, %256 : vector<32x640xf32>
    %258 = arith.addf %247, %257 : vector<32x640xf32>
    %c3_118 = arith.constant 3 : index
    %c0_119 = arith.constant 0 : index
    %c0_120 = arith.constant 0 : index
    %259 = vector.load %arg4[%c3_118, %c0_119, %c0_120] : memref<4x1x640xf32, #tpu.memory_space<vmem>>, vector<1x1x640xf32>
    %260 = vector.shape_cast %259 : vector<1x1x640xf32> to vector<1x640xf32>
    %261 = vector.broadcast %260 : vector<1x640xf32> to vector<32x640xf32>
    %262 = arith.addf %258, %261 : vector<32x640xf32>
    %263 = arith.truncf %262 : vector<32x640xf32> to vector<32x640xbf16>
    %c3_121 = arith.constant 3 : index
    %c0_122 = arith.constant 0 : index
    %c0_123 = arith.constant 0 : index
    %264 = vector.load %arg5[%c3_121, %c0_122, %c0_123] : memref<4x640x640xbf16, #tpu.memory_space<vmem>>, vector<1x640x640xbf16>
    %265 = vector.shape_cast %264 : vector<1x640x640xbf16> to vector<640x640xbf16>
    %cst_124 = arith.constant dense<0.000000e+00> : vector<32x640xf32>
    %266 = tpu.matmul %263, %265, %cst_124 {dimension_numbers = #tpu.dot_dimension_numbers<[1], [0], [0], [1], [0, 0, 1, 1], [], []>} : vector<32x640xbf16>, vector<640x640xbf16>, vector<32x640xf32> -> vector<32x640xf32>
    %c3_125 = arith.constant 3 : index
    %c0_126 = arith.constant 0 : index
    %c0_127 = arith.constant 0 : index
    %267 = vector.load %arg6[%c3_125, %c0_126, %c0_127] : memref<4x1x640xf32, #tpu.memory_space<vmem>>, vector<1x1x640xf32>
    %268 = vector.shape_cast %267 : vector<1x1x640xf32> to vector<1x640xf32>
    %269 = vector.broadcast %268 : vector<1x640xf32> to vector<32x640xf32>
    %270 = arith.mulf %266, %269 : vector<32x640xf32>
    %c3_128 = arith.constant 3 : index
    %c0_129 = arith.constant 0 : index
    %c0_130 = arith.constant 0 : index
    %271 = vector.load %arg7[%c3_128, %c0_129, %c0_130] : memref<4x1x640xf32, #tpu.memory_space<vmem>>, vector<1x1x640xf32>
    %272 = vector.shape_cast %271 : vector<1x1x640xf32> to vector<1x640xf32>
    %273 = vector.broadcast %272 : vector<1x640xf32> to vector<32x640xf32>
    %274 = arith.addf %270, %273 : vector<32x640xf32>
    %cst_131 = arith.constant 0.000000e+00 : f32
    %275 = vector.broadcast %cst_131 : f32 to vector<32x640xf32>
    %276 = arith.maximumf %274, %275 : vector<32x640xf32>
    %277 = arith.truncf %276 : vector<32x640xf32> to vector<32x640xbf16>
    %c0_132 = arith.constant 0 : index
    %c0_133 = arith.constant 0 : index
    %278 = vector.load %arg8[%c0_132, %c0_133] : memref<640x256xbf16, #tpu.memory_space<vmem>>, vector<640x256xbf16>
    %cst_134 = arith.constant dense<0.000000e+00> : vector<32x256xf32>
    %279 = tpu.matmul %277, %278, %cst_134 {dimension_numbers = #tpu.dot_dimension_numbers<[1], [0], [0], [1], [0, 0, 1, 1], [], []>} : vector<32x640xbf16>, vector<640x256xbf16>, vector<32x256xf32> -> vector<32x256xf32>
    %c0_135 = arith.constant 0 : index
    %c0_136 = arith.constant 0 : index
    %280 = vector.load %arg9[%c0_135, %c0_136] : memref<1x256xf32, #tpu.memory_space<vmem>>, vector<1x256xf32>
    %281 = vector.broadcast %280 : vector<1x256xf32> to vector<32x256xf32>
    %282 = arith.addf %279, %281 : vector<32x256xf32>
    %cst_137 = arith.constant 0.000000e+00 : f32
    %283 = vector.broadcast %cst_137 : f32 to vector<32x256xf32>
    %284 = arith.maximumf %282, %283 : vector<32x256xf32>
    %285 = arith.truncf %284 : vector<32x256xf32> to vector<32x256xbf16>
    %c0_138 = arith.constant 0 : index
    %c0_139 = arith.constant 0 : index
    %286 = vector.load %arg10[%c0_138, %c0_139] : memref<256x128xbf16, #tpu.memory_space<vmem>>, vector<256x128xbf16>
    %cst_140 = arith.constant dense<0.000000e+00> : vector<32x128xf32>
    %287 = tpu.matmul %285, %286, %cst_140 {dimension_numbers = #tpu.dot_dimension_numbers<[1], [0], [0], [1], [0, 0, 1, 1], [], []>} : vector<32x256xbf16>, vector<256x128xbf16>, vector<32x128xf32> -> vector<32x128xf32>
    %c0_141 = arith.constant 0 : index
    %c0_142 = arith.constant 0 : index
    %288 = vector.load %arg11[%c0_141, %c0_142] : memref<1x128xf32, #tpu.memory_space<vmem>>, vector<1x128xf32>
    %289 = vector.broadcast %288 : vector<1x128xf32> to vector<32x128xf32>
    %290 = arith.addf %287, %289 : vector<32x128xf32>
    %c0_143 = arith.constant 0 : index
    %c0_144 = arith.constant 0 : index
    %291 = vector.load %arg12[%c0_143, %c0_144] : memref<32x128xf32, #tpu.memory_space<vmem>>, vector<32x128xf32>
    tpu.vector_store %arg12[%c0_143, %c0_144], %290 {strides = array<i32>} : memref<32x128xf32, #tpu.memory_space<vmem>>, vector<32x128xf32>,
    return
  }
  func.func @transform_0(%arg0: i32) -> (i32, i32) {
    %c0_i32 = arith.constant 0 : i32
    %c0_i32_0 = arith.constant 0 : i32
    %c0_i32_1 = arith.constant 0 : i32
    return %c0_i32, %c0_i32_0 : i32, i32
  }
  func.func @transform_1(%arg0: i32) -> (i32, i32, i32) {
    %c0_i32 = arith.constant 0 : i32
    %c0_i32_0 = arith.constant 0 : i32
    %c0_i32_1 = arith.constant 0 : i32
    %c0_i32_2 = arith.constant 0 : i32
    return %c0_i32, %c0_i32_0, %c0_i32_1 : i32, i32, i32
  }
  func.func @transform_2(%arg0: i32) -> (i32, i32, i32) {
    %c0_i32 = arith.constant 0 : i32
    %c0_i32_0 = arith.constant 0 : i32
    %c0_i32_1 = arith.constant 0 : i32
    %c0_i32_2 = arith.constant 0 : i32
    return %c0_i32, %c0_i32_0, %c0_i32_1 : i32, i32, i32
  }
  func.func @transform_3(%arg0: i32) -> (i32, i32, i32) {
    %c0_i32 = arith.constant 0 : i32
    %c0_i32_0 = arith.constant 0 : i32
    %c0_i32_1 = arith.constant 0 : i32
    %c0_i32_2 = arith.constant 0 : i32
    return %c0_i32, %c0_i32_0, %c0_i32_1 : i32, i32, i32
  }
  func.func @transform_4(%arg0: i32) -> (i32, i32, i32) {
    %c0_i32 = arith.constant 0 : i32
    %c0_i32_0 = arith.constant 0 : i32
    %c0_i32_1 = arith.constant 0 : i32
    %c0_i32_2 = arith.constant 0 : i32
    return %c0_i32, %c0_i32_0, %c0_i32_1 : i32, i32, i32
  }
  func.func @transform_5(%arg0: i32) -> (i32, i32, i32) {
    %c0_i32 = arith.constant 0 : i32
    %c0_i32_0 = arith.constant 0 : i32
    %c0_i32_1 = arith.constant 0 : i32
    %c0_i32_2 = arith.constant 0 : i32
    return %c0_i32, %c0_i32_0, %c0_i32_1 : i32, i32, i32
  }
  func.func @transform_6(%arg0: i32) -> (i32, i32, i32) {
    %c0_i32 = arith.constant 0 : i32
    %c0_i32_0 = arith.constant 0 : i32
    %c0_i32_1 = arith.constant 0 : i32
    %c0_i32_2 = arith.constant 0 : i32
    return %c0_i32, %c0_i32_0, %c0_i32_1 : i32, i32, i32
  }
  func.func @transform_7(%arg0: i32) -> (i32, i32) {
    %c0_i32 = arith.constant 0 : i32
    %c0_i32_0 = arith.constant 0 : i32
    %c0_i32_1 = arith.constant 0 : i32
    return %c0_i32, %c0_i32_0 : i32, i32
  }
  func.func @transform_8(%arg0: i32) -> (i32, i32) {
    %c0_i32 = arith.constant 0 : i32
    %c0_i32_0 = arith.constant 0 : i32
    %c0_i32_1 = arith.constant 0 : i32
    return %c0_i32, %c0_i32_0 : i32, i32
  }
  func.func @transform_9(%arg0: i32) -> (i32, i32) {
    %c0_i32 = arith.constant 0 : i32
    %c0_i32_0 = arith.constant 0 : i32
    %c0_i32_1 = arith.constant 0 : i32
    return %c0_i32, %c0_i32_0 : i32, i32
  }
  func.func @transform_10(%arg0: i32) -> (i32, i32) {
    %c0_i32 = arith.constant 0 : i32
    %c0_i32_0 = arith.constant 0 : i32
    %c0_i32_1 = arith.constant 0 : i32
    return %c0_i32, %c0_i32_0 : i32, i32
  }
  func.func @transform_11(%arg0: i32) -> (i32, i32) {
    %c0_i32 = arith.constant 0 : i32
    %c0_i32_0 = arith.constant 0 : i32
    %c0_i32_1 = arith.constant 0 : i32
    return %c0_i32, %c0_i32_0 : i32, i32
  }
}

</mosaic_0001>

<bundles_post_ra>
// kernel: jungmin5_forward.1
= control target key start
LH: loop header
LB: loop body
LE: loop exit
PB: predicated region body
PF: predicated region fallthrough
CT: control target
= control target key end

     0   :  { %16 = vsyncpa [#allocation3], 0  ;;  %s20064_s0 = inlined_call_operand.vmem [shape: f32[32,640], index: 0, kind: input, shape index: {}]   ;;  %s20065_s1 = inlined_call_operand.hbm [shape: f32[5,32,1], index: 1, kind: input, shape index: {}]   ;;  %s20066_s2 = inlined_call_operand.vmem [shape: f32[4,5,640], index: 2, kind: input, shape index: {}]   ;;  %s20067_s3 = inlined_call_operand.hbm [shape: f32[4,1,640], index: 3, kind: input, shape index: {}]   ;;  %s20068_s4 = inlined_call_operand.hbm [shape: bf16[4,640,640], index: 4, kind: input, shape index: {}]   ;;  %s20069_s5 = inlined_call_operand.hbm [shape: f32[4,1,640], index: 5, kind: input, shape index: {}]   ;;  %s20070_s6 = inlined_call_operand.hbm [shape: f32[4,1,640], index: 6, kind: input, shape index: {}]   ;;  %s20071_s7 = inlined_call_operand.hbm [shape: bf16[640,256], index: 7, kind: input, shape index: {}]   ;;  %s20072_s8 = inlined_call_operand.hbm [shape: f32[1,256], index: 8, kind: input, shape index: {}]   ;;  %s20073_s9 = inlined_call_operand.hbm [shape: bf16[256,128], index: 9, kind: input, shape index: {}]   ;;  %s20074_s10 = inlined_call_operand.hbm [shape: f32[1,128], index: 10, kind: input, shape index: {}]   ;;  %s20075_s11 = inlined_call_operand.vmem [shape: f32[32,128], index: 11, kind: output, shape index: {}]  }
   0x1   :  { %17 = vsyncpa [#allocation5], 0 }
   0x2   :  { %18 = vsyncpa [#allocation8], 0 }
   0x3   :  { %19 = vsyncpa [#allocation11], 0  ;;  %s42_s19 = sshll.u32 %s20067_s3, 4  ;;  %s43_s19 = int_to_ptr.hbm [resolvable:$true] %s42_s19 }
   0x4   :  { %20 = vsyncpa [#allocation14], 0  ;;  %s15750_s20 = smov [#allocation4]   ;;  %s68_s24 = sshll.u32 %s20069_s5, 4  ;;  %s69_s24 = int_to_ptr.hbm [resolvable:$true] %s68_s24 }
   0x5   :  { %s44_s21 = sshll.u32 %s15750_s20, 4  ;;  %s15751_s25 = smov 80   ;;  %s45_s21 = int_to_ptr.vmem [resolvable:$true] %s44_s21 }
   0x6   :  { %s15752_s26 = smov 5   ;;  %s15753_s27 = smov [#allocation7]  }
   0x7   :  { %50 = dma.hbm_to_vmem [thread:$0]  %s43_s19, 320, %s45_s21, [#allocation5], %s15751_s25, %s15751_s25, %s15752_s26  }
   0x8   :  { %s70_s28 = sshll.u32 %s15753_s27, 4  ;;  %s94_s30 = sshll.u32 %s20071_s7, 4  ;;  %s71_s28 = int_to_ptr.vmem [resolvable:$true] %s70_s28  ;;  %s95_s30 = int_to_ptr.hbm [resolvable:$true] %s94_s30 }
   0x9   :  { %76 = dma.hbm_to_vmem [thread:$0]  %s69_s24, 320, %s71_s28, [#allocation8], %s15751_s25, %s15751_s25, %s15752_s26  }
   0xa   :  { %s15754_s5 = smov [#allocation10]   ;;  %s118_s15 = sshll.u32 %s20073_s9, 4  ;;  %s119_s15 = int_to_ptr.hbm [resolvable:$true] %s118_s15 }
   0xb   :  { %s96_s12 = sshll.u32 %s15754_s5, 4  ;;  %s15755_s16 = smov 128   ;;  %s97_s12 = int_to_ptr.vmem [resolvable:$true] %s96_s12 }
   0xc   :  { %s15756_s17 = smov 8   ;;  %s15757_s18 = smov [#allocation13]  }
   0xd   :  { %102 = dma.hbm_to_vmem [thread:$0]  %s95_s30, 10240, %s97_s12, [#allocation11], %s15755_s16, %s15755_s16, %s15756_s17  }
   0xe   :  { %s120_s19 = sshll.u32 %s15757_s18, 4  ;;  %s15758_s20 = smov 64   ;;  %s121_s19 = int_to_ptr.vmem [resolvable:$true] %s120_s19 }
   0xf   :  { %s15759_s21 = smov 4   ;;  %s27_s23 = sshll.u32 %s20065_s1, 4  ;;  %s28_s23 = int_to_ptr.hbm [resolvable:$true] %s27_s23 }
  0x10   :  { %126 = dma.hbm_to_vmem [thread:$0]  %s119_s15, 2048, %s121_s19, [#allocation14], %s15758_s20, %s15758_s20, %s15759_s21  }
  0x11   :  { %s15760_s24 = smov [#allocation2]   ;;  %s55_s3 = sshll.u32 %s20068_s4, 4  ;;  %s56_s3 = int_to_ptr.hbm [resolvable:$true] %s55_s3 }
  0x12   :  { %s29_s27 = sshll.u32 %s15760_s24, 4  ;;  %s15761_s29 = smov [#allocation6]   ;;  %s30_s27 = int_to_ptr.vmem [resolvable:$true] %s29_s27 }
  0x13   :  { %35 = dma.hbm_to_vmem [thread:$0]  %s28_s23, 2560, %s30_s27, [#allocation3], %s15755_s16, %s15755_s16, %s15756_s17  }
  0x14   :  { %s57_s30 = sshll.u32 %s15761_s29, 4  ;;  %s15762_s5 = smov 320   ;;  %s58_s30 = int_to_ptr.vmem [resolvable:$true] %s57_s30 }
  0x15   :  { %s15763_s12 = smov 20   ;;  %s81_s1 = sshll.u32 %s20070_s6, 4  ;;  %s82_s1 = int_to_ptr.hbm [resolvable:$true] %s81_s1 }
  0x16   :  { %63 = dma.hbm_to_vmem [thread:$0]  %s56_s3, 102400, %s58_s30, [#allocation5], %s15762_s5, %s15762_s5, %s15763_s12  }
  0x17   :  { %s15764_s15 = smov [#allocation9]   ;;  %s108_s4 = sshll.u32 %s20072_s8, 4  ;;  %s109_s4 = int_to_ptr.hbm [resolvable:$true] %s108_s4 }
  0x18   :  { %s83_s18 = sshll.u32 %s15764_s15, 4  ;;  %s15765_s16 = smov [#allocation12]   ;;  %s84_s18 = int_to_ptr.vmem [resolvable:$true] %s83_s18 }
  0x19   :  { %89 = dma.hbm_to_vmem [thread:$0]  %s82_s1, 320, %s84_s18, [#allocation8], %s15751_s25, %s15751_s25, %s15752_s26  }
  0x1a   :  { %s110_s17 = sshll.u32 %s15765_s16, 4  ;;  %s132_s7 = sshll.u32 %s20074_s10, 4  ;;  %s111_s17 = int_to_ptr.vmem [resolvable:$true] %s110_s17  ;;  %s133_s7 = int_to_ptr.hbm [resolvable:$true] %s132_s7 }
  0x1b   :  { %113 = dma.hbm_to_vmem [thread:$0]  %s109_s4, 32, %s111_s17, [#allocation11]  }
  0x1c   :  { %s15766_s6 = smov [#allocation15]  }
  0x1d   :  { %s134_s23 = sshll.u32 %s15766_s6, 4  ;;  %s135_s23 = int_to_ptr.vmem [resolvable:$true] %s134_s23 }
  0x1e   :  { %137 = dma.hbm_to_vmem [thread:$0]  %s133_s7, 16, %s135_s23, [#allocation14]  }
  0x1f   :  { %15740 = dma.done.wait [#allocation3], 2560  }
  0x20   :  { %15741 = vsyncadd [#allocation3], 4294964736 }
  0x21   :  { %15742 = dma.done.wait [#allocation5], 102720  }
  0x22   :  { %15743 = vsyncadd [#allocation5], 4294864576 }
  0x23   :  { %15744 = dma.done.wait [#allocation8], 640  }
  0x24   :  { %15745 = vsyncadd [#allocation8], 4294966656 }
  0x25   :  { %15746 = dma.done.wait [#allocation11], 10272  }
  0x26   :  { %15747 = vsyncadd [#allocation11], 4294957024 }
  0x27   :  { %15748 = dma.done.wait [#allocation14], 2064  }
  0x28   :  { %15749 = vsyncadd [#allocation14], 4294965232  ;;  %v15767_v0 = vmov 0   ;;  %v627_v1 = vld [vmem:[#allocation2 + $0x60] sm:$0xff]  ;;  %v628_v4 = vld [vmem:[#allocation2 + $0x68] sm:$0xff]  ;;  %vm219_vm0 = vcmask 1041408  }
  0x29   :  { %15512 = vset.pattern.permute.xlu2 %v15767_v0  ;;  %15511 = vset.pattern.permute.xlu1 %v15767_v0  ;;  %v431_v2 = vld [vmem:[#allocation2 + $0x20] sm:$0xff]  ;;  %v432_v5 = vld [vmem:[#allocation2 + $0x28] sm:$0xff]  ;;  %v282_v8 = vld [vmem:[#allocation2 + $0x10] sm:$0xff]  ;;  %vm369_vm1 = vcmask 1040384   ;;  %vm565_vm2 = vcmask 1046528   ;;  %vm716_vm3 = vcmask 1045504  }
  0x2a   :  { %15510 = vset.pattern.permute.xlu0 %v15767_v0  ;;  %v280_v3 = vld [vmem:[#allocation2] sm:$0xff]  ;;  %633 = vperm.xlu2 %15512, %v627_v1   ;;  %v281_v6 = vld [vmem:[#allocation2 + $0x8] sm:$0xff]  ;;  %v433_v10 = vld [vmem:[#allocation2 + $0x30] sm:$0xff] }
  0x2b   :  { %437 = vperm.xlu1 %15511, %v431_v2   ;;  %286 = vperm.xlu0 %15510, %v280_v3   ;;  %v779_v7 = vld [vmem:[#allocation2 + $0x88] sm:$0xff]  ;;  %v778_v9 = vld [vmem:[#allocation2 + $0x80] sm:$0xff]  ;;  %v434_v11 = vld [vmem:[#allocation2 + $0x38] sm:$0xff] }
  0x2c   :  { %v283_v12 = vld [vmem:[#allocation2 + $0x18] sm:$0xff]  ;;  %v780_v14 = vld [vmem:[#allocation2 + $0x90] sm:$0xff]  ;;  %v11139_v17 = vld [vmem:[#allocation6 + $0x118] sm:$0xf] }
  0x2d   :  { %v630_v13 = vld [vmem:[#allocation2 + $0x78] sm:$0xff]  ;;  %v629_v15 = vld [vmem:[#allocation2 + $0x70] sm:$0xff]  ;;  %v14633_v18 = vld [vmem:[#allocation6 + $0x128] sm:$0xf0] }
  0x2e   :  { %v781_v16 = vld [vmem:[#allocation2 + $0x98] sm:$0xff]  ;;  %v11299_v19 = vld [vmem:[#allocation6 + $0x258] sm:$0xf]  ;;  %v11140_v20 = vor.u32 %v14633_v18, %v11139_v17  ;;  %v14673_v21 = vld [vmem:[#allocation6 + $0x268] sm:$0xf0] }
  0x2f   :  { %v11459_v22 = vld [vmem:[#allocation6 + $0x398] sm:$0xf]  ;;  %v14713_v23 = vld [vmem:[#allocation6 + $0x3a8] sm:$0xf0]  ;;  %v11300_v24 = vor.u32 %v14673_v21, %v11299_v19  ;;  %v11119_v28 = vld [vmem:[#allocation6 + $0xf0] sm:$0xf] }
  0x30   :  { %v11460_v25 = vor.u32 %v14713_v23, %v11459_v22  ;;  %v11619_v26 = vld [vmem:[#allocation6 + $0x4d8] sm:$0xf]  ;;  %v14753_v27 = vld [vmem:[#allocation6 + $0x4e8] sm:$0xf0]  ;;  %2189 = vmatpush.bf16.msra.mxu0 %v11140_v20  ;;  %v14628_v30 = vld [vmem:[#allocation6 + $0x100] sm:$0xf0] }
  0x31   :  { %v11620_v29 = vor.u32 %v14753_v27, %v11619_v26  ;;  %v11279_v31 = vld [vmem:[#allocation6 + $0x230] sm:$0xf]  ;;  %v14668_v32 = vld [vmem:[#allocation6 + $0x240] sm:$0xf0]  ;;  %2208 = vmatpush.bf16.msra.mxu1 %v11300_v24  ;;  %v11120_v33 = vor.u32 %v14628_v30, %v11119_v28  ;;  %v15872_v42 = vld [vmem:[%s20064_s0 + $0x8] sm:$0xff] }
  0x32   :  { %638 = vperm.xlu2 %15512, %v628_v4   ;;  %2227 = vmatpush.bf16.msra.mxu2 %v11460_v25  ;;  %v11280_v34 = vor.u32 %v14668_v32, %v11279_v31  ;;  %v11439_v35 = vld [vmem:[#allocation6 + $0x370] sm:$0xf]  ;;  %v14708_v36 = vld [vmem:[#allocation6 + $0x380] sm:$0xf0]  ;;  %v221_v45 = vrot.slane %v15872_v42, 6  ;;  %v371_v46 = vrot.slane %v15872_v42, 7 }
  0x33   :  { %442 = vperm.xlu1 %15511, %v432_v5   ;;  %291 = vperm.xlu0 %15510, %v281_v6   ;;  %v11599_v37 = vld [vmem:[#allocation6 + $0x4b0] sm:$0xf]  ;;  %v11440_v38 = vor.u32 %v14708_v36, %v11439_v35  ;;  %v14748_v39 = vld [vmem:[#allocation6 + $0x4c0] sm:$0xf0]  ;;  %v11099_v47 = vld [vmem:[#allocation6 + $0xc8] sm:$0xf] }
  0x34   :  { %2246 = vmatpush.bf16.msra.mxu3 %v11620_v29  ;;  %v11600_v40 = vor.u32 %v14748_v39, %v11599_v37  ;;  %v15867_v41 = vld [vmem:[%s20064_s0] sm:$0xff]  ;;  %2190 = vmatpush.bf16.msra.mxu0 %v11120_v33  ;;  %v14623_v48 = vld [vmem:[#allocation6 + $0xd8] sm:$0xf0]  ;;  %v11259_v49 = vld [vmem:[#allocation6 + $0x208] sm:$0xf] }
  0x35   :  { %v220_v43 = vrot.slane %v15867_v41, 6  ;;  %v370_v44 = vrot.slane %v15867_v41, 7  ;;  %2209 = vmatpush.bf16.msra.mxu1 %v11280_v34  ;;  %v15881_v50 = vld [vmem:[%s20064_s0 + $0x10] sm:$0xff]  ;;  %v11100_v51 = vor.u32 %v14623_v48, %v11099_v47  ;;  %v11419_v53 = vld [vmem:[#allocation6 + $0x348] sm:$0xf]  ;;  %v566_v19 = vrot.slane %v15867_v41, 1 }
  0x36   :  { %2228 = vmatpush.bf16.msra.mxu2 %v11440_v38  ;;  %v14663_v52 = vld [vmem:[#allocation6 + $0x218] sm:$0xf0]  ;;  %v11579_v57 = vld [vmem:[#allocation6 + $0x488] sm:$0xf]  ;;  %v11079_v59 = vld [vmem:[#allocation6 + $0xa0] sm:$0xf] }
  0x37   :  { %v14703_v54 = vld [vmem:[#allocation6 + $0x358] sm:$0xf0]  ;;  %v11260_v55 = vor.u32 %v14663_v52, %v11259_v49  ;;  %v14618_v61 = vld [vmem:[#allocation6 + $0xb0] sm:$0xf0]  ;;  %v11239_v62 = vld [vmem:[#allocation6 + $0x1e0] sm:$0xf] }
  0x38   :  { %2247 = vmatpush.bf16.msra.mxu3 %v11600_v40  ;;  %v11420_v56 = vor.u32 %v14703_v54, %v11419_v53  ;;  %v14743_v58 = vld [vmem:[#allocation6 + $0x498] sm:$0xf0]  ;;  %2191 = vmatpush.bf16.msra.mxu0 %v11100_v51  ;;  %v14658_v63 = vld [vmem:[#allocation6 + $0x1f0] sm:$0xf0]  ;;  %v11080_v0 = vor.u32 %v14618_v61, %v11079_v59  ;;  %v11399_v2 = vld [vmem:[#allocation6 + $0x320] sm:$0xf] }
  0x39   :  { %v11580_v60 = vor.u32 %v14743_v58, %v11579_v57  ;;  %2210 = vmatpush.bf16.msra.mxu1 %v11260_v55  ;;  %v11240_v1 = vor.u32 %v14658_v63, %v11239_v62  ;;  %v14698_v3 = vld [vmem:[#allocation6 + $0x330] sm:$0xf0]  ;;  %v11559_v4 = vld [vmem:[#allocation6 + $0x460] sm:$0xf]  ;;  %v11059_v20 = vld [vmem:[#allocation6 + $0x78] sm:$0xf] }
  0x3a   :  { %296 = vperm.xlu2 %15512, %v282_v8   ;;  %2229 = vmatpush.bf16.msra.mxu2 %v11420_v56  ;;  %v11400_v5 = vor.u32 %v14698_v3, %v11399_v2  ;;  %v14738_v6 = vld [vmem:[#allocation6 + $0x470] sm:$0xf0]  ;;  %v15891_v8 = vsel %vm219_vm0, 0.0, %v220_v43  ;;  %v14613_v21 = vld [vmem:[#allocation6 + $0x88] sm:$0xf0]  ;;  %v15919_v23 = vld [vmem:[%s20064_s0 + $0x50] sm:$0xff] }
  0x3b   :  { %789 = vperm.xlu1 %15511, %v779_v7   ;;  %784 = vperm.xlu0 %15510, %v778_v9   ;;  %v15886_v7 = vld [vmem:[%s20064_s0 + $0x28] sm:$0xff]  ;;  %v222_v9 = vrot.slane %v15881_v50, 6  ;;  %v11060_v24 = vor.u32 %v14613_v21, %v11059_v20  ;;  %v14653_v25 = vld [vmem:[#allocation6 + $0x1c8] sm:$0xf0]  ;;  %v11039_v32 = vld [vmem:[#allocation6 + $0x50] sm:$0xf] }
  0x3c   :  { %2248 = vmatpush.bf16.msra.mxu3 %v11580_v60  ;;  %2192 = vmatpush.bf16.msra.mxu0 %v11080_v0  ;;  %v11219_v22 = vld [vmem:[#allocation6 + $0x1b8] sm:$0xf]  ;;  %v14693_v27 = vld [vmem:[#allocation6 + $0x308] sm:$0xf0]  ;;  %v14608_v34 = vld [vmem:[#allocation6 + $0x60] sm:$0xf0] }
  0x3d   :  { %2211 = vmatpush.bf16.msra.mxu1 %v11240_v1  ;;  %v11379_v26 = vld [vmem:[#allocation6 + $0x2f8] sm:$0xf]  ;;  %v11220_v28 = vor.u32 %v14653_v25, %v11219_v22  ;;  %v14733_v31 = vld [vmem:[#allocation6 + $0x448] sm:$0xf0]  ;;  %v11199_v35 = vld [vmem:[#allocation6 + $0x190] sm:$0xf]  ;;  %v11040_v37 = vor.u32 %v14608_v34, %v11039_v32 }
  0x3e   :  { %2230 = vmatpush.bf16.msra.mxu2 %v11400_v5  ;;  %v11380_v29 = vor.u32 %v14693_v27, %v11379_v26  ;;  %v11539_v30 = vld [vmem:[#allocation6 + $0x438] sm:$0xf]  ;;  %v14648_v36 = vld [vmem:[#allocation6 + $0x1a0] sm:$0xf0]  ;;  %v11359_v39 = vld [vmem:[#allocation6 + $0x2d0] sm:$0xf] }
  0x3f   :  { %v11540_v33 = vor.u32 %v14733_v31, %v11539_v30  ;;  %v11200_v38 = vor.u32 %v14648_v36, %v11199_v35  ;;  %v14688_v40 = vld [vmem:[#allocation6 + $0x2e0] sm:$0xf0]  ;;  %v11519_v47 = vld [vmem:[#allocation6 + $0x410] sm:$0xf]  ;;  %v567_v52 = vrot.slane %v15886_v7, 1  ;;  %v20082_v53 = vrot.slane %v15919_v23, 1 }
  0x40   :  { %2193 = vmatpush.bf16.msra.mxu0 %v11060_v24  ;;  %v11360_v48 = vor.u32 %v14688_v40, %v11359_v39  ;;  %v14728_v49 = vld [vmem:[#allocation6 + $0x420] sm:$0xf0]  ;;  %v717_v56 = vrot.slane %v15867_v41, 2  ;;  %v718_v59 = vrot.slane %v15886_v7, 2  ;;  %v20081_v60 = vrot.slane %v15919_v23, 2  ;;  %v15964_v27 = vld [vmem:[%s20064_s0 + $0x30] sm:$0xff] }
  0x41   :  { %2212 = vmatpush.bf16.msra.mxu1 %v11220_v28  ;;  %v11520_v54 = vor.u32 %v14728_v49, %v11519_v47  ;;  %v568_v57 = vsel %vm565_vm2, %v566_v19, %v567_v52  ;;  %v582_v58 = vsel %vm565_vm2, %v567_v52, %v20082_v53  ;;  %v11019_v62 = vld [vmem:[#allocation6 + $0x28] sm:$0xf]  ;;  %v14603_v63 = vld [vmem:[#allocation6 + $0x38] sm:$0xf0]  ;;  %v195_v19 = vld [vmem:[%s20066_s2 + $0x8] sm:$0x1f] }
  0x42   :  { %452 = vperm.xlu2 %15512, %v434_v11   ;;  %v11560_v11 = vor.u32 %v14738_v6, %v11559_v4  ;;  %2231 = vmatpush.bf16.msra.mxu2 %v11380_v29  ;;  %v11179_v0 = vld [vmem:[#allocation6 + $0x168] sm:$0xf]  ;;  %v11020_v2 = vor.u32 %v14603_v63, %v11019_v62  ;;  %v14643_v3 = vld [vmem:[#allocation6 + $0x178] sm:$0xf0]  ;;  %v10999_v25 = vld [vmem:[#allocation6] sm:$0xf] }
  0x43   :  { %447 = vperm.xlu1 %15511, %v433_v10   ;;  %301 = vperm.xlu0 %15510, %v283_v12   ;;  %v372_v10 = vrot.slane %v15881_v50, 7  ;;  %v15898_v12 = vld [vmem:[%s20066_s2] sm:$0x1f]  ;;  %v11339_v4 = vld [vmem:[#allocation6 + $0x2a8] sm:$0xf]  ;;  %v11180_v20 = vor.u32 %v14643_v3, %v11179_v0  ;;  %20239 = vst [vmem:[#allocation24_spill] sm:$0xff] %v15964_v27 }
  0x44   :  { %v15910_v17 = vperm.slane %v15898_v12, 0  ;;  %v15913_v18 = vperm.slane %v15898_v12, 1  ;;  %2249 = vmatpush.bf16.msra.mxu3 %v11560_v11  ;;  %v15922_v51 = vperm.slane %v15898_v12, 2  ;;  %v15927_v55 = vperm.slane %v15898_v12, 3  ;;  %2194 = vmatpush.bf16.msra.mxu0 %v11040_v37  ;;  %v14683_v5 = vld [vmem:[#allocation6 + $0x2b8] sm:$0xf0] }
  0x45   :  { %2213 = vmatpush.bf16.msra.mxu1 %v11200_v38  ;;  %v11340_v21 = vor.u32 %v14683_v5, %v11339_v4  ;;  %v11499_v22 = vld [vmem:[#allocation6 + $0x3e8] sm:$0xf]  ;;  %v14723_v24 = vld [vmem:[#allocation6 + $0x3f8] sm:$0xf0]  ;;  %v14598_v29 = vld [vmem:[#allocation6 + $0x10] sm:$0xf0] }
  0x46   :  { %20237 = vst [vmem:[#allocation22_spill] sm:$0xff] %v15927_v55  ;;  %2232 = vmatpush.bf16.msra.mxu2 %v11360_v48  ;;  %v11500_v28 = vor.u32 %v14723_v24, %v11499_v22  ;;  %v11159_v30 = vld [vmem:[#allocation6 + $0x140] sm:$0xf]  ;;  %v14638_v31 = vld [vmem:[#allocation6 + $0x150] sm:$0xf0]  ;;  %v15968_v32 = vmul.f32 %v15922_v51, %v15886_v7  ;;  %v11000_v34 = vor.u32 %v14598_v29, %v10999_v25  ;;  %v15990_v49 = vperm.slane %v15898_v12, 4 }
  0x47   :  { %v11160_v35 = vor.u32 %v14638_v31, %v11159_v30  ;;  %v11319_v36 = vld [vmem:[#allocation6 + $0x280] sm:$0xf]  ;;  %v14678_v37 = vld [vmem:[#allocation6 + $0x290] sm:$0xf0]  ;;  %v15992_v52 = vld [vmem:[#allocation4] sm:$0x1f] }
  0x48   :  { %2250 = vmatpush.bf16.msra.mxu3 %v11540_v33  ;;  %2195 = vmatpush.bf16.msra.mxu0 %v11020_v2  ;;  %v15981_v33 = vld [vmem:[%s20064_s0 + $0x58] sm:$0xff]  ;;  %v11479_v38 = vld [vmem:[#allocation6 + $0x3c0] sm:$0xf]  ;;  %v11320_v40 = vor.u32 %v14678_v37, %v11319_v36  ;;  %v14718_v47 = vld [vmem:[#allocation6 + $0x3d0] sm:$0xf0]  ;;  %v20079_v62 = vrot.slane %v15964_v27, 7 }
  0x49   :  { %20240 = vst [vmem:[#allocation25_spill] sm:$0xff] %v15981_v33  ;;  %2214 = vmatpush.bf16.msra.mxu1 %v11180_v20  ;;  %v426_v63 = vsel %vm369_vm1, 0.0, %v371_v46  ;;  %v16014_v0 = vperm.slane %v195_v19, 1  ;;  %v569_v2 = vrot.slane %v15872_v42, 1  ;;  %v570_v3 = vrot.slane %v15964_v27, 1  ;;  %v16054_v31 = vld [vmem:[%s20064_s0 + $0x38] sm:$0xff] }
  0x4a   :  { %794 = vperm.xlu2 %15512, %v780_v14   ;;  %v20083_v14 = vrot.slane %v15886_v7, 7  ;;  %2233 = vmatpush.bf16.msra.mxu2 %v11340_v21  ;;  %v20077_v4 = vrot.slane %v15981_v33, 1  ;;  %v16028_v5 = vperm.slane %v195_v19, 3  ;;  %v721_v20 = vrot.slane %v15964_v27, 2  ;;  %v196_v25 = vld [vmem:[%s20066_s2 + $0x10] sm:$0x1f] }
  0x4b   :  { %648 = vperm.xlu1 %15511, %v630_v13   ;;  %643 = vperm.xlu0 %15510, %v629_v15   ;;  %v20084_v13 = vrot.slane %v15886_v7, 6  ;;  %v15905_v15 = vsel %vm369_vm1, 0.0, %v370_v44  ;;  %v571_v24 = vsel %vm565_vm2, %v569_v2, %v570_v3  ;;  %v20076_v30 = vrot.slane %v15981_v33, 2  ;;  %v16064_v36 = vld [vmem:[%s20064_s0 + $0x60] sm:$0xff] }
  0x4c   :  { %2251 = vmatpush.bf16.msra.mxu3 %v11520_v54  ;;  %v15955_v26 = vsel %vm369_vm1, %v370_v44, %v20083_v14  ;;  %v15971_v44 = vsel %vm716_vm3, %v717_v56, %v718_v59  ;;  %v20080_v54 = vrot.slane %v15964_v27, 6  ;;  %v11480_v56 = vor.u32 %v14718_v47, %v11479_v38  ;;  %2196 = vmatpush.bf16.msra.mxu0 %v11000_v34 }
  0x4d   :  { %v15944_v6 = vsel %vm219_vm0, %v220_v43, %v20084_v13  ;;  %v15959_v43 = vmul.f32 %v15922_v51, %v15867_v41  ;;  %v15976_v41 = vsel %vm716_vm3, %v718_v59, %v20081_v60  ;;  %v16001_v59 = vperm.slane %v195_v19, 0  ;;  %2215 = vmatpush.bf16.msra.mxu1 %v11160_v35  ;;  %20242 = vst [vmem:[#allocation27_spill] sm:$0xff] %v16028_v5 }
  0x4e   :  { %v16008_v12 = vsel %vm219_vm0, %v221_v45, %v20080_v54  ;;  %2234 = vmatpush.bf16.msra.mxu2 %v11320_v40  ;;  %v16056_v34 = vperm.slane %v195_v19, 4  ;;  %v16059_v35 = vperm.slane %v15992_v52, 1  ;;  %v20078_v37 = vrot.slane %v16054_v31, 6 }
  0x4f   :  { %v277_v38 = vsel %vm219_vm0, 0.0, %v222_v9 }
  0x50   :  { %2252 = vmatpush.bf16.msra.mxu3 %v11500_v28  ;;  %v230_v2 = vsel %vm219_vm0, %v222_v9, %v20078_v37 }
  0x53   :  { %799 = vperm.xlu0 %15510, %v781_v16  }
  0x54   :  { %2253 = vmatpush.bf16.msra.mxu3 %v11480_v56  ;;  %v16079_v56 = vperm.slane %v196_v25, 0 }
  0x84   :  { %v15907_v16 = vpop.permute.xlu2 %633 }
  0x85   :  { %20236 = vst [vmem:[#allocation21_spill] sm:$0xff] %v15907_v16  ;;  %v651_v1 = vmul.f32 %v15907_v16, %v568_v57  ;;  %v15996_v57 = vperm.slane %v15992_v52, 0  ;;  %v652_v28 = vmul.f32 %v15907_v16, %v571_v24  ;;  %v16090_v24 = vperm.slane %v196_v25, 1 }
  0x87   :  { %v15984_v39 = vmul.f32 %v15927_v55, %v651_v1  ;;  %v16016_v1 = vperm.slane %v195_v19, 2  ;;  %v677_v40 = vmul.f32 %v16028_v5, %v652_v28  ;;  %v16077_v19 = vsel %vm716_vm3, %v721_v20, %v20076_v30 }
  0x88   :  { %v572_v28 = vrot.slane %v15881_v50, 1 }
  0x89   :  { %20241 = vst [vmem:[#allocation26_spill] sm:$0xff] %v16016_v1  ;;  %v526_v21 = vmul.f32 %v16016_v1, %v15872_v42  ;;  %v16036_v22 = vmul.f32 %v16016_v1, %v15964_v27 }
  0x8c   :  { %v15936_v61 = vpop.permute.xlu2 %638 }
  0x8d   :  { %20238 = vst [vmem:[#allocation23_spill] sm:$0xff] %v15936_v61  ;;  %v656_v11 = vmul.f32 %v15936_v61, %v582_v58  ;;  %v276_v58 = vsel %vm219_vm0, 0.0, %v221_v45  ;;  %v16026_v45 = vsel %vm369_vm1, %v371_v46, %v20079_v62  ;;  %v584_v46 = vsel %vm565_vm2, %v570_v3, %v20077_v4 }
  0x8e   :  { %v657_v29 = vmul.f32 %v15936_v61, %v584_v46  ;;  %v20085_v3 = vrot.slane %v16054_v31, 7 }
  0x8f   :  { %v15987_v48 = vmul.f32 %v15927_v55, %v656_v11  ;;  %v720_v11 = vrot.slane %v15872_v42, 2  ;;  %v16136_v55 = vperm.slane %v196_v25, 4 }
  0x90   :  { %v16072_v47 = vmul.f32 %v16028_v5, %v657_v29  ;;  %v573_v29 = vrot.slane %v16054_v31, 1  ;;  %v380_v62 = vsel %vm369_vm1, %v372_v10, %v20085_v3  ;;  %v20246_v3 = vrot.slane %v16064_v36, 1 }
  0x91   :  { %v16048_v42 = vsel %vm716_vm3, %v720_v11, %v721_v20  ;;  %v427_v11 = vsel %vm369_vm1, 0.0, %v372_v10  ;;  %v16094_v20 = vperm.slane %v196_v25, 2 }
  0x92   :  { %v586_v5 = vsel %vm565_vm2, %v573_v29, %v20246_v3 }
  0x93   :  { %20244 = vst [vmem:[#allocation29_spill] sm:$0xff] %v16094_v20  ;;  %v532_v10 = vmul.f32 %v16094_v20, %v16054_v31 }
  0x9d   :  { %v16092_v46 = vpop.permute.xlu1 %437  ;;  %v16099_v4 = vpop.permute.xlu0 %286 }
  0x9e   :  { %20243 = vst [vmem:[#allocation28_spill] sm:$0xff] %v16092_v46  ;;  %v455_v9 = vmul.f32 %v16092_v46, %v15905_v15  ;;  %v456_v37 = vmul.f32 %v16092_v46, %v426_v63  ;;  %v457_v54 = vmul.f32 %v16092_v46, %v427_v11  ;;  %v304_v60 = vmul.f32 %v16099_v4, %v15891_v8 }
  0x9f   :  { %20245 = vst [vmem:[#allocation30_spill] sm:$0xff] %v16099_v4  ;;  %v305_v53 = vmul.f32 %v16099_v4, %v276_v58  ;;  %v306_v14 = vmul.f32 %v16099_v4, %v277_v38  ;;  %v527_v15 = vmul.f32 %v16094_v20, %v15881_v50  ;;  %v574_v38 = vsel %vm565_vm2, %v572_v28, %v573_v29 }
  0xa0   :  { %v480_v63 = vmul.f32 %v15913_v18, %v455_v9  ;;  %v481_v13 = vmul.f32 %v16014_v0, %v456_v37  ;;  %v482_v30 = vmul.f32 %v16090_v24, %v457_v54  ;;  %v329_v11 = vmul.f32 %v15910_v17, %v304_v60 }
  0xa1   :  { %v330_v8 = vmul.f32 %v16001_v59, %v305_v53  ;;  %v331_v58 = vmul.f32 %v16079_v56, %v306_v14  ;;  %v653_v9 = vmul.f32 %v15907_v16, %v574_v38  ;;  %v16129_v37 = vperm.slane %v196_v25, 3 }
  0xa2   :  { %v723_v54 = vrot.slane %v15881_v50, 2  ;;  %v500_v1 = vadd.f32 %v480_v63, %v329_v11  ;;  %v658_v60 = vmul.f32 %v15936_v61, %v586_v5  ;;  %v724_v14 = vrot.slane %v16054_v31, 2 }
  0xa3   :  { %v501_v20 = vadd.f32 %v481_v13, %v330_v8  ;;  %v502_v27 = vadd.f32 %v482_v30, %v331_v58  ;;  %v678_v53 = vmul.f32 %v16129_v37, %v653_v9  ;;  %v20100_v28 = vrot.slane %v16064_v36, 2 }
  0xa4   :  { %v545_v29 = vadd.f32 %v15959_v43, %v500_v1  ;;  %v683_v50 = vmul.f32 %v16129_v37, %v658_v60  ;;  %v725_v25 = vsel %vm716_vm3, %v723_v54, %v724_v14  ;;  %v16181_v58 = vperm.slane %v15992_v52, 2 }
  0xa5   :  { %v16138_v3 = vpop.permute.xlu1 %442  ;;  %v546_v38 = vadd.f32 %v526_v21, %v501_v20  ;;  %v547_v33 = vadd.f32 %v527_v15, %v502_v27  ;;  %v16142_v13 = vpop.permute.xlu0 %291  ;;  %v737_v15 = vsel %vm716_vm3, %v724_v14, %v20100_v28 }
  0xa6   :  { %20247 = vst [vmem:[#allocation31_spill] sm:$0xff] %v16138_v3  ;;  %v460_v5 = vmul.f32 %v16138_v3, %v15955_v26  ;;  %v461_v30 = vmul.f32 %v16138_v3, %v16026_v45  ;;  %v462_v63 = vmul.f32 %v16138_v3, %v380_v62  ;;  %v309_v11 = vmul.f32 %v16142_v13, %v15944_v6  ;;  %v16158_v26 = vld [vmem:[%s20064_s0 + $0x18] sm:$0xff] }
  0xa7   :  { %20248 = vst [vmem:[#allocation32_spill] sm:$0xff] %v16142_v13  ;;  %v696_v43 = vadd.f32 %v15984_v39, %v545_v29  ;;  %v310_v27 = vmul.f32 %v16142_v13, %v16008_v12  ;;  %v697_v1 = vadd.f32 %v677_v40, %v546_v38  ;;  %v311_v21 = vmul.f32 %v16142_v13, %v230_v2  ;;  %v16167_v6 = vld [vmem:[%s20066_s2 + $0x18] sm:$0x1f]  ;;  %v16177_v2 = vld [vmem:[%s20064_s0 + $0x40] sm:$0xff] }
  0xa8   :  { %v485_v45 = vmul.f32 %v15913_v18, %v460_v5  ;;  %v486_v62 = vmul.f32 %v16014_v0, %v461_v30  ;;  %v487_v20 = vmul.f32 %v16090_v24, %v462_v63  ;;  %v334_v39 = vmul.f32 %v15910_v17, %v309_v11  ;;  %20249 = vst [vmem:[#allocation33_spill] sm:$0xff] %v16181_v58 }
  0xa9   :  { %v335_v12 = vmul.f32 %v16001_v59, %v310_v27  ;;  %v698_v40 = vadd.f32 %v678_v53, %v547_v33  ;;  %v336_v8 = vmul.f32 %v16079_v56, %v311_v21  ;;  %v223_v9 = vrot.slane %v16158_v26, 6 }
  0xaa   :  { %v20099_v54 = vrot.slane %v16177_v2, 6  ;;  %v505_v60 = vadd.f32 %v485_v45, %v334_v39  ;;  %v16186_v53 = vperm.slane %v16167_v6, 0  ;;  %v373_v14 = vrot.slane %v16158_v26, 7 }
  0xab   :  { %v506_v33 = vadd.f32 %v486_v62, %v335_v12  ;;  %v507_v29 = vadd.f32 %v487_v20, %v336_v8  ;;  %v278_v5 = vsel %vm219_vm0, 0.0, %v223_v9  ;;  %v20098_v30 = vrot.slane %v16177_v2, 7 }
  0xac   :  { %20250 = vst [vmem:[#allocation34_spill] sm:$0xff] %v16186_v53  ;;  %v232_v38 = vsel %vm219_vm0, %v223_v9, %v20099_v54  ;;  %v550_v11 = vadd.f32 %v15968_v32, %v505_v60  ;;  %v307_v45 = vmul.f32 %v16099_v4, %v278_v5  ;;  %v16275_v54 = vld [vmem:[#allocation6 + $0x600] sm:$0xf0] }
  0xad   :  { %v16194_v63 = vpop.permute.xlu1 %789  ;;  %v551_v27 = vadd.f32 %v16036_v22, %v506_v33  ;;  %v312_v62 = vmul.f32 %v16142_v13, %v232_v38  ;;  %v16200_v21 = vpop.permute.xlu0 %784  ;;  %v552_v12 = vadd.f32 %v532_v10, %v507_v29 }
  0xae   :  { %20251 = vst [vmem:[#allocation35_spill] sm:$0xff] %v16194_v63  ;;  %v807_v20 = vmul.f32 %v16194_v63, %v15976_v41  ;;  %v808_v39 = vmul.f32 %v16194_v63, %v16077_v19  ;;  %v809_v8 = vmul.f32 %v16194_v63, %v737_v15  ;;  %v701_v9 = vadd.f32 %v15987_v48, %v550_v11 }
  0xaf   :  { %20252 = vst [vmem:[#allocation36_spill] sm:$0xff] %v16200_v21  ;;  %v802_v32 = vmul.f32 %v16200_v21, %v15971_v44  ;;  %v702_v22 = vadd.f32 %v16072_v47, %v551_v27  ;;  %v803_v60 = vmul.f32 %v16200_v21, %v16048_v42  ;;  %v703_v38 = vadd.f32 %v683_v50, %v552_v12 }
  0xb0   :  { %v832_v33 = vmul.f32 %v15990_v49, %v807_v20  ;;  %v833_v41 = vmul.f32 %v16056_v34, %v808_v39  ;;  %v804_v19 = vmul.f32 %v16200_v21, %v725_v25  ;;  %v834_v48 = vmul.f32 %v16136_v55, %v809_v8  ;;  %v16228_v8 = vpop.permute.xlu2 %296 }
  0xb1   :  { %v827_v10 = vmul.f32 %v15990_v49, %v802_v32  ;;  %v828_v15 = vmul.f32 %v16056_v34, %v803_v60  ;;  %v332_v44 = vmul.f32 %v16186_v53, %v307_v45  ;;  %v337_v42 = vmul.f32 %v16186_v53, %v312_v62  ;;  %20253 = vst [vmem:[#allocation37_spill] sm:$0xff] %v16228_v8  ;;  %v16317_v53 = vld [vmem:[#allocation6 + $0x21c] sm:$0xf0] }
  0xb2   :  { %v852_v29 = vadd.f32 %v832_v33, %v701_v9  ;;  %v853_v47 = vadd.f32 %v833_v41, %v702_v22  ;;  %v829_v5 = vmul.f32 %v16136_v55, %v804_v19  ;;  %v854_v20 = vadd.f32 %v834_v48, %v703_v38 }
  0xb3   :  { %v847_v11 = vadd.f32 %v827_v10, %v696_v43  ;;  %v848_v27 = vadd.f32 %v828_v15, %v697_v1  ;;  %v382_v50 = vsel %vm369_vm1, %v373_v14, %v20098_v30  ;;  %v428_v45 = vsel %vm369_vm1, 0.0, %v373_v14  ;;  %v16273_v30 = vld [vmem:[#allocation6 + $0x5f0] sm:$0xf] }
  0xb4   :  { %v884_v25 = vadd.f32 %v15996_v57, %v852_v29  ;;  %v885_v39 = vadd.f32 %v16059_v35, %v853_v47  ;;  %v849_v12 = vadd.f32 %v829_v5, %v698_v40  ;;  %v886_v43 = vadd.f32 %v16181_v58, %v854_v20  ;;  %v16240_v40 = vld [vmem:[%s20064_s0 + $0x68] sm:$0xff] }
  0xb5   :  { %v879_v9 = vadd.f32 %v15996_v57, %v847_v11  ;;  %v880_v62 = vadd.f32 %v16059_v35, %v848_v27  ;;  %v458_v1 = vmul.f32 %v16092_v46, %v428_v45  ;;  %v16234_v32 = vpop.permute.xlu0 %301  ;;  %v463_v14 = vmul.f32 %v16138_v3, %v382_v50  ;;  %v11779_v50 = vld [vmem:[#allocation6 + $0x618] sm:$0xf]  ;;  %v11281_v3 = vld [vmem:[#allocation6 + $0x244] sm:$0xf0]  ;;  %v16299_v46 = vpop.permute.xlu1 %447 }
  0xb6   :  { %20254 = vst [vmem:[#allocation38_spill] sm:$0xff] %v16234_v32  ;;  %v881_v22 = vadd.f32 %v16181_v58, %v849_v12  ;;  %v16244_v60 = vperm.slane %v16167_v6, 1  ;;  %v16247_v33 = vperm.slane %v16167_v6, 2  ;;  %v575_v19 = vrot.slane %v16158_v26, 1 }
  0xb7   :  { %v16249_v41 = vpack.c.bf16 %v884_v25, %v879_v9  ;;  %v16251_v38 = vpack.c.bf16 %v885_v39, %v880_v62  ;;  %v576_v10 = vrot.slane %v16177_v2, 1  ;;  %v20111_v27 = vrot.slane %v16240_v40, 1  ;;  %v14793_v25 = vld [vmem:[#allocation6 + $0x628] sm:$0xf0]  ;;  %v14631_v62 = vld [vmem:[#allocation6 + $0x11c] sm:$0xf] }
  0xb8   :  { %20255 = vst [vmem:[#allocation39_spill] sm:$0xff] %v16244_v60  ;;  %v16255_v15 = vpack.c.bf16 %v886_v43, %v881_v22  ;;  %v483_v48 = vmul.f32 %v16244_v60, %v458_v1  ;;  %v488_v29 = vmul.f32 %v16244_v60, %v463_v14  ;;  %v528_v47 = vmul.f32 %v16247_v33, %v16158_v26  ;;  %v11141_v43 = vld [vmem:[#allocation6 + $0x12c] sm:$0xf0]  ;;  %v14671_v1 = vld [vmem:[#allocation6 + $0x25c] sm:$0xf] }
  0xb9   :  { %20256 = vst [vmem:[#allocation40_spill] sm:$0xff] %v16247_v33  ;;  %2197 = vmatmul.bf16.vlgmr.msra.gmra.mxu0 %v16249_v41  ;;  %2216 = vmatmul.bf16.vlgmr.msra.gmra.mxu1 %v16251_v38  ;;  %v533_v5 = vmul.f32 %v16247_v33, %v16177_v2  ;;  %v577_v11 = vsel %vm565_vm2, %v575_v19, %v576_v10  ;;  %v16268_v20 = vperm.slane %v16167_v6, 3  ;;  %v726_v9 = vrot.slane %v16158_v26, 2  ;;  %v11301_v22 = vld [vmem:[#allocation6 + $0x26c] sm:$0xf0] }
  0xba   :  { %20257 = vst [vmem:[#allocation41_spill] sm:$0xff] %v16249_v41  ;;  %2235 = vmatmul.bf16.vlgmr.msra.gmra.mxu2 %v16255_v15  ;;  %v503_v39 = vadd.f32 %v483_v48, %v332_v44  ;;  %v508_v12 = vadd.f32 %v488_v29, %v337_v42  ;;  %v654_v45 = vmul.f32 %v15907_v16, %v577_v11  ;;  %v14711_v14 = vld [vmem:[#allocation6 + $0x39c] sm:$0xf]  ;;  %v11461_v19 = vld [vmem:[#allocation6 + $0x3ac] sm:$0xf0]  ;;  %v727_v44 = vrot.slane %v16177_v2, 2 }
  0xbb   :  { %20258 = vst [vmem:[#allocation42_spill] sm:$0xff] %v16251_v38  ;;  %v588_v28 = vsel %vm565_vm2, %v576_v10, %v20111_v27  ;;  %v16283_v26 = vperm.slane %v16167_v6, 4  ;;  %v16285_v48 = vld [vmem:[#allocation6 + $0xf4] sm:$0xf]  ;;  %v16287_v29 = vld [vmem:[#allocation6 + $0x104] sm:$0xf0]  ;;  %v11464_v33 = vor.u32 %v14711_v14, %v11461_v19 }
  0xbc   :  { %20259 = vst [vmem:[#allocation43_spill] sm:$0xff] %v16255_v15  ;;  %v548_v11 = vadd.f32 %v528_v47, %v503_v39  ;;  %v553_v15 = vadd.f32 %v533_v5, %v508_v12  ;;  %v659_v38 = vmul.f32 %v15936_v61, %v588_v28  ;;  %v679_v41 = vmul.f32 %v16268_v20, %v654_v45  ;;  %v14666_v16 = vld [vmem:[#allocation6 + $0x234] sm:$0xf]  ;;  %v16293_v27 = vld [vmem:[#allocation6 + $0x384] sm:$0xf0] }
  0xbd   :  { %20260 = vst [vmem:[#allocation44_spill] sm:$0xff] %v16268_v20  ;;  %v16291_v10 = vld [vmem:[#allocation6 + $0x374] sm:$0xf]  ;;  %v16295_v42 = vld [vmem:[#allocation6 + $0x5c8] sm:$0xf]  ;;  %v728_v13 = vsel %vm716_vm3, %v726_v9, %v727_v44  ;;  %v20262_v47 = vrot.slane %v16240_v40, 2  ;;  %v11780_v39 = vor.u32 %v14793_v25, %v11779_v50  ;;  %v16323_v50 = vpop.permute.xlu2 %452  ;;  %v11144_v25 = vor.u32 %v14631_v62, %v11141_v43  ;;  %2322 = vmatpush.bf16.msrb.mxu3 %v11464_v33 }
  0xbe   :  { %v16297_v6 = vld [vmem:[#allocation6 + $0x5d8] sm:$0xf0]  ;;  %20261 = vst [vmem:[#allocation45_spill] sm:$0xff] %v16299_v46  ;;  %v16306_v5 = vperm.slane %v15992_v52, 3  ;;  %v16308_v12 = vld [vmem:[#allocation6 + $0xcc] sm:$0xf]  ;;  %v684_v4 = vmul.f32 %v16268_v20, %v659_v38  ;;  %v699_v60 = vadd.f32 %v679_v41, %v548_v11  ;;  %v805_v58 = vmul.f32 %v16200_v21, %v728_v13  ;;  %v16335_v20 = vpop.permute.xlu0 %643 }
  0xbf   :  { %v739_v28 = vsel %vm716_vm3, %v727_v44, %v20262_v47  ;;  %v16310_v45 = vld [vmem:[#allocation6 + $0xdc] sm:$0xf0]  ;;  %v16312_v61 = vld [vmem:[#allocation6 + $0x20c] sm:$0xf]  ;;  %20263 = vst [vmem:[#allocation46_spill] sm:$0xff] %v16323_v50  ;;  %2265 = vmatpush.bf16.msrb.mxu0 %v11780_v39  ;;  %v11304_v47 = vor.u32 %v14671_v1, %v11301_v22  ;;  %v11760_v38 = vor.u32 %v16275_v54, %v16273_v30  ;;  %v235_v14 = vrot.slane %v15919_v23, 6 }
  0xc0   :  { %v810_v9 = vmul.f32 %v16194_v63, %v739_v28  ;;  %v16319_v44 = vld [vmem:[#allocation6 + $0x34c] sm:$0xf]  ;;  %v16321_v52 = vld [vmem:[#allocation6 + $0x35c] sm:$0xf0]  ;;  %v16329_v13 = vld [vmem:[#allocation6 + $0x5b0] sm:$0xf0]  ;;  %v704_v28 = vadd.f32 %v684_v4, %v553_v15  ;;  %v830_v63 = vmul.f32 %v16283_v26, %v805_v58  ;;  %v11124_v62 = vor.u32 %v16285_v48, %v16287_v29  ;;  %2284 = vmatpush.bf16.msrb.mxu1 %v11144_v25 }
  0xc1   :  { %v16327_v41 = vld [vmem:[#allocation6 + $0x5a0] sm:$0xf]  ;;  %v16331_v11 = vld [vmem:[#allocation6 + $0xa4] sm:$0xf]  ;;  %v16339_v43 = vld [vmem:[#allocation6 + $0xb4] sm:$0xf0]  ;;  %2303 = vmatpush.bf16.msrb.mxu2 %v11304_v47  ;;  %v11284_v30 = vor.u32 %v14666_v16, %v11281_v3  ;;  %v11444_v4 = vor.u32 %v16291_v10, %v16293_v27  ;;  %v11740_v58 = vor.u32 %v16297_v6, %v16295_v42  ;;  %v11104_v29 = vor.u32 %v16308_v12, %v16310_v45  ;;  %v16383_v47 = vpop.permute.xlu1 %648 }
  0xc2   :  { %v835_v21 = vmul.f32 %v16283_v26, %v810_v9  ;;  %v16341_v1 = vld [vmem:[#allocation6 + $0x1e4] sm:$0xf]  ;;  %v16343_v54 = vld [vmem:[#allocation6 + $0x1f4] sm:$0xf0]  ;;  %v850_v19 = vadd.f32 %v830_v63, %v699_v60  ;;  %v11264_v16 = vor.u32 %v16312_v61, %v16317_v53  ;;  %v11424_v27 = vor.u32 %v16319_v44, %v16321_v52 }
  0xc3   :  { %v16349_v15 = vld [vmem:[#allocation6 + $0x324] sm:$0xf]  ;;  %v16351_v22 = vld [vmem:[#allocation6 + $0x334] sm:$0xf0]  ;;  %2266 = vmatpush.bf16.msrb.mxu0 %v11760_v38  ;;  %v11720_v42 = vor.u32 %v16329_v13, %v16327_v41  ;;  %v11084_v63 = vor.u32 %v16331_v11, %v16339_v43  ;;  %v20264_v33 = vrot.slane %v15886_v7, 6  ;;  %v385_v12 = vrot.slane %v15919_v23, 7  ;;  %2323 = vmatpush.bf16.msrb.mxu3 %v11444_v4 }
  0xc4   :  { %v855_v48 = vadd.f32 %v835_v21, %v704_v28  ;;  %v189_v3 = vld [vmem:[%s20064_s0 + $0x78] sm:$0xff]  ;;  %v11244_v21 = vor.u32 %v16341_v1, %v16343_v54  ;;  %v882_v60 = vadd.f32 %v16306_v5, %v850_v19  ;;  %v11404_v53 = vor.u32 %v16349_v15, %v16351_v22  ;;  %2285 = vmatpush.bf16.msrb.mxu1 %v11124_v62  ;;  %v20267_v15 = vld [vmem:[#allocation25_spill] sm:$0xff] }
  0xc5   :  { %v236_v10 = vsel %vm219_vm0, %v20264_v33, %v235_v14  ;;  %2304 = vmatpush.bf16.msrb.mxu2 %v11284_v30  ;;  %v245_v6 = vrot.slane %v189_v3, 6  ;;  %v395_v45 = vrot.slane %v189_v3, 7  ;;  %v535_v44 = vmul.f32 %v15922_v51, %v15919_v23  ;;  %v16398_v30 = vpop.permute.xlu2 %794 }
  0xc6   :  { %v887_v61 = vadd.f32 %v16306_v5, %v855_v48  ;;  %v314_v39 = vmul.f32 %v16228_v8, %v236_v10  ;;  %v540_v52 = vmul.f32 %v15922_v51, %v189_v3  ;;  %v591_v25 = vrot.slane %v189_v3, 1 }
  0xc7   :  { %2267 = vmatpush.bf16.msrb.mxu0 %v11740_v58  ;;  %v246_v38 = vsel %vm219_vm0, %v235_v14, %v245_v6  ;;  %v20265_v13 = vrot.slane %v15886_v7, 7  ;;  %v396_v28 = vsel %vm369_vm1, %v385_v12, %v395_v45  ;;  %v20266_v1 = vrot.slane %v15919_v23, 1  ;;  %v16403_v14 = vpop.permute.xlu0 %799  ;;  %2324 = vmatpush.bf16.msrb.mxu3 %v11424_v27  ;;  %v190_v27 = vld [vmem:[%s20064_s0 + $0x80] sm:$0xff] }
  0xc8   :  { %v16378_v9 = vpack.c.bf16 %v887_v61, %v882_v60  ;;  %v339_v41 = vmul.f32 %v15910_v17, %v314_v39  ;;  %v319_v62 = vmul.f32 %v16234_v32, %v246_v38  ;;  %v470_v43 = vmul.f32 %v16323_v50, %v396_v28  ;;  %2286 = vmatpush.bf16.msrb.mxu1 %v11104_v29  ;;  %v20268_v29 = vld [vmem:[#allocation22_spill] sm:$0xff] }
  0xc9   :  { %v386_v11 = vsel %vm369_vm1, %v20265_v13, %v385_v12  ;;  %v592_v54 = vsel %vm565_vm2, %v20266_v1, %v591_v25  ;;  %2305 = vmatpush.bf16.msrb.mxu2 %v11264_v16  ;;  %v621_v7 = vsel %vm565_vm2, %v591_v25, 0.0  ;;  %v742_v58 = vrot.slane %v189_v3, 2 }
  0xca   :  { %2254 = vmatmul.bf16.vlgmr.msra.gmra.mxu3 %v16378_v9  ;;  %v465_v51 = vmul.f32 %v16299_v46, %v386_v11  ;;  %v661_v4 = vmul.f32 %v16335_v20, %v592_v54  ;;  %v237_v22 = vrot.slane %v20267_v15, 6  ;;  %v344_v19 = vmul.f32 %v15910_v17, %v319_v62  ;;  %v20270_v17 = vld [vmem:[#allocation24_spill] sm:$0xff] }
  0xcb   :  { %v495_v60 = vmul.f32 %v15913_v18, %v470_v43  ;;  %v666_v61 = vmul.f32 %v16383_v47, %v621_v7  ;;  %2268 = vmatpush.bf16.msrb.mxu0 %v11720_v42  ;;  %v20269_v33 = vrot.slane %v15919_v23, 2  ;;  %v772_v10 = vsel %vm716_vm3, %v742_v58, 0.0  ;;  %2325 = vmatpush.bf16.msrb.mxu3 %v11404_v53 }
  0xcc   :  { %v490_v48 = vmul.f32 %v15913_v18, %v465_v51  ;;  %v686_v16 = vmul.f32 %v20268_v29, %v661_v4  ;;  %v20271_v6 = vrot.slane %v20270_v17, 6  ;;  %2287 = vmatpush.bf16.msrb.mxu1 %v11084_v63  ;;  %v817_v23 = vmul.f32 %v16403_v14, %v772_v10 }
  0xcd   :  { %v743_v3 = vsel %vm716_vm3, %v20269_v33, %v742_v58  ;;  %v515_v12 = vadd.f32 %v495_v60, %v344_v19  ;;  %v691_v42 = vmul.f32 %v20268_v29, %v666_v61  ;;  %2306 = vmatpush.bf16.msrb.mxu2 %v11244_v21  ;;  %v247_v25 = vrot.slane %v190_v27, 6 }
  0xce   :  { %v238_v39 = vsel %vm219_vm0, %v20271_v6, %v237_v22  ;;  %v510_v18 = vadd.f32 %v490_v48, %v339_v41  ;;  %v812_v45 = vmul.f32 %v16398_v30, %v743_v3  ;;  %v387_v13 = vrot.slane %v20267_v15, 7 }
  0xcf   :  { %v315_v38 = vmul.f32 %v16228_v8, %v238_v39  ;;  %v560_v28 = vadd.f32 %v540_v52, %v515_v12  ;;  %v397_v41 = vrot.slane %v190_v27, 7  ;;  %v842_v51 = vmul.f32 %v15990_v49, %v817_v23 }
  0xd0   :  { %v555_v11 = vadd.f32 %v535_v44, %v510_v18  ;;  %v837_v62 = vmul.f32 %v15990_v49, %v812_v45  ;;  %v248_v43 = vsel %vm219_vm0, %v237_v22, %v247_v25  ;;  %v20272_v21 = vrot.slane %v20270_v17, 7  ;;  %v20273_v49 = vld [vmem:[#allocation26_spill] sm:$0xff] }
  0xd1   :  { %v340_v63 = vmul.f32 %v16001_v59, %v315_v38  ;;  %v711_v7 = vadd.f32 %v691_v42, %v560_v28  ;;  %v320_v4 = vmul.f32 %v16234_v32, %v248_v43  ;;  %v398_v53 = vsel %vm369_vm1, %v387_v13, %v397_v41  ;;  %v191_v25 = vld [vmem:[%s20064_s0 + $0x88] sm:$0xff] }
  0xd2   :  { %v388_v1 = vsel %vm369_vm1, %v20272_v21, %v387_v13  ;;  %v706_v54 = vadd.f32 %v686_v16, %v555_v11  ;;  %v471_v52 = vmul.f32 %v16323_v50, %v398_v53  ;;  %v536_v58 = vmul.f32 %v20273_v49, %v20267_v15 }
  0xd3   :  { %v466_v44 = vmul.f32 %v16299_v46, %v388_v1  ;;  %v541_v22 = vmul.f32 %v20273_v49, %v190_v27  ;;  %v862_v48 = vadd.f32 %v842_v51, %v711_v7  ;;  %v345_v60 = vmul.f32 %v16001_v59, %v320_v4 }
  0xd4   :  { %v857_v19 = vadd.f32 %v837_v62, %v706_v54  ;;  %v593_v61 = vrot.slane %v190_v27, 1  ;;  %v496_v16 = vmul.f32 %v16014_v0, %v471_v52  ;;  %v744_v33 = vrot.slane %v190_v27, 2  ;;  %v20277_v62 = vld [vmem:[#allocation27_spill] sm:$0xff] }
  0xd5   :  { %v491_v29 = vmul.f32 %v16014_v0, %v466_v44  ;;  %v239_v3 = vrot.slane %v16064_v36, 6  ;;  %v894_v17 = vadd.f32 %v15996_v57, %v862_v48  ;;  %v20274_v6 = vrot.slane %v20267_v15, 1 }
  0xd6   :  { %v889_v10 = vadd.f32 %v15996_v57, %v857_v19  ;;  %v622_v18 = vsel %vm565_vm2, %v593_v61, 0.0  ;;  %v516_v59 = vadd.f32 %v496_v16, %v345_v60  ;;  %v20275_v27 = vrot.slane %v20267_v15, 2  ;;  %v20279_v60 = vld [vmem:[#allocation29_spill] sm:$0xff] }
  0xd7   :  { %v594_v39 = vsel %vm565_vm2, %v20274_v6, %v593_v61  ;;  %v511_v12 = vadd.f32 %v491_v29, %v340_v63  ;;  %v667_v45 = vmul.f32 %v16383_v47, %v622_v18  ;;  %v773_v57 = vsel %vm716_vm3, %v744_v33, 0.0 }
  0xd8   :  { %v662_v42 = vmul.f32 %v16335_v20, %v594_v39  ;;  %v16451_v0 = vpack.c.bf16 %v894_v17, %v889_v10  ;;  %v745_v23 = vsel %vm716_vm3, %v20275_v27, %v744_v33  ;;  %v20276_v38 = vrot.slane %v16054_v31, 6 }
  0xd9   :  { %v556_v11 = vadd.f32 %v536_v58, %v511_v12  ;;  %v561_v28 = vadd.f32 %v541_v22, %v516_v59  ;;  %v692_v51 = vmul.f32 %v20277_v62, %v667_v45  ;;  %v813_v15 = vmul.f32 %v16398_v30, %v745_v23 }
  0xda   :  { %v240_v13 = vsel %vm219_vm0, %v20276_v38, %v239_v3  ;;  %v687_v41 = vmul.f32 %v20277_v62, %v662_v42  ;;  %2202 = vmatmul.bf16.gmra.mxu0 %v16451_v0  ;;  %v818_v43 = vmul.f32 %v16403_v14, %v773_v57  ;;  %v249_v63 = vrot.slane %v191_v25, 6 }
  0xdb   :  { %v316_v21 = vmul.f32 %v16228_v8, %v240_v13  ;;  %v712_v54 = vadd.f32 %v692_v51, %v561_v28  ;;  %v389_v7 = vrot.slane %v16064_v36, 7  ;;  %v399_v4 = vrot.slane %v191_v25, 7 }
  0xdc   :  { %v707_v1 = vadd.f32 %v687_v41, %v556_v11  ;;  %v838_v53 = vmul.f32 %v16056_v34, %v813_v15  ;;  %v843_v44 = vmul.f32 %v16056_v34, %v818_v43  ;;  %v250_v52 = vsel %vm219_vm0, %v239_v3, %v249_v63 }
  0xdd   :  { %v341_v49 = vmul.f32 %v16079_v56, %v316_v21  ;;  %v321_v58 = vmul.f32 %v16234_v32, %v250_v52  ;;  %v20278_v22 = vrot.slane %v16054_v31, 7  ;;  %v400_v48 = vsel %vm369_vm1, %v389_v7, %v399_v4 }
  0xde   :  { %v537_v61 = vmul.f32 %v20279_v60, %v16064_v36  ;;  %v858_v29 = vadd.f32 %v838_v53, %v707_v1  ;;  %v863_v16 = vadd.f32 %v843_v44, %v712_v54  ;;  %v472_v34 = vmul.f32 %v16323_v50, %v400_v48  ;;  %v20284_v48 = vld [vmem:[#allocation34_spill] sm:$0xff] }
  0xdf   :  { %v390_v19 = vsel %vm369_vm1, %v20278_v22, %v389_v7  ;;  %v346_v3 = vmul.f32 %v16079_v56, %v321_v58  ;;  %v542_v10 = vmul.f32 %v20279_v60, %v191_v25  ;;  %v595_v17 = vrot.slane %v191_v25, 1  ;;  %v20283_v58 = vld [vmem:[#allocation40_spill] sm:$0xff] }
  0xe0   :  { %v467_v33 = vmul.f32 %v16299_v46, %v390_v19  ;;  %v746_v6 = vrot.slane %v191_v25, 2  ;;  %v890_v31 = vadd.f32 %v16059_v35, %v858_v29  ;;  %v895_v39 = vadd.f32 %v16059_v35, %v863_v16 }
  0xe1   :  { %v497_v12 = vmul.f32 %v16090_v24, %v472_v34  ;;  %v20280_v59 = vrot.slane %v16064_v36, 1  ;;  %v623_v45 = vsel %vm565_vm2, %v595_v17, 0.0  ;;  %v20281_v56 = vrot.slane %v16064_v36, 2  ;;  %v16506_v36 = vld [vmem:[%s20064_s0 + $0x90] sm:$0xff] }
  0xe2   :  { %v492_v18 = vmul.f32 %v16090_v24, %v467_v33  ;;  %v774_v23 = vsel %vm716_vm3, %v746_v6, 0.0  ;;  %v16497_v57 = vpack.c.bf16 %v895_v39, %v890_v31  ;;  %v668_v24 = vmul.f32 %v16383_v47, %v623_v45  ;;  %v14773_v33 = vld [vmem:[#allocation6 + $0x588] sm:$0xf0]  ;;  %v14611_v34 = vld [vmem:[#allocation6 + $0x7c] sm:$0xf] }
  0xe3   :  { %v596_v42 = vsel %vm565_vm2, %v20280_v59, %v595_v17  ;;  %v747_v27 = vsel %vm716_vm3, %v20281_v56, %v746_v6  ;;  %v517_v35 = vadd.f32 %v497_v12, %v346_v3  ;;  %v819_v11 = vmul.f32 %v16403_v14, %v774_v23  ;;  %v11061_v3 = vld [vmem:[#allocation6 + $0x8c] sm:$0xf0] }
  0xe4   :  { %v512_v25 = vadd.f32 %v492_v18, %v341_v49  ;;  %v663_v38 = vmul.f32 %v16335_v20, %v596_v42  ;;  %v814_v13 = vmul.f32 %v16398_v30, %v747_v27  ;;  %v241_v28 = vrot.slane %v16240_v40, 6  ;;  %2221 = vmatmul.bf16.gmra.mxu1 %v16497_v57  ;;  %v20286_v39 = vld [vmem:[#allocation33_spill] sm:$0xff]  ;;  %v14651_v42 = vld [vmem:[#allocation6 + $0x1bc] sm:$0xf] }
  0xe5   :  { %v562_v41 = vadd.f32 %v542_v10, %v517_v35  ;;  %v251_v15 = vrot.slane %v16506_v36, 6  ;;  %v693_v43 = vmul.f32 %v16129_v37, %v668_v24  ;;  %v844_v21 = vmul.f32 %v16136_v55, %v819_v11  ;;  %v11221_v45 = vld [vmem:[#allocation6 + $0x1cc] sm:$0xf0]  ;;  %v20287_v27 = vld [vmem:[#allocation39_spill] sm:$0xff]  ;;  %v14768_v11 = vld [vmem:[#allocation6 + $0x560] sm:$0xf0] }
  0xe6   :  { %v557_v62 = vadd.f32 %v537_v61, %v512_v25  ;;  %v688_v51 = vmul.f32 %v16129_v37, %v663_v38  ;;  %v839_v63 = vmul.f32 %v16136_v55, %v814_v13  ;;  %v20282_v1 = vrot.slane %v16177_v2, 6  ;;  %v11699_v55 = vld [vmem:[#allocation6 + $0x578] sm:$0xf]  ;;  %v14691_v38 = vld [vmem:[#allocation6 + $0x2fc] sm:$0xf] }
  0xe7   :  { %v252_v4 = vsel %vm219_vm0, %v241_v28, %v251_v15  ;;  %v391_v44 = vrot.slane %v16240_v40, 7  ;;  %v713_v52 = vadd.f32 %v693_v43, %v562_v41  ;;  %v401_v37 = vrot.slane %v16506_v36, 7  ;;  %v11381_v24 = vld [vmem:[#allocation6 + $0x30c] sm:$0xf0]  ;;  %v14606_v43 = vld [vmem:[#allocation6 + $0x54] sm:$0xf] }
  0xe8   :  { %v242_v54 = vsel %vm219_vm0, %v20282_v1, %v241_v28  ;;  %v708_v7 = vadd.f32 %v688_v51, %v557_v62  ;;  %v322_v49 = vmul.f32 %v16234_v32, %v252_v4  ;;  %v538_v22 = vmul.f32 %v20283_v58, %v16240_v40  ;;  %v11679_v13 = vld [vmem:[#allocation6 + $0x550] sm:$0xf]  ;;  %v11201_v1 = vld [vmem:[#allocation6 + $0x1a4] sm:$0xf0] }
  0xe9   :  { %v317_v53 = vmul.f32 %v16228_v8, %v242_v54  ;;  %v20285_v61 = vrot.slane %v16177_v2, 7  ;;  %v543_v16 = vmul.f32 %v20283_v58, %v16506_v36  ;;  %v864_v10 = vadd.f32 %v844_v21, %v713_v52  ;;  %v14646_v21 = vld [vmem:[#allocation6 + $0x194] sm:$0xf]  ;;  %v11361_v52 = vld [vmem:[#allocation6 + $0x2e4] sm:$0xf0] }
  0xea   :  { %v859_v19 = vadd.f32 %v839_v63, %v708_v7  ;;  %v347_v17 = vmul.f32 %v20284_v48, %v322_v49  ;;  %v402_v6 = vsel %vm369_vm1, %v391_v44, %v401_v37  ;;  %v597_v2 = vrot.slane %v16506_v36, 1  ;;  %v11041_v63 = vld [vmem:[#allocation6 + $0x64] sm:$0xf0]  ;;  %v14763_v37 = vld [vmem:[#allocation6 + $0x538] sm:$0xf0] }
  0xeb   :  { %v342_v60 = vmul.f32 %v20284_v48, %v317_v53  ;;  %v392_v29 = vsel %vm369_vm1, %v20285_v61, %v391_v44  ;;  %v473_v12 = vmul.f32 %v16323_v50, %v402_v6  ;;  %v748_v59 = vrot.slane %v16506_v36, 2  ;;  %v14686_v44 = vld [vmem:[#allocation6 + $0x2d4] sm:$0xf]  ;;  %v11659_v49 = vld [vmem:[#allocation6 + $0x528] sm:$0xf] }
  0xec   :  { %v468_v31 = vmul.f32 %v16299_v46, %v392_v29  ;;  %v891_v18 = vadd.f32 %v20286_v39, %v859_v19  ;;  %v896_v56 = vadd.f32 %v20286_v39, %v864_v10  ;;  %v11700_v25 = vor.u32 %v14773_v33, %v11699_v55  ;;  %v14601_v48 = vld [vmem:[#allocation6 + $0x2c] sm:$0xf]  ;;  %v11021_v61 = vld [vmem:[#allocation6 + $0x3c] sm:$0xf0] }
  0xed   :  { %v11064_v35 = vor.u32 %v14611_v34, %v11061_v3  ;;  %v498_v28 = vmul.f32 %v20287_v27, %v473_v12  ;;  %v20288_v62 = vrot.slane %v16240_v40, 1  ;;  %v624_v36 = vsel %vm565_vm2, %v597_v2, 0.0  ;;  %v14641_v29 = vld [vmem:[#allocation6 + $0x16c] sm:$0xf]  ;;  %v20290_v34 = vld [vmem:[#allocation44_spill] sm:$0xff] }
  0xee   :  { %v493_v23 = vmul.f32 %v20287_v27, %v468_v31  ;;  %v20289_v51 = vrot.slane %v16240_v40, 2  ;;  %v16548_v54 = vpack.c.bf16 %v896_v56, %v891_v18  ;;  %v669_v53 = vmul.f32 %v16383_v47, %v624_v36  ;;  %2269 = vmatpush.bf16.msrb.mxu0 %v11700_v25  ;;  %v11181_v6 = vld [vmem:[#allocation6 + $0x17c] sm:$0xf0]  ;;  %v16563_v31 = vld [vmem:[#allocation6 + $0x2ac] sm:$0xf] }
  0xef   :  { %v598_v41 = vsel %vm565_vm2, %v20288_v62, %v597_v2  ;;  %v518_v58 = vadd.f32 %v498_v28, %v347_v17  ;;  %v775_v40 = vsel %vm716_vm3, %v748_v59, 0.0  ;;  %2288 = vmatpush.bf16.msrb.mxu1 %v11064_v35  ;;  %v11224_v19 = vor.u32 %v14651_v42, %v11221_v45  ;;  %v16565_v39 = vld [vmem:[#allocation6 + $0x2bc] sm:$0xf0]  ;;  %v14758_v45 = vld [vmem:[#allocation6 + $0x510] sm:$0xf0] }
  0xf0   :  { %v749_v15 = vsel %vm716_vm3, %v20289_v51, %v748_v59  ;;  %v513_v7 = vadd.f32 %v493_v23, %v342_v60  ;;  %v664_v4 = vmul.f32 %v16335_v20, %v598_v41  ;;  %v16557_v60 = vld [vmem:[%s20064_s0 + $0x20] sm:$0xff]  ;;  %2240 = vmatmul.bf16.gmra.mxu2 %v16548_v54  ;;  %v694_v10 = vmul.f32 %v20290_v34, %v669_v53  ;;  %v11639_v42 = vld [vmem:[#allocation6 + $0x500] sm:$0xf]  ;;  %v11001_v35 = vld [vmem:[#allocation6 + $0x14] sm:$0xf0] }
  0xf1   :  { %v815_v55 = vmul.f32 %v16398_v30, %v749_v15  ;;  %v820_v17 = vmul.f32 %v16403_v14, %v775_v40  ;;  %v563_v18 = vadd.f32 %v543_v16, %v518_v58  ;;  %2307 = vmatpush.bf16.msrb.mxu2 %v11224_v19  ;;  %v11384_v2 = vor.u32 %v14691_v38, %v11381_v24  ;;  %v14636_v28 = vld [vmem:[#allocation6 + $0x144] sm:$0xf]  ;;  %v11161_v62 = vld [vmem:[#allocation6 + $0x154] sm:$0xf0] }
  0xf2   :  { %v558_v33 = vadd.f32 %v538_v22, %v513_v7  ;;  %v689_v3 = vmul.f32 %v20290_v34, %v664_v4  ;;  %v11680_v59 = vor.u32 %v14768_v11, %v11679_v13  ;;  %v14596_v22 = vld [vmem:[#allocation6 + $0x4] sm:$0xf]  ;;  %v11044_v23 = vor.u32 %v14606_v43, %v11041_v63  ;;  %v16571_v38 = vld [vmem:[#allocation6 + $0x294] sm:$0xf0]  ;;  %v198_v43 = vld [vmem:[%s20066_s2 + $0x20] sm:$0x1f] }
  0xf3   :  { %v840_v12 = vmul.f32 %v16283_v26, %v815_v55  ;;  %v845_v27 = vmul.f32 %v16283_v26, %v820_v17  ;;  %v11204_v25 = vor.u32 %v14646_v21, %v11201_v1  ;;  %v714_v41 = vadd.f32 %v694_v10, %v563_v18  ;;  %2326 = vmatpush.bf16.msrb.mxu3 %v11384_v2  ;;  %v16569_v51 = vld [vmem:[#allocation6 + $0x284] sm:$0xf]  ;;  %v16582_v4 = vld [vmem:[%s20064_s0 + $0x48] sm:$0xff]  ;;  %v16607_v34 = vld [vmem:[%s20064_s0 + $0x70] sm:$0xff] }
  0xf4   :  { %v709_v56 = vadd.f32 %v689_v3, %v558_v33  ;;  %2270 = vmatpush.bf16.msrb.mxu0 %v11680_v59  ;;  %v11364_v16 = vor.u32 %v14686_v44, %v11361_v52  ;;  %v11660_v36 = vor.u32 %v14763_v37, %v11659_v49  ;;  %v224_v24 = vrot.slane %v16557_v60, 6  ;;  %2289 = vmatpush.bf16.msrb.mxu1 %v11044_v23  ;;  %v20291_v58 = vld [vmem:[#allocation30_spill] sm:$0xff]  ;;  %v20292_v3 = vld [vmem:[#allocation32_spill] sm:$0xff] }
  0xf5   :  { %v11024_v11 = vor.u32 %v14601_v48, %v11021_v61  ;;  %v11184_v26 = vor.u32 %v14641_v29, %v11181_v6  ;;  %v11344_v15 = vor.u32 %v16563_v31, %v16565_v39  ;;  %v865_v63 = vadd.f32 %v845_v27, %v714_v41  ;;  %2308 = vmatpush.bf16.msrb.mxu2 %v11204_v25  ;;  %v20293_v39 = vld [vmem:[#allocation28_spill] sm:$0xff] }
  0xf6   :  { %v860_v13 = vadd.f32 %v840_v12, %v709_v56  ;;  %v11640_v21 = vor.u32 %v14758_v45, %v11639_v42  ;;  %v11004_v1 = vor.u32 %v14596_v22, %v11001_v35  ;;  %v11164_v7 = vor.u32 %v14636_v28, %v11161_v62  ;;  %v20294_v42 = vld [vmem:[#allocation31_spill] sm:$0xff]  ;;  %v11621_v62 = vld [vmem:[#allocation6 + $0x4ec] sm:$0xf0] }
  0xf7   :  { %v11324_v44 = vor.u32 %v16569_v51, %v16571_v38  ;;  %v20137_v52 = vrot.slane %v16582_v4, 6  ;;  %v279_v49 = vsel %vm219_vm0, 0.0, %v224_v24  ;;  %v897_v37 = vadd.f32 %v16306_v5, %v865_v63  ;;  %2327 = vmatpush.bf16.msrb.mxu3 %v11364_v16  ;;  %v14751_v28 = vld [vmem:[#allocation6 + $0x4dc] sm:$0xf]  ;;  %v20295_v63 = vld [vmem:[#allocation21_spill] sm:$0xff] }
  0xf8   :  { %v892_v53 = vadd.f32 %v16306_v5, %v860_v13  ;;  %2271 = vmatpush.bf16.msrb.mxu0 %v11660_v36  ;;  %v308_v40 = vmul.f32 %v20291_v58, %v279_v49  ;;  %v16591_v55 = vperm.slane %v198_v43, 0  ;;  %v374_v19 = vrot.slane %v16557_v60, 7  ;;  %2290 = vmatpush.bf16.msrb.mxu1 %v11024_v11  ;;  %v14791_v13 = vld [vmem:[#allocation6 + $0x61c] sm:$0xf]  ;;  %v11781_v11 = vld [vmem:[#allocation6 + $0x62c] sm:$0xf0] }
  0xf9   :  { %v234_v48 = vsel %vm219_vm0, %v224_v24, %v20137_v52  ;;  %v20136_v61 = vrot.slane %v16582_v4, 7  ;;  %v16598_v29 = vperm.slane %v198_v43, 1  ;;  %v16600_v33 = vperm.slane %v198_v43, 2  ;;  %2309 = vmatpush.bf16.msrb.mxu2 %v11184_v26  ;;  %v14674_v49 = vld [vmem:[#allocation6 + $0x270] sm:$0xf0] }
  0xfa   :  { %v16602_v5 = vpack.c.bf16 %v897_v37, %v892_v53  ;;  %v313_v10 = vmul.f32 %v20292_v3, %v234_v48  ;;  %v333_v17 = vmul.f32 %v16591_v55, %v308_v40  ;;  %v429_v6 = vsel %vm369_vm1, 0.0, %v374_v19  ;;  %v11307_v53 = vld [vmem:[#allocation6 + $0x260] sm:$0xf]  ;;  %v16640_v37 = vld [vmem:[#allocation6 + $0x4b4] sm:$0xf] }
  0xfb   :  { %v384_v31 = vsel %vm369_vm1, %v374_v19, %v20136_v61  ;;  %v459_v18 = vmul.f32 %v20293_v39, %v429_v6  ;;  %v529_v12 = vmul.f32 %v16600_v33, %v16557_v60  ;;  %v534_v2 = vmul.f32 %v16600_v33, %v16582_v4  ;;  %2328 = vmatpush.bf16.msrb.mxu3 %v11344_v15  ;;  %v16642_v40 = vld [vmem:[#allocation6 + $0x4c4] sm:$0xf0]  ;;  %v20296_v48 = vld [vmem:[#allocation23_spill] sm:$0xff]  ;;  %v16670_v61 = vld [vmem:[#allocation6 + $0x5cc] sm:$0xf] }
  0xfc   :  { %2259 = vmatmul.bf16.gmra.mxu3 %v16602_v5  ;;  %2272 = vmatpush.bf16.msrb.mxu0 %v11640_v21  ;;  %v338_v59 = vmul.f32 %v16591_v55, %v313_v10  ;;  %v464_v45 = vmul.f32 %v20294_v42, %v384_v31  ;;  %v578_v22 = vrot.slane %v16557_v60, 1  ;;  %v579_v56 = vrot.slane %v16582_v4, 1  ;;  %v20297_v31 = vld [vmem:[#allocation41_spill] sm:$0xff]  ;;  %v16672_v52 = vld [vmem:[#allocation6 + $0x5dc] sm:$0xf0] }
  0xfd   :  { %2291 = vmatpush.bf16.msrb.mxu1 %v11004_v1  ;;  %v484_v27 = vmul.f32 %v16598_v29, %v459_v18  ;;  %v20135_v23 = vrot.slane %v16607_v34, 1  ;;  %v16627_v25 = vperm.slane %v198_v43, 3  ;;  %v729_v35 = vrot.slane %v16557_v60, 2  ;;  %2310 = vmatpush.bf16.msrb.mxu2 %v11164_v7  ;;  %v11147_v1 = vld [vmem:[#allocation6 + $0x120] sm:$0xf] }
  0xfe   :  { %v489_v41 = vmul.f32 %v16598_v29, %v464_v45  ;;  %v580_v16 = vsel %vm565_vm2, %v578_v22, %v579_v56  ;;  %v730_v36 = vrot.slane %v16582_v4, 2  ;;  %v20134_v24 = vrot.slane %v16607_v34, 2  ;;  %v14634_v7 = vld [vmem:[#allocation6 + $0x130] sm:$0xf0]  ;;  %v11761_v18 = vld [vmem:[#allocation6 + $0x604] sm:$0xf0] }
  0xff   :  { %v504_v26 = vadd.f32 %v484_v27, %v333_v17  ;;  %v590_v15 = vsel %vm565_vm2, %v579_v56, %v20135_v23  ;;  %v655_v60 = vmul.f32 %v20295_v63, %v580_v16  ;;  %v16638_v21 = vperm.slane %v198_v43, 4  ;;  %v16650_v43 = vld [vmem:[#allocation6 + $0x5f4] sm:$0xf]  ;;  %v16652_v45 = vld [vmem:[#allocation6 + $0xf8] sm:$0xf]  ;;  %2329 = vmatpush.bf16.msrb.mxu3 %v11324_v44 }
 0x100   :  { %v509_v19 = vadd.f32 %v489_v41, %v338_v59  ;;  %v660_v10 = vmul.f32 %v20296_v48, %v590_v15  ;;  %v731_v17 = vsel %vm716_vm3, %v729_v35, %v730_v36  ;;  %v741_v6 = vsel %vm716_vm3, %v730_v36, %v20134_v24  ;;  %2292 = vmatmul.bf16.vlgmr.msrb.gmra.mxu1 %v20297_v31  ;;  %v16654_v22 = vld [vmem:[#allocation6 + $0x108] sm:$0xf0]  ;;  %v16656_v56 = vld [vmem:[#allocation6 + $0x238] sm:$0xf]  ;;  %v20298_v41 = vld [vmem:[#allocation36_spill] sm:$0xff] }
 0x101   :  { %v16658_v59 = vld [vmem:[#allocation6 + $0x248] sm:$0xf0]  ;;  %v549_v27 = vadd.f32 %v529_v12, %v504_v26  ;;  %v680_v35 = vmul.f32 %v16627_v25, %v655_v60  ;;  %v806_v16 = vmul.f32 %v20298_v41, %v731_v17  ;;  %v20299_v36 = vld [vmem:[#allocation35_spill] sm:$0xff]  ;;  %v20300_v44 = vld [vmem:[#allocation42_spill] sm:$0xff]  ;;  %v11624_v12 = vor.u32 %v14751_v28, %v11621_v62 }
 0x102   :  { %v811_v15 = vmul.f32 %v20299_v36, %v741_v6  ;;  %v16666_v24 = vld [vmem:[#allocation6 + $0x48c] sm:$0xf]  ;;  %v16668_v23 = vld [vmem:[#allocation6 + $0x49c] sm:$0xf0]  ;;  %v554_v48 = vadd.f32 %v534_v2, %v509_v19  ;;  %v685_v63 = vmul.f32 %v16627_v25, %v660_v10  ;;  %2311 = vmatmul.bf16.vlgmr.msrb.gmra.mxu2 %v20300_v44  ;;  %v16678_v26 = vld [vmem:[#allocation6 + $0xd0] sm:$0xf]  ;;  %v11784_v2 = vor.u32 %v14791_v13, %v11781_v11 }
 0x103   :  { %v15514_v51 = vld [vmem:[#allocation4] sm:$0x1f]  ;;  %v16680_v60 = vld [vmem:[#allocation6 + $0xe0] sm:$0xf0]  ;;  %v700_v6 = vadd.f32 %v680_v35, %v549_v27  ;;  %v831_v36 = vmul.f32 %v16638_v21, %v806_v16  ;;  %2341 = vmatpush.bf16.msra.mxu0 %v11624_v12  ;;  %v11148_v28 = vor.u32 %v14634_v7, %v11147_v1  ;;  %v11308_v62 = vor.u32 %v14674_v49, %v11307_v53  ;;  %v16696_v27 = vld [vmem:[#allocation6 + $0x5b4] sm:$0xf0] }
 0x104   :  { %v16675_v38 = vperm.slane %v15514_v51, 4  ;;  %v16682_v17 = vld [vmem:[#allocation6 + $0x210] sm:$0xf]  ;;  %v836_v41 = vmul.f32 %v16638_v21, %v811_v15  ;;  %v16686_v19 = vld [vmem:[#allocation6 + $0x220] sm:$0xf0]  ;;  %v705_v42 = vadd.f32 %v685_v63, %v554_v48  ;;  %v11604_v3 = vor.u32 %v16640_v37, %v16642_v40  ;;  %2360 = vmatpush.bf16.msra.mxu1 %v11784_v2 }
 0x105   :  { %v16688_v10 = vld [vmem:[#allocation6 + $0x464] sm:$0xf]  ;;  %v16690_v51 = vld [vmem:[#allocation6 + $0x474] sm:$0xf0]  ;;  %v16698_v35 = vld [vmem:[#allocation6 + $0xa8] sm:$0xf]  ;;  %v851_v13 = vadd.f32 %v831_v36, %v700_v6  ;;  %v11764_v11 = vor.u32 %v16650_v43, %v11761_v18  ;;  %v11128_v16 = vor.u32 %v16654_v22, %v16652_v45  ;;  %v11288_v63 = vor.u32 %v16658_v59, %v16656_v56  ;;  %2379 = vmatpush.bf16.msra.mxu2 %v11148_v28 }
 0x106   :  { %v16694_v39 = vld [vmem:[#allocation6 + $0x5a4] sm:$0xf]  ;;  %v16705_v1 = vld [vmem:[#allocation6 + $0xb8] sm:$0xf0]  ;;  %v16707_v7 = vld [vmem:[#allocation6 + $0x1e8] sm:$0xf]  ;;  %v856_v49 = vadd.f32 %v836_v41, %v705_v42  ;;  %2398 = vmatpush.bf16.msra.mxu3 %v11308_v62  ;;  %v11584_v37 = vor.u32 %v16666_v24, %v16668_v23  ;;  %v11744_v40 = vor.u32 %v16670_v61, %v16672_v52  ;;  %v11108_v45 = vor.u32 %v16680_v60, %v16678_v26 }
 0x107   :  { %v16709_v53 = vld [vmem:[#allocation6 + $0x1f8] sm:$0xf0]  ;;  %v193_v48 = vld [vmem:[%s20064_s0 + $0x98] sm:$0xff]  ;;  %v243_v43 = vrot.slane %v16607_v34, 6  ;;  %v883_v18 = vadd.f32 %v16675_v38, %v851_v13  ;;  %v11268_v42 = vor.u32 %v16686_v19, %v16682_v17  ;;  %v11564_v23 = vor.u32 %v16688_v10, %v16690_v51  ;;  %2342 = vmatpush.bf16.msra.mxu0 %v11604_v3 }
 0x108   :  { %v888_v24 = vadd.f32 %v16675_v38, %v856_v49  ;;  %v11724_v52 = vor.u32 %v16694_v39, %v16696_v27  ;;  %v11088_v61 = vor.u32 %v16705_v1, %v16698_v35  ;;  %v11248_v22 = vor.u32 %v16709_v53, %v16707_v7  ;;  %2361 = vmatpush.bf16.msra.mxu1 %v11764_v11  ;;  %v20303_v10 = vld [vmem:[#allocation43_spill] sm:$0xff]  ;;  %v11541_v53 = vld [vmem:[#allocation6 + $0x44c] sm:$0xf0] }
 0x109   :  { %v20301_v56 = vrot.slane %v16582_v4, 6  ;;  %v253_v41 = vrot.slane %v193_v48, 6  ;;  %v393_v36 = vrot.slane %v16607_v34, 7  ;;  %v403_v15 = vrot.slane %v193_v48, 7  ;;  %2380 = vmatpush.bf16.msra.mxu2 %v11128_v16  ;;  %v14731_v16 = vld [vmem:[#allocation6 + $0x43c] sm:$0xf] }
 0x10a   :  { %v16737_v12 = vpack.c.bf16 %v888_v24, %v883_v18  ;;  %2399 = vmatpush.bf16.msra.mxu3 %v11288_v63  ;;  %v539_v39 = vmul.f32 %v16600_v33, %v16607_v34  ;;  %v599_v26 = vrot.slane %v193_v48, 1  ;;  %v20302_v17 = vrot.slane %v16582_v4, 7  ;;  %v14771_v49 = vld [vmem:[#allocation6 + $0x57c] sm:$0xf] }
 0x10b   :  { %v244_v59 = vsel %vm219_vm0, %v20301_v56, %v243_v43  ;;  %v254_v60 = vsel %vm219_vm0, %v243_v43, %v253_v41  ;;  %v404_v2 = vsel %vm369_vm1, %v393_v36, %v403_v15  ;;  %v544_v19 = vmul.f32 %v16600_v33, %v193_v48  ;;  %2343 = vmatpush.bf16.msra.mxu0 %v11584_v37  ;;  %v11701_v37 = vld [vmem:[#allocation6 + $0x58c] sm:$0xf0]  ;;  %v14614_v41 = vld [vmem:[#allocation6 + $0x90] sm:$0xf0] }
 0x10c   :  { %v318_v3 = vmul.f32 %v16228_v8, %v244_v59  ;;  %v394_v6 = vsel %vm369_vm1, %v20302_v17, %v393_v36  ;;  %2273 = vmatmul.bf16.vlgmr.msrb.gmra.mxu0 %v16737_v12  ;;  %2330 = vmatmul.bf16.vlgmr.msrb.gmra.mxu3 %v20303_v10  ;;  %v323_v51 = vmul.f32 %v16234_v32, %v254_v60  ;;  %v625_v27 = vsel %vm565_vm2, %v599_v26, 0.0  ;;  %v14654_v36 = vld [vmem:[#allocation6 + $0x1d0] sm:$0xf0]  ;;  %v11521_v60 = vld [vmem:[#allocation6 + $0x424] sm:$0xf0] }
 0x10d   :  { %v469_v62 = vmul.f32 %v16299_v46, %v394_v6  ;;  %2362 = vmatpush.bf16.msra.mxu1 %v11744_v40  ;;  %v474_v4 = vmul.f32 %v16323_v50, %v404_v2  ;;  %v20304_v35 = vrot.slane %v16607_v34, 1  ;;  %v670_v13 = vmul.f32 %v16383_v47, %v625_v27  ;;  %2381 = vmatpush.bf16.msra.mxu2 %v11108_v45  ;;  %v11681_v6 = vld [vmem:[#allocation6 + $0x564] sm:$0xf0]  ;;  %v11047_v2 = vld [vmem:[#allocation6 + $0x58] sm:$0xf] }
 0x10e   :  { %v343_v28 = vmul.f32 %v16591_v55, %v318_v3  ;;  %v750_v11 = vrot.slane %v193_v48, 2  ;;  %2400 = vmatpush.bf16.msra.mxu3 %v11268_v42  ;;  %v348_v63 = vmul.f32 %v16591_v55, %v323_v51  ;;  %v20305_v18 = vrot.slane %v16607_v34, 2  ;;  %v11067_v42 = vld [vmem:[#allocation6 + $0x80] sm:$0xf] }
 0x10f   :  { %v600_v33 = vsel %vm565_vm2, %v20304_v35, %v599_v26  ;;  %v494_v1 = vmul.f32 %v16598_v29, %v469_v62  ;;  %v499_v40 = vmul.f32 %v16598_v29, %v474_v4  ;;  %v695_v43 = vmul.f32 %v16627_v25, %v670_v13  ;;  %v11227_v29 = vld [vmem:[#allocation6 + $0x1c0] sm:$0xf]  ;;  %2344 = vmatpush.bf16.msra.mxu0 %v11564_v23  ;;  %v14726_v26 = vld [vmem:[#allocation6 + $0x414] sm:$0xf]  ;;  %v14609_v23 = vld [vmem:[#allocation6 + $0x68] sm:$0xf0] }
 0x110   :  { %v665_v7 = vmul.f32 %v16335_v20, %v600_v33  ;;  %v751_v48 = vsel %vm716_vm3, %v20305_v18, %v750_v11  ;;  %v776_v45 = vsel %vm716_vm3, %v750_v11, 0.0  ;;  %2297 = vmatmul.bf16.gmra.mxu1 %v16451_v0  ;;  %v11544_v15 = vor.u32 %v14731_v16, %v11541_v53  ;;  %v14649_v4 = vld [vmem:[#allocation6 + $0x1a8] sm:$0xf0]  ;;  %v11501_v53 = vld [vmem:[#allocation6 + $0x3fc] sm:$0xf0] }
 0x111   :  { %v514_v24 = vadd.f32 %v494_v1, %v343_v28  ;;  %v816_v56 = vmul.f32 %v16398_v30, %v751_v48  ;;  %v821_v59 = vmul.f32 %v16403_v14, %v776_v45  ;;  %2363 = vmatpush.bf16.msra.mxu1 %v11724_v52  ;;  %v519_v34 = vadd.f32 %v499_v40, %v348_v63  ;;  %v11207_v52 = vld [vmem:[#allocation6 + $0x198] sm:$0xf]  ;;  %v14721_v16 = vld [vmem:[#allocation6 + $0x3ec] sm:$0xf]  ;;  %v11661_v1 = vld [vmem:[#allocation6 + $0x53c] sm:$0xf0] }
 0x112   :  { %v690_v55 = vmul.f32 %v16627_v25, %v665_v7  ;;  %v11704_v3 = vor.u32 %v14771_v49, %v11701_v37  ;;  %2382 = vmatpush.bf16.msra.mxu2 %v11088_v61  ;;  %2401 = vmatpush.bf16.msra.mxu3 %v11248_v22  ;;  %v14766_v25 = vld [vmem:[#allocation6 + $0x554] sm:$0xf]  ;;  %v11068_v62 = vor.u32 %v14614_v41, %v11067_v42  ;;  %v14761_v63 = vld [vmem:[#allocation6 + $0x52c] sm:$0xf]  ;;  %v11027_v49 = vld [vmem:[#allocation6 + $0x30] sm:$0xf] }
 0x113   :  { %v559_v17 = vadd.f32 %v539_v39, %v514_v24  ;;  %v564_v51 = vadd.f32 %v544_v19, %v519_v34  ;;  %v846_v28 = vmul.f32 %v16638_v21, %v821_v59  ;;  %2316 = vmatmul.bf16.gmra.mxu2 %v16497_v57  ;;  %v11228_v27 = vor.u32 %v14654_v36, %v11227_v29  ;;  %v14604_v37 = vld [vmem:[#allocation6 + $0x40] sm:$0xf0]  ;;  %v11187_v40 = vld [vmem:[#allocation6 + $0x170] sm:$0xf]  ;;  %v11641_v59 = vld [vmem:[#allocation6 + $0x514] sm:$0xf0] }
 0x114   :  { %v841_v33 = vmul.f32 %v16638_v21, %v816_v56  ;;  %2345 = vmatpush.bf16.msra.mxu0 %v11544_v15  ;;  %v11524_v61 = vor.u32 %v14726_v26, %v11521_v60  ;;  %v11684_v22 = vor.u32 %v14766_v25, %v11681_v6  ;;  %v11048_v19 = vor.u32 %v14609_v23, %v11047_v2  ;;  %v14644_v18 = vld [vmem:[#allocation6 + $0x180] sm:$0xf0]  ;;  %v11007_v36 = vld [vmem:[#allocation6 + $0x8] sm:$0xf]  ;;  %v14599_v34 = vld [vmem:[#allocation6 + $0x18] sm:$0xf0] }
 0x115   :  { %v710_v35 = vadd.f32 %v690_v55, %v559_v17  ;;  %v715_v13 = vadd.f32 %v695_v43, %v564_v51  ;;  %2364 = vmatpush.bf16.msra.mxu1 %v11704_v3  ;;  %v11208_v11 = vor.u32 %v14649_v4, %v11207_v52  ;;  %v11664_v48 = vor.u32 %v14761_v63, %v11661_v1  ;;  %v14716_v45 = vld [vmem:[#allocation6 + $0x3c4] sm:$0xf]  ;;  %v11481_v55 = vld [vmem:[#allocation6 + $0x3d4] sm:$0xf0]  ;;  %v11167_v15 = vld [vmem:[#allocation6 + $0x148] sm:$0xf] }
 0x116   :  { %2383 = vmatpush.bf16.msra.mxu2 %v11068_v62  ;;  %2402 = vmatpush.bf16.msra.mxu3 %v11228_v27  ;;  %v11504_v42 = vor.u32 %v14721_v16, %v11501_v53  ;;  %v11028_v24 = vor.u32 %v14604_v37, %v11027_v49  ;;  %v14756_v56 = vld [vmem:[#allocation6 + $0x504] sm:$0xf]  ;;  %v11188_v29 = vor.u32 %v14644_v18, %v11187_v40  ;;  %v11467_v3 = vld [vmem:[#allocation6 + $0x3a0] sm:$0xf]  ;;  %v14714_v26 = vld [vmem:[#allocation6 + $0x3b0] sm:$0xf0] }
 0x117   :  { %v861_v39 = vadd.f32 %v841_v33, %v710_v35  ;;  %v866_v7 = vadd.f32 %v846_v28, %v715_v13  ;;  %v11644_v60 = vor.u32 %v14756_v56, %v11641_v59  ;;  %v11787_v17 = vld [vmem:[#allocation6 + $0x620] sm:$0xf]  ;;  %v14794_v25 = vld [vmem:[#allocation6 + $0x630] sm:$0xf0]  ;;  %v11484_v6 = vor.u32 %v14716_v45, %v11481_v55  ;;  %v14632_v23 = vld [vmem:[#allocation6 + $0x124] sm:$0xf] }
 0x118   :  { %2346 = vmatpush.bf16.msra.mxu0 %v11524_v61  ;;  %v11008_v2 = vor.u32 %v14599_v34, %v11007_v36  ;;  %v11627_v51 = vld [vmem:[#allocation6 + $0x4e0] sm:$0xf]  ;;  %v14754_v28 = vld [vmem:[#allocation6 + $0x4f0] sm:$0xf0]  ;;  %v11468_v27 = vor.u32 %v14714_v26, %v11467_v3  ;;  %v11149_v52 = vld [vmem:[#allocation6 + $0x134] sm:$0xf0]  ;;  %v11788_v4 = vor.u32 %v14794_v25, %v11787_v17 }
 0x119   :  { %v893_v21 = vadd.f32 %v16675_v38, %v861_v39  ;;  %v898_v43 = vadd.f32 %v16675_v38, %v866_v7  ;;  %2365 = vmatpush.bf16.msra.mxu1 %v11684_v22  ;;  %v14639_v38 = vld [vmem:[#allocation6 + $0x158] sm:$0xf0]  ;;  %v11447_v35 = vld [vmem:[#allocation6 + $0x378] sm:$0xf]  ;;  %v14709_v33 = vld [vmem:[#allocation6 + $0x388] sm:$0xf0]  ;;  %v11628_v13 = vor.u32 %v14754_v28, %v11627_v51  ;;  %v11152_v39 = vor.u32 %v14632_v23, %v11149_v52 }
 0x11a   :  { %2384 = vmatpush.bf16.msra.mxu2 %v11048_v19  ;;  %2403 = vmatpush.bf16.msra.mxu3 %v11208_v11  ;;  %v11168_v62 = vor.u32 %v14639_v38, %v11167_v15  ;;  %v11767_v61 = vld [vmem:[#allocation6 + $0x5f8] sm:$0xf]  ;;  %v14789_v22 = vld [vmem:[#allocation6 + $0x608] sm:$0xf0]  ;;  %v11448_v16 = vor.u32 %v14709_v33, %v11447_v35  ;;  %v14627_v63 = vld [vmem:[#allocation6 + $0xfc] sm:$0xf] }
 0x11b   :  { %v16777_v41 = vpack.c.bf16 %v898_v43, %v893_v21  ;;  %v11607_v19 = vld [vmem:[#allocation6 + $0x4b8] sm:$0xf]  ;;  %v14749_v11 = vld [vmem:[#allocation6 + $0x4c8] sm:$0xf0]  ;;  %v11129_v1 = vld [vmem:[#allocation6 + $0x10c] sm:$0xf0]  ;;  %v11768_v7 = vor.u32 %v14789_v22, %v11767_v61 }
 0x11c   :  { %2335 = vmatmul.bf16.gmra.mxu3 %v16548_v54  ;;  %2347 = vmatpush.bf16.msra.mxu0 %v11504_v42  ;;  %v11427_v53 = vld [vmem:[#allocation6 + $0x350] sm:$0xf]  ;;  %v14704_v49 = vld [vmem:[#allocation6 + $0x360] sm:$0xf0]  ;;  %v11608_v37 = vor.u32 %v14749_v11, %v11607_v19  ;;  %v11132_v21 = vor.u32 %v14627_v63, %v11129_v1  ;;  %v14622_v42 = vld [vmem:[#allocation6 + $0xd4] sm:$0xf] }
 0x11d   :  { %2278 = vmatmul.bf16.gmra.mxu0 %v16777_v41  ;;  %2366 = vmatpush.bf16.msra.mxu1 %v11664_v48  ;;  %v11747_v40 = vld [vmem:[#allocation6 + $0x5d0] sm:$0xf]  ;;  %v14784_v18 = vld [vmem:[#allocation6 + $0x5e0] sm:$0xf0]  ;;  %v11428_v45 = vor.u32 %v14704_v49, %v11427_v53  ;;  %v11407_v56 = vld [vmem:[#allocation6 + $0x328] sm:$0xf] }
 0x11e   :  { %2385 = vmatpush.bf16.msra.mxu2 %v11028_v24  ;;  %2404 = vmatpush.bf16.msra.mxu3 %v11188_v29  ;;  %v11587_v43 = vld [vmem:[#allocation6 + $0x490] sm:$0xf]  ;;  %v14744_v48 = vld [vmem:[#allocation6 + $0x4a0] sm:$0xf0]  ;;  %v11109_v24 = vld [vmem:[#allocation6 + $0xe4] sm:$0xf0]  ;;  %v11748_v55 = vor.u32 %v14784_v18, %v11747_v40 }
 0x11f   :  { %v14699_v59 = vld [vmem:[#allocation6 + $0x338] sm:$0xf0]  ;;  %v11588_v29 = vor.u32 %v14744_v48, %v11587_v43  ;;  %v11727_v36 = vld [vmem:[#allocation6 + $0x5a8] sm:$0xf]  ;;  %v11112_v15 = vor.u32 %v14622_v42, %v11109_v24  ;;  %v11089_v17 = vld [vmem:[#allocation6 + $0xbc] sm:$0xf0] }
 0x120   :  { %2348 = vmatpush.bf16.msra.mxu0 %v11484_v6  ;;  %v14779_v34 = vld [vmem:[#allocation6 + $0x5b8] sm:$0xf0]  ;;  %v11567_v38 = vld [vmem:[#allocation6 + $0x468] sm:$0xf]  ;;  %v11408_v26 = vor.u32 %v14699_v59, %v11407_v56  ;;  %v11387_v6 = vld [vmem:[#allocation6 + $0x300] sm:$0xf] }
 0x121   :  { %2367 = vmatpush.bf16.msra.mxu1 %v11644_v60  ;;  %v14739_v3 = vld [vmem:[#allocation6 + $0x478] sm:$0xf0]  ;;  %v14617_v60 = vld [vmem:[#allocation6 + $0xac] sm:$0xf]  ;;  %v11728_v25 = vor.u32 %v14779_v34, %v11727_v36  ;;  %v11707_v28 = vld [vmem:[#allocation6 + $0x580] sm:$0xf] }
 0x122   :  { %2386 = vmatpush.bf16.msra.mxu2 %v11008_v2  ;;  %2405 = vmatpush.bf16.msra.mxu3 %v11168_v62  ;;  %v14694_v2 = vld [vmem:[#allocation6 + $0x310] sm:$0xf0]  ;;  %v11568_v51 = vor.u32 %v14739_v3, %v11567_v38  ;;  %v11547_v23 = vld [vmem:[#allocation6 + $0x440] sm:$0xf]  ;;  %v14612_v35 = vld [vmem:[#allocation6 + $0x84] sm:$0xf] }
 0x123   :  { %v14774_v62 = vld [vmem:[#allocation6 + $0x590] sm:$0xf0]  ;;  %v11069_v33 = vld [vmem:[#allocation6 + $0x94] sm:$0xf0]  ;;  %v14689_v22 = vld [vmem:[#allocation6 + $0x2e8] sm:$0xf0] }
 0x124   :  { %2417 = vmatpush.bf16.msrb.mxu0 %v11468_v27  ;;  %2368 = vmatmul.bf16.vlgmr.msra.gmra.mxu1 %v16737_v12  ;;  %v11092_v27 = vor.u32 %v14617_v60, %v11089_v17  ;;  %v14734_v52 = vld [vmem:[#allocation6 + $0x450] sm:$0xf0]  ;;  %v11367_v61 = vld [vmem:[#allocation6 + $0x2d8] sm:$0xf]  ;;  %v14769_v11 = vld [vmem:[#allocation6 + $0x568] sm:$0xf0] }
 0x125   :  { %2387 = vmatmul.bf16.vlgmr.msra.gmra.mxu2 %v20297_v31  ;;  %2436 = vmatpush.bf16.msrb.mxu1 %v11628_v13  ;;  %v11708_v13 = vor.u32 %v14774_v62, %v11707_v28  ;;  %v11687_v19 = vld [vmem:[#allocation6 + $0x558] sm:$0xf]  ;;  %v14729_v1 = vld [vmem:[#allocation6 + $0x428] sm:$0xf0]  ;;  %v14607_v53 = vld [vmem:[#allocation6 + $0x5c] sm:$0xf] }
 0x126   :  { %2455 = vmatpush.bf16.msrb.mxu2 %v11788_v4  ;;  %2474 = vmatpush.bf16.msrb.mxu3 %v11152_v39  ;;  %v11388_v4 = vor.u32 %v14694_v2, %v11387_v6  ;;  %v11548_v39 = vor.u32 %v14734_v52, %v11547_v23  ;;  %v11527_v63 = vld [vmem:[#allocation6 + $0x418] sm:$0xf]  ;;  %v11049_v49 = vld [vmem:[#allocation6 + $0x6c] sm:$0xf0]  ;;  %v14684_v18 = vld [vmem:[#allocation6 + $0x2c0] sm:$0xf0] }
 0x127   :  { %v11347_v40 = vld [vmem:[#allocation6 + $0x2b0] sm:$0xf]  ;;  %v14764_v48 = vld [vmem:[#allocation6 + $0x540] sm:$0xf0]  ;;  %v11029_v59 = vld [vmem:[#allocation6 + $0x44] sm:$0xf0] }
 0x128   :  { %2418 = vmatpush.bf16.msrb.mxu0 %v11448_v16  ;;  %v11072_v16 = vor.u32 %v14612_v35, %v11069_v33  ;;  %v11667_v43 = vld [vmem:[#allocation6 + $0x530] sm:$0xf]  ;;  %v14724_v24 = vld [vmem:[#allocation6 + $0x400] sm:$0xf0]  ;;  %v11348_v56 = vor.u32 %v14684_v18, %v11347_v40  ;;  %v14679_v36 = vld [vmem:[#allocation6 + $0x298] sm:$0xf0] }
 0x129   :  { %2437 = vmatpush.bf16.msrb.mxu1 %v11608_v37  ;;  %v11688_v37 = vor.u32 %v14769_v11, %v11687_v19  ;;  %v11507_v42 = vld [vmem:[#allocation6 + $0x3f0] sm:$0xf]  ;;  %v11668_v34 = vor.u32 %v14764_v48, %v11667_v43  ;;  %v14719_v38 = vld [vmem:[#allocation6 + $0x3d8] sm:$0xf0]  ;;  %v11647_v3 = vld [vmem:[#allocation6 + $0x508] sm:$0xf] }
 0x12a   :  { %2456 = vmatpush.bf16.msrb.mxu2 %v11768_v7  ;;  %2475 = vmatpush.bf16.msrb.mxu3 %v11132_v21  ;;  %v11368_v7 = vor.u32 %v14689_v22, %v11367_v61  ;;  %v11528_v21 = vor.u32 %v14729_v1, %v11527_v63  ;;  %v14759_v60 = vld [vmem:[#allocation6 + $0x518] sm:$0xf0]  ;;  %v14672_v17 = vld [vmem:[#allocation6 + $0x264] sm:$0xf]  ;;  %v14597_v2 = vld [vmem:[#allocation6 + $0xc] sm:$0xf] }
 0x12b   :  { %v11629_v28 = vld [vmem:[#allocation6 + $0x4f4] sm:$0xf0]  ;;  %v14712_v23 = vld [vmem:[#allocation6 + $0x3a4] sm:$0xf]  ;;  %v11289_v19 = vld [vmem:[#allocation6 + $0x24c] sm:$0xf0] }
 0x12c   :  { %2419 = vmatpush.bf16.msrb.mxu0 %v11428_v45  ;;  %2406 = vmatmul.bf16.vlgmr.msra.gmra.mxu3 %v20300_v44  ;;  %v11052_v45 = vor.u32 %v14607_v53, %v11049_v49  ;;  %v11469_v52 = vld [vmem:[#allocation6 + $0x3b4] sm:$0xf0]  ;;  %v14792_v33 = vld [vmem:[#allocation6 + $0x624] sm:$0xf]  ;;  %v14707_v63 = vld [vmem:[#allocation6 + $0x37c] sm:$0xf] }
 0x12d   :  { %2349 = vmatmul.bf16.vlgmr.msra.gmra.mxu0 %v16378_v9  ;;  %2438 = vmatpush.bf16.msrb.mxu1 %v11588_v29  ;;  %v11327_v29 = vld [vmem:[#allocation6 + $0x288] sm:$0xf]  ;;  %v14747_v53 = vld [vmem:[#allocation6 + $0x4bc] sm:$0xf]  ;;  %v11609_v49 = vld [vmem:[#allocation6 + $0x4cc] sm:$0xf0] }
 0x12e   :  { %2457 = vmatpush.bf16.msrb.mxu2 %v11748_v55  ;;  %2476 = vmatpush.bf16.msrb.mxu3 %v11112_v15  ;;  %v14602_v55 = vld [vmem:[#allocation6 + $0x34] sm:$0xf]  ;;  %v11487_v15 = vld [vmem:[#allocation6 + $0x3c8] sm:$0xf]  ;;  %v11328_v62 = vor.u32 %v14679_v36, %v11327_v29  ;;  %v14787_v40 = vld [vmem:[#allocation6 + $0x5fc] sm:$0xf] }
 0x12f   :  { %v11032_v6 = vor.u32 %v14602_v55, %v11029_v59  ;;  %v11488_v61 = vor.u32 %v14719_v38, %v11487_v15  ;;  %v11769_v18 = vld [vmem:[#allocation6 + $0x60c] sm:$0xf0]  ;;  %v11269_v43 = vld [vmem:[#allocation6 + $0x224] sm:$0xf0]  ;;  %v14782_v36 = vld [vmem:[#allocation6 + $0x5d4] sm:$0xf] }
 0x130   :  { %2420 = vmatpush.bf16.msrb.mxu0 %v11408_v26  ;;  %v11508_v26 = vor.u32 %v14724_v24, %v11507_v42  ;;  %v14702_v42 = vld [vmem:[#allocation6 + $0x354] sm:$0xf]  ;;  %v11772_v24 = vor.u32 %v14787_v40, %v11769_v18  ;;  %v11429_v55 = vld [vmem:[#allocation6 + $0x364] sm:$0xf0]  ;;  %v14657_v15 = vld [vmem:[#allocation6 + $0x1ec] sm:$0xf] }
 0x131   :  { %2439 = vmatpush.bf16.msrb.mxu1 %v11568_v51  ;;  %v14752_v51 = vld [vmem:[#allocation6 + $0x4e4] sm:$0xf]  ;;  %v11589_v59 = vld [vmem:[#allocation6 + $0x4a4] sm:$0xf0]  ;;  %v11249_v38 = vld [vmem:[#allocation6 + $0x1fc] sm:$0xf0] }
 0x132   :  { %2458 = vmatpush.bf16.msrb.mxu2 %v11728_v25  ;;  %2477 = vmatpush.bf16.msrb.mxu3 %v11092_v27  ;;  %v11309_v25 = vld [vmem:[#allocation6 + $0x274] sm:$0xf0]  ;;  %v11009_v27 = vld [vmem:[#allocation6 + $0x1c] sm:$0xf0]  ;;  %v11632_v22 = vor.u32 %v14752_v51, %v11629_v28  ;;  %v11252_v51 = vor.u32 %v14657_v15, %v11249_v38  ;;  %v14777_v28 = vld [vmem:[#allocation6 + $0x5ac] sm:$0xf] }
 0x133   :  { %v11312_v35 = vor.u32 %v14672_v17, %v11309_v25  ;;  %v11012_v11 = vor.u32 %v14597_v2, %v11009_v27  ;;  %v11409_v25 = vld [vmem:[#allocation6 + $0x33c] sm:$0xf0]  ;;  %v14652_v27 = vld [vmem:[#allocation6 + $0x1c4] sm:$0xf]  ;;  %v14727_v40 = vld [vmem:[#allocation6 + $0x41c] sm:$0xf] }
 0x134   :  { %2421 = vmatpush.bf16.msrb.mxu0 %v11388_v4  ;;  %2373 = vmatmul.bf16.gmra.mxu1 %v16777_v41  ;;  %v11648_v4 = vor.u32 %v14759_v60, %v11647_v3  ;;  %v11432_v3 = vor.u32 %v14702_v42, %v11429_v55  ;;  %v14697_v60 = vld [vmem:[#allocation6 + $0x32c] sm:$0xf]  ;;  %v11569_v2 = vld [vmem:[#allocation6 + $0x47c] sm:$0xf0]  ;;  %v11529_v18 = vld [vmem:[#allocation6 + $0x42c] sm:$0xf0] }
 0x135   :  { %2392 = vmatmul.bf16.gmra.mxu2 %v16451_v0  ;;  %2440 = vmatpush.bf16.msrb.mxu1 %v11548_v39  ;;  %v14667_v39 = vld [vmem:[#allocation6 + $0x23c] sm:$0xf]  ;;  %v11189_v42 = vld [vmem:[#allocation6 + $0x184] sm:$0xf0]  ;;  %v11532_v55 = vor.u32 %v14727_v40, %v11529_v18  ;;  %v14762_v38 = vld [vmem:[#allocation6 + $0x534] sm:$0xf] }
 0x136   :  { %2459 = vmatpush.bf16.msrb.mxu2 %v11708_v13  ;;  %2478 = vmatpush.bf16.msrb.mxu3 %v11072_v16  ;;  %v11789_v13 = vld [vmem:[#allocation6 + $0x634] sm:$0xf0]  ;;  %v11472_v16 = vor.u32 %v14712_v23, %v11469_v52  ;;  %v11412_v52 = vor.u32 %v14697_v60, %v11409_v25  ;;  %v11169_v60 = vld [vmem:[#allocation6 + $0x15c] sm:$0xf0]  ;;  %v14630_v40 = vld [vmem:[#allocation6 + $0x110] sm:$0xf0] }
 0x137   :  { %v11792_v1 = vor.u32 %v14792_v33, %v11789_v13  ;;  %v11229_v23 = vld [vmem:[#allocation6 + $0x1d4] sm:$0xf0] }
 0x138   :  { %2422 = vmatpush.bf16.msrb.mxu0 %v11368_v7  ;;  %v11449_v7 = vld [vmem:[#allocation6 + $0x38c] sm:$0xf0]  ;;  %v11389_v13 = vld [vmem:[#allocation6 + $0x314] sm:$0xf0] }
 0x139   :  { %2441 = vmatpush.bf16.msrb.mxu1 %v11528_v21  ;;  %v14662_v21 = vld [vmem:[#allocation6 + $0x214] sm:$0xf]  ;;  %v11452_v48 = vor.u32 %v14707_v63, %v11449_v7  ;;  %v11209_v63 = vld [vmem:[#allocation6 + $0x1ac] sm:$0xf0] }
 0x13a   :  { %2460 = vmatpush.bf16.msrb.mxu2 %v11688_v37  ;;  %2479 = vmatpush.bf16.msrb.mxu3 %v11052_v45  ;;  %v11292_v37 = vor.u32 %v14667_v39, %v11289_v19  ;;  %v11612_v45 = vor.u32 %v14747_v53, %v11609_v49  ;;  %v11272_v29 = vor.u32 %v14662_v21, %v11269_v43  ;;  %v14772_v19 = vld [vmem:[#allocation6 + $0x584] sm:$0xf]  ;;  %v14687_v53 = vld [vmem:[#allocation6 + $0x2dc] sm:$0xf] }
 0x13b   :  { %v11232_v39 = vor.u32 %v14652_v27, %v11229_v23  ;;  %v14767_v43 = vld [vmem:[#allocation6 + $0x55c] sm:$0xf]  ;;  %v11489_v27 = vld [vmem:[#allocation6 + $0x3dc] sm:$0xf0]  ;;  %v14757_v23 = vld [vmem:[#allocation6 + $0x50c] sm:$0xf] }
 0x13c   :  { %2423 = vmatpush.bf16.msrb.mxu0 %v11348_v56  ;;  %2411 = vmatmul.bf16.gmra.mxu3 %v16497_v57  ;;  %v14742_v56 = vld [vmem:[#allocation6 + $0x494] sm:$0xf] }
 0x13d   :  { %2354 = vmatmul.bf16.gmra.mxu0 %v16602_v5  ;;  %2442 = vmatpush.bf16.msrb.mxu1 %v11508_v26  ;;  %v11592_v26 = vor.u32 %v14742_v56, %v11589_v59  ;;  %v14682_v56 = vld [vmem:[#allocation6 + $0x2b4] sm:$0xf] }
 0x13e   :  { %2461 = vmatpush.bf16.msrb.mxu2 %v11668_v34  ;;  %2480 = vmatpush.bf16.msrb.mxu3 %v11032_v6  ;;  %v11749_v34 = vld [vmem:[#allocation6 + $0x5e4] sm:$0xf0]  ;;  %v14737_v6 = vld [vmem:[#allocation6 + $0x46c] sm:$0xf] }
 0x13f   :  { %v11752_v17 = vor.u32 %v14782_v36, %v11749_v34  ;;  %v14722_v36 = vld [vmem:[#allocation6 + $0x3f4] sm:$0xf]  ;;  %v11509_v34 = vld [vmem:[#allocation6 + $0x404] sm:$0xf0] }
 0x140   :  { %2424 = vmatpush.bf16.msrb.mxu0 %v11328_v62  ;;  %v11729_v62 = vld [vmem:[#allocation6 + $0x5bc] sm:$0xf0]  ;;  %v11512_v25 = vor.u32 %v14722_v36, %v11509_v34 }
 0x141   :  { %2443 = vmatpush.bf16.msrb.mxu1 %v11488_v61  ;;  %v11732_v33 = vor.u32 %v14777_v28, %v11729_v62  ;;  %v14732_v61 = vld [vmem:[#allocation6 + $0x444] sm:$0xf]  ;;  %v16795_v28 = vpop.f32.mrf.mxu1 }
 0x142   :  { %2462 = vmatpush.bf16.msrb.mxu2 %v11648_v4  ;;  %2481 = vmatpush.bf16.msrb.mxu3 %v11012_v11  ;;  %v11572_v4 = vor.u32 %v14737_v6, %v11569_v2  ;;  %v11709_v11 = vld [vmem:[#allocation6 + $0x594] sm:$0xf0]  ;;  %v14677_v6 = vld [vmem:[#allocation6 + $0x28c] sm:$0xf]  ;;  %v11329_v2 = vld [vmem:[#allocation6 + $0x29c] sm:$0xf0] }
 0x143   :  { %v11712_v49 = vor.u32 %v14772_v19, %v11709_v11  ;;  %v11332_v19 = vor.u32 %v14677_v6, %v11329_v2  ;;  %v11595_v2 = vld [vmem:[#allocation6 + $0x498] sm:$0xf] }
 0x144   :  { %2493 = vmatpush.bf16.msra.mxu0 %v11312_v35  ;;  %2444 = vmatmul.bf16.vlgmr.msrb.gmra.mxu1 %v16378_v9  ;;  %v14692_v35 = vld [vmem:[#allocation6 + $0x304] sm:$0xf] }
 0x145   :  { %2512 = vmatpush.bf16.msra.mxu1 %v11472_v16  ;;  %2463 = vmatmul.bf16.vlgmr.msrb.gmra.mxu2 %v16737_v12  ;;  %v14647_v16 = vld [vmem:[#allocation6 + $0x19c] sm:$0xf] }
 0x146   :  { %2531 = vmatpush.bf16.msra.mxu2 %v11632_v22  ;;  %2550 = vmatpush.bf16.msra.mxu3 %v11792_v1  ;;  %v11549_v22 = vld [vmem:[#allocation6 + $0x454] sm:$0xf0]  ;;  %v11392_v1 = vor.u32 %v14692_v35, %v11389_v13  ;;  %v11212_v21 = vor.u32 %v14647_v16, %v11209_v63  ;;  %v11155_v35 = vld [vmem:[#allocation6 + $0x128] sm:$0xf]  ;;  %v14755_v63 = vld [vmem:[#allocation6 + $0x4f8] sm:$0xf0] }
 0x147   :  { %v11552_v7 = vor.u32 %v14732_v61, %v11549_v22  ;;  %v11315_v13 = vld [vmem:[#allocation6 + $0x268] sm:$0xf]  ;;  %v14675_v61 = vld [vmem:[#allocation6 + $0x278] sm:$0xf0] }
 0x148   :  { %2494 = vmatpush.bf16.msra.mxu0 %v11292_v37  ;;  %v11369_v37 = vld [vmem:[#allocation6 + $0x2ec] sm:$0xf0]  ;;  %v11475_v22 = vld [vmem:[#allocation6 + $0x3a8] sm:$0xf] }
 0x149   :  { %2513 = vmatpush.bf16.msra.mxu1 %v11452_v48  ;;  %v11689_v48 = vld [vmem:[#allocation6 + $0x56c] sm:$0xf0]  ;;  %v11635_v16 = vld [vmem:[#allocation6 + $0x4e8] sm:$0xf]  ;;  %v16799_v36 = vpop.f32.mrf.mxu1 }
 0x14a   :  { %2532 = vmatpush.bf16.msra.mxu2 %v11612_v45  ;;  %2551 = vmatpush.bf16.msra.mxu3 %v11772_v24  ;;  %v14642_v45 = vld [vmem:[#allocation6 + $0x174] sm:$0xf]  ;;  %v11372_v24 = vor.u32 %v14687_v53, %v11369_v37  ;;  %v11692_v59 = vor.u32 %v14767_v43, %v11689_v48  ;;  %v11316_v53 = vor.u32 %v14675_v61, %v11315_v13  ;;  %v11135_v37 = vld [vmem:[#allocation6 + $0x100] sm:$0xf]  ;;  %v11255_v13 = vld [vmem:[#allocation6 + $0x1f0] sm:$0xf] }
 0x14b   :  { %v11192_v15 = vor.u32 %v14642_v45, %v11189_v42  ;;  %v11636_v18 = vor.u32 %v14755_v63, %v11635_v16  ;;  %v14710_v43 = vld [vmem:[#allocation6 + $0x390] sm:$0xf0]  ;;  %v11295_v48 = vld [vmem:[#allocation6 + $0x240] sm:$0xf]  ;;  %v11136_v42 = vor.u32 %v14630_v40, %v11135_v37  ;;  %v14660_v61 = vld [vmem:[#allocation6 + $0x200] sm:$0xf0] }
 0x14c   :  { %2495 = vmatpush.bf16.msra.mxu0 %v11272_v29  ;;  %2482 = vmatmul.bf16.vlgmr.msrb.gmra.mxu3 %v20297_v31  ;;  %v11349_v29 = vld [vmem:[#allocation6 + $0x2c4] sm:$0xf0]  ;;  %v14670_v45 = vld [vmem:[#allocation6 + $0x250] sm:$0xf0]  ;;  %v14615_v63 = vld [vmem:[#allocation6 + $0x98] sm:$0xf0] }
 0x14d   :  { %2514 = vmatpush.bf16.msra.mxu1 %v11432_v3  ;;  %2425 = vmatmul.bf16.vlgmr.msrb.gmra.mxu0 %v20303_v10  ;;  %v11669_v3 = vld [vmem:[#allocation6 + $0x544] sm:$0xf0]  ;;  %v11296_v34 = vor.u32 %v14670_v45, %v11295_v48  ;;  %v14735_v48 = vld [vmem:[#allocation6 + $0x458] sm:$0xf0] }
 0x14e   :  { %2533 = vmatpush.bf16.msra.mxu2 %v11592_v26  ;;  %2552 = vmatpush.bf16.msra.mxu3 %v11752_v17  ;;  %v14637_v26 = vld [vmem:[#allocation6 + $0x14c] sm:$0xf]  ;;  %v11352_v17 = vor.u32 %v14682_v56, %v11349_v29  ;;  %v11672_v62 = vor.u32 %v14762_v38, %v11669_v3  ;;  %v16801_v3 = vpop.f32.mrf.mxu2  ;;  %v11075_v16 = vld [vmem:[#allocation6 + $0x88] sm:$0xf] }
 0x14f   :  { %v14625_v29 = vld [vmem:[#allocation6 + $0xe8] sm:$0xf0]  ;;  %v11235_v40 = vld [vmem:[#allocation6 + $0x1c8] sm:$0xf] }
 0x150   :  { %2496 = vmatpush.bf16.msra.mxu0 %v11252_v51  ;;  %v14717_v51 = vld [vmem:[#allocation6 + $0x3cc] sm:$0xf] }
 0x151   :  { %2515 = vmatpush.bf16.msra.mxu1 %v11412_v52  ;;  %v11649_v52 = vld [vmem:[#allocation6 + $0x51c] sm:$0xf0]  ;;  %v11492_v11 = vor.u32 %v14717_v51, %v11489_v27  ;;  %v14705_v38 = vld [vmem:[#allocation6 + $0x368] sm:$0xf0]  ;;  %v11095_v27 = vld [vmem:[#allocation6 + $0xb0] sm:$0xf] }
 0x152   :  { %2534 = vmatpush.bf16.msra.mxu2 %v11572_v4  ;;  %2553 = vmatpush.bf16.msra.mxu3 %v11732_v33  ;;  %v11172_v4 = vor.u32 %v14637_v26, %v11169_v60  ;;  %v14635_v33 = vld [vmem:[#allocation6 + $0x138] sm:$0xf0]  ;;  %v11275_v60 = vld [vmem:[#allocation6 + $0x218] sm:$0xf]  ;;  %v14745_v51 = vld [vmem:[#allocation6 + $0x4a8] sm:$0xf0] }
 0x154   :  { %2497 = vmatpush.bf16.msra.mxu0 %v11232_v39  ;;  %2449 = vmatmul.bf16.gmra.mxu1 %v16602_v5  ;;  %v14715_v39 = vld [vmem:[#allocation6 + $0x3b8] sm:$0xf0] }
 0x155   :  { %2516 = vmatpush.bf16.msra.mxu1 %v11392_v1  ;;  %2468 = vmatmul.bf16.gmra.mxu2 %v16777_v41  ;;  %v11652_v1 = vor.u32 %v14757_v23, %v11649_v52  ;;  %v14620_v23 = vld [vmem:[#allocation6 + $0xc0] sm:$0xf0] }
 0x156   :  { %2535 = vmatpush.bf16.msra.mxu2 %v11552_v7  ;;  %2554 = vmatpush.bf16.msra.mxu3 %v11712_v49  ;;  %v11156_v7 = vor.u32 %v14635_v33, %v11155_v35  ;;  %v11476_v49 = vor.u32 %v14715_v39, %v11475_v22  ;;  %v14700_v35 = vld [vmem:[#allocation6 + $0x340] sm:$0xf0]  ;;  %v11596_v33 = vor.u32 %v14745_v51, %v11595_v2  ;;  %v11575_v39 = vld [vmem:[#allocation6 + $0x470] sm:$0xf]  ;;  %v16810_v45 = vpop.f32.mrf.mxu2  ;;  %v14730_v2 = vld [vmem:[#allocation6 + $0x430] sm:$0xf0] }
 0x157   :  { %v11096_v22 = vor.u32 %v14620_v23, %v11095_v27  ;;  %v14605_v27 = vld [vmem:[#allocation6 + $0x48] sm:$0xf0] }
 0x158   :  { %2498 = vmatpush.bf16.msra.mxu0 %v11212_v21  ;;  %v11455_v21 = vld [vmem:[#allocation6 + $0x380] sm:$0xf] }
 0x159   :  { %2517 = vmatpush.bf16.msra.mxu1 %v11372_v24  ;;  %v11615_v24 = vld [vmem:[#allocation6 + $0x4c0] sm:$0xf]  ;;  %v11456_v56 = vor.u32 %v14710_v43, %v11455_v21  ;;  %v11076_v21 = vor.u32 %v14615_v63, %v11075_v16  ;;  %v11555_v43 = vld [vmem:[#allocation6 + $0x448] sm:$0xf]  ;;  %v11015_v63 = vld [vmem:[#allocation6 + $0x10] sm:$0xf] }
 0x15a   :  { %2536 = vmatpush.bf16.msra.mxu2 %v11532_v55  ;;  %2555 = vmatpush.bf16.msra.mxu3 %v11692_v59  ;;  %v14750_v55 = vld [vmem:[#allocation6 + $0x4d0] sm:$0xf0]  ;;  %v11115_v59 = vld [vmem:[#allocation6 + $0xd8] sm:$0xf] }
 0x15b   :  { %v11616_v26 = vor.u32 %v14750_v55, %v11615_v24  ;;  %v11116_v6 = vor.u32 %v14625_v29, %v11115_v59  ;;  %v11055_v24 = vld [vmem:[#allocation6 + $0x60] sm:$0xf]  ;;  %v14610_v55 = vld [vmem:[#allocation6 + $0x70] sm:$0xf0] }
 0x15c   :  { %2499 = vmatpush.bf16.msra.mxu0 %v11192_v15  ;;  %2487 = vmatmul.bf16.gmra.mxu3 %v16451_v0  ;;  %v11435_v15 = vld [vmem:[#allocation6 + $0x358] sm:$0xf] }
 0x15d   :  { %2518 = vmatpush.bf16.msra.mxu1 %v11352_v17  ;;  %2430 = vmatmul.bf16.gmra.mxu0 %v16548_v54  ;;  %v14665_v17 = vld [vmem:[#allocation6 + $0x228] sm:$0xf0] }
 0x15e   :  { %2537 = vmatpush.bf16.msra.mxu2 %v11512_v25  ;;  %2556 = vmatpush.bf16.msra.mxu3 %v11672_v62  ;;  %v16803_v25 = vpop.f32.mrf.mxu0  ;;  %v11436_v62 = vor.u32 %v14705_v38, %v11435_v15  ;;  %v11276_v52 = vor.u32 %v14665_v17, %v11275_v60  ;;  %v14690_v15 = vld [vmem:[#allocation6 + $0x2f0] sm:$0xf0]  ;;  %v11556_v38 = vor.u32 %v14735_v48, %v11555_v43  ;;  %v14640_v43 = vld [vmem:[#allocation6 + $0x160] sm:$0xf0]  ;;  %v11335_v48 = vld [vmem:[#allocation6 + $0x290] sm:$0xf] }
 0x15f   :  { %v14650_v60 = vld [vmem:[#allocation6 + $0x1b0] sm:$0xf0]  ;;  %v11056_v17 = vor.u32 %v14610_v55, %v11055_v24  ;;  %v14680_v55 = vld [vmem:[#allocation6 + $0x2a0] sm:$0xf0] }
 0x160   :  { %2500 = vmatpush.bf16.msra.mxu0 %v11172_v4  ;;  %v11415_v4 = vld [vmem:[#allocation6 + $0x330] sm:$0xf] }
 0x161   :  { %2519 = vmatpush.bf16.msra.mxu1 %v11332_v19  ;;  %v14740_v19 = vld [vmem:[#allocation6 + $0x480] sm:$0xf0] }
 0x162   :  { %2538 = vmatpush.bf16.msra.mxu2 %v11492_v11  ;;  %2557 = vmatpush.bf16.msra.mxu3 %v11652_v1  ;;  %v11416_v11 = vor.u32 %v14700_v35, %v11415_v4  ;;  %v16807_v1 = vpop.f32.mrf.mxu1  ;;  %v11576_v37 = vor.u32 %v14740_v19, %v11575_v39  ;;  %v14685_v4 = vld [vmem:[#allocation6 + $0x2c8] sm:$0xf0]  ;;  %v11515_v39 = vld [vmem:[#allocation6 + $0x3f8] sm:$0xf] }
 0x163   :  { %v14725_v19 = vld [vmem:[#allocation6 + $0x408] sm:$0xf0] }
 0x164   :  { %2569 = vmatpush.bf16.msrb.mxu0 %v11156_v7  ;;  %2520 = vmatmul.bf16.vlgmr.msra.gmra.mxu1 %v20303_v10  ;;  %v11256_v7 = vor.u32 %v14660_v61, %v11255_v13  ;;  %v14645_v13 = vld [vmem:[#allocation6 + $0x188] sm:$0xf0] }
 0x165   :  { %2588 = vmatpush.bf16.msrb.mxu1 %v11316_v53  ;;  %2539 = vmatmul.bf16.vlgmr.msra.gmra.mxu2 %v16378_v9  ;;  %v11395_v53 = vld [vmem:[#allocation6 + $0x308] sm:$0xf] }
 0x166   :  { %2607 = vmatpush.bf16.msrb.mxu2 %v11476_v49  ;;  %2626 = vmatpush.bf16.msrb.mxu3 %v11636_v18  ;;  %v14695_v49 = vld [vmem:[#allocation6 + $0x318] sm:$0xf0]  ;;  %v16814_v59 = vpop.f32.mrf.mxu0 }
 0x167   :  { %v14655_v18 = vld [vmem:[#allocation6 + $0x1d8] sm:$0xf0] }
 0x168   :  { %2570 = vmatpush.bf16.msrb.mxu0 %v11136_v42  ;;  %v11396_v42 = vor.u32 %v14695_v49, %v11395_v53  ;;  %v11236_v29 = vor.u32 %v14655_v18, %v11235_v40 }
 0x169   :  { %2589 = vmatpush.bf16.msrb.mxu1 %v11296_v34  ;;  %v11375_v34 = vld [vmem:[#allocation6 + $0x2e0] sm:$0xf] }
 0x16a   :  { %2608 = vmatpush.bf16.msrb.mxu2 %v11456_v56  ;;  %2627 = vmatpush.bf16.msrb.mxu3 %v11616_v26  ;;  %v16812_v56 = vpop.f32.mrf.mxu3  ;;  %v11215_v26 = vld [vmem:[#allocation6 + $0x1a0] sm:$0xf]  ;;  %v11376_v51 = vor.u32 %v14690_v15, %v11375_v34  ;;  %v16817_v61 = vpop.f32.mrf.mxu1  ;;  %v14720_v34 = vld [vmem:[#allocation6 + $0x3e0] sm:$0xf0] }
 0x16b   :  { %v11216_v23 = vor.u32 %v14650_v60, %v11215_v26  ;;  %v11795_v60 = vld [vmem:[#allocation6 + $0x628] sm:$0xf] }
 0x16c   :  { %2571 = vmatpush.bf16.msrb.mxu0 %v11116_v6  ;;  %2558 = vmatmul.bf16.vlgmr.msra.gmra.mxu3 %v16737_v12  ;;  %v11535_v6 = vld [vmem:[#allocation6 + $0x420] sm:$0xf] }
 0x16d   :  { %2590 = vmatpush.bf16.msrb.mxu1 %v11276_v52  ;;  %2501 = vmatmul.bf16.vlgmr.msra.gmra.mxu0 %v20300_v44  ;;  %v11355_v52 = vld [vmem:[#allocation6 + $0x2b8] sm:$0xf]  ;;  %v11536_v35 = vor.u32 %v14730_v2, %v11535_v6  ;;  %v11775_v6 = vld [vmem:[#allocation6 + $0x600] sm:$0xf] }
 0x16e   :  { %2609 = vmatpush.bf16.msrb.mxu2 %v11436_v62  ;;  %2628 = vmatpush.bf16.msrb.mxu3 %v11596_v33  ;;  %v11035_v62 = vld [vmem:[#allocation6 + $0x38] sm:$0xf]  ;;  %v11356_v16 = vor.u32 %v14685_v4, %v11355_v52  ;;  %v16822_v53 = vpop.f32.mrf.mxu0 }
 0x16f   :  { %v11195_v33 = vld [vmem:[#allocation6 + $0x178] sm:$0xf] }
 0x170   :  { %2572 = vmatpush.bf16.msrb.mxu0 %v11096_v22  ;;  %v11036_v22 = vor.u32 %v14605_v27, %v11035_v62  ;;  %v11196_v49 = vor.u32 %v14645_v13, %v11195_v33  ;;  %v11944_v62 = vld [vmem:[#allocation6 + $0x758] sm:$0xf]  ;;  %v14833_v27 = vld [vmem:[#allocation6 + $0x768] sm:$0xf0]  ;;  %v14828_v13 = vld [vmem:[#allocation6 + $0x740] sm:$0xf0] }
 0x171   :  { %2591 = vmatpush.bf16.msrb.mxu1 %v11256_v7  ;;  %v14600_v7 = vld [vmem:[#allocation6 + $0x20] sm:$0xf0]  ;;  %v11945_v4 = vor.u32 %v14833_v27, %v11944_v62  ;;  %v14818_v62 = vld [vmem:[#allocation6 + $0x6f0] sm:$0xf0] }
 0x172   :  { %2610 = vmatpush.bf16.msrb.mxu2 %v11416_v11  ;;  %2629 = vmatpush.bf16.msrb.mxu3 %v11576_v37  ;;  %v11516_v37 = vor.u32 %v14725_v19, %v11515_v39  ;;  %v16825_v40 = vpop.f32.mrf.mxu3  ;;  %v11016_v18 = vor.u32 %v14600_v7, %v11015_v63  ;;  %v14785_v39 = vld [vmem:[#allocation6 + $0x5e8] sm:$0xf0] }
 0x173   :  { %v16820_v11 = vpop.f32.mrf.mxu2 }
 0x174   :  { %2573 = vmatpush.bf16.msrb.mxu0 %v11076_v21  ;;  %2525 = vmatmul.bf16.gmra.mxu1 %v16548_v54  ;;  %v11175_v21 = vld [vmem:[#allocation6 + $0x150] sm:$0xf] }
 0x175   :  { %2592 = vmatpush.bf16.msrb.mxu1 %v11236_v29  ;;  %2544 = vmatmul.bf16.gmra.mxu2 %v16602_v5  ;;  %v11176_v24 = vor.u32 %v14640_v43, %v11175_v21  ;;  %v11495_v29 = vld [vmem:[#allocation6 + $0x3d0] sm:$0xf]  ;;  %v14780_v43 = vld [vmem:[#allocation6 + $0x5c0] sm:$0xf0] }
 0x176   :  { %2611 = vmatpush.bf16.msrb.mxu2 %v11396_v42  ;;  %2630 = vmatpush.bf16.msrb.mxu3 %v11556_v38  ;;  %v11336_v38 = vor.u32 %v14680_v55, %v11335_v48  ;;  %v11496_v26 = vor.u32 %v14720_v34, %v11495_v29  ;;  %v16835_v52 = vpop.f32.mrf.mxu0  ;;  %v11735_v21 = vld [vmem:[#allocation6 + $0x5b0] sm:$0xf]  ;;  %v2220_v29 = vadd.f32 %v16799_v36, %v16814_v59  ;;  %v14775_v36 = vld [vmem:[#allocation6 + $0x598] sm:$0xf0]  ;;  %v11884_v59 = vld [vmem:[#allocation6 + $0x6e0] sm:$0xf] }
 0x178   :  { %2574 = vmatpush.bf16.msrb.mxu0 %v11056_v17  ;;  %v14795_v17 = vld [vmem:[#allocation6 + $0x638] sm:$0xf0] }
 0x179   :  { %2593 = vmatpush.bf16.msrb.mxu1 %v11216_v23  ;;  %v11796_v2 = vor.u32 %v14795_v17, %v11795_v60  ;;  %v11904_v60 = vld [vmem:[#allocation6 + $0x708] sm:$0xf]  ;;  %v14823_v17 = vld [vmem:[#allocation6 + $0x718] sm:$0xf0] }
 0x17a   :  { %2612 = vmatpush.bf16.msrb.mxu2 %v11376_v51  ;;  %2631 = vmatpush.bf16.msrb.mxu3 %v11536_v35  ;;  %v14790_v51 = vld [vmem:[#allocation6 + $0x610] sm:$0xf0]  ;;  %v11924_v35 = vld [vmem:[#allocation6 + $0x730] sm:$0xf] }
 0x17b   :  { %v16828_v42 = vpop.f32.mrf.mxu2  ;;  %v11776_v33 = vor.u32 %v14790_v51, %v11775_v6  ;;  %v11925_v19 = vor.u32 %v14828_v13, %v11924_v35  ;;  %v11715_v6 = vld [vmem:[#allocation6 + $0x588] sm:$0xf]  ;;  %v11905_v51 = vor.u32 %v14823_v17, %v11904_v60  ;;  %v14770_v35 = vld [vmem:[#allocation6 + $0x570] sm:$0xf0]  ;;  %v11885_v13 = vor.u32 %v14818_v62, %v11884_v59  ;;  %v11844_v60 = vld [vmem:[#allocation6 + $0x690] sm:$0xf] }
 0x17c   :  { %2575 = vmatpush.bf16.msrb.mxu0 %v11036_v22  ;;  %2563 = vmatmul.bf16.gmra.mxu3 %v16777_v41  ;;  %v11755_v22 = vld [vmem:[#allocation6 + $0x5d8] sm:$0xf]  ;;  %v14808_v17 = vld [vmem:[#allocation6 + $0x6a0] sm:$0xf0] }
 0x17d   :  { %2594 = vmatpush.bf16.msrb.mxu1 %v11196_v49  ;;  %2506 = vmatmul.bf16.gmra.mxu0 %v16497_v57  ;;  %v16831_v15 = vpop.f32.mrf.mxu1  ;;  %v11756_v7 = vor.u32 %v14785_v39, %v11755_v22  ;;  %v16841_v49 = vld [vmem:[#allocation7] sm:$0x1f] }
 0x17e   :  { %2613 = vmatpush.bf16.msrb.mxu2 %v11356_v16  ;;  %2632 = vmatpush.bf16.msrb.mxu3 %v11516_v37  ;;  %v2218_v16 = vadd.f32 %v16795_v28, %v16803_v25  ;;  %v16850_v28 = vld [vmem:[#allocation9] sm:$0x1f]  ;;  %v11736_v25 = vor.u32 %v14780_v43, %v11735_v21  ;;  %v14765_v43 = vld [vmem:[#allocation6 + $0x548] sm:$0xf0] }
 0x17f   :  { %v16833_v23 = vpop.f32.mrf.mxu3  ;;  %v16857_v55 = vperm.slane %v16850_v28, 0  ;;  %v11675_v21 = vld [vmem:[#allocation6 + $0x538] sm:$0xf] }
 0x180   :  { %2576 = vmatpush.bf16.msrb.mxu0 %v11016_v18  ;;  %v2237_v63 = vadd.f32 %v16801_v3, %v2218_v16  ;;  %v11864_v16 = vld [vmem:[#allocation6 + $0x6b8] sm:$0xf] }
 0x181   :  { %2595 = vmatpush.bf16.msrb.mxu1 %v11176_v24 }
 0x182   :  { %2614 = vmatpush.bf16.msrb.mxu2 %v11336_v38  ;;  %2633 = vmatpush.bf16.msrb.mxu3 %v11496_v26  ;;  %v2256_v3 = vadd.f32 %v16812_v56, %v2237_v63  ;;  %v2239_v56 = vadd.f32 %v16810_v45, %v2220_v29  ;;  %v14813_v63 = vld [vmem:[#allocation6 + $0x6c8] sm:$0xf0] }
 0x183   :  { %v11865_v29 = vor.u32 %v14813_v63, %v11864_v16 }
 0x184   :  { %2645 = vmatpush.bf16.msra.mxu0 %v11796_v2  ;;  %2596 = vmatmul.bf16.vlgmr.msrb.gmra.mxu1 %v20300_v44  ;;  %v16854_v44 = vperm.slane %v16841_v49, 0 }
 0x185   :  { %4643 = vmatpush.bf16.msra.mxu1 %v11945_v4  ;;  %2615 = vmatmul.bf16.vlgmr.msrb.gmra.mxu2 %v20303_v10  ;;  %v16844_v37 = vpop.f32.mrf.mxu2  ;;  %v16846_v18 = vpop.f32.mrf.mxu1  ;;  %v11695_v4 = vld [vmem:[#allocation6 + $0x560] sm:$0xf] }
 0x187   :  { %v16848_v48 = vpop.f32.mrf.mxu3 }
 0x188   :  { %2646 = vmatpush.bf16.msra.mxu0 %v11776_v33 }
 0x189   :  { %4644 = vmatpush.bf16.msra.mxu1 %v11925_v19  ;;  %v2274_v24 = vpop.f32.mrf.mxu0  ;;  %v11696_v19 = vor.u32 %v14770_v35, %v11695_v4  ;;  %v11845_v35 = vor.u32 %v14808_v17, %v11844_v60 }
 0x18a   :  { %v2275_v10 = vadd.f32 %v2274_v24, %v2256_v3  ;;  %v2223_v3 = vadd.f32 %v16807_v1, %v16822_v53  ;;  %v16883_v24 = vld [vmem:[%s20066_s2 + $0x28] sm:$0x1f]  ;;  %v2225_v1 = vadd.f32 %v16817_v61, %v16835_v52  ;;  %v11655_v61 = vld [vmem:[#allocation6 + $0x510] sm:$0xf]  ;;  %v14760_v52 = vld [vmem:[#allocation6 + $0x520] sm:$0xf0] }
 0x18b   :  { %v16891_v53 = vperm.slane %v16883_v24, 0 }
 0x18c   :  { %2647 = vmatpush.bf16.msra.mxu0 %v11756_v7  ;;  %v2676_v34 = vmul.f32 %v16854_v44, %v2275_v10  ;;  %2634 = vmatmul.bf16.vlgmr.msrb.gmra.mxu3 %v16378_v9  ;;  %v11716_v9 = vor.u32 %v14775_v36, %v11715_v6  ;;  %v2244_v62 = vadd.f32 %v16828_v42, %v2225_v1  ;;  %v16936_v1 = vperm.slane %v16850_v28, 1 }
 0x18d   :  { %2577 = vmatmul.bf16.vlgmr.msrb.gmra.mxu0 %v20297_v31  ;;  %v16865_v38 = vpop.f32.mrf.mxu2  ;;  %v16867_v26 = vpop.f32.mrf.mxu1  ;;  %4645 = vmatpush.bf16.msra.mxu1 %v11905_v51  ;;  %v2258_v31 = vadd.f32 %v16825_v40, %v2239_v56  ;;  %v11676_v56 = vor.u32 %v14765_v43, %v11675_v21 }
 0x18e   :  { %v2708_v2 = vadd.f32 %v16857_v55, %v2676_v34  ;;  %v2242_v34 = vadd.f32 %v16820_v11, %v2223_v3 }
 0x18f   :  { %v2331_v27 = vpop.f32.mrf.mxu3 }
 0x190   :  { %2648 = vmatpush.bf16.msra.mxu0 %v11736_v25  ;;  %v16870_v45 = vmax.f32 %v2708_v2, 0.0  ;;  %v20306_v2 = vld [vmem:[#allocation28_spill] sm:$0xff] }
 0x191   :  { %v2276_v33 = vpop.f32.mrf.mxu0  ;;  %4646 = vmatpush.bf16.msra.mxu1 %v11885_v13 }
 0x192   :  { %v2774_v22 = vrot.slane %v16870_v45, 6  ;;  %v2899_v39 = vrot.slane %v16870_v45, 7  ;;  %v2277_v7 = vadd.f32 %v2276_v33, %v2258_v31  ;;  %v2261_v31 = vadd.f32 %v16833_v23, %v2242_v34 }
 0x193   :  { %v16908_v33 = vperm.slane %v16883_v24, 2  ;;  %v2315_v23 = vadd.f32 %v16865_v38, %v16846_v18  ;;  %v20308_v18 = vld [vmem:[#allocation31_spill] sm:$0xff] }
 0x194   :  { %2649 = vmatpush.bf16.msra.mxu0 %v11716_v9  ;;  %v2829_v25 = vsel %vm219_vm0, 0.0, %v2774_v22  ;;  %v2954_v40 = vsel %vm369_vm1, 0.0, %v2899_v39  ;;  %2601 = vmatmul.bf16.gmra.mxu1 %v16497_v57  ;;  %v2681_v10 = vmul.f32 %v16854_v44, %v2277_v7  ;;  %v2313_v9 = vadd.f32 %v16844_v37, %v16831_v15 }
 0x195   :  { %2620 = vmatmul.bf16.gmra.mxu2 %v16548_v54  ;;  %v2834_v6 = vmul.f32 %v2829_v25, %v20291_v58  ;;  %v2959_v51 = vmul.f32 %v2954_v40, %v20306_v2  ;;  %v16896_v54 = vperm.slane %v16883_v24, 1  ;;  %v16899_v59 = vpop.f32.mrf.mxu1  ;;  %4647 = vmatpush.bf16.msra.mxu1 %v11865_v29  ;;  %v2263_v37 = vadd.f32 %v16848_v48, %v2244_v62  ;;  %v16951_v62 = vld [vmem:[%s20066_s2 + $0x30] sm:$0x1f] }
 0x196   :  { %v2317_v57 = vpop.f32.mrf.mxu2  ;;  %v2713_v11 = vadd.f32 %v16857_v55, %v2681_v10  ;;  %v16915_v7 = vadd.f32 %v2331_v27, %v2313_v9  ;;  %v16925_v40 = vperm.slane %v16841_v49, 1  ;;  %v3069_v48 = vrot.slane %v16870_v45, 1  ;;  %v20307_v27 = vld [vmem:[#allocation32_spill] sm:$0xff] }
 0x197   :  { %v2333_v36 = vpop.f32.mrf.mxu3  ;;  %v2859_v16 = vmul.f32 %v16891_v53, %v2834_v6  ;;  %v2984_v63 = vmul.f32 %v16896_v54, %v2959_v51  ;;  %v16944_v6 = vadd.f32 %v2317_v57, %v16867_v26  ;;  %v11824_v51 = vld [vmem:[#allocation6 + $0x668] sm:$0xf] }
 0x198   :  { %2650 = vmatpush.bf16.msra.mxu0 %v11696_v19  ;;  %v16904_v4 = vmax.f32 %v2713_v11, 0.0  ;;  %v11656_v19 = vor.u32 %v14760_v52, %v11655_v61  ;;  %v16940_v60 = vadd.f32 %v2333_v36, %v2315_v23  ;;  %v14803_v11 = vld [vmem:[#allocation6 + $0x678] sm:$0xf0]  ;;  %v11804_v61 = vld [vmem:[#allocation6 + $0x640] sm:$0xf] }
 0x199   :  { %4648 = vmatpush.bf16.msra.mxu1 %v11845_v35  ;;  %v11825_v9 = vor.u32 %v14803_v11, %v11824_v51  ;;  %v14798_v35 = vld [vmem:[#allocation6 + $0x650] sm:$0xf0] }
 0x19a   :  { %v2279_v13 = vpop.f32.mrf.mxu0  ;;  %v2779_v42 = vrot.slane %v16904_v4, 6  ;;  %v2904_v15 = vrot.slane %v16904_v4, 7  ;;  %v3070_v25 = vrot.slane %v16904_v4, 1  ;;  %v3195_v34 = vrot.slane %v16904_v4, 2 }
 0x19b   :  { %v2280_v21 = vadd.f32 %v2279_v13, %v2261_v31  ;;  %v16959_v13 = vperm.slane %v16951_v62, 0 }
 0x19c   :  { %2651 = vmatpush.bf16.msra.mxu0 %v11676_v56  ;;  %2639 = vmatmul.bf16.gmra.mxu3 %v16602_v5  ;;  %v2780_v43 = vsel %vm219_vm0, %v2774_v22, %v2779_v42  ;;  %v2905_v3 = vsel %vm369_vm1, %v2899_v39, %v2904_v15  ;;  %v3004_v22 = vadd.f32 %v2984_v63, %v2859_v16  ;;  %v3194_v39 = vrot.slane %v16870_v45, 2 }
 0x19d   :  { %2582 = vmatmul.bf16.gmra.mxu0 %v16451_v0  ;;  %v2839_v10 = vmul.f32 %v2780_v43, %v20307_v27  ;;  %v2964_v38 = vmul.f32 %v2905_v3, %v20308_v18  ;;  %v2686_v5 = vmul.f32 %v16854_v44, %v2280_v21  ;;  %v3029_v56 = vmul.f32 %v16908_v33, %v16870_v45 }
 0x19e   :  { %v2319_v29 = vpop.f32.mrf.mxu2  ;;  %v3071_v31 = vsel %vm565_vm2, %v3069_v48, %v3070_v25  ;;  %v16963_v63 = vperm.slane %v16883_v24, 3  ;;  %4649 = vmatpush.bf16.msra.mxu1 %v11825_v9  ;;  %v11805_v43 = vor.u32 %v14798_v35, %v11804_v61  ;;  %v3196_v3 = vsel %vm716_vm3, %v3194_v39, %v3195_v34  ;;  %v20310_v61 = vld [vmem:[#allocation36_spill] sm:$0xff] }
 0x19f   :  { %v16933_v0 = vpop.f32.mrf.mxu3  ;;  %v2718_v17 = vadd.f32 %v16857_v55, %v2686_v5  ;;  %v2864_v45 = vmul.f32 %v16891_v53, %v2839_v10  ;;  %v2989_v36 = vmul.f32 %v16896_v54, %v2964_v38  ;;  %v3049_v23 = vadd.f32 %v3029_v56, %v3004_v22 }
 0x1a0   :  { %2652 = vmatpush.bf16.msra.mxu0 %v11656_v19  ;;  %v20309_v19 = vld [vmem:[#allocation21_spill] sm:$0xff]  ;;  %v16973_v22 = vperm.slane %v16883_v24, 4  ;;  %v3254_v9 = vmul.f32 %v3196_v3, %v20310_v61  ;;  %v20311_v24 = vld [vmem:[#allocation23_spill] sm:$0xff] }
 0x1a1   :  { %v16946_v52 = vpop.f32.mrf.mxu1  ;;  %v16956_v26 = vmax.f32 %v2718_v17, 0.0  ;;  %v3129_v16 = vmul.f32 %v3071_v31, %v20309_v19  ;;  %v3009_v5 = vadd.f32 %v2989_v36, %v2864_v45 }
 0x1a2   :  { %v2281_v57 = vpop.f32.mrf.mxu0  ;;  %4650 = vmatpush.bf16.msra.mxu1 %v11805_v43  ;;  %v2320_v43 = vadd.f32 %v2319_v29, %v16899_v59 }
 0x1a3   :  { %v2282_v21 = vadd.f32 %v2281_v57, %v2263_v37  ;;  %v2789_v10 = vrot.slane %v16956_v26, 6  ;;  %v2914_v48 = vrot.slane %v16956_v26, 7  ;;  %v20138_v38 = vrot.slane %v16956_v26, 1  ;;  %v12104_v57 = vld [vmem:[#allocation6 + $0x898] sm:$0xf] }
 0x1a4   :  { %v20141_v17 = vrot.slane %v16956_v26, 2  ;;  %v3154_v11 = vmul.f32 %v16963_v63, %v3129_v16  ;;  %v16988_v16 = vperm.slane %v16951_v62, 1 }
 0x1a5   :  { %v2691_v51 = vmul.f32 %v16854_v44, %v2282_v21  ;;  %v2790_v37 = vsel %vm219_vm0, %v2779_v42, %v2789_v10  ;;  %v2915_v39 = vsel %vm369_vm1, %v2904_v15, %v2914_v48  ;;  %v3085_v56 = vsel %vm565_vm2, %v3070_v25, %v20138_v38  ;;  %v14873_v42 = vld [vmem:[#allocation6 + $0x8a8] sm:$0xf0] }
 0x1a6   :  { %v2844_v35 = vmul.f32 %v2790_v37, %v16228_v8  ;;  %v2969_v45 = vmul.f32 %v2915_v39, %v16299_v46  ;;  %v3134_v31 = vmul.f32 %v3085_v56, %v20311_v24  ;;  %v3034_v15 = vmul.f32 %v16908_v33, %v16904_v4  ;;  %v20312_v24 = vld [vmem:[#allocation35_spill] sm:$0xff] }
 0x1a7   :  { %v2723_v44 = vadd.f32 %v16857_v55, %v2691_v51  ;;  %v2338_v36 = vpop.f32.mrf.mxu3  ;;  %v3174_v21 = vadd.f32 %v3154_v11, %v3049_v23  ;;  %v3210_v3 = vsel %vm716_vm3, %v3195_v34, %v20141_v17  ;;  %v3279_v4 = vmul.f32 %v16973_v22, %v3254_v9  ;;  %v17004_v11 = vld [vmem:[#allocation4 + $0x5] sm:$0x1f] }
 0x1a8   :  { %v16990_v25 = vpop.f32.mrf.mxu2  ;;  %v3159_v37 = vmul.f32 %v16963_v63, %v3134_v31  ;;  %v2869_v39 = vmul.f32 %v16891_v53, %v2844_v35  ;;  %v3054_v38 = vadd.f32 %v3034_v15, %v3009_v5  ;;  %v3259_v23 = vmul.f32 %v3210_v3, %v20312_v24  ;;  %20313 = vst [vmem:[#allocation25_spill] sm:$0xff] %v17004_v11 }
 0x1a9   :  { %v16995_v55 = vmax.f32 %v2723_v44, 0.0  ;;  %v16998_v51 = vpop.f32.mrf.mxu1  ;;  %v12105_v46 = vor.u32 %v14873_v42, %v12104_v57  ;;  %v2994_v34 = vmul.f32 %v16896_v54, %v2969_v45  ;;  %v3299_v29 = vadd.f32 %v3279_v4, %v3174_v21  ;;  %v12084_v42 = vld [vmem:[#allocation6 + $0x870] sm:$0xf]  ;;  %v14868_v21 = vld [vmem:[#allocation6 + $0x880] sm:$0xf0] }
 0x1aa   :  { %v2350_v56 = vpop.f32.mrf.mxu0  ;;  %v3179_v17 = vadd.f32 %v3159_v37, %v3054_v38  ;;  %v3284_v45 = vmul.f32 %v16973_v22, %v3259_v23  ;;  %v17017_v57 = vperm.slane %v17004_v11, 0  ;;  %v14863_v23 = vld [vmem:[#allocation6 + $0x858] sm:$0xf0] }
 0x1ab   :  { %v2799_v44 = vrot.slane %v16995_v55, 6  ;;  %v2924_v59 = vrot.slane %v16995_v55, 7  ;;  %v3094_v31 = vrot.slane %v16995_v55, 1  ;;  %v3219_v9 = vrot.slane %v16995_v55, 2  ;;  %4662 = vmatpush.bf16.msra.mxu2 %v12105_v46 }
 0x1ac   :  { %v2351_v35 = vadd.f32 %v2350_v56, %v16915_v7  ;;  %v17023_v46 = vperm.slane %v16951_v62, 2  ;;  %v3304_v37 = vadd.f32 %v3284_v45, %v3179_v17  ;;  %v12064_v56 = vld [vmem:[#allocation6 + $0x848] sm:$0xf] }
 0x1ad   :  { %v2800_v5 = vsel %vm219_vm0, %v2789_v10, %v2799_v44  ;;  %v2925_v15 = vsel %vm369_vm1, %v2914_v48, %v2924_v59  ;;  %2653 = vmatmul.bf16.vlgmr.msra.gmra.mxu0 %v16737_v12  ;;  %v3124_v7 = vsel %vm565_vm2, %v3094_v31, 0.0  ;;  %v3039_v10 = vmul.f32 %v16908_v33, %v16956_v26 }
 0x1ae   :  { %v2849_v3 = vmul.f32 %v2800_v5, %v16234_v32  ;;  %v2974_v4 = vmul.f32 %v2925_v15, %v16323_v50  ;;  %v17029_v12 = vadd.f32 %v16933_v0, %v16944_v6  ;;  %v2370_v48 = vadd.f32 %v16946_v52, %v2351_v35 }
 0x1af   :  { %v2407_v38 = vpop.f32.mrf.mxu3  ;;  %v3014_v44 = vadd.f32 %v2994_v34, %v2869_v39  ;;  %v3249_v59 = vsel %vm716_vm3, %v3219_v9, 0.0  ;;  %v17033_v5 = vadd.f32 %v2338_v36, %v2320_v43  ;;  %v12085_v50 = vor.u32 %v14868_v21, %v12084_v42  ;;  %v12044_v21 = vld [vmem:[#allocation6 + $0x820] sm:$0xf] }
 0x1b0   :  { %v17035_v15 = vpop.f32.mrf.mxu2  ;;  %v3144_v32 = vmul.f32 %v3124_v7, %v16383_v47  ;;  %v2677_v24 = vmul.f32 %v16925_v40, %v2370_v48  ;;  %v3332_v0 = vadd.f32 %v17017_v57, %v3299_v29  ;;  %v3337_v6 = vadd.f32 %v17017_v57, %v3304_v37  ;;  %v14858_v7 = vld [vmem:[#allocation6 + $0x830] sm:$0xf0] }
 0x1b1   :  { %v17041_v52 = vpop.f32.mrf.mxu1  ;;  %4663 = vmatpush.bf16.msra.mxu2 %v12085_v50  ;;  %v12065_v39 = vor.u32 %v14863_v23, %v12064_v56  ;;  %v2874_v34 = vmul.f32 %v16891_v53, %v2849_v3  ;;  %v2999_v36 = vmul.f32 %v16896_v54, %v2974_v4  ;;  %v20314_v43 = vrot.slane %v16956_v26, 1  ;;  %v12024_v4 = vld [vmem:[#allocation6 + $0x7f8] sm:$0xf] }
 0x1b2   :  { %v2352_v17 = vpop.f32.mrf.mxu0  ;;  %v2709_v45 = vadd.f32 %v16936_v1, %v2677_v24  ;;  %v17050_v29 = vpack.c.bf16 %v3337_v6, %v3332_v0  ;;  %v3044_v50 = vmul.f32 %v16908_v33, %v16995_v55  ;;  %v20316_v54 = vrot.slane %v16956_v26, 2  ;;  %v14853_v24 = vld [vmem:[#allocation6 + $0x808] sm:$0xf0]  ;;  %v17064_v0 = vld [vmem:[#allocation6 + $0x7d0] sm:$0xf] }
 0x1b3   :  { %v3095_v35 = vsel %vm565_vm2, %v20314_v43, %v3094_v31  ;;  %v2353_v42 = vadd.f32 %v2352_v17, %v16940_v60  ;;  %v3019_v53 = vadd.f32 %v2999_v36, %v2874_v34  ;;  %v3269_v31 = vmul.f32 %v3249_v59, %v16403_v14  ;;  %v17066_v33 = vld [vmem:[#allocation6 + $0x7e0] sm:$0xf0]  ;;  %v17074_v59 = vld [vmem:[#allocation6 + $0x7b8] sm:$0xf0] }
 0x1b4   :  { %20315 = vst [vmem:[#allocation22_spill] sm:$0xff] %v17050_v29  ;;  %v3139_v48 = vmul.f32 %v3095_v35, %v16335_v20  ;;  %v3220_v3 = vsel %vm716_vm3, %v20316_v54, %v3219_v9  ;;  %v3059_v37 = vadd.f32 %v3039_v10, %v3014_v44  ;;  %v17059_v60 = vmax.f32 %v2709_v45, 0.0  ;;  %4651 = vmatmul.bf16.vlgmr.msra.gmra.mxu1 %v17050_v29  ;;  %v17072_v44 = vld [vmem:[#allocation6 + $0x7a8] sm:$0xf]  ;;  %v14908_v29 = vld [vmem:[#allocation6 + $0x9c0] sm:$0xf0] }
 0x1b5   :  { %v2372_v56 = vadd.f32 %v16998_v51, %v2353_v42  ;;  %v17069_v26 = vadd.f32 %v2407_v38, %v16990_v25  ;;  %4664 = vmatpush.bf16.msra.mxu2 %v12065_v39  ;;  %v12045_v55 = vor.u32 %v14858_v7, %v12044_v21  ;;  %v3064_v9 = vadd.f32 %v3044_v50, %v3019_v53 }
 0x1b6   :  { %v3164_v23 = vmul.f32 %v16963_v63, %v3139_v48  ;;  %v3264_v10 = vmul.f32 %v3220_v3, %v16398_v30  ;;  %v2775_v51 = vrot.slane %v17059_v60, 6  ;;  %v2900_v6 = vrot.slane %v17059_v60, 7 }
 0x1b7   :  { %v2409_v17 = vpop.f32.mrf.mxu3  ;;  %v3169_v34 = vmul.f32 %v16963_v63, %v3144_v32  ;;  %v12025_v36 = vor.u32 %v14853_v24, %v12024_v4  ;;  %v2682_v25 = vmul.f32 %v16925_v40, %v2372_v56  ;;  %v3294_v43 = vmul.f32 %v16973_v22, %v3269_v31 }
 0x1b8   :  { %v17080_v38 = vpop.f32.mrf.mxu2  ;;  %v3184_v39 = vadd.f32 %v3164_v23, %v3059_v37  ;;  %v12005_v35 = vor.u32 %v17066_v33, %v17064_v0  ;;  %v2830_v45 = vsel %vm219_vm0, 0.0, %v2775_v51  ;;  %v2955_v42 = vsel %vm369_vm1, 0.0, %v2900_v6 }
 0x1b9   :  { %v17087_v21 = vpop.f32.mrf.mxu1  ;;  %v3189_v7 = vadd.f32 %v3169_v34, %v3064_v9  ;;  %v11985_v32 = vor.u32 %v17074_v59, %v17072_v44  ;;  %v2835_v63 = vmul.f32 %v2830_v45, %v20291_v58  ;;  %v2960_v48 = vmul.f32 %v2955_v42, %v20306_v2  ;;  %4665 = vmatpush.bf16.msra.mxu2 %v12045_v55 }
 0x1ba   :  { %v2714_v50 = vadd.f32 %v16936_v1, %v2682_v25  ;;  %v2355_v53 = vpop.f32.mrf.mxu0  ;;  %v3289_v54 = vmul.f32 %v16973_v22, %v3264_v10  ;;  %v3030_v3 = vmul.f32 %v17023_v46, %v17059_v60  ;;  %v3072_v31 = vrot.slane %v17059_v60, 1 }
 0x1bb   :  { %v2356_v4 = vadd.f32 %v2355_v53, %v17029_v12  ;;  %v3314_v24 = vadd.f32 %v3294_v43, %v3189_v7  ;;  %v2860_v37 = vmul.f32 %v16959_v13, %v2835_v63  ;;  %v2985_v56 = vmul.f32 %v16988_v16, %v2960_v48 }
 0x1bc   :  { %v17101_v23 = vmax.f32 %v2714_v50, 0.0  ;;  %v3309_v0 = vadd.f32 %v3289_v54, %v3184_v39  ;;  %v3197_v33 = vrot.slane %v17059_v60, 2  ;;  %v17105_v55 = vadd.f32 %v2409_v17, %v17035_v15  ;;  %v17121_v15 = vld [vmem:[%s20066_s2 + $0x38] sm:$0x1f] }
 0x1bd   :  { %v2375_v22 = vadd.f32 %v17041_v52, %v2356_v4  ;;  %2658 = vmatmul.bf16.gmra.mxu0 %v16777_v41  ;;  %v17110_v9 = vperm.slane %v16841_v49, 2  ;;  %v3347_v34 = vadd.f32 %v17017_v57, %v3314_v24  ;;  %4666 = vmatpush.bf16.msra.mxu2 %v12025_v36  ;;  %v17116_v25 = vperm.slane %v16850_v28, 2 }
 0x1be   :  { %v2781_v12 = vrot.slane %v17101_v23, 6  ;;  %v2906_v10 = vrot.slane %v17101_v23, 7  ;;  %v3073_v41 = vrot.slane %v17101_v23, 1  ;;  %v3198_v49 = vrot.slane %v17101_v23, 2 }
 0x1bf   :  { %v2687_v52 = vmul.f32 %v16925_v40, %v2375_v22  ;;  %v17126_v60 = vpop.f32.mrf.mxu3  ;;  %v17129_v17 = vperm.slane %v17121_v15, 0  ;;  %v3005_v36 = vadd.f32 %v2985_v56, %v2860_v37  ;;  %v3342_v43 = vadd.f32 %v17017_v57, %v3309_v0 }
 0x1c0   :  { %v2782_v28 = vsel %vm219_vm0, %v2775_v51, %v2781_v12  ;;  %v2907_v39 = vsel %vm369_vm1, %v2900_v6, %v2906_v10  ;;  %v17134_v45 = vpop.f32.mrf.mxu2  ;;  %v3035_v63 = vmul.f32 %v17023_v46, %v17101_v23  ;;  %v11964_v51 = vld [vmem:[#allocation6 + $0x780] sm:$0xf]  ;;  %v14838_v6 = vld [vmem:[#allocation6 + $0x790] sm:$0xf0]  ;;  %v3074_v57 = vsel %vm565_vm2, %v3072_v31, %v3073_v41 }
 0x1c1   :  { %v2840_v42 = vmul.f32 %v2782_v28, %v20307_v27  ;;  %v2965_v7 = vmul.f32 %v2907_v39, %v20308_v18  ;;  %v2719_v48 = vadd.f32 %v16936_v1, %v2687_v52  ;;  %v2445_v50 = vpop.f32.mrf.mxu1  ;;  %v17141_v54 = vpack.c.bf16 %v3347_v34, %v3342_v43  ;;  %4667 = vmatpush.bf16.msra.mxu2 %v12005_v35 }
 0x1c2   :  { %v2357_v53 = vpop.f32.mrf.mxu0  ;;  %v17145_v4 = vperm.slane %v16951_v62, 3  ;;  %v3199_v24 = vsel %vm716_vm3, %v3197_v33, %v3198_v49  ;;  %v3050_v22 = vadd.f32 %v3030_v3, %v3005_v36  ;;  %v3130_v35 = vmul.f32 %v3074_v57, %v20309_v19 }
 0x1c3   :  { %20317 = vst [vmem:[#allocation24_spill] sm:$0xff] %v17141_v54  ;;  %v17148_v37 = vmax.f32 %v2719_v48, 0.0  ;;  %v2358_v56 = vadd.f32 %v2357_v53, %v17033_v5  ;;  %v2865_v23 = vmul.f32 %v16959_v13, %v2840_v42  ;;  %v2990_v0 = vmul.f32 %v16988_v16, %v2965_v7 }
 0x1c4   :  { %v3255_v34 = vmul.f32 %v3199_v24, %v20310_v61  ;;  %v17156_v31 = vperm.slane %v16951_v62, 4  ;;  %4656 = vmatmul.bf16.gmra.mxu1 %v17141_v54  ;;  %v11965_v5 = vor.u32 %v14838_v6, %v11964_v51  ;;  %v3155_v62 = vmul.f32 %v17145_v4, %v3130_v35  ;;  %v14831_v6 = vld [vmem:[#allocation6 + $0x75c] sm:$0xf]  ;;  %v12264_v35 = vld [vmem:[#allocation6 + $0x9d8] sm:$0xf] }
 0x1c5   :  { %v20149_v52 = vrot.slane %v17148_v37, 6  ;;  %v20147_v33 = vrot.slane %v17148_v37, 7  ;;  %v20146_v28 = vrot.slane %v17148_v37, 1  ;;  %v20148_v39 = vrot.slane %v17148_v37, 2  ;;  %4668 = vmatpush.bf16.msra.mxu2 %v11985_v32  ;;  %v20318_v32 = vld [vmem:[#allocation45_spill] sm:$0xff] }
 0x1c6   :  { %v2377_v3 = vadd.f32 %v17087_v21, %v2358_v56  ;;  %v3010_v36 = vadd.f32 %v2990_v0, %v2865_v23  ;;  %v17180_v44 = vperm.slane %v17004_v11, 1  ;;  %v3280_v51 = vmul.f32 %v17156_v31, %v3255_v34 }
 0x1c7   :  { %v2792_v43 = vsel %vm219_vm0, %v2781_v12, %v20149_v52  ;;  %v2917_v42 = vsel %vm369_vm1, %v2906_v10, %v20147_v33  ;;  %v3087_v7 = vsel %vm565_vm2, %v3073_v41, %v20146_v28  ;;  %v17177_v21 = vpop.f32.mrf.mxu3  ;;  %v11946_v10 = vld [vmem:[#allocation6 + $0x76c] sm:$0xf0]  ;;  %v20319_v41 = vld [vmem:[#allocation23_spill] sm:$0xff]  ;;  %v3175_v23 = vadd.f32 %v3155_v62, %v3050_v22 }
 0x1c8   :  { %v2845_v59 = vmul.f32 %v2792_v43, %v16228_v8  ;;  %v2970_v48 = vmul.f32 %v2917_v42, %v20318_v32  ;;  %v2692_v53 = vmul.f32 %v16925_v40, %v2377_v3  ;;  %v2464_v12 = vpop.f32.mrf.mxu2  ;;  %v3055_v24 = vadd.f32 %v3035_v63, %v3010_v36  ;;  %v14913_v43 = vld [vmem:[#allocation6 + $0x9e8] sm:$0xf0]  ;;  %v20320_v28 = vld [vmem:[#allocation35_spill] sm:$0xff]  ;;  %v14826_v63 = vld [vmem:[#allocation6 + $0x734] sm:$0xf] }
 0x1c9   :  { %v17186_v57 = vpop.f32.mrf.mxu1  ;;  %v3135_v56 = vmul.f32 %v3087_v7, %v20319_v41  ;;  %v3212_v0 = vsel %vm716_vm3, %v3198_v49, %v20148_v39  ;;  %4669 = vmatpush.bf16.msra.mxu2 %v11965_v5  ;;  %v11926_v36 = vld [vmem:[#allocation6 + $0x744] sm:$0xf0]  ;;  %v3300_v7 = vadd.f32 %v3280_v51, %v3175_v23  ;;  %v11949_v49 = vor.u32 %v14831_v6, %v11946_v10  ;;  %v14821_v6 = vld [vmem:[#allocation6 + $0x70c] sm:$0xf]  ;;  %v11906_v10 = vld [vmem:[#allocation6 + $0x71c] sm:$0xf0] }
 0x1ca   :  { %v2870_v42 = vmul.f32 %v16959_v13, %v2845_v59  ;;  %v2995_v40 = vmul.f32 %v16988_v16, %v2970_v48  ;;  %v2724_v34 = vadd.f32 %v16936_v1, %v2692_v53  ;;  %v2426_v3 = vpop.f32.mrf.mxu0  ;;  %v3260_v33 = vmul.f32 %v3212_v0, %v20320_v28  ;;  %v12244_v0 = vld [vmem:[#allocation6 + $0x9b0] sm:$0xf] }
 0x1cb   :  { %v2427_v22 = vadd.f32 %v2426_v3, %v17069_v26  ;;  %v3160_v62 = vmul.f32 %v17145_v4, %v3135_v56  ;;  %v3040_v59 = vmul.f32 %v17023_v46, %v17148_v37  ;;  %v12265_v48 = vor.u32 %v14913_v43, %v12264_v35 }
 0x1cc   :  { %v3015_v39 = vadd.f32 %v2995_v40, %v2870_v42  ;;  %v2744_v52 = vmax.f32 %v2724_v34, 0.0  ;;  %v3285_v5 = vmul.f32 %v17156_v31, %v3260_v33  ;;  %v11929_v53 = vor.u32 %v14826_v63, %v11926_v36  ;;  %v20323_v36 = vld [vmem:[#allocation38_spill] sm:$0xff] }
 0x1cd   :  { %v2446_v54 = vadd.f32 %v2445_v50, %v2427_v22  ;;  %v3180_v1 = vadd.f32 %v3160_v62, %v3055_v24  ;;  %4738 = vmatpush.bf16.msrb.mxu2 %v11949_v49  ;;  %v3333_v51 = vadd.f32 %v17180_v44, %v3300_v7  ;;  %4681 = vmatpush.bf16.msra.mxu3 %v12265_v48  ;;  %v20321_v33 = vrot.slane %v17148_v37, 6  ;;  %v20324_v62 = vld [vmem:[#allocation46_spill] sm:$0xff]  ;;  %v14903_v48 = vld [vmem:[#allocation6 + $0x998] sm:$0xf0] }
 0x1ce   :  { %v17201_v11 = vadd.f32 %v3040_v59, %v3015_v39  ;;  %v2801_v26 = vrot.slane %v2744_v52, 6  ;;  %v2926_v56 = vrot.slane %v2744_v52, 7  ;;  %v3096_v23 = vrot.slane %v2744_v52, 1  ;;  %v12224_v59 = vld [vmem:[#allocation6 + $0x988] sm:$0xf] }
 0x1cf   :  { %v3221_v42 = vrot.slane %v2744_v52, 2  ;;  %v2465_v35 = vadd.f32 %v2464_v12, %v2446_v54  ;;  %v17204_v50 = vpop.f32.mrf.mxu3  ;;  %v3305_v24 = vadd.f32 %v3285_v5, %v3180_v1  ;;  %v20322_v39 = vrot.slane %v17148_v37, 7 }
 0x1d0   :  { %v2802_v43 = vsel %vm219_vm0, %v20321_v33, %v2801_v26  ;;  %v3045_v34 = vmul.f32 %v17023_v46, %v2744_v52  ;;  %v2466_v3 = vpop.f32.mrf.mxu2  ;;  %v12245_v63 = vor.u32 %v14908_v29, %v12244_v0  ;;  %v3125_v54 = vsel %vm565_vm2, %v3096_v23, 0.0  ;;  %v14816_v52 = vld [vmem:[#allocation6 + $0x6e4] sm:$0xf]  ;;  %v11886_v0 = vld [vmem:[#allocation6 + $0x6f4] sm:$0xf0] }
 0x1d1   :  { %v2927_v40 = vsel %vm369_vm1, %v20322_v39, %v2926_v56  ;;  %v2850_v22 = vmul.f32 %v2802_v43, %v20323_v36  ;;  %4739 = vmatpush.bf16.msrb.mxu2 %v11929_v53  ;;  %v17216_v12 = vpop.f32.mrf.mxu1  ;;  %v11909_v49 = vor.u32 %v14821_v6, %v11906_v10  ;;  %v3250_v1 = vsel %vm716_vm3, %v3221_v42, 0.0  ;;  %v12204_v10 = vld [vmem:[#allocation6 + $0x960] sm:$0xf]  ;;  %v14898_v43 = vld [vmem:[#allocation6 + $0x970] sm:$0xf0] }
 0x1d2   :  { %v2975_v7 = vmul.f32 %v2927_v40, %v20324_v62  ;;  %v2678_v5 = vmul.f32 %v17110_v9, %v2465_v35  ;;  %v2428_v26 = vpop.f32.mrf.mxu0  ;;  %v3338_v46 = vadd.f32 %v17180_v44, %v3305_v24  ;;  %4682 = vmatpush.bf16.msra.mxu3 %v12245_v63  ;;  %v12225_v29 = vor.u32 %v14903_v48, %v12224_v59  ;;  %v14811_v48 = vld [vmem:[#allocation6 + $0x6bc] sm:$0xf] }
 0x1d3   :  { %v3145_v56 = vmul.f32 %v3125_v54, %v16383_v47  ;;  %v2429_v53 = vadd.f32 %v2428_v26, %v17105_v55  ;;  %v2875_v33 = vmul.f32 %v16959_v13, %v2850_v22  ;;  %v11889_v40 = vor.u32 %v14816_v52, %v11886_v0 }
 0x1d4   :  { %v3000_v6 = vmul.f32 %v16988_v16, %v2975_v7  ;;  %v2710_v39 = vadd.f32 %v17116_v25, %v2678_v5  ;;  %v17226_v35 = vpack.c.bf16 %v3338_v46, %v3333_v51  ;;  %v20326_v24 = vrot.slane %v17148_v37, 1 }
 0x1d5   :  { %v2448_v59 = vadd.f32 %v17186_v57, %v2429_v53  ;;  %4740 = vmatpush.bf16.msrb.mxu2 %v11909_v49  ;;  %v20327_v13 = vrot.slane %v17148_v37, 2  ;;  %v3270_v7 = vmul.f32 %v3250_v1, %v16403_v14  ;;  %v11866_v57 = vld [vmem:[#allocation6 + $0x6cc] sm:$0xf0]  ;;  %v2413_v46 = vadd.f32 %v17126_v60, %v17080_v38 }
 0x1d6   :  { %20325 = vst [vmem:[#allocation26_spill] sm:$0xff] %v17226_v35  ;;  %v3097_v63 = vsel %vm565_vm2, %v20326_v24, %v3096_v23  ;;  %v3020_v54 = vadd.f32 %v3000_v6, %v2875_v33  ;;  %v17236_v22 = vmax.f32 %v2710_v39, 0.0  ;;  %4670 = vmatmul.bf16.vlgmr.msra.gmra.mxu2 %v17226_v35  ;;  %4683 = vmatpush.bf16.msra.mxu3 %v12225_v29  ;;  %v17250_v1 = vperm.slane %v17121_v15, 1  ;;  %v12184_v6 = vld [vmem:[#allocation6 + $0x938] sm:$0xf] }
 0x1d7   :  { %v3140_v55 = vmul.f32 %v3097_v63, %v16335_v20  ;;  %v3222_v16 = vsel %vm716_vm3, %v20327_v13, %v3221_v42  ;;  %v12205_v23 = vor.u32 %v14898_v43, %v12204_v10  ;;  %v2467_v49 = vadd.f32 %v2466_v3, %v2448_v59  ;;  %v17241_v5 = vpop.f32.mrf.mxu3  ;;  %v14806_v39 = vld [vmem:[#allocation6 + $0x694] sm:$0xf]  ;;  %v11846_v24 = vld [vmem:[#allocation6 + $0x6a4] sm:$0xf0]  ;;  %v14888_v13 = vld [vmem:[#allocation6 + $0x920] sm:$0xf0] }
 0x1d8   :  { %v3265_v51 = vmul.f32 %v3222_v16, %v16398_v30  ;;  %v3065_v26 = vadd.f32 %v3045_v34, %v3020_v54  ;;  %v3170_v42 = vmul.f32 %v17145_v4, %v3145_v56  ;;  %v2776_v29 = vrot.slane %v17236_v22, 6  ;;  %v2469_v0 = vpop.f32.mrf.mxu2 }
 0x1d9   :  { %v3165_v37 = vmul.f32 %v17145_v4, %v3140_v55  ;;  %v2901_v52 = vrot.slane %v17236_v22, 7  ;;  %v2683_v3 = vmul.f32 %v17110_v9, %v2467_v49  ;;  %4741 = vmatpush.bf16.msrb.mxu2 %v11889_v40  ;;  %v11869_v33 = vor.u32 %v14811_v48, %v11866_v57  ;;  %v14893_v4 = vld [vmem:[#allocation6 + $0x948] sm:$0xf0]  ;;  %v2452_v54 = vpop.f32.mrf.mxu1  ;;  %v12164_v55 = vld [vmem:[#allocation6 + $0x910] sm:$0xf] }
 0x1da   :  { %v3190_v53 = vadd.f32 %v3170_v42, %v3065_v26  ;;  %v2831_v56 = vsel %vm219_vm0, 0.0, %v2776_v29  ;;  %v2431_v60 = vpop.f32.mrf.mxu0  ;;  %v3290_v10 = vmul.f32 %v17156_v31, %v3265_v51  ;;  %v3295_v43 = vmul.f32 %v17156_v31, %v3270_v7  ;;  %4684 = vmatpush.bf16.msra.mxu3 %v12205_v23  ;;  %v14801_v49 = vld [vmem:[#allocation6 + $0x66c] sm:$0xf]  ;;  %v11826_v26 = vld [vmem:[#allocation6 + $0x67c] sm:$0xf0] }
 0x1db   :  { %v3185_v34 = vadd.f32 %v3165_v37, %v17201_v11  ;;  %v2956_v38 = vsel %vm369_vm1, 0.0, %v2901_v52  ;;  %v2836_v40 = vmul.f32 %v2831_v56, %v20291_v58  ;;  %v2715_v63 = vadd.f32 %v17116_v25, %v2683_v3 }
 0x1dc   :  { %v2961_v11 = vmul.f32 %v2956_v38, %v20306_v2  ;;  %v2432_v59 = vadd.f32 %v2431_v60, %v2413_v46  ;;  %v3315_v16 = vadd.f32 %v3295_v43, %v3190_v53  ;;  %v12185_v48 = vor.u32 %v14893_v4, %v12184_v6 }
 0x1dd   :  { %v17261_v57 = vmax.f32 %v2715_v63, 0.0  ;;  %v3310_v51 = vadd.f32 %v3290_v10, %v3185_v34  ;;  %4742 = vmatpush.bf16.msrb.mxu2 %v11869_v33  ;;  %v11849_v31 = vor.u32 %v14806_v39, %v11846_v24  ;;  %v12165_v23 = vor.u32 %v14888_v13, %v12164_v55  ;;  %v12144_v55 = vld [vmem:[#allocation6 + $0x8e8] sm:$0xf]  ;;  %v14883_v13 = vld [vmem:[#allocation6 + $0x8f8] sm:$0xf0] }
 0x1de   :  { %v2451_v7 = vadd.f32 %v17216_v12, %v2432_v59  ;;  %4685 = vmatpush.bf16.msra.mxu3 %v12185_v48  ;;  %v2861_v37 = vmul.f32 %v17129_v17, %v2836_v40  ;;  %v2986_v42 = vmul.f32 %v17250_v1, %v2961_v11  ;;  %v2415_v34 = vadd.f32 %v17177_v21, %v17134_v45 }
 0x1df   :  { %v2783_v46 = vrot.slane %v17261_v57, 6  ;;  %v2908_v3 = vrot.slane %v17261_v57, 7  ;;  %v17268_v53 = vpop.f32.mrf.mxu3  ;;  %v17273_v33 = vperm.slane %v17121_v15, 2  ;;  %v3348_v6 = vadd.f32 %v17180_v44, %v3315_v16  ;;  %v14796_v16 = vld [vmem:[#allocation6 + $0x644] sm:$0xf] }
 0x1e0   :  { %v2470_v12 = vadd.f32 %v2469_v0, %v2451_v7  ;;  %v2471_v4 = vpop.f32.mrf.mxu2  ;;  %v3343_v60 = vadd.f32 %v17180_v44, %v3310_v51  ;;  %v11829_v10 = vor.u32 %v14801_v49, %v11826_v26  ;;  %v3076_v45 = vrot.slane %v17261_v57, 1  ;;  %v11806_v7 = vld [vmem:[#allocation6 + $0x654] sm:$0xf0]  ;;  %v14878_v49 = vld [vmem:[#allocation6 + $0x8d0] sm:$0xf0] }
 0x1e1   :  { %v2784_v56 = vsel %vm219_vm0, %v2776_v29, %v2783_v46  ;;  %v2909_v38 = vsel %vm369_vm1, %v2901_v52, %v2908_v3  ;;  %4743 = vmatpush.bf16.msrb.mxu2 %v11849_v31  ;;  %v3006_v24 = vadd.f32 %v2986_v42, %v2861_v37  ;;  %v3075_v40 = vrot.slane %v17236_v22, 1  ;;  %v2521_v51 = vpop.f32.mrf.mxu1 }
 0x1e2   :  { %v2841_v43 = vmul.f32 %v2784_v56, %v20307_v27  ;;  %v2966_v39 = vmul.f32 %v2909_v38, %v20308_v18  ;;  %v2688_v21 = vmul.f32 %v17110_v9, %v2470_v12  ;;  %v2433_v0 = vpop.f32.mrf.mxu0  ;;  %4686 = vmatpush.bf16.msra.mxu3 %v12165_v23  ;;  %v3200_v29 = vrot.slane %v17236_v22, 2  ;;  %v12124_v23 = vld [vmem:[#allocation6 + $0x8c0] sm:$0xf] }
 0x1e3   :  { %v2434_v52 = vadd.f32 %v2433_v0, %v2415_v34  ;;  %v3031_v44 = vmul.f32 %v17273_v33, %v17236_v22  ;;  %v17289_v11 = vmul.f32 %v17273_v33, %v17261_v57  ;;  %v17292_v59 = vpack.c.bf16 %v3348_v6, %v3343_v60 }
 0x1e4   :  { %v2720_v63 = vadd.f32 %v17116_v25, %v2688_v21  ;;  %v12145_v31 = vor.u32 %v14883_v13, %v12144_v55  ;;  %v2866_v22 = vmul.f32 %v17129_v17, %v2841_v43  ;;  %v2991_v26 = vmul.f32 %v17250_v1, %v2966_v39 }
 0x1e5   :  { %20328 = vst [vmem:[#allocation27_spill] sm:$0xff] %v17292_v59  ;;  %v2453_v48 = vadd.f32 %v2452_v54, %v2434_v52  ;;  %4744 = vmatpush.bf16.msrb.mxu2 %v11829_v10  ;;  %v3201_v37 = vrot.slane %v17261_v57, 2  ;;  %v11809_v34 = vor.u32 %v14796_v16, %v11806_v7  ;;  %v3077_v12 = vsel %vm565_vm2, %v3075_v40, %v3076_v45 }
 0x1e6   :  { %v17297_v42 = vmax.f32 %v2720_v63, 0.0  ;;  %4675 = vmatmul.bf16.gmra.mxu2 %v17292_v59  ;;  %v3051_v54 = vadd.f32 %v3031_v44, %v3006_v24  ;;  %4687 = vmatpush.bf16.msra.mxu3 %v12145_v31  ;;  %v12125_v38 = vor.u32 %v14878_v49, %v12124_v23  ;;  %v3131_v60 = vmul.f32 %v3077_v12, %v20309_v19  ;;  %v17312_v24 = vld [vmem:[#allocation7] sm:$0x1f]  ;;  %v17327_v23 = vld [vmem:[#allocation9] sm:$0x1f] }
 0x1e7   :  { %v2472_v6 = vadd.f32 %v2471_v4, %v2453_v48  ;;  %v17301_v56 = vpop.f32.mrf.mxu3  ;;  %v17308_v21 = vperm.slane %v17121_v15, 3  ;;  %20329 = vst [vmem:[#allocation29_spill] sm:$0xff] %v17312_v24  ;;  %v17315_v40 = vperm.slane %v17312_v24, 3  ;;  %v3011_v52 = vadd.f32 %v2991_v26, %v2866_v22 }
 0x1e8   :  { %v2793_v10 = vrot.slane %v17297_v42, 6  ;;  %v2918_v43 = vrot.slane %v17297_v42, 7  ;;  %v20156_v57 = vrot.slane %v17297_v42, 1  ;;  %v2540_v39 = vpop.f32.mrf.mxu2  ;;  %v20155_v0 = vrot.slane %v17297_v42, 2  ;;  %20330 = vst [vmem:[#allocation40_spill] sm:$0xff] %v17327_v23 }
 0x1e9   :  { %v2693_v4 = vmul.f32 %v17110_v9, %v2472_v6  ;;  %4745 = vmatpush.bf16.msrb.mxu2 %v11809_v34  ;;  %v3202_v16 = vsel %vm716_vm3, %v3200_v29, %v3201_v37  ;;  %v3156_v29 = vmul.f32 %v17308_v21, %v3131_v60 }
 0x1ea   :  { %v2794_v44 = vsel %vm219_vm0, %v2783_v46, %v2793_v10  ;;  %v2919_v63 = vsel %vm369_vm1, %v2908_v3, %v2918_v43  ;;  %v3089_v55 = vsel %vm565_vm2, %v3076_v45, %v20156_v57  ;;  %v2502_v13 = vpop.f32.mrf.mxu0  ;;  %4688 = vmatpush.bf16.msra.mxu3 %v12125_v38  ;;  %v17330_v46 = vperm.slane %v17327_v23, 3  ;;  %v17335_v3 = vld [vmem:[%s20066_s2 + $0x40] sm:$0x1f] }
 0x1eb   :  { %v2846_v9 = vmul.f32 %v2794_v44, %v16228_v8  ;;  %v2971_v48 = vmul.f32 %v2919_v63, %v20318_v32  ;;  %v2725_v31 = vadd.f32 %v17116_v25, %v2693_v4  ;;  %v2503_v7 = vadd.f32 %v2502_v13, %v17204_v50  ;;  %v2523_v44 = vpop.f32.mrf.mxu1  ;;  %v20331_v57 = vld [vmem:[#allocation25_spill] sm:$0xff] }
 0x1ec   :  { %v3136_v45 = vmul.f32 %v3089_v55, %v20319_v41  ;;  %v3214_v25 = vsel %vm716_vm3, %v3201_v37, %v20155_v0  ;;  %v17346_v22 = vperm.slane %v17335_v3, 0  ;;  %v3256_v26 = vmul.f32 %v3202_v16, %v20310_v61 }
 0x1ed   :  { %v2871_v50 = vmul.f32 %v17129_v17, %v2846_v9  ;;  %v17343_v49 = vmax.f32 %v2725_v31, 0.0  ;;  %v2996_v34 = vmul.f32 %v17250_v1, %v2971_v48  ;;  %v2522_v12 = vadd.f32 %v2521_v51, %v2503_v7  ;;  %v12106_v31 = vld [vmem:[#allocation6 + $0x8ac] sm:$0xf0] }
 0x1ee   :  { %v3161_v6 = vmul.f32 %v17308_v21, %v3136_v45  ;;  %v17352_v38 = vperm.slane %v17121_v15, 4  ;;  %v3056_v63 = vadd.f32 %v17289_v11, %v3011_v52  ;;  %v3261_v55 = vmul.f32 %v3214_v25, %v20320_v28  ;;  %v14871_v15 = vld [vmem:[#allocation6 + $0x89c] sm:$0xf]  ;;  %v12424_v11 = vld [vmem:[#allocation6 + $0xb18] sm:$0xf] }
 0x1ef   :  { %v2803_v60 = vrot.slane %v17343_v49, 6  ;;  %v2928_v37 = vrot.slane %v17343_v49, 7  ;;  %v2559_v4 = vpop.f32.mrf.mxu3  ;;  %v3041_v13 = vmul.f32 %v17273_v33, %v17297_v42  ;;  %v3098_v51 = vrot.slane %v17343_v49, 1  ;;  %v14953_v52 = vld [vmem:[#allocation6 + $0xb28] sm:$0xf0] }
 0x1f0   :  { %v2541_v16 = vadd.f32 %v2540_v39, %v2522_v12  ;;  %v2542_v9 = vpop.f32.mrf.mxu2  ;;  %v3176_v48 = vadd.f32 %v3156_v29, %v3051_v54  ;;  %v3181_v0 = vadd.f32 %v3161_v6, %v3056_v63  ;;  %v17364_v59 = vperm.slane %v20331_v57, 2  ;;  %v14866_v29 = vld [vmem:[#allocation6 + $0x874] sm:$0xf]  ;;  %v12086_v12 = vld [vmem:[#allocation6 + $0x884] sm:$0xf0] }
 0x1f1   :  { %v2804_v7 = vsel %vm219_vm0, %v2793_v10, %v2803_v60  ;;  %v2929_v45 = vsel %vm369_vm1, %v2918_v43, %v2928_v37  ;;  %v3016_v25 = vadd.f32 %v2996_v34, %v2871_v50  ;;  %v3223_v24 = vrot.slane %v17343_v49, 2  ;;  %v12404_v6 = vld [vmem:[#allocation6 + $0xaf0] sm:$0xf]  ;;  %v14948_v37 = vld [vmem:[#allocation6 + $0xb00] sm:$0xf0] }
 0x1f2   :  { %v2851_v23 = vmul.f32 %v2804_v7, %v20323_v36  ;;  %v2504_v39 = vpop.f32.mrf.mxu0  ;;  %v3281_v54 = vmul.f32 %v17352_v38, %v3256_v26  ;;  %v3126_v10 = vsel %vm565_vm2, %v3098_v51, 0.0  ;;  %v2560_v60 = vadd.f32 %v2559_v4, %v2541_v16 }
 0x1f3   :  { %v2505_v43 = vadd.f32 %v2504_v39, %v17241_v5  ;;  %v3286_v57 = vmul.f32 %v17352_v38, %v3261_v55  ;;  %v2976_v50 = vmul.f32 %v2929_v45, %v20324_v62  ;;  %v12109_v63 = vor.u32 %v14871_v15, %v12106_v31  ;;  %v20332_v55 = vld [vmem:[#allocation22_spill] sm:$0xff]  ;;  %v14943_v39 = vld [vmem:[#allocation6 + $0xad8] sm:$0xf0] }
 0x1f4   :  { %v3301_v34 = vadd.f32 %v3281_v54, %v3176_v48  ;;  %v12425_v7 = vor.u32 %v14953_v52, %v12424_v11  ;;  %v3046_v35 = vmul.f32 %v17273_v33, %v17343_v49  ;;  %v2679_v26 = vmul.f32 %v17315_v40, %v2560_v60  ;;  %v12384_v52 = vld [vmem:[#allocation6 + $0xac8] sm:$0xf] }
 0x1f5   :  { %v2524_v36 = vadd.f32 %v2523_v44, %v2505_v43  ;;  %v3306_v32 = vadd.f32 %v3286_v57, %v3181_v0  ;;  %v3146_v4 = vmul.f32 %v3126_v10, %v16383_v47  ;;  %v17378_v5 = vperm.slane %v17335_v3, 1  ;;  %4757 = vmatpush.bf16.msrb.mxu3 %v12109_v63  ;;  %v14861_v0 = vld [vmem:[#allocation6 + $0x84c] sm:$0xf]  ;;  %v12066_v44 = vld [vmem:[#allocation6 + $0x85c] sm:$0xf0] }
 0x1f6   :  { %4746 = vmatmul.bf16.vlgmr.msrb.gmra.mxu2 %v20332_v55  ;;  %v12089_v16 = vor.u32 %v14866_v29, %v12086_v12  ;;  %v12405_v45 = vor.u32 %v14948_v37, %v12404_v6  ;;  %v2711_v48 = vadd.f32 %v17330_v46, %v2679_v26  ;;  %v3334_v33 = vadd.f32 %v17364_v59, %v3301_v34 }
 0x1f7   :  { %v2543_v15 = vadd.f32 %v2542_v9, %v2524_v36  ;;  %v2561_v31 = vpop.f32.mrf.mxu3  ;;  %v3339_v49 = vadd.f32 %v17364_v59, %v3306_v32  ;;  %4700 = vmatpush.bf16.msrb.mxu0 %v12425_v7  ;;  %v3251_v11 = vsel %vm716_vm3, %v3223_v24, 0.0  ;;  %v2876_v54 = vmul.f32 %v17129_v17, %v2851_v23  ;;  %v2526_v32 = vpop.f32.mrf.mxu1  ;;  %v14856_v17 = vld [vmem:[#allocation6 + $0x824] sm:$0xf]  ;;  %v12046_v23 = vld [vmem:[#allocation6 + $0x834] sm:$0xf0] }
 0x1f8   :  { %v3001_v29 = vmul.f32 %v17250_v1, %v2976_v50  ;;  %v20333_v12 = vrot.slane %v17297_v42, 1  ;;  %v17390_v9 = vmax.f32 %v2711_v48, 0.0  ;;  %v3061_v57 = vadd.f32 %v3041_v13, %v3016_v25  ;;  %v2545_v37 = vpop.f32.mrf.mxu2  ;;  %v12364_v13 = vld [vmem:[#allocation6 + $0xaa0] sm:$0xf]  ;;  %v14938_v25 = vld [vmem:[#allocation6 + $0xab0] sm:$0xf0] }
 0x1f9   :  { %v2562_v10 = vadd.f32 %v2561_v31, %v2543_v15  ;;  %v17392_v60 = vpack.c.bf16 %v3339_v49, %v3334_v33  ;;  %4758 = vmatpush.bf16.msrb.mxu3 %v12089_v16  ;;  %v12069_v34 = vor.u32 %v14861_v0, %v12066_v44  ;;  %v20335_v50 = vrot.slane %v17297_v42, 2 }
 0x1fa   :  { %v3099_v36 = vsel %vm565_vm2, %v20333_v12, %v3098_v51  ;;  %v2507_v6 = vpop.f32.mrf.mxu0  ;;  %v3021_v1 = vadd.f32 %v3001_v29, %v2876_v54  ;;  %v2777_v63 = vrot.slane %v17390_v9, 6  ;;  %v2902_v7 = vrot.slane %v17390_v9, 7  ;;  %v14851_v29 = vld [vmem:[#allocation6 + $0x7fc] sm:$0xf]  ;;  %v12026_v12 = vld [vmem:[#allocation6 + $0x80c] sm:$0xf0] }
 0x1fb   :  { %20334 = vst [vmem:[#allocation34_spill] sm:$0xff] %v17392_v60  ;;  %v3141_v43 = vmul.f32 %v3099_v36, %v16335_v20  ;;  %v3224_v51 = vsel %vm716_vm3, %v20335_v50, %v3223_v24  ;;  %4689 = vmatmul.bf16.vlgmr.msra.gmra.mxu3 %v17392_v60  ;;  %4701 = vmatpush.bf16.msrb.mxu0 %v12405_v45 }
 0x1fc   :  { %v12385_v26 = vor.u32 %v14943_v39, %v12384_v52  ;;  %v3171_v16 = vmul.f32 %v17308_v21, %v3146_v4  ;;  %v2684_v48 = vmul.f32 %v17315_v40, %v2562_v10  ;;  %v2508_v15 = vadd.f32 %v2507_v6, %v17268_v53  ;;  %v14933_v6 = vld [vmem:[#allocation6 + $0xa88] sm:$0xf0] }
 0x1fd   :  { %v3066_v31 = vadd.f32 %v3046_v35, %v3021_v1  ;;  %v3271_v42 = vmul.f32 %v3251_v11, %v16403_v14  ;;  %v2832_v24 = vsel %vm219_vm0, 0.0, %v2777_v63  ;;  %v2957_v33 = vsel %vm369_vm1, 0.0, %v2902_v7  ;;  %4759 = vmatpush.bf16.msrb.mxu3 %v12069_v34 }
 0x1fe   :  { %v3166_v49 = vmul.f32 %v17308_v21, %v3141_v43  ;;  %v3266_v45 = vmul.f32 %v3224_v51, %v16398_v30  ;;  %v2716_v0 = vadd.f32 %v17330_v46, %v2684_v48  ;;  %v2527_v44 = vadd.f32 %v2526_v32, %v2508_v15  ;;  %v12344_v43 = vld [vmem:[#allocation6 + $0xa78] sm:$0xf] }
 0x1ff   :  { %v12049_v4 = vor.u32 %v14856_v17, %v12046_v23  ;;  %v12365_v52 = vor.u32 %v14938_v25, %v12364_v13  ;;  %v2837_v39 = vmul.f32 %v2832_v24, %v20291_v58  ;;  %v2564_v53 = vpop.f32.mrf.mxu3  ;;  %4702 = vmatpush.bf16.msrb.mxu0 %v12385_v26  ;;  %v3191_v11 = vadd.f32 %v3171_v16, %v3066_v31  ;;  %v12006_v25 = vld [vmem:[#allocation6 + $0x7e4] sm:$0xf0] }
 0x200   :  { %v3186_v35 = vadd.f32 %v3166_v49, %v3061_v57  ;;  %v3291_v54 = vmul.f32 %v17352_v38, %v3266_v45  ;;  %v2962_v21 = vmul.f32 %v2957_v33, %v20306_v2  ;;  %v17413_v36 = vmax.f32 %v2716_v0, 0.0  ;;  %v2547_v24 = vpop.f32.mrf.mxu2  ;;  %v12324_v33 = vld [vmem:[#allocation6 + $0xa50] sm:$0xf] }
 0x201   :  { %v2546_v10 = vadd.f32 %v2545_v37, %v2527_v44  ;;  %v3296_v32 = vmul.f32 %v17352_v38, %v3271_v42  ;;  %4760 = vmatpush.bf16.msrb.mxu3 %v12049_v4  ;;  %v12029_v50 = vor.u32 %v14851_v29, %v12026_v12  ;;  %v17419_v51 = vperm.slane %v17335_v3, 2  ;;  %v14846_v38 = vld [vmem:[#allocation6 + $0x7d4] sm:$0xf]  ;;  %v2528_v42 = vpop.f32.mrf.mxu1  ;;  %v11986_v29 = vld [vmem:[#allocation6 + $0x7bc] sm:$0xf0] }
 0x202   :  { %v3311_v34 = vadd.f32 %v3291_v54, %v3186_v35  ;;  %v2785_v17 = vrot.slane %v17413_v36, 6  ;;  %v2910_v23 = vrot.slane %v17413_v36, 7  ;;  %v2509_v57 = vpop.f32.mrf.mxu0  ;;  %v12345_v37 = vor.u32 %v14933_v6, %v12344_v43  ;;  %v14841_v54 = vld [vmem:[#allocation6 + $0x7ac] sm:$0xf]  ;;  %v14923_v6 = vld [vmem:[#allocation6 + $0xa38] sm:$0xf0] }
 0x203   :  { %v3316_v1 = vadd.f32 %v3296_v32, %v3191_v11  ;;  %v2565_v26 = vadd.f32 %v2564_v53, %v2546_v10  ;;  %v2510_v13 = vadd.f32 %v2509_v57, %v17301_v56  ;;  %4703 = vmatpush.bf16.msrb.mxu0 %v12365_v52  ;;  %v2862_v16 = vmul.f32 %v17346_v22, %v2837_v39  ;;  %v14928_v56 = vld [vmem:[#allocation6 + $0xa60] sm:$0xf0] }
 0x204   :  { %v2987_v48 = vmul.f32 %v17378_v5, %v2962_v21  ;;  %v2786_v15 = vsel %vm219_vm0, %v2777_v63, %v2785_v17  ;;  %v2911_v31 = vsel %vm369_vm1, %v2902_v7, %v2910_v23  ;;  %v3079_v4 = vrot.slane %v17413_v36, 1  ;;  %v20336_v52 = vld [vmem:[#allocation24_spill] sm:$0xff] }
 0x205   :  { %v2842_v49 = vmul.f32 %v2786_v15, %v20307_v27  ;;  %v2967_v45 = vmul.f32 %v2911_v31, %v20308_v18  ;;  %v2689_v0 = vmul.f32 %v17315_v40, %v2565_v26  ;;  %v2529_v44 = vadd.f32 %v2528_v42, %v2510_v13  ;;  %4761 = vmatpush.bf16.msrb.mxu3 %v12029_v50  ;;  %v12284_v15 = vld [vmem:[#allocation6 + $0xa00] sm:$0xf] }
 0x206   :  { %4751 = vmatmul.bf16.gmra.mxu2 %v20336_v52  ;;  %v3344_v63 = vadd.f32 %v17364_v59, %v3311_v34  ;;  %v3349_v39 = vadd.f32 %v17364_v59, %v3316_v1  ;;  %v12009_v7 = vor.u32 %v14846_v38, %v12006_v25  ;;  %v12325_v11 = vor.u32 %v14928_v56, %v12324_v33  ;;  %v12304_v59 = vld [vmem:[#allocation6 + $0xa28] sm:$0xf]  ;;  %v14836_v1 = vld [vmem:[#allocation6 + $0x784] sm:$0xf]  ;;  %v11966_v25 = vld [vmem:[#allocation6 + $0x794] sm:$0xf0] }
 0x207   :  { %v2721_v53 = vadd.f32 %v17330_v46, %v2689_v0  ;;  %v2548_v35 = vadd.f32 %v2547_v24, %v2529_v44  ;;  %4704 = vmatpush.bf16.msrb.mxu0 %v12345_v37  ;;  %v3032_v12 = vmul.f32 %v17419_v51, %v17390_v9  ;;  %v3078_v21 = vrot.slane %v17390_v9, 1  ;;  %v2566_v32 = vpop.f32.mrf.mxu3  ;;  %v14918_v56 = vld [vmem:[#allocation6 + $0xa10] sm:$0xf0]  ;;  %v11952_v44 = vld [vmem:[#allocation6 + $0x760] sm:$0xf] }
 0x208   :  { %v3203_v10 = vrot.slane %v17390_v9, 2  ;;  %v17442_v43 = vpack.c.bf16 %v3349_v39, %v3344_v63  ;;  %v2867_v50 = vmul.f32 %v17346_v22, %v2842_v49  ;;  %v2992_v26 = vmul.f32 %v17378_v5, %v2967_v45  ;;  %v14834_v63 = vld [vmem:[#allocation6 + $0x770] sm:$0xf0] }
 0x209   :  { %v17444_v34 = vmax.f32 %v2721_v53, 0.0  ;;  %v2567_v57 = vadd.f32 %v2566_v32, %v2548_v35  ;;  %v3007_v13 = vadd.f32 %v2987_v48, %v2862_v16  ;;  %v3204_v37 = vrot.slane %v17413_v36, 2  ;;  %4762 = vmatpush.bf16.msrb.mxu3 %v12009_v7 }
 0x20a   :  { %v17449_v38 = vpop.f32.mrf.mxu0  ;;  %v11989_v9 = vor.u32 %v14841_v54, %v11986_v29  ;;  %v3080_v31 = vsel %vm565_vm2, %v3078_v21, %v3079_v4  ;;  %v12305_v33 = vor.u32 %v14923_v6, %v12304_v59  ;;  %v17456_v16 = vperm.slane %v17335_v3, 3  ;;  %v17472_v21 = vpop.f32.mrf.mxu1 }
 0x20b   :  { %v2795_v42 = vrot.slane %v17444_v34, 6  ;;  %v3090_v24 = vrot.slane %v17444_v34, 1  ;;  %4694 = vmatmul.bf16.gmra.mxu3 %v17442_v43  ;;  %4705 = vmatpush.bf16.msrb.mxu0 %v12325_v11  ;;  %v3037_v48 = vmul.f32 %v17419_v51, %v17413_v36  ;;  %v2920_v49 = vrot.slane %v17444_v34, 7 }
 0x20c   :  { %v20165_v45 = vrot.slane %v17444_v34, 2  ;;  %v2694_v0 = vmul.f32 %v17315_v40, %v2567_v57  ;;  %v11969_v7 = vor.u32 %v14836_v1, %v11966_v25  ;;  %v3012_v53 = vadd.f32 %v2992_v26, %v2867_v50  ;;  %v17488_v50 = vpop.f32.mrf.mxu2 }
 0x20d   :  { %v3091_v39 = vsel %vm565_vm2, %v3079_v4, %v3090_v24  ;;  %v3132_v35 = vmul.f32 %v3080_v31, %v20309_v19  ;;  %v2796_v11 = vsel %vm219_vm0, %v2785_v17, %v2795_v42  ;;  %4763 = vmatpush.bf16.msrb.mxu3 %v11989_v9  ;;  %v12285_v29 = vor.u32 %v14918_v56, %v12284_v15  ;;  %v14911_v31 = vld [vmem:[#allocation6 + $0x9dc] sm:$0xf] }
 0x20e   :  { %v2726_v54 = vadd.f32 %v17330_v46, %v2694_v0  ;;  %v3205_v40 = vsel %vm716_vm3, %v3203_v10, %v3204_v37  ;;  %v11953_v32 = vor.u32 %v14834_v63, %v11952_v44  ;;  %v3137_v4 = vmul.f32 %v3091_v39, %v20319_v41  ;;  %v11932_v44 = vld [vmem:[#allocation6 + $0x738] sm:$0xf]  ;;  %v14829_v63 = vld [vmem:[#allocation6 + $0x748] sm:$0xf0] }
 0x20f   :  { %4706 = vmatpush.bf16.msrb.mxu0 %v12305_v33  ;;  %v3157_v59 = vmul.f32 %v17456_v16, %v3132_v35  ;;  %v3216_v6 = vsel %vm716_vm3, %v3204_v37, %v20165_v45  ;;  %v3052_v57 = vadd.f32 %v3032_v12, %v3007_v13  ;;  %v2921_v46 = vsel %vm369_vm1, %v2910_v23, %v2920_v49  ;;  %v20337_v37 = vld [vmem:[#allocation45_spill] sm:$0xff]  ;;  %v12246_v35 = vld [vmem:[#allocation6 + $0x9c4] sm:$0xf0] }
 0x210   :  { %v17482_v17 = vmax.f32 %v2726_v54, 0.0  ;;  %v17485_v10 = vperm.slane %v17335_v3, 4  ;;  %v2847_v1 = vmul.f32 %v2796_v11, %v16228_v8  ;;  %v3057_v26 = vadd.f32 %v3037_v48, %v3012_v53  ;;  %v12266_v33 = vld [vmem:[#allocation6 + $0x9ec] sm:$0xf0]  ;;  %v14906_v53 = vld [vmem:[#allocation6 + $0x9b4] sm:$0xf] }
 0x211   :  { %v3162_v9 = vmul.f32 %v17456_v16, %v3137_v4  ;;  %v3257_v25 = vmul.f32 %v3205_v40, %v20310_v61  ;;  %4764 = vmatpush.bf16.msrb.mxu3 %v11969_v7  ;;  %v3177_v23 = vadd.f32 %v3157_v59, %v3052_v57  ;;  %v3262_v3 = vmul.f32 %v3216_v6, %v20320_v28  ;;  %v17504_v40 = vld [vmem:[#allocation4 + $0x5] sm:$0x1f]  ;;  %v14824_v59 = vld [vmem:[#allocation6 + $0x720] sm:$0xf0] }
 0x212   :  { %v2805_v12 = vrot.slane %v17482_v17, 6  ;;  %v2930_v36 = vrot.slane %v17482_v17, 7  ;;  %v17494_v13 = vpop.f32.mrf.mxu0  ;;  %v2972_v15 = vmul.f32 %v2921_v46, %v20337_v37  ;;  %v3100_v56 = vrot.slane %v17482_v17, 1  ;;  %v11912_v4 = vld [vmem:[#allocation6 + $0x710] sm:$0xf]  ;;  %v20338_v46 = vld [vmem:[#allocation38_spill] sm:$0xff] }
 0x213   :  { %4707 = vmatpush.bf16.msrb.mxu0 %v12285_v29  ;;  %v3182_v48 = vadd.f32 %v3162_v9, %v3057_v26  ;;  %v3282_v0 = vmul.f32 %v17485_v10, %v3257_v25  ;;  %v2872_v11 = vmul.f32 %v17346_v22, %v2847_v1  ;;  %v3287_v54 = vmul.f32 %v17485_v10, %v3262_v3  ;;  %v14901_v3 = vld [vmem:[#allocation6 + $0x98c] sm:$0xf] }
 0x214   :  { %v2806_v39 = vsel %vm219_vm0, %v2795_v42, %v2805_v12  ;;  %v2931_v7 = vsel %vm369_vm1, %v2920_v49, %v2930_v36  ;;  %v2997_v6 = vmul.f32 %v17378_v5, %v2972_v15  ;;  %v3225_v42 = vrot.slane %v17482_v17, 2  ;;  %v17514_v12 = vpop.f32.mrf.mxu1 }
 0x215   :  { %4833 = vmatpush.bf16.msra.mxu3 %v11953_v32  ;;  %v3302_v29 = vadd.f32 %v3282_v0, %v3177_v23  ;;  %v17507_v32 = vperm.slane %v17504_v40, 3  ;;  %v12269_v57 = vor.u32 %v14911_v31, %v12266_v33  ;;  %v11933_v49 = vor.u32 %v14829_v63, %v11932_v44  ;;  %v17516_v0 = vpop.f32.mrf.mxu3  ;;  %v12226_v44 = vld [vmem:[#allocation6 + $0x99c] sm:$0xf0]  ;;  %v11892_v63 = vld [vmem:[#allocation6 + $0x6e8] sm:$0xf] }
 0x216   :  { %v2852_v26 = vmul.f32 %v2806_v39, %v20338_v46  ;;  %v2977_v1 = vmul.f32 %v2931_v7, %v20324_v62  ;;  %v3127_v9 = vsel %vm565_vm2, %v3100_v56, 0.0  ;;  %v3307_v25 = vadd.f32 %v3287_v54, %v3182_v48  ;;  %v14819_v39 = vld [vmem:[#allocation6 + $0x6f8] sm:$0xf0] }
 0x217   :  { %4776 = vmatpush.bf16.msra.mxu0 %v12269_v57  ;;  %v12249_v36 = vor.u32 %v14906_v53, %v12246_v35  ;;  %v11913_v23 = vor.u32 %v14824_v59, %v11912_v4  ;;  %v3335_v31 = vadd.f32 %v17507_v32, %v3302_v29  ;;  %v3017_v7 = vadd.f32 %v2997_v6, %v2872_v11  ;;  %v17526_v35 = vpop.f32.mrf.mxu2  ;;  %v20339_v4 = vld [vmem:[#allocation26_spill] sm:$0xff] }
 0x218   :  { %v3340_v33 = vadd.f32 %v17507_v32, %v3307_v25  ;;  %v3042_v48 = vmul.f32 %v17419_v51, %v17444_v34  ;;  %v3147_v54 = vmul.f32 %v3127_v9, %v16383_v47  ;;  %v3252_v53 = vsel %vm716_vm3, %v3225_v42, 0.0  ;;  %v14896_v9 = vld [vmem:[#allocation6 + $0x964] sm:$0xf] }
 0x219   :  { %4834 = vmatpush.bf16.msra.mxu3 %v11933_v49  ;;  %v2877_v29 = vmul.f32 %v17346_v22, %v2852_v26  ;;  %v3002_v57 = vmul.f32 %v17378_v5, %v2977_v1  ;;  %v3101_v11 = vsel %vm565_vm2, %v3090_v24, %v3100_v56  ;;  %v12229_v6 = vor.u32 %v14901_v3, %v12226_v44  ;;  %v11872_v22 = vld [vmem:[#allocation6 + $0x6c0] sm:$0xf]  ;;  %v14814_v26 = vld [vmem:[#allocation6 + $0x6d0] sm:$0xf0]  ;;  %v14993_v3 = vld [vmem:[#allocation6 + $0xc68] sm:$0xf0] }
 0x21a   :  { %v17518_v15 = vpop.f32.mrf.mxu0  ;;  %v17529_v59 = vpack.c.bf16 %v3340_v33, %v3335_v31  ;;  %v11893_v49 = vor.u32 %v14819_v39, %v11892_v63  ;;  %v3142_v25 = vmul.f32 %v3101_v11, %v16335_v20  ;;  %v3047_v45 = vmul.f32 %v17419_v51, %v17482_v17  ;;  %v12206_v31 = vld [vmem:[#allocation6 + $0x974] sm:$0xf0]  ;;  %v14991_v63 = vld [vmem:[#allocation6 + $0xc5c] sm:$0xf]  ;;  %v12586_v39 = vld [vmem:[#allocation6 + $0xc6c] sm:$0xf0] }
 0x21b   :  { %4765 = vmatmul.bf16.vlgmr.msrb.gmra.mxu3 %v20339_v4  ;;  %4777 = vmatpush.bf16.msra.mxu0 %v12249_v36  ;;  %v3022_v5 = vadd.f32 %v3002_v57, %v2877_v29  ;;  %v20341_v1 = vrot.slane %v17444_v34, 2  ;;  %v3272_v56 = vmul.f32 %v3252_v53, %v16403_v14  ;;  %v3062_v33 = vadd.f32 %v3042_v48, %v3017_v7  ;;  %v14891_v57 = vld [vmem:[#allocation6 + $0x93c] sm:$0xf]  ;;  %v12564_v53 = vld [vmem:[#allocation6 + $0xc30] sm:$0xf] }
 0x21c   :  { %20340 = vst [vmem:[#allocation33_spill] sm:$0xff] %v17529_v59  ;;  %4708 = vmatmul.bf16.vlgmr.msrb.gmra.mxu0 %v17529_v59  ;;  %v3167_v36 = vmul.f32 %v17456_v16, %v3142_v25  ;;  %v3172_v51 = vmul.f32 %v17456_v16, %v3147_v54  ;;  %v12209_v29 = vor.u32 %v14896_v9, %v12206_v31  ;;  %v11852_v7 = vld [vmem:[#allocation6 + $0x698] sm:$0xf]  ;;  %v14809_v16 = vld [vmem:[#allocation6 + $0x6a8] sm:$0xf0] }
 0x21d   :  { %4835 = vmatpush.bf16.msra.mxu3 %v11913_v23  ;;  %v3226_v24 = vsel %vm716_vm3, %v20341_v1, %v3225_v42  ;;  %v12584_v23 = vld [vmem:[#allocation6 + $0xc58] sm:$0xf]  ;;  %v3067_v44 = vadd.f32 %v3047_v45, %v3022_v5  ;;  %v11873_v34 = vor.u32 %v14814_v26, %v11872_v22  ;;  %v12186_v42 = vld [vmem:[#allocation6 + $0x94c] sm:$0xf0]  ;;  %v3297_v45 = vmul.f32 %v17485_v10, %v3272_v56  ;;  %v14988_v54 = vld [vmem:[#allocation6 + $0xc40] sm:$0xf0]  ;;  %v17554_v26 = vpop.f32.mrf.mxu3 }
 0x21e   :  { %v3267_v17 = vmul.f32 %v3226_v24, %v16398_v30  ;;  %v12585_v11 = vor.u32 %v14993_v3, %v12584_v23  ;;  %v3187_v25 = vadd.f32 %v3167_v36, %v3062_v33  ;;  %v12589_v48 = vor.u32 %v14991_v63, %v12586_v39  ;;  %v14986_v31 = vld [vmem:[#allocation6 + $0xc34] sm:$0xf]  ;;  %v12566_v22 = vld [vmem:[#allocation6 + $0xc44] sm:$0xf0]  ;;  %v14804_v63 = vld [vmem:[#allocation6 + $0x680] sm:$0xf0] }
 0x21f   :  { %4778 = vmatpush.bf16.msra.mxu0 %v12229_v6  ;;  %v3192_v59 = vadd.f32 %v3172_v51, %v3067_v44  ;;  %v2598_v6 = vadd.f32 %v17472_v21, %v17449_v38  ;;  %v12565_v9 = vor.u32 %v14988_v54, %v12564_v53  ;;  %v12569_v56 = vor.u32 %v14986_v31, %v12566_v22  ;;  %v17558_v23 = vpop.f32.mrf.mxu2  ;;  %v14886_v3 = vld [vmem:[#allocation6 + $0x914] sm:$0xf]  ;;  %v12166_v44 = vld [vmem:[#allocation6 + $0x924] sm:$0xf0]  ;;  %v11832_v51 = vld [vmem:[#allocation6 + $0x670] sm:$0xf] }
 0x220   :  { %4719 = vmatpush.bf16.msrb.mxu1 %v12585_v11  ;;  %v3292_v5 = vmul.f32 %v17485_v10, %v3267_v17  ;;  %4814 = vmatpush.bf16.msra.mxu2 %v12589_v48  ;;  %v12189_v38 = vor.u32 %v14891_v57, %v12186_v42  ;;  %v11853_v21 = vor.u32 %v14809_v16, %v11852_v7  ;;  %v17563_v10 = vld [vmem:[%s20066_s2 + $0x48] sm:$0x1f]  ;;  %v20342_v17 = vld [vmem:[#allocation29_spill] sm:$0xff]  ;;  %v12146_v42 = vld [vmem:[#allocation6 + $0x8fc] sm:$0xf0] }
 0x221   :  { %4836 = vmatpush.bf16.msra.mxu3 %v11893_v49  ;;  %v17552_v49 = vpop.f32.mrf.mxu1  ;;  %v3317_v24 = vadd.f32 %v3297_v45, %v3192_v59  ;;  %v2617_v36 = vadd.f32 %v17488_v50, %v2598_v6  ;;  %v17568_v39 = vperm.slane %v20342_v17, 4  ;;  %v14881_v57 = vld [vmem:[#allocation6 + $0x8ec] sm:$0xf]  ;;  %v2600_v11 = vadd.f32 %v17514_v12, %v17494_v13  ;;  %v11812_v16 = vld [vmem:[#allocation6 + $0x648] sm:$0xf]  ;;  %v20344_v48 = vld [vmem:[#allocation27_spill] sm:$0xff] }
 0x222   :  { %v17547_v1 = vpop.f32.mrf.mxu0  ;;  %v3312_v33 = vadd.f32 %v3292_v5, %v3187_v25  ;;  %v20343_v25 = vld [vmem:[#allocation40_spill] sm:$0xff]  ;;  %v17578_v6 = vperm.slane %v17563_v10, 0  ;;  %v12592_v31 = vld [vmem:[#allocation6 + $0xc60] sm:$0xf]  ;;  %v14994_v22 = vld [vmem:[#allocation6 + $0xc70] sm:$0xf0]  ;;  %v12149_v5 = vor.u32 %v14881_v57, %v12146_v42 }
 0x223   :  { %4779 = vmatpush.bf16.msra.mxu0 %v12209_v29  ;;  %v3350_v59 = vadd.f32 %v17507_v32, %v3317_v24  ;;  %v2636_v50 = vadd.f32 %v17516_v0, %v2617_v36  ;;  %v12169_v29 = vor.u32 %v14886_v3, %v12166_v44  ;;  %v17573_v45 = vperm.slane %v20343_v25, 4  ;;  %v14799_v0 = vld [vmem:[#allocation6 + $0x658] sm:$0xf0]  ;;  %v17586_v24 = vld [vmem:[#allocation6 + $0x8c4] sm:$0xf] }
 0x224   :  { %4720 = vmatpush.bf16.msrb.mxu1 %v12565_v9  ;;  %4815 = vmatpush.bf16.msra.mxu2 %v12569_v56  ;;  %v3345_v7 = vadd.f32 %v17507_v32, %v3312_v33  ;;  %v17581_v9 = vperm.slane %v17563_v10, 1  ;;  %v2619_v13 = vadd.f32 %v17526_v35, %v2600_v11  ;;  %v17588_v32 = vld [vmem:[#allocation6 + $0x8d4] sm:$0xf0]  ;;  %v12544_v56 = vld [vmem:[#allocation6 + $0xc08] sm:$0xf]  ;;  %v11813_v33 = vor.u32 %v14799_v0, %v11812_v16 }
 0x225   :  { %4837 = vmatpush.bf16.msra.mxu3 %v11873_v34  ;;  %v11833_v34 = vor.u32 %v14804_v63, %v11832_v51  ;;  %v14983_v36 = vld [vmem:[#allocation6 + $0xc18] sm:$0xf0]  ;;  %v12546_v51 = vld [vmem:[#allocation6 + $0xc1c] sm:$0xf0]  ;;  %v14874_v35 = vld [vmem:[#allocation6 + $0x8b0] sm:$0xf0]  ;;  %v2603_v16 = vadd.f32 %v17552_v49, %v17518_v15  ;;  %v12129_v15 = vor.u32 %v17586_v24, %v17588_v32 }
 0x226   :  { %v17584_v12 = vpack.c.bf16 %v3350_v59, %v3345_v7  ;;  %v12545_v44 = vor.u32 %v14983_v36, %v12544_v56  ;;  %v17591_v63 = vld [vmem:[#allocation6 + $0x8a0] sm:$0xf]  ;;  %v17593_v59 = vpop.f32.mrf.mxu3  ;;  %v12572_v57 = vld [vmem:[#allocation6 + $0xc38] sm:$0xf]  ;;  %v14989_v42 = vld [vmem:[#allocation6 + $0xc48] sm:$0xf0] }
 0x227   :  { %4780 = vmatpush.bf16.msra.mxu0 %v12189_v38  ;;  %v14981_v38 = vld [vmem:[#allocation6 + $0xc0c] sm:$0xf]  ;;  %v12524_v11 = vld [vmem:[#allocation6 + $0xbe0] sm:$0xf]  ;;  %v12526_v7 = vld [vmem:[#allocation6 + $0xbf4] sm:$0xf0] }
 0x228   :  { %v12549_v17 = vor.u32 %v14981_v38, %v12546_v51  ;;  %4721 = vmatpush.bf16.msrb.mxu1 %v12545_v44  ;;  %v17604_v36 = vld [vmem:[#allocation6 + $0xc10] sm:$0xf]  ;;  %v2638_v38 = vadd.f32 %v17554_v26, %v2619_v13  ;;  %v17610_v44 = vperm.slane %v17563_v10, 2  ;;  %v12504_v49 = vld [vmem:[#allocation6 + $0xbb8] sm:$0xf]  ;;  %v12113_v26 = vor.u32 %v14874_v35, %v17591_v63 }
 0x229   :  { %4838 = vmatpush.bf16.msra.mxu3 %v11853_v21  ;;  %v2604_v21 = vpop.f32.mrf.mxu1  ;;  %v12573_v13 = vor.u32 %v14989_v42, %v12572_v57  ;;  %v17622_v32 = vperm.slane %v17563_v10, 3  ;;  %v17625_v35 = vld [vmem:[#allocation6 + $0x850] sm:$0xf]  ;;  %v17627_v57 = vld [vmem:[#allocation6 + $0x860] sm:$0xf0] }
 0x22a   :  { %v2654_v53 = vpop.f32.mrf.mxu0  ;;  %v2605_v0 = vadd.f32 %v2604_v21, %v17547_v1  ;;  %4816 = vmatpush.bf16.msra.mxu2 %v12549_v17  ;;  %v17614_v1 = vld [vmem:[#allocation6 + $0xc20] sm:$0xf0]  ;;  %v2622_v21 = vadd.f32 %v17558_v23, %v2603_v16  ;;  %v17629_v42 = vld [vmem:[#allocation6 + $0xbe8] sm:$0xf]  ;;  %v17656_v23 = vld [vmem:[#allocation6 + $0xbd0] sm:$0xf0] }
 0x22b   :  { %4770 = vmatmul.bf16.gmra.mxu3 %v20344_v48  ;;  %v2655_v54 = vadd.f32 %v2654_v53, %v2636_v50  ;;  %4781 = vmatpush.bf16.msra.mxu0 %v12169_v29  ;;  %v12593_v50 = vor.u32 %v14994_v22, %v12592_v31  ;;  %v2623_v53 = vpop.f32.mrf.mxu2  ;;  %v14978_v29 = vld [vmem:[#allocation6 + $0xbf0] sm:$0xf0]  ;;  %v17600_v31 = vld [vmem:[#allocation6 + $0x878] sm:$0xf]  ;;  %v17602_v22 = vld [vmem:[#allocation6 + $0x888] sm:$0xf0] }
 0x22c   :  { %4713 = vmatmul.bf16.gmra.mxu0 %v17584_v12  ;;  %v2624_v51 = vadd.f32 %v2623_v53, %v2605_v0  ;;  %v12093_v16 = vor.u32 %v17602_v22, %v17600_v31  ;;  %v12553_v0 = vor.u32 %v17614_v1, %v17604_v36  ;;  %v17647_v22 = vld [vmem:[#allocation6 + $0x828] sm:$0xf]  ;;  %v17649_v36 = vld [vmem:[#allocation6 + $0x838] sm:$0xf0]  ;;  %v17651_v1 = vld [vmem:[#allocation6 + $0xbc0] sm:$0xf] }
 0x22d   :  { %v2680_v3 = vmul.f32 %v17568_v39, %v2655_v54  ;;  %4839 = vmatpush.bf16.msra.mxu3 %v11833_v34  ;;  %v14976_v34 = vld [vmem:[#allocation6 + $0xbe4] sm:$0xf]  ;;  %v12525_v54 = vor.u32 %v14978_v29, %v12524_v11  ;;  %v14973_v11 = vld [vmem:[#allocation6 + $0xbc8] sm:$0xf0]  ;;  %v12506_v29 = vld [vmem:[#allocation6 + $0xbcc] sm:$0xf0] }
 0x22e   :  { %v12529_v56 = vor.u32 %v14976_v34, %v12526_v7  ;;  %v12466_v24 = vld [vmem:[#allocation6 + $0xb7c] sm:$0xf0] }
 0x22f   :  { %v2712_v25 = vadd.f32 %v17573_v45, %v2680_v3  ;;  %4782 = vmatpush.bf16.msra.mxu0 %v12149_v5  ;;  %4722 = vmatpush.bf16.msrb.mxu1 %v12525_v54  ;;  %v17641_v54 = vld [vmem:[#allocation6 + $0xbf8] sm:$0xf0] }
 0x230   :  { %4817 = vmatpush.bf16.msra.mxu2 %v12529_v56  ;;  %v12484_v56 = vld [vmem:[#allocation6 + $0xb90] sm:$0xf] }
 0x231   :  { %v17607_v3 = vmax.f32 %v2712_v25, 0.0  ;;  %4840 = vmatpush.bf16.msra.mxu3 %v11813_v33  ;;  %v14971_v25 = vld [vmem:[#allocation6 + $0xbbc] sm:$0xf] }
 0x232   :  { %v2656_v17 = vpop.f32.mrf.mxu0  ;;  %v12509_v63 = vor.u32 %v14971_v25, %v12506_v29  ;;  %v14966_v25 = vld [vmem:[#allocation6 + $0xb94] sm:$0xf]  ;;  %v2641_v29 = vadd.f32 %v17593_v59, %v2622_v21  ;;  %v12464_v59 = vld [vmem:[#allocation6 + $0xb68] sm:$0xf]  ;;  %v14963_v21 = vld [vmem:[#allocation6 + $0xb78] sm:$0xf0] }
 0x233   :  { %v2778_v5 = vrot.slane %v17607_v3, 6  ;;  %v2903_v33 = vrot.slane %v17607_v3, 7  ;;  %v2657_v53 = vadd.f32 %v2656_v17, %v2638_v38  ;;  %4783 = vmatpush.bf16.msra.mxu0 %v12129_v15  ;;  %v12486_v15 = vld [vmem:[#allocation6 + $0xba4] sm:$0xf0] }
 0x234   :  { %4818 = vmatpush.bf16.msra.mxu2 %v12509_v63 }
 0x235   :  { %4909 = vmatpush.bf16.msrb.mxu3 %v12593_v50  ;;  %v12505_v50 = vor.u32 %v14973_v11, %v12504_v49  ;;  %v2833_v34 = vsel %vm219_vm0, 0.0, %v2778_v5  ;;  %v2958_v7 = vsel %vm369_vm1, 0.0, %v2903_v33  ;;  %v2685_v17 = vmul.f32 %v17568_v39, %v2657_v53  ;;  %v14968_v11 = vld [vmem:[#allocation6 + $0xba0] sm:$0xf0] }
 0x236   :  { %v2838_v38 = vmul.f32 %v2833_v34, %v20291_v58  ;;  %v2963_v49 = vmul.f32 %v2958_v7, %v20306_v2  ;;  %v12485_v31 = vor.u32 %v14968_v11, %v12484_v56  ;;  %v2642_v34 = vpop.f32.mrf.mxu3  ;;  %v3033_v56 = vmul.f32 %v17610_v44, %v17607_v3  ;;  %v17711_v2 = vld [vmem:[#allocation6 + $0xb80] sm:$0xf0]  ;;  %v12426_v58 = vld [vmem:[#allocation6 + $0xb2c] sm:$0xf0] }
 0x237   :  { %4852 = vmatpush.bf16.msrb.mxu0 %v12113_v26  ;;  %4723 = vmatpush.bf16.msrb.mxu1 %v12505_v50  ;;  %v2717_v26 = vadd.f32 %v17573_v45, %v2685_v17  ;;  %v17658_v50 = vadd.f32 %v2642_v34, %v2624_v51  ;;  %v12073_v11 = vor.u32 %v17627_v57, %v17625_v35  ;;  %v17666_v17 = vld [vmem:[#allocation6 + $0x800] sm:$0xf]  ;;  %v17674_v35 = vld [vmem:[#allocation6 + $0x810] sm:$0xf0] }
 0x238   :  { %v2863_v7 = vmul.f32 %v17578_v6, %v2838_v38  ;;  %v2988_v53 = vmul.f32 %v17581_v9, %v2963_v49  ;;  %v12533_v38 = vor.u32 %v17641_v54, %v17629_v42  ;;  %v14961_v49 = vld [vmem:[#allocation6 + $0xb6c] sm:$0xf]  ;;  %v12053_v51 = vor.u32 %v17649_v36, %v17647_v22  ;;  %v17686_v36 = vld [vmem:[#allocation6 + $0xb98] sm:$0xf] }
 0x239   :  { %4910 = vmatpush.bf16.msrb.mxu3 %v12573_v13  ;;  %v12489_v13 = vor.u32 %v14966_v25, %v12486_v15  ;;  %v17668_v25 = vmax.f32 %v2717_v26, 0.0  ;;  %v12513_v34 = vor.u32 %v17656_v23, %v17651_v1  ;;  %v12465_v42 = vor.u32 %v14963_v21, %v12464_v59  ;;  %v14956_v59 = vld [vmem:[#allocation6 + $0xb44] sm:$0xf]  ;;  %v12446_v21 = vld [vmem:[#allocation6 + $0xb54] sm:$0xf0] }
 0x23a   :  { %v3008_v63 = vadd.f32 %v2988_v53, %v2863_v7  ;;  %v2659_v15 = vpop.f32.mrf.mxu0  ;;  %v12469_v54 = vor.u32 %v14961_v49, %v12466_v24  ;;  %v12444_v7 = vld [vmem:[#allocation6 + $0xb40] sm:$0xf]  ;;  %v14958_v53 = vld [vmem:[#allocation6 + $0xb50] sm:$0xf0]  ;;  %v17678_v26 = vperm.slane %v17563_v10, 4 }
 0x23b   :  { %4853 = vmatpush.bf16.msrb.mxu0 %v12093_v16  ;;  %4841 = vmatmul.bf16.vlgmr.msra.gmra.mxu3 %v20332_v55  ;;  %v2660_v57 = vadd.f32 %v2659_v15, %v2641_v29  ;;  %v2912_v22 = vrot.slane %v17668_v25, 7  ;;  %v14969_v29 = vld [vmem:[#allocation6 + $0xba8] sm:$0xf0]  ;;  %v17690_v24 = vmul.f32 %v17610_v44, %v17668_v25  ;;  %v3082_v10 = vrot.slane %v17668_v25, 1  ;;  %v17706_v23 = vld [vmem:[#allocation6 + $0xb70] sm:$0xf] }
 0x23c   :  { %4724 = vmatpush.bf16.msrb.mxu1 %v12485_v31  ;;  %v17680_v16 = vadd.f32 %v3033_v56, %v3008_v63  ;;  %4819 = vmatpush.bf16.msra.mxu2 %v12489_v13  ;;  %v12445_v49 = vor.u32 %v14958_v53, %v12444_v7  ;;  %v17702_v63 = vld [vmem:[#allocation6 + $0x7d8] sm:$0xf]  ;;  %v17704_v15 = vld [vmem:[#allocation6 + $0x7e8] sm:$0xf0]  ;;  %v12449_v7 = vor.u32 %v14956_v59, %v12446_v21  ;;  %v20345_v53 = vrot.slane %v17607_v3, 1 }
 0x23d   :  { %4911 = vmatpush.bf16.msrb.mxu3 %v12553_v0  ;;  %v2787_v0 = vrot.slane %v17668_v25, 6  ;;  %v2690_v1 = vmul.f32 %v17568_v39, %v2660_v57  ;;  %v2913_v56 = vsel %vm369_vm1, %v2903_v33, %v2912_v22  ;;  %4784 = vmatmul.bf16.vlgmr.msra.gmra.mxu0 %v17392_v60  ;;  %v14951_v33 = vld [vmem:[#allocation6 + $0xb1c] sm:$0xf] }
 0x23e   :  { %v2968_v31 = vmul.f32 %v2913_v56, %v20308_v18  ;;  %v3083_v60 = vsel %vm565_vm2, %v20345_v53, %v3082_v10  ;;  %v12432_v56 = vld [vmem:[#allocation6 + $0xb20] sm:$0xf]  ;;  %v14954_v18 = vld [vmem:[#allocation6 + $0xb30] sm:$0xf0]  ;;  %v12429_v21 = vor.u32 %v14951_v33, %v12426_v58 }
 0x23f   :  { %v2788_v13 = vsel %vm219_vm0, %v2778_v5, %v2787_v0  ;;  %v2722_v5 = vadd.f32 %v17573_v45, %v2690_v1  ;;  %4854 = vmatpush.bf16.msrb.mxu0 %v12073_v11  ;;  %v12433_v53 = vor.u32 %v14954_v18, %v12432_v56  ;;  %v12406_v56 = vld [vmem:[#allocation6 + $0xb04] sm:$0xf0] }
 0x240   :  { %v2843_v57 = vmul.f32 %v2788_v13, %v20307_v27  ;;  %4725 = vmatpush.bf16.msrb.mxu1 %v12465_v42  ;;  %4820 = vmatpush.bf16.msra.mxu2 %v12469_v54  ;;  %v17718_v13 = vperm.slane %v17504_v40, 4  ;;  %v2993_v42 = vmul.f32 %v17581_v9, %v2968_v31  ;;  %v3133_v54 = vmul.f32 %v3083_v60, %v20309_v19 }
 0x241   :  { %4912 = vmatpush.bf16.msrb.mxu3 %v12533_v38  ;;  %v12493_v38 = vor.u32 %v14969_v29, %v17686_v36  ;;  %v17720_v1 = vmax.f32 %v2722_v5, 0.0  ;;  %v12013_v36 = vor.u32 %v17704_v15, %v17702_v63  ;;  %v20346_v29 = vrot.slane %v17668_v25, 2  ;;  %v17732_v5 = vld [vmem:[#allocation6 + $0x7b0] sm:$0xf]  ;;  %v17739_v63 = vld [vmem:[#allocation6 + $0x7c0] sm:$0xf0] }
 0x242   :  { %v2868_v11 = vmul.f32 %v17578_v6, %v2843_v57  ;;  %v2661_v27 = vpop.f32.mrf.mxu0  ;;  %v20347_v40 = vrot.slane %v17607_v3, 2  ;;  %v3158_v18 = vmul.f32 %v17622_v32, %v3133_v54  ;;  %v12452_v54 = vld [vmem:[#allocation6 + $0xb48] sm:$0xf] }
 0x243   :  { %v2797_v57 = vrot.slane %v17720_v1, 6  ;;  %v2922_v31 = vrot.slane %v17720_v1, 7  ;;  %v3092_v60 = vrot.slane %v17720_v1, 1  ;;  %4855 = vmatpush.bf16.msrb.mxu0 %v12053_v51  ;;  %v3217_v3 = vrot.slane %v17720_v1, 2 }
 0x244   :  { %v3208_v59 = vsel %vm716_vm3, %v20347_v40, %v20346_v29  ;;  %4726 = vmatpush.bf16.msrb.mxu1 %v12445_v49  ;;  %v2662_v58 = vadd.f32 %v2661_v27, %v17658_v50  ;;  %4821 = vmatpush.bf16.msra.mxu2 %v12449_v7  ;;  %v3013_v15 = vadd.f32 %v2993_v42, %v2868_v11  ;;  %v14946_v7 = vld [vmem:[#allocation6 + $0xaf4] sm:$0xf] }
 0x245   :  { %4913 = vmatpush.bf16.msrb.mxu3 %v12513_v34  ;;  %v12473_v34 = vor.u32 %v17711_v2, %v17706_v23  ;;  %v2798_v33 = vsel %vm219_vm0, %v2787_v0, %v2797_v57  ;;  %v2923_v51 = vsel %vm369_vm1, %v2912_v22, %v2922_v31  ;;  %v3093_v2 = vsel %vm565_vm2, %v3082_v10, %v3092_v60 }
 0x246   :  { %v3258_v23 = vmul.f32 %v3208_v59, %v20310_v61  ;;  %v2848_v27 = vmul.f32 %v2798_v33, %v16228_v8  ;;  %v2973_v50 = vmul.f32 %v2923_v51, %v20337_v37  ;;  %v2695_v49 = vmul.f32 %v17568_v39, %v2662_v58  ;;  %v17776_v33 = vld [vmem:[#allocation6 + $0x788] sm:$0xf]  ;;  %v17778_v51 = vld [vmem:[#allocation6 + $0x798] sm:$0xf0] }
 0x247   :  { %v11993_v0 = vor.u32 %v17739_v63, %v17732_v5  ;;  %v20348_v22 = vor.u32 %v17674_v35, %v17666_v17  ;;  %v3138_v10 = vmul.f32 %v3093_v2, %v20319_v41  ;;  %v3178_v11 = vadd.f32 %v3158_v18, %v17680_v16  ;;  %v14949_v16 = vld [vmem:[#allocation6 + $0xb08] sm:$0xf0]  ;;  %v14827_v63 = vld [vmem:[#allocation6 + $0x73c] sm:$0xf] }
 0x248   :  { %4795 = vmatpush.bf16.msra.mxu1 %v12429_v21  ;;  %4890 = vmatpush.bf16.msrb.mxu2 %v12433_v53  ;;  %v20349_v42 = vmov %v20346_v29  ;;  %v14959_v29 = vld [vmem:[#allocation6 + $0xb58] sm:$0xf0]  ;;  %v2873_v40 = vmul.f32 %v17578_v6, %v2848_v27  ;;  %v2998_v59 = vmul.f32 %v17581_v9, %v2973_v50  ;;  %v2727_v17 = vadd.f32 %v17573_v45, %v2695_v49  ;;  %v12412_v21 = vld [vmem:[#allocation6 + $0xaf8] sm:$0xf]  ;;  %v14952_v50 = vld [vmem:[#allocation6 + $0xb24] sm:$0xf] }
 0x249   :  { %4914 = vmatpush.bf16.msrb.mxu3 %v12493_v38  ;;  %4856 = vmatpush.bf16.msrb.mxu0 %v20348_v22  ;;  %v3218_v39 = vsel %vm716_vm3, %v20349_v42, %v3217_v3  ;;  %v3283_v38 = vmul.f32 %v17678_v26, %v3258_v23  ;;  %v3058_v53 = vadd.f32 %v17690_v24, %v3013_v15  ;;  %v12434_v49 = vld [vmem:[#allocation6 + $0xb34] sm:$0xf0]  ;;  %v12386_v22 = vld [vmem:[#allocation6 + $0xadc] sm:$0xf0] }
 0x24a   :  { %v3263_v35 = vmul.f32 %v3218_v39, %v20320_v28  ;;  %v3163_v25 = vmul.f32 %v17622_v32, %v3138_v10  ;;  %v12409_v18 = vor.u32 %v14946_v7, %v12406_v56  ;;  %v3018_v2 = vadd.f32 %v2998_v59, %v2873_v40  ;;  %v14941_v56 = vld [vmem:[#allocation6 + $0xacc] sm:$0xf]  ;;  %v12392_v10 = vld [vmem:[#allocation6 + $0xad0] sm:$0xf] }
 0x24b   :  { %v3303_v58 = vadd.f32 %v3283_v38, %v3178_v11  ;;  %v3043_v23 = vmul.f32 %v17610_v44, %v17720_v1  ;;  %v17782_v27 = vmax.f32 %v2727_v17, 0.0  ;;  %v12453_v45 = vor.u32 %v14959_v29, %v12452_v54  ;;  %4846 = vmatmul.bf16.gmra.mxu3 %v20336_v52  ;;  %v14944_v38 = vld [vmem:[#allocation6 + $0xae0] sm:$0xf0]  ;;  %v11954_v17 = vld [vmem:[#allocation6 + $0x774] sm:$0xf0] }
 0x24c   :  { %v3183_v24 = vadd.f32 %v3163_v25, %v3058_v53  ;;  %v3288_v15 = vmul.f32 %v17678_v26, %v3263_v35  ;;  %v12413_v7 = vor.u32 %v14949_v16, %v12412_v21  ;;  %4796 = vmatpush.bf16.msra.mxu1 %v12409_v18  ;;  %v14832_v54 = vld [vmem:[#allocation6 + $0x764] sm:$0xf]  ;;  %v12437_v59 = vor.u32 %v14952_v50, %v12434_v49  ;;  %v14947_v35 = vld [vmem:[#allocation6 + $0xafc] sm:$0xf]  ;;  %v12414_v25 = vld [vmem:[#allocation6 + $0xb0c] sm:$0xf0] }
 0x24d   :  { %4915 = vmatpush.bf16.msrb.mxu3 %v12473_v34  ;;  %4857 = vmatpush.bf16.msrb.mxu0 %v12013_v36  ;;  %v2807_v11 = vrot.slane %v17782_v27, 6  ;;  %v2932_v42 = vrot.slane %v17782_v27, 7  ;;  %v3336_v39 = vadd.f32 %v17718_v13, %v3303_v58  ;;  %v11973_v34 = vor.u32 %v17778_v51, %v17776_v33  ;;  %v14936_v58 = vld [vmem:[#allocation6 + $0xaa4] sm:$0xf]  ;;  %v12366_v18 = vld [vmem:[#allocation6 + $0xab4] sm:$0xf0] }
 0x24e   :  { %v3102_v36 = vrot.slane %v17782_v27, 1  ;;  %v3227_v29 = vrot.slane %v17782_v27, 2  ;;  %v3308_v40 = vadd.f32 %v3288_v15, %v3183_v24  ;;  %4891 = vmatpush.bf16.msrb.mxu2 %v12413_v7  ;;  %4789 = vmatmul.bf16.gmra.mxu0 %v17442_v43  ;;  %v12389_v53 = vor.u32 %v14941_v56, %v12386_v22  ;;  %v14942_v15 = vld [vmem:[#allocation6 + $0xad4] sm:$0xf]  ;;  %v12394_v7 = vld [vmem:[#allocation6 + $0xae4] sm:$0xf0] }
 0x24f   :  { %v2808_v21 = vsel %vm219_vm0, %v2797_v57, %v2807_v11  ;;  %v2933_v16 = vsel %vm369_vm1, %v2922_v31, %v2932_v42  ;;  %v3063_v33 = vadd.f32 %v3043_v23, %v3018_v2  ;;  %v12372_v57 = vld [vmem:[#allocation6 + $0xaa8] sm:$0xf]  ;;  %v14939_v31 = vld [vmem:[#allocation6 + $0xab8] sm:$0xf0]  ;;  %v12393_v23 = vor.u32 %v14944_v38, %v12392_v10  ;;  %v14822_v1 = vld [vmem:[#allocation6 + $0x714] sm:$0xf] }
 0x250   :  { %v2853_v51 = vmul.f32 %v2808_v21, %v20338_v46  ;;  %v2978_v50 = vmul.f32 %v2933_v16, %v20324_v62  ;;  %v3128_v49 = vsel %vm565_vm2, %v3102_v36, 0.0  ;;  %v3253_v24 = vsel %vm716_vm3, %v3227_v29, 0.0  ;;  %4797 = vmatpush.bf16.msra.mxu1 %v12389_v53  ;;  %v12346_v21 = vld [vmem:[#allocation6 + $0xa8c] sm:$0xf0]  ;;  %v14937_v16 = vld [vmem:[#allocation6 + $0xaac] sm:$0xf] }
 0x251   :  { %4916 = vmatpush.bf16.msrb.mxu3 %v12453_v45  ;;  %4858 = vmatpush.bf16.msrb.mxu0 %v11993_v0  ;;  %v3048_v45 = vmul.f32 %v17610_v44, %v17782_v27  ;;  %v3341_v2 = vadd.f32 %v17718_v13, %v3308_v40  ;;  %v3148_v56 = vmul.f32 %v3128_v49, %v16383_v47  ;;  %v11934_v0 = vld [vmem:[#allocation6 + $0x74c] sm:$0xf0]  ;;  %v14931_v40 = vld [vmem:[#allocation6 + $0xa7c] sm:$0xf]  ;;  %v12332_v49 = vld [vmem:[#allocation6 + $0xa58] sm:$0xf] }
 0x252   :  { %v11957_v22 = vor.u32 %v14832_v54, %v11954_v17  ;;  %v12417_v11 = vor.u32 %v14947_v35, %v12414_v25  ;;  %v12369_v5 = vor.u32 %v14936_v58, %v12366_v18  ;;  %4892 = vmatpush.bf16.msrb.mxu2 %v12393_v23  ;;  %v2878_v44 = vmul.f32 %v17578_v6, %v2853_v51  ;;  %v12352_v54 = vld [vmem:[#allocation6 + $0xa80] sm:$0xf]  ;;  %v14934_v17 = vld [vmem:[#allocation6 + $0xa90] sm:$0xf0]  ;;  %v11914_v18 = vld [vmem:[#allocation6 + $0x724] sm:$0xf0] }
 0x253   :  { %v17811_v42 = vpack.c.bf16 %v3341_v2, %v3336_v39  ;;  %v3003_v27 = vmul.f32 %v17581_v9, %v2978_v50  ;;  %v12397_v10 = vor.u32 %v14942_v15, %v12394_v7  ;;  %v3103_v38 = vsel %vm565_vm2, %v3092_v60, %v3102_v36  ;;  %v14926_v51 = vld [vmem:[#allocation6 + $0xa54] sm:$0xf]  ;;  %v12326_v50 = vld [vmem:[#allocation6 + $0xa64] sm:$0xf0]  ;;  %v14817_v7 = vld [vmem:[#allocation6 + $0x6ec] sm:$0xf] }
 0x254   :  { %v3228_v39 = vsel %vm716_vm3, %v3217_v3, %v3227_v29  ;;  %v11937_v6 = vor.u32 %v14827_v63, %v11934_v0  ;;  %4798 = vmatpush.bf16.msra.mxu1 %v12369_v5  ;;  %v3173_v35 = vmul.f32 %v17622_v32, %v3148_v56  ;;  %v3273_v60 = vmul.f32 %v3253_v24, %v16403_v14  ;;  %v12374_v3 = vld [vmem:[#allocation6 + $0xabc] sm:$0xf0]  ;;  %v12354_v56 = vld [vmem:[#allocation6 + $0xa94] sm:$0xf0]  ;;  %v14921_v0 = vld [vmem:[#allocation6 + $0xa2c] sm:$0xf] }
 0x255   :  { %4985 = vmatpush.bf16.msra.mxu3 %v12437_v59  ;;  %v12373_v59 = vor.u32 %v14939_v31, %v12372_v57  ;;  %4859 = vmatpush.bf16.msrb.mxu0 %v11973_v34  ;;  %v3023_v9 = vadd.f32 %v3003_v27, %v2878_v44  ;;  %v3143_v34 = vmul.f32 %v3103_v38, %v16335_v20  ;;  %v14929_v57 = vld [vmem:[#allocation6 + $0xa68] sm:$0xf0]  ;;  %v11894_v63 = vld [vmem:[#allocation6 + $0x6fc] sm:$0xf0]  ;;  %v14924_v44 = vld [vmem:[#allocation6 + $0xa40] sm:$0xf0] }
 0x256   :  { %4727 = vmatmul.bf16.vlgmr.msrb.gmra.mxu1 %v17811_v42  ;;  %4822 = vmatmul.bf16.vlgmr.msra.gmra.mxu2 %v17811_v42  ;;  %v12349_v36 = vor.u32 %v14931_v40, %v12346_v21  ;;  %v3268_v25 = vmul.f32 %v3228_v39, %v16398_v30  ;;  %v12353_v58 = vor.u32 %v14934_v17, %v12352_v54  ;;  %v14812_v38 = vld [vmem:[#allocation6 + $0x6c4] sm:$0xf]  ;;  %v11874_v39 = vld [vmem:[#allocation6 + $0x6d4] sm:$0xf0] }
 0x257   :  { %4893 = vmatpush.bf16.msrb.mxu2 %v12373_v59  ;;  %v3068_v29 = vadd.f32 %v3048_v45, %v3023_v9  ;;  %v3168_v53 = vmul.f32 %v17622_v32, %v3143_v34  ;;  %v3298_v24 = vmul.f32 %v17678_v26, %v3273_v60  ;;  %v12377_v23 = vor.u32 %v14937_v16, %v12374_v3  ;;  %v14932_v32 = vld [vmem:[#allocation6 + $0xa84] sm:$0xf]  ;;  %v12306_v59 = vld [vmem:[#allocation6 + $0xa3c] sm:$0xf0]  ;;  %v12286_v34 = vld [vmem:[#allocation6 + $0xa14] sm:$0xf0] }
 0x258   :  { %4799 = vmatpush.bf16.msra.mxu1 %v12349_v36  ;;  %v11917_v15 = vor.u32 %v14822_v1, %v11914_v18  ;;  %v12329_v45 = vor.u32 %v14926_v51, %v12326_v50  ;;  %v12333_v5 = vor.u32 %v14929_v57, %v12332_v49  ;;  %v12357_v40 = vor.u32 %v14932_v32, %v12354_v56  ;;  %v14916_v9 = vld [vmem:[#allocation6 + $0xa04] sm:$0xf]  ;;  %v14919_v60 = vld [vmem:[#allocation6 + $0xa18] sm:$0xf0]  ;;  %v12272_v36 = vld [vmem:[#allocation6 + $0x9e0] sm:$0xf] }
 0x259   :  { %4986 = vmatpush.bf16.msra.mxu3 %v12417_v11  ;;  %4928 = vmatpush.bf16.msra.mxu0 %v11957_v22  ;;  %v3188_v31 = vadd.f32 %v3168_v53, %v3063_v33  ;;  %v3193_v2 = vadd.f32 %v3173_v35, %v3068_v29  ;;  %v3293_v22 = vmul.f32 %v17678_v26, %v3268_v25  ;;  %v12312_v33 = vld [vmem:[#allocation6 + $0xa30] sm:$0xf]  ;;  %v14927_v26 = vld [vmem:[#allocation6 + $0xa5c] sm:$0xf]  ;;  %v12292_v35 = vld [vmem:[#allocation6 + $0xa08] sm:$0xf] }
 0x25a   :  { %v11897_v21 = vor.u32 %v14817_v7, %v11894_v63  ;;  %v12313_v17 = vor.u32 %v14924_v44, %v12312_v33  ;;  %v14914_v16 = vld [vmem:[#allocation6 + $0x9f0] sm:$0xf0]  ;;  %v14912_v3 = vld [vmem:[#allocation6 + $0x9e4] sm:$0xf]  ;;  %v12274_v29 = vld [vmem:[#allocation6 + $0x9f4] sm:$0xf0]  ;;  %v11877_v53 = vor.u32 %v14812_v38, %v11874_v39  ;;  %v12289_v51 = vor.u32 %v14916_v9, %v12286_v34 }
 0x25b   :  { %v3318_v11 = vadd.f32 %v3298_v24, %v3193_v2  ;;  %4894 = vmatpush.bf16.msrb.mxu2 %v12353_v58  ;;  %4917 = vmatmul.bf16.vlgmr.msrb.gmra.mxu3 %v17811_v42  ;;  %v3313_v27 = vadd.f32 %v3293_v22, %v3188_v31  ;;  %v14807_v58 = vld [vmem:[#allocation6 + $0x69c] sm:$0xf]  ;;  %v12293_v50 = vor.u32 %v14919_v60, %v12292_v35  ;;  %v11854_v49 = vld [vmem:[#allocation6 + $0x6ac] sm:$0xf0]  ;;  %v14922_v57 = vld [vmem:[#allocation6 + $0xa34] sm:$0xf] }
 0x25c   :  { %4800 = vmatpush.bf16.msra.mxu1 %v12329_v45  ;;  %v12314_v31 = vld [vmem:[#allocation6 + $0xa44] sm:$0xf0]  ;;  %v12273_v2 = vor.u32 %v14914_v16, %v12272_v36  ;;  %v12277_v24 = vor.u32 %v14912_v3, %v12274_v29  ;;  %v14802_v7 = vld [vmem:[#allocation6 + $0x674] sm:$0xf]  ;;  %v14907_v32 = vld [vmem:[#allocation6 + $0x9bc] sm:$0xf] }
 0x25d   :  { %4987 = vmatpush.bf16.msra.mxu3 %v12397_v10  ;;  %4929 = vmatpush.bf16.msra.mxu0 %v11937_v6  ;;  %v12309_v10 = vor.u32 %v14921_v0, %v12306_v59  ;;  %v3351_v54 = vadd.f32 %v17718_v13, %v3318_v11  ;;  %v12334_v6 = vld [vmem:[#allocation6 + $0xa6c] sm:$0xf0]  ;;  %v3346_v1 = vadd.f32 %v17718_v13, %v3313_v27  ;;  %v12252_v13 = vld [vmem:[#allocation6 + $0x9b8] sm:$0xf]  ;;  %v11834_v22 = vld [vmem:[#allocation6 + $0x684] sm:$0xf0] }
 0x25e   :  { %4860 = vmatmul.bf16.vlgmr.msrb.gmra.mxu0 %v20339_v4  ;;  %v12337_v25 = vor.u32 %v14927_v26, %v12334_v6  ;;  %v12317_v45 = vor.u32 %v14922_v57, %v12314_v31  ;;  %v12254_v56 = vld [vmem:[#allocation6 + $0x9cc] sm:$0xf0]  ;;  %v14917_v11 = vld [vmem:[#allocation6 + $0xa0c] sm:$0xf]  ;;  %v12280_v0 = vld [vmem:[#allocation6 + $0x9e8] sm:$0xf] }
 0x25f   :  { %4895 = vmatpush.bf16.msrb.mxu2 %v12333_v5  ;;  %v17834_v18 = vpack.c.bf16 %v3351_v54, %v3346_v1  ;;  %v12294_v5 = vld [vmem:[#allocation6 + $0xa1c] sm:$0xf0]  ;;  %v14915_v59 = vld [vmem:[#allocation6 + $0x9f8] sm:$0xf0]  ;;  %v12257_v33 = vor.u32 %v14907_v32, %v12254_v56  ;;  %v12232_v44 = vld [vmem:[#allocation6 + $0x990] sm:$0xf] }
 0x260   :  { %4801 = vmatpush.bf16.msra.mxu1 %v12309_v10  ;;  %v14904_v27 = vld [vmem:[#allocation6 + $0x9a0] sm:$0xf0]  ;;  %v14902_v10 = vld [vmem:[#allocation6 + $0x994] sm:$0xf]  ;;  %v12234_v38 = vld [vmem:[#allocation6 + $0x9a4] sm:$0xf0]  ;;  %v12281_v54 = vor.u32 %v14915_v59, %v12280_v0 }
 0x261   :  { %4988 = vmatpush.bf16.msra.mxu3 %v12377_v23  ;;  %4930 = vmatpush.bf16.msra.mxu0 %v11917_v15  ;;  %20350 = vst [vmem:[#allocation39_spill] sm:$0xff] %v17834_v18  ;;  %v14909_v23 = vld [vmem:[#allocation6 + $0x9c8] sm:$0xf0]  ;;  %v11857_v15 = vor.u32 %v14807_v58, %v11854_v49  ;;  %v11814_v26 = vld [vmem:[#allocation6 + $0x65c] sm:$0xf0]  ;;  %v12233_v6 = vor.u32 %v14904_v27, %v12232_v44 }
 0x262   :  { %v12253_v63 = vor.u32 %v14909_v23, %v12252_v13  ;;  %v14797_v39 = vld [vmem:[#allocation6 + $0x64c] sm:$0xf]  ;;  %v12594_v9 = vld [vmem:[#allocation6 + $0xc74] sm:$0xf0]  ;;  %v12260_v34 = vld [vmem:[#allocation6 + $0x9c0] sm:$0xf]  ;;  %v12237_v60 = vor.u32 %v14902_v10, %v12234_v38 }
 0x263   :  { %4896 = vmatpush.bf16.msrb.mxu2 %v12313_v17  ;;  %v14992_v17 = vld [vmem:[#allocation6 + $0xc64] sm:$0xf]  ;;  %v14910_v35 = vld [vmem:[#allocation6 + $0x9d0] sm:$0xf0]  ;;  %v12212_v36 = vld [vmem:[#allocation6 + $0x968] sm:$0xf]  ;;  %v11817_v16 = vor.u32 %v14797_v39, %v11814_v26 }
 0x264   :  { %4802 = vmatpush.bf16.msra.mxu1 %v12289_v51  ;;  %v14899_v1 = vld [vmem:[#allocation6 + $0x978] sm:$0xf0]  ;;  %v12597_v3 = vor.u32 %v14992_v17, %v12594_v9  ;;  %v12261_v29 = vor.u32 %v14910_v35, %v12260_v34  ;;  %v12240_v49 = vld [vmem:[#allocation6 + $0x998] sm:$0xf]  ;;  %v14905_v57 = vld [vmem:[#allocation6 + $0x9a8] sm:$0xf0] }
 0x265   :  { %4989 = vmatpush.bf16.msra.mxu3 %v12357_v40  ;;  %4931 = vmatpush.bf16.msra.mxu0 %v11897_v21  ;;  %v11837_v40 = vor.u32 %v14802_v7, %v11834_v22  ;;  %v12297_v21 = vor.u32 %v14917_v11, %v12294_v5  ;;  %v14987_v58 = vld [vmem:[#allocation6 + $0xc3c] sm:$0xf]  ;;  %v12213_v51 = vor.u32 %v14899_v1, %v12212_v36  ;;  %v12192_v31 = vld [vmem:[#allocation6 + $0x940] sm:$0xf]  ;;  %v14982_v7 = vld [vmem:[#allocation6 + $0xc14] sm:$0xf] }
 0x266   :  { %4732 = vmatmul.bf16.gmra.mxu1 %v17834_v18  ;;  %4827 = vmatmul.bf16.gmra.mxu2 %v17834_v18  ;;  %v12241_v23 = vor.u32 %v14905_v57, %v12240_v49  ;;  %v12554_v56 = vld [vmem:[#allocation6 + $0xc24] sm:$0xf0]  ;;  %v12220_v22 = vld [vmem:[#allocation6 + $0x970] sm:$0xf]  ;;  %v14900_v11 = vld [vmem:[#allocation6 + $0x980] sm:$0xf0] }
 0x267   :  { %4897 = vmatpush.bf16.msrb.mxu2 %v12293_v50  ;;  %v12574_v50 = vld [vmem:[#allocation6 + $0xc4c] sm:$0xf0]  ;;  %v14889_v0 = vld [vmem:[#allocation6 + $0x928] sm:$0xf0]  ;;  %v12221_v44 = vor.u32 %v14900_v11, %v12220_v22  ;;  %v14887_v27 = vld [vmem:[#allocation6 + $0x91c] sm:$0xf] }
 0x268   :  { %4871 = vmatpush.bf16.msrb.mxu1 %v12273_v2  ;;  %v14894_v2 = vld [vmem:[#allocation6 + $0x950] sm:$0xf0]  ;;  %v12577_v13 = vor.u32 %v14987_v58, %v12574_v50  ;;  %v20351_v5 = vld [vmem:[#allocation33_spill] sm:$0xff]  ;;  %v12200_v38 = vld [vmem:[#allocation6 + $0x948] sm:$0xf] }
 0x269   :  { %4932 = vmatpush.bf16.msra.mxu0 %v11877_v53  ;;  %4990 = vmatpush.bf16.msra.mxu3 %v12337_v25  ;;  %v14897_v53 = vld [vmem:[#allocation6 + $0x96c] sm:$0xf]  ;;  %v12214_v25 = vld [vmem:[#allocation6 + $0x97c] sm:$0xf0]  ;;  %v12193_v32 = vor.u32 %v14894_v2, %v12192_v31  ;;  %v14895_v39 = vld [vmem:[#allocation6 + $0x958] sm:$0xf0] }
 0x26a   :  { %v14977_v10 = vld [vmem:[#allocation6 + $0xbec] sm:$0xf]  ;;  %v12534_v26 = vld [vmem:[#allocation6 + $0xbfc] sm:$0xf0]  ;;  %v14884_v17 = vld [vmem:[#allocation6 + $0x900] sm:$0xf0]  ;;  %v12201_v9 = vor.u32 %v14895_v39, %v12200_v38 }
 0x26b   :  { %4966 = vmatpush.bf16.msra.mxu2 %v12277_v24  ;;  %4922 = vmatmul.bf16.gmra.mxu3 %v17834_v18  ;;  %v12217_v24 = vor.u32 %v14897_v53, %v12214_v25  ;;  %v14882_v34 = vld [vmem:[#allocation6 + $0x8f4] sm:$0xf]  ;;  %v12154_v35 = vld [vmem:[#allocation6 + $0x904] sm:$0xf0]  ;;  %v14972_v1 = vld [vmem:[#allocation6 + $0xbc4] sm:$0xf] }
 0x26c   :  { %4872 = vmatpush.bf16.msrb.mxu1 %v12253_v63  ;;  %v12172_v63 = vld [vmem:[#allocation6 + $0x918] sm:$0xf]  ;;  %v12132_v53 = vld [vmem:[#allocation6 + $0x8c8] sm:$0xf]  ;;  %v14879_v25 = vld [vmem:[#allocation6 + $0x8d8] sm:$0xf0]  ;;  %v12157_v58 = vor.u32 %v14882_v34, %v12154_v35 }
 0x26d   :  { %4933 = vmatpush.bf16.msra.mxu0 %v11857_v15  ;;  %4991 = vmatpush.bf16.msra.mxu3 %v12317_v45  ;;  %v14892_v15 = vld [vmem:[#allocation6 + $0x944] sm:$0xf]  ;;  %v12194_v45 = vld [vmem:[#allocation6 + $0x954] sm:$0xf0]  ;;  %v12134_v50 = vld [vmem:[#allocation6 + $0x8dc] sm:$0xf0] }
 0x26e   :  { %4865 = vmatmul.bf16.gmra.mxu0 %v20344_v48  ;;  %v12197_v59 = vor.u32 %v14892_v15, %v12194_v45  ;;  %v12160_v57 = vld [vmem:[#allocation6 + $0x8f8] sm:$0xf]  ;;  %v14872_v31 = vld [vmem:[#allocation6 + $0x8a4] sm:$0xf]  ;;  %v12120_v15 = vld [vmem:[#allocation6 + $0x8a8] sm:$0xf] }
 0x26f   :  { %4967 = vmatpush.bf16.msra.mxu2 %v12257_v33  ;;  %v12557_v33 = vor.u32 %v14982_v7, %v12554_v56  ;;  %v12114_v2 = vld [vmem:[#allocation6 + $0x8b4] sm:$0xf0]  ;;  %v14875_v45 = vld [vmem:[#allocation6 + $0x8b8] sm:$0xf0]  ;;  %v12474_v38 = vld [vmem:[#allocation6 + $0xb84] sm:$0xf0] }
 0x270   :  { %4873 = vmatpush.bf16.msrb.mxu1 %v12233_v6  ;;  %v14967_v7 = vld [vmem:[#allocation6 + $0xb9c] sm:$0xf]  ;;  %v12117_v22 = vor.u32 %v14872_v31, %v12114_v2  ;;  %v12080_v34 = vld [vmem:[#allocation6 + $0x858] sm:$0xf]  ;;  %v14865_v35 = vld [vmem:[#allocation6 + $0x868] sm:$0xf0]  ;;  %v17847_v2 = vpop.f32.mrf.mxu2 }
 0x271   :  { %4934 = vmatpush.bf16.msra.mxu0 %v11837_v40  ;;  %4992 = vmatpush.bf16.msra.mxu3 %v12297_v21  ;;  %v12174_v40 = vld [vmem:[#allocation6 + $0x92c] sm:$0xf0]  ;;  %v12173_v21 = vor.u32 %v14889_v0, %v12172_v63  ;;  %v12121_v63 = vor.u32 %v14875_v45, %v12120_v15  ;;  %v12420_v31 = vld [vmem:[#allocation6 + $0xb00] sm:$0xf]  ;;  %v12034_v15 = vld [vmem:[#allocation6 + $0x814] sm:$0xf0] }
 0x272   :  { %v12177_v6 = vor.u32 %v14887_v27, %v12174_v40  ;;  %v12140_v0 = vld [vmem:[#allocation6 + $0x8d0] sm:$0xf]  ;;  %v14880_v27 = vld [vmem:[#allocation6 + $0x8e0] sm:$0xf0]  ;;  %v12100_v40 = vld [vmem:[#allocation6 + $0x880] sm:$0xf] }
 0x273   :  { %4968 = vmatpush.bf16.msra.mxu2 %v12237_v60  ;;  %v12537_v60 = vor.u32 %v14977_v10, %v12534_v26  ;;  %v14962_v10 = vld [vmem:[#allocation6 + $0xb74] sm:$0xf]  ;;  %v12141_v26 = vor.u32 %v14880_v27, %v12140_v0  ;;  %v14945_v0 = vld [vmem:[#allocation6 + $0xae8] sm:$0xf0] }
 0x274   :  { %4874 = vmatpush.bf16.msrb.mxu1 %v12213_v51  ;;  %v14877_v51 = vld [vmem:[#allocation6 + $0x8cc] sm:$0xf]  ;;  %v14850_v27 = vld [vmem:[#allocation6 + $0x7f0] sm:$0xf0] }
 0x275   :  { %5061 = vmatpush.bf16.msrb.mxu3 %v12281_v54  ;;  %4935 = vmatpush.bf16.msra.mxu0 %v11817_v16  ;;  %v12152_v54 = vld [vmem:[#allocation6 + $0x8f0] sm:$0xf]  ;;  %v12180_v16 = vld [vmem:[#allocation6 + $0x920] sm:$0xf]  ;;  %v12137_v56 = vor.u32 %v14877_v51, %v12134_v50  ;;  %v14860_v50 = vld [vmem:[#allocation6 + $0x840] sm:$0xf0] }
 0x276   :  { %4803 = vmatmul.bf16.vlgmr.msra.gmra.mxu1 %v20351_v5  ;;  %4898 = vmatmul.bf16.vlgmr.msrb.gmra.mxu2 %v20351_v5  ;;  %v12153_v36 = vor.u32 %v14884_v17, %v12152_v54  ;;  %v14862_v17 = vld [vmem:[#allocation6 + $0x854] sm:$0xf]  ;;  %v12060_v51 = vld [vmem:[#allocation6 + $0x830] sm:$0xf] }
 0x277   :  { %4969 = vmatpush.bf16.msra.mxu2 %v12217_v24 }
 0x278   :  { %4875 = vmatpush.bf16.msrb.mxu1 %v12193_v32  ;;  %v12494_v32 = vld [vmem:[#allocation6 + $0xbac] sm:$0xf0] }
 0x279   :  { %5004 = vmatpush.bf16.msrb.mxu0 %v12597_v3  ;;  %5062 = vmatpush.bf16.msrb.mxu3 %v12261_v29  ;;  %v14890_v3 = vld [vmem:[#allocation6 + $0x930] sm:$0xf0]  ;;  %v12514_v29 = vld [vmem:[#allocation6 + $0xbd4] sm:$0xf0] }
 0x27a   :  { %v12181_v49 = vor.u32 %v14890_v3, %v12180_v16  ;;  %v12517_v24 = vor.u32 %v14972_v1, %v12514_v29  ;;  %v12440_v16 = vld [vmem:[#allocation6 + $0xb28] sm:$0xf]  ;;  %v14955_v3 = vld [vmem:[#allocation6 + $0xb38] sm:$0xf0]  ;;  %v12081_v29 = vor.u32 %v14865_v35, %v12080_v34  ;;  %v17854_v34 = vpop.f32.mrf.mxu2 }
 0x27b   :  { %4970 = vmatpush.bf16.msra.mxu2 %v12197_v59  ;;  %4993 = vmatmul.bf16.vlgmr.msra.gmra.mxu3 %v20351_v5  ;;  %v14867_v59 = vld [vmem:[#allocation6 + $0x87c] sm:$0xf] }
 0x27c   :  { %4876 = vmatpush.bf16.msrb.mxu1 %v12173_v21  ;;  %v14870_v21 = vld [vmem:[#allocation6 + $0x890] sm:$0xf0] }
 0x27d   :  { %5005 = vmatpush.bf16.msrb.mxu0 %v12577_v13  ;;  %5063 = vmatpush.bf16.msrb.mxu3 %v12241_v23  ;;  %v12133_v13 = vor.u32 %v14879_v25, %v12132_v53  ;;  %v14885_v23 = vld [vmem:[#allocation6 + $0x908] sm:$0xf0]  ;;  %v12101_v54 = vor.u32 %v14870_v21, %v12100_v40  ;;  %v12054_v25 = vld [vmem:[#allocation6 + $0x83c] sm:$0xf0]  ;;  %v20352_v40 = vld [vmem:[#allocation34_spill] sm:$0xff] }
 0x27e   :  { %4936 = vmatmul.bf16.vlgmr.msra.gmra.mxu0 %v20332_v55  ;;  %v12161_v11 = vor.u32 %v14885_v23, %v12160_v57  ;;  %v14857_v53 = vld [vmem:[#allocation6 + $0x82c] sm:$0xf]  ;;  %v14852_v23 = vld [vmem:[#allocation6 + $0x804] sm:$0xf]  ;;  %v17850_v45 = vpop.f32.mrf.mxu3 }
 0x27f   :  { %4971 = vmatpush.bf16.msra.mxu2 %v12177_v6  ;;  %v12074_v6 = vld [vmem:[#allocation6 + $0x864] sm:$0xf0]  ;;  %v12057_v57 = vor.u32 %v14857_v53, %v12054_v25  ;;  %v11974_v53 = vld [vmem:[#allocation6 + $0x79c] sm:$0xf0]  ;;  %v11980_v25 = vld [vmem:[#allocation6 + $0x790] sm:$0xf] }
 0x280   :  { %4877 = vmatpush.bf16.msrb.mxu1 %v12153_v36  ;;  %v12454_v36 = vld [vmem:[#allocation6 + $0xb5c] sm:$0xf0]  ;;  %v12077_v1 = vor.u32 %v14862_v17, %v12074_v6  ;;  %v11994_v17 = vld [vmem:[#allocation6 + $0x7c4] sm:$0xf0]  ;;  %v12000_v6 = vld [vmem:[#allocation6 + $0x7b8] sm:$0xf] }
 0x281   :  { %5006 = vmatpush.bf16.msrb.mxu0 %v12557_v33  ;;  %5064 = vmatpush.bf16.msrb.mxu3 %v12221_v44  ;;  %v12094_v33 = vld [vmem:[#allocation6 + $0x88c] sm:$0xf0]  ;;  %v12497_v44 = vor.u32 %v14967_v7, %v12494_v32  ;;  %v12040_v7 = vld [vmem:[#allocation6 + $0x808] sm:$0xf]  ;;  %v14855_v32 = vld [vmem:[#allocation6 + $0x818] sm:$0xf0] }
 0x282   :  { %v12097_v39 = vor.u32 %v14867_v59, %v12094_v33  ;;  %v14847_v59 = vld [vmem:[#allocation6 + $0x7dc] sm:$0xf]  ;;  %v12014_v33 = vld [vmem:[#allocation6 + $0x7ec] sm:$0xf0] }
 0x283   :  { %4972 = vmatpush.bf16.msra.mxu2 %v12157_v58 }
 0x284   :  { %4878 = vmatpush.bf16.msrb.mxu1 %v12133_v13  ;;  %v14950_v13 = vld [vmem:[#allocation6 + $0xb10] sm:$0xf0] }
 0x285   :  { %5065 = vmatpush.bf16.msrb.mxu3 %v12201_v9  ;;  %5007 = vmatpush.bf16.msrb.mxu0 %v12537_v60  ;;  %v12477_v9 = vor.u32 %v14962_v10, %v12474_v38  ;;  %v14957_v60 = vld [vmem:[#allocation6 + $0xb4c] sm:$0xf]  ;;  %v12017_v10 = vor.u32 %v14847_v59, %v12014_v33  ;;  %v12380_v38 = vld [vmem:[#allocation6 + $0xab0] sm:$0xf] }
 0x286   :  { %4808 = vmatmul.bf16.gmra.mxu1 %v17584_v12  ;;  %4903 = vmatmul.bf16.gmra.mxu2 %v17584_v12  ;;  %v12457_v58 = vor.u32 %v14957_v60, %v12454_v36  ;;  %v17856_v35 = vpop.f32.mrf.mxu3 }
 0x287   :  { %4973 = vmatpush.bf16.msra.mxu2 %v12137_v56  ;;  %v12421_v56 = vor.u32 %v14950_v13, %v12420_v31  ;;  %v12340_v13 = vld [vmem:[#allocation6 + $0xa60] sm:$0xf] }
 0x288   :  { %4947 = vmatpush.bf16.msra.mxu1 %v12117_v22  ;;  %v12037_v22 = vor.u32 %v14852_v23, %v12034_v15  ;;  %v14930_v23 = vld [vmem:[#allocation6 + $0xa70] sm:$0xf0] }
 0x289   :  { %5066 = vmatpush.bf16.msrb.mxu3 %v12181_v49  ;;  %5008 = vmatpush.bf16.msrb.mxu0 %v12517_v24  ;;  %v12441_v49 = vor.u32 %v14955_v3, %v12440_v16  ;;  %v12061_v24 = vor.u32 %v14860_v50, %v12060_v51  ;;  %v14935_v16 = vld [vmem:[#allocation6 + $0xa98] sm:$0xf0]  ;;  %v14840_v51 = vld [vmem:[#allocation6 + $0x7a0] sm:$0xf0]  ;;  %v11960_v50 = vld [vmem:[#allocation6 + $0x768] sm:$0xf] }
 0x28b   :  { %5042 = vmatpush.bf16.msrb.mxu2 %v12121_v63  ;;  %4998 = vmatmul.bf16.gmra.mxu3 %v17584_v12  ;;  %v12041_v63 = vor.u32 %v14855_v32, %v12040_v7  ;;  %v11940_v7 = vld [vmem:[#allocation6 + $0x740] sm:$0xf]  ;;  %v14830_v32 = vld [vmem:[#allocation6 + $0x750] sm:$0xf0] }
 0x28c   :  { %4948 = vmatpush.bf16.msra.mxu1 %v12097_v39 }
 0x28d   :  { %5067 = vmatpush.bf16.msrb.mxu3 %v12161_v11  ;;  %5009 = vmatpush.bf16.msrb.mxu0 %v12497_v44  ;;  %v12400_v11 = vld [vmem:[#allocation6 + $0xad8] sm:$0xf]  ;;  %v12020_v44 = vld [vmem:[#allocation6 + $0x7e0] sm:$0xf] }
 0x28e   :  { %4941 = vmatmul.bf16.gmra.mxu0 %v20336_v52  ;;  %v12401_v21 = vor.u32 %v14945_v0, %v12400_v11  ;;  %v12021_v39 = vor.u32 %v14850_v27, %v12020_v44  ;;  %v12320_v11 = vld [vmem:[#allocation6 + $0xa38] sm:$0xf]  ;;  %v11941_v0 = vor.u32 %v14830_v32, %v11940_v7  ;;  %v17864_v59 = vpop.f32.mrf.mxu3  ;;  %v14825_v27 = vld [vmem:[#allocation6 + $0x728] sm:$0xf0] }
 0x28f   :  { %5043 = vmatpush.bf16.msrb.mxu2 %v12101_v54  ;;  %v14842_v54 = vld [vmem:[#allocation6 + $0x7b4] sm:$0xf]  ;;  %v11920_v44 = vld [vmem:[#allocation6 + $0x718] sm:$0xf] }
 0x290   :  { %4949 = vmatpush.bf16.msra.mxu1 %v12077_v1  ;;  %v11997_v36 = vor.u32 %v14842_v54, %v11994_v17  ;;  %v12360_v1 = vld [vmem:[#allocation6 + $0xa88] sm:$0xf] }
 0x291   :  { %5068 = vmatpush.bf16.msrb.mxu3 %v12141_v26  ;;  %5010 = vmatpush.bf16.msrb.mxu0 %v12477_v9  ;;  %v14940_v26 = vld [vmem:[#allocation6 + $0xac0] sm:$0xf0]  ;;  %v14845_v9 = vld [vmem:[#allocation6 + $0x7c8] sm:$0xf0] }
 0x292   :  { %v12381_v60 = vor.u32 %v14940_v26, %v12380_v38  ;;  %v12001_v3 = vor.u32 %v14845_v9, %v12000_v6  ;;  %v11921_v38 = vor.u32 %v14825_v27, %v11920_v44  ;;  %v14820_v26 = vld [vmem:[#allocation6 + $0x700] sm:$0xf0]  ;;  %v4652_v6 = vpop.f32.mrf.mxu1  ;;  %v12580_v44 = vld [vmem:[#allocation6 + $0xc40] sm:$0xf] }
 0x293   :  { %5044 = vmatpush.bf16.msrb.mxu2 %v12081_v29  ;;  %v14837_v29 = vld [vmem:[#allocation6 + $0x78c] sm:$0xf] }
 0x294   :  { %4950 = vmatpush.bf16.msra.mxu1 %v12057_v57  ;;  %v12361_v57 = vor.u32 %v14935_v16, %v12360_v1  ;;  %v11977_v31 = vor.u32 %v14837_v29, %v11974_v53  ;;  %v11860_v29 = vld [vmem:[#allocation6 + $0x6a0] sm:$0xf]  ;;  %v14810_v53 = vld [vmem:[#allocation6 + $0x6b0] sm:$0xf0] }
 0x295   :  { %5011 = vmatpush.bf16.msrb.mxu0 %v12457_v58 }
 0x296   :  { %4879 = vmatmul.bf16.vlgmr.msrb.gmra.mxu1 %v20352_v40  ;;  %4974 = vmatmul.bf16.vlgmr.msra.gmra.mxu2 %v20352_v40  ;;  %v17875_v16 = vpop.f32.mrf.mxu3 }
 0x297   :  { %5045 = vmatpush.bf16.msrb.mxu2 %v12061_v24  ;;  %v11981_v24 = vor.u32 %v14840_v51, %v11980_v25  ;;  %v11861_v25 = vor.u32 %v14810_v53, %v11860_v29  ;;  %v12540_v53 = vld [vmem:[#allocation6 + $0xbf0] sm:$0xf] }
 0x298   :  { %4951 = vmatpush.bf16.msra.mxu1 %v12037_v22  ;;  %v17862_v22 = vpop.f32.mrf.mxu2 }
 0x299   :  { %5080 = vmatpush.bf16.msra.mxu0 %v12441_v49  ;;  %v17858_v58 = vpop.f32.mrf.mxu0  ;;  %v14835_v49 = vld [vmem:[#allocation6 + $0x778] sm:$0xf0] }
 0x29a   :  { %v11961_v15 = vor.u32 %v14835_v49, %v11960_v50  ;;  %v11840_v50 = vld [vmem:[#allocation6 + $0x678] sm:$0xf]  ;;  %v14805_v49 = vld [vmem:[#allocation6 + $0x688] sm:$0xf0] }
 0x29b   :  { %5046 = vmatpush.bf16.msrb.mxu2 %v12041_v63  ;;  %5069 = vmatmul.bf16.vlgmr.msrb.gmra.mxu3 %v20352_v40  ;;  %v14925_v63 = vld [vmem:[#allocation6 + $0xa48] sm:$0xf0] }
 0x29c   :  { %4952 = vmatpush.bf16.msra.mxu1 %v12017_v10  ;;  %v12321_v40 = vor.u32 %v14925_v63, %v12320_v11  ;;  %v14920_v10 = vld [vmem:[#allocation6 + $0xa20] sm:$0xf0]  ;;  %v12600_v63 = vld [vmem:[#allocation6 + $0xc68] sm:$0xf] }
 0x29d   :  { %5081 = vmatpush.bf16.msra.mxu0 %v12421_v56  ;;  %v12341_v56 = vor.u32 %v14930_v23, %v12340_v13  ;;  %v11820_v13 = vld [vmem:[#allocation6 + $0x650] sm:$0xf]  ;;  %v14800_v23 = vld [vmem:[#allocation6 + $0x660] sm:$0xf0] }
 0x29e   :  { %5012 = vmatmul.bf16.vlgmr.msrb.gmra.mxu0 %v17811_v42 }
 0x29f   :  { %5047 = vmatpush.bf16.msrb.mxu2 %v12021_v39  ;;  %v11900_v39 = vld [vmem:[#allocation6 + $0x6f0] sm:$0xf] }
 0x2a0   :  { %4953 = vmatpush.bf16.msra.mxu1 %v11997_v36  ;;  %v11901_v17 = vor.u32 %v14820_v26, %v11900_v39  ;;  %v14815_v36 = vld [vmem:[#allocation6 + $0x6d8] sm:$0xf0]  ;;  %v17873_v1 = vpop.f32.mrf.mxu2  ;;  %v14985_v26 = vld [vmem:[#allocation6 + $0xc28] sm:$0xf0] }
 0x2a1   :  { %5082 = vmatpush.bf16.msra.mxu0 %v12401_v21  ;;  %v17866_v33 = vpop.f32.mrf.mxu0  ;;  %v12300_v21 = vld [vmem:[#allocation6 + $0xa10] sm:$0xf] }
 0x2a2   :  { %v12301_v54 = vor.u32 %v14920_v10, %v12300_v21  ;;  %v12749_v21 = vld [vmem:[#allocation6 + $0xd98] sm:$0xf]  ;;  %v15033_v10 = vld [vmem:[#allocation6 + $0xda8] sm:$0xf0] }
 0x2a3   :  { %5048 = vmatpush.bf16.msrb.mxu2 %v12001_v3  ;;  %v12750_v39 = vor.u32 %v15033_v10, %v12749_v21  ;;  %v14975_v21 = vld [vmem:[#allocation6 + $0xbd8] sm:$0xf0]  ;;  %v12689_v10 = vld [vmem:[#allocation6 + $0xd20] sm:$0xf] }
 0x2a4   :  { %4954 = vmatpush.bf16.msra.mxu1 %v11977_v31 }
 0x2a5   :  { %5083 = vmatpush.bf16.msra.mxu0 %v12381_v60  ;;  %v11880_v60 = vld [vmem:[#allocation6 + $0x6c8] sm:$0xf] }
 0x2a6   :  { %4884 = vmatmul.bf16.gmra.mxu1 %v17442_v43  ;;  %4979 = vmatmul.bf16.gmra.mxu2 %v17442_v43  ;;  %v11881_v3 = vor.u32 %v14815_v36, %v11880_v60 }
 0x2a7   :  { %5049 = vmatpush.bf16.msrb.mxu2 %v11981_v24  ;;  %v17886_v24 = vpop.f32.mrf.mxu3 }
 0x2a8   :  { %5023 = vmatpush.bf16.msrb.mxu1 %v11961_v15  ;;  %v17884_v31 = vpop.f32.mrf.mxu2  ;;  %v11821_v15 = vor.u32 %v14800_v23, %v11820_v13 }
 0x2a9   :  { %5084 = vmatpush.bf16.msra.mxu0 %v12361_v57  ;;  %v17870_v9 = vpop.f32.mrf.mxu0  ;;  %v11841_v57 = vor.u32 %v14805_v49, %v11840_v50  ;;  %v4672_v50 = vadd.f32 %v17847_v2, %v4652_v6 }
 0x2ab   :  { %5074 = vmatmul.bf16.gmra.mxu3 %v17442_v43  ;;  %v17882_v43 = vpop.f32.mrf.mxu1  ;;  %7099 = vmatpush.bf16.msra.mxu2 %v12750_v39  ;;  %v4691_v13 = vadd.f32 %v17850_v45, %v4672_v50  ;;  %v12520_v45 = vld [vmem:[#allocation6 + $0xbc8] sm:$0xf] }
 0x2ac   :  { %5024 = vmatpush.bf16.msrb.mxu1 %v11941_v0  ;;  %v14995_v0 = vld [vmem:[#allocation6 + $0xc78] sm:$0xf0] }
 0x2ad   :  { %5085 = vmatpush.bf16.msra.mxu0 %v12341_v56  ;;  %v12601_v27 = vor.u32 %v14995_v0, %v12600_v63  ;;  %v4710_v63 = vadd.f32 %v17858_v58, %v4691_v13  ;;  %v15018_v58 = vld [vmem:[#allocation6 + $0xd30] sm:$0xf0]  ;;  %v12669_v13 = vld [vmem:[#allocation6 + $0xcf8] sm:$0xf] }
 0x2ae   :  { %5017 = vmatmul.bf16.gmra.mxu0 %v17834_v18  ;;  %v4767_v18 = vadd.f32 %v17886_v24, %v17884_v31 }
 0x2af   :  { %v17895_v56 = vpop.f32.mrf.mxu3 }
 0x2b0   :  { %5025 = vmatpush.bf16.msrb.mxu1 %v11921_v38  ;;  %v12560_v38 = vld [vmem:[#allocation6 + $0xc18] sm:$0xf] }
 0x2b1   :  { %5086 = vmatpush.bf16.msra.mxu0 %v12321_v40  ;;  %v17878_v51 = vpop.f32.mrf.mxu0  ;;  %v14990_v40 = vld [vmem:[#allocation6 + $0xc50] sm:$0xf0] }
 0x2b3   :  { %v17891_v32 = vpop.f32.mrf.mxu1 }
 0x2b4   :  { %5026 = vmatpush.bf16.msrb.mxu1 %v11901_v17  ;;  %v15028_v17 = vld [vmem:[#allocation6 + $0xd80] sm:$0xf0] }
 0x2b5   :  { %5087 = vmatpush.bf16.msra.mxu0 %v12301_v54  ;;  %v12729_v54 = vld [vmem:[#allocation6 + $0xd70] sm:$0xf] }
 0x2b6   :  { %4955 = vmatmul.bf16.vlgmr.msra.gmra.mxu1 %v20339_v4  ;;  %5050 = vmatmul.bf16.vlgmr.msrb.gmra.mxu2 %v20339_v4  ;;  %v17893_v4 = vpop.f32.mrf.mxu2  ;;  %v12730_v36 = vor.u32 %v15028_v17, %v12729_v54  ;;  %v12521_v54 = vor.u32 %v14975_v21, %v12520_v45  ;;  %v12500_v17 = vld [vmem:[#allocation6 + $0xba0] sm:$0xf] }
 0x2b8   :  { %5027 = vmatpush.bf16.msrb.mxu1 %v11881_v3  ;;  %v12561_v3 = vor.u32 %v14985_v26, %v12560_v38  ;;  %7100 = vmatpush.bf16.msra.mxu2 %v12730_v36  ;;  %v4674_v38 = vadd.f32 %v17854_v34, %v17882_v43  ;;  %v14970_v36 = vld [vmem:[#allocation6 + $0xbb0] sm:$0xf0]  ;;  %v12480_v43 = vld [vmem:[#allocation6 + $0xb78] sm:$0xf] }
 0x2b9   :  { %v12501_v50 = vor.u32 %v14970_v36, %v12500_v17  ;;  %v12460_v17 = vld [vmem:[#allocation6 + $0xb50] sm:$0xf]  ;;  %v14960_v36 = vld [vmem:[#allocation6 + $0xb60] sm:$0xf0] }
 0x2ba   :  { %v17888_v7 = vpop.f32.mrf.mxu0 }
 0x2bb   :  { %v17901_v60 = vpop.f32.mrf.mxu1 }
 0x2bc   :  { %5028 = vmatpush.bf16.msrb.mxu1 %v11861_v25  ;;  %v14980_v25 = vld [vmem:[#allocation6 + $0xc00] sm:$0xf0] }
 0x2bd   :  { %v12541_v23 = vor.u32 %v14980_v25, %v12540_v53  ;;  %v12690_v53 = vor.u32 %v15018_v58, %v12689_v10  ;;  %v12649_v10 = vld [vmem:[#allocation6 + $0xcd0] sm:$0xf]  ;;  %v4677_v58 = vadd.f32 %v17862_v22, %v17891_v32  ;;  %v4679_v22 = vadd.f32 %v17873_v1, %v17901_v60 }
 0x2be   :  { %5088 = vmatmul.bf16.vlgmr.msra.gmra.mxu0 %v20351_v5  ;;  %v12581_v5 = vor.u32 %v14990_v40, %v12580_v44  ;;  %v17903_v29 = vpop.f32.mrf.mxu2  ;;  %v15023_v40 = vld [vmem:[#allocation6 + $0xd58] sm:$0xf0] }
 0x2bf   :  { %v4696_v32 = vadd.f32 %v17864_v59, %v4677_v58  ;;  %v17972_v59 = vadd.f32 %v17895_v56, %v17893_v4  ;;  %v12609_v4 = vld [vmem:[#allocation6 + $0xc80] sm:$0xf]  ;;  %v14998_v56 = vld [vmem:[#allocation6 + $0xc90] sm:$0xf0] }
 0x2c0   :  { %5029 = vmatpush.bf16.msrb.mxu1 %v11841_v57  ;;  %v17910_v57 = vld [vmem:[#allocation7 + $0x5] sm:$0x1f] }
 0x2c1   :  { %v17918_v0 = vperm.slane %v17910_v57, 0 }
 0x2c2   :  { %v17897_v11 = vpop.f32.mrf.mxu0 }
 0x2c4   :  { %5030 = vmatpush.bf16.msrb.mxu1 %v11821_v15  ;;  %v17914_v15 = vld [vmem:[#allocation9 + $0x5] sm:$0x1f] }
 0x2c5   :  { %20353 = vst [vmem:[#allocation44_spill] sm:$0xff] %v17914_v15  ;;  %v17921_v6 = vperm.slane %v17914_v15, 0 }
 0x2c6   :  { %4960 = vmatmul.bf16.gmra.mxu1 %v20344_v48  ;;  %5055 = vmatmul.bf16.gmra.mxu2 %v20344_v48  ;;  %v17905_v48 = vpop.f32.mrf.mxu3  ;;  %v17927_v39 = vpop.f32.mrf.mxu2 }
 0x2c7   :  { %v17982_v31 = vadd.f32 %v17905_v48, %v17903_v29 }
 0x2c8   :  { %5099 = vmatpush.bf16.msra.mxu1 %v12601_v27  ;;  %v12709_v27 = vld [vmem:[#allocation6 + $0xd48] sm:$0xf] }
 0x2cb   :  { %v17908_v49 = vpop.f32.mrf.mxu0 }
 0x2cc   :  { %5100 = vmatpush.bf16.msra.mxu1 %v12581_v5  ;;  %v12710_v5 = vor.u32 %v15023_v40, %v12709_v27  ;;  %v17941_v27 = vld [vmem:[%s20066_s2 + $0x50] sm:$0x1f] }
 0x2ce   :  { %5093 = vmatmul.bf16.gmra.mxu0 %v17584_v12  ;;  %v17929_v26 = vpop.f32.mrf.mxu3  ;;  %7101 = vmatpush.bf16.msra.mxu2 %v12710_v5 }
 0x2d0   :  { %5101 = vmatpush.bf16.msra.mxu1 %v12561_v3 }
 0x2d2   :  { %7102 = vmatpush.bf16.msra.mxu2 %v12690_v53 }
 0x2d3   :  { %v4728_v44 = vpop.f32.mrf.mxu1  ;;  %v17933_v25 = vpop.f32.mrf.mxu0 }
 0x2d4   :  { %v4729_v2 = vadd.f32 %v4728_v44, %v4710_v63  ;;  %5102 = vmatpush.bf16.msra.mxu1 %v12541_v23  ;;  %v15013_v23 = vld [vmem:[#allocation6 + $0xd08] sm:$0xf0] }
 0x2d5   :  { %v14965_v63 = vld [vmem:[#allocation6 + $0xb88] sm:$0xf0]  ;;  %v12670_v45 = vor.u32 %v15013_v23, %v12669_v13  ;;  %v17955_v23 = vperm.slane %v17941_v27, 1 }
 0x2d6   :  { %v5131_v12 = vmul.f32 %v17918_v0, %v4729_v2  ;;  %5031 = vmatmul.bf16.vlgmr.msrb.gmra.mxu1 %v20332_v55  ;;  %v4693_v55 = vadd.f32 %v17856_v35, %v4674_v38  ;;  %v12481_v21 = vor.u32 %v14965_v63, %v12480_v43 }
 0x2d7   :  { %7103 = vmatpush.bf16.msra.mxu2 %v12670_v45 }
 0x2d8   :  { %v5164_v3 = vadd.f32 %v17921_v6, %v5131_v12  ;;  %5103 = vmatpush.bf16.msra.mxu1 %v12521_v54  ;;  %v4712_v44 = vadd.f32 %v17866_v33, %v4693_v55  ;;  %v17946_v12 = vperm.slane %v17941_v27, 0  ;;  %v15008_v33 = vld [vmem:[#allocation6 + $0xce0] sm:$0xf0] }
 0x2d9   :  { %v20355_v55 = vld [vmem:[#allocation28_spill] sm:$0xff]  ;;  %v12650_v63 = vor.u32 %v15008_v33, %v12649_v10  ;;  %v17986_v33 = vperm.slane %v17941_v27, 2 }
 0x2da   :  { %v17935_v34 = vmax.f32 %v5164_v3, 0.0  ;;  %v20354_v3 = vld [vmem:[#allocation30_spill] sm:$0xff] }
 0x2db   :  { %v4730_v2 = vpop.f32.mrf.mxu1  ;;  %7104 = vmatpush.bf16.msra.mxu2 %v12650_v63  ;;  %v20357_v63 = vld [vmem:[#allocation31_spill] sm:$0xff] }
 0x2dc   :  { %v5230_v35 = vrot.slane %v17935_v34, 6  ;;  %v5355_v40 = vrot.slane %v17935_v34, 7  ;;  %v4731_v5 = vadd.f32 %v4730_v2, %v4712_v44  ;;  %5104 = vmatpush.bf16.msra.mxu1 %v12501_v50  ;;  %v17957_v50 = vpop.f32.mrf.mxu2  ;;  %v17963_v44 = vpop.f32.mrf.mxu3  ;;  %v5525_v58 = vrot.slane %v17935_v34, 1 }
 0x2dd   :  { %v5650_v29 = vrot.slane %v17935_v34, 2 }
 0x2de   :  { %v5285_v38 = vsel %vm219_vm0, 0.0, %v5230_v35  ;;  %v5410_v54 = vsel %vm369_vm1, 0.0, %v5355_v40  ;;  %v5136_v43 = vmul.f32 %v17918_v0, %v4731_v5  ;;  %v4715_v5 = vadd.f32 %v17870_v9, %v4696_v32 }
 0x2df   :  { %v5290_v53 = vmul.f32 %v5285_v38, %v20354_v3  ;;  %v5415_v13 = vmul.f32 %v5410_v54, %v20355_v55  ;;  %v12461_v38 = vor.u32 %v14960_v36, %v12460_v17  ;;  %v4698_v54 = vadd.f32 %v17875_v16, %v4679_v22  ;;  %v12629_v55 = vld [vmem:[#allocation6 + $0xca8] sm:$0xf]  ;;  %v15003_v3 = vld [vmem:[#allocation6 + $0xcb8] sm:$0xf0] }
 0x2e0   :  { %v5169_v2 = vadd.f32 %v17921_v6, %v5136_v43  ;;  %5105 = vmatpush.bf16.msra.mxu1 %v12481_v21  ;;  %v17978_v21 = vpop.f32.mrf.mxu0  ;;  %v12630_v10 = vor.u32 %v15003_v3, %v12629_v55  ;;  %v12610_v43 = vor.u32 %v14998_v56, %v12609_v4  ;;  %v20356_v22 = vld [vmem:[#allocation32_spill] sm:$0xff] }
 0x2e1   :  { %v5315_v1 = vmul.f32 %v17946_v12, %v5290_v53  ;;  %v5440_v60 = vmul.f32 %v17955_v23, %v5415_v13  ;;  %v4717_v9 = vadd.f32 %v17878_v51, %v4698_v54 }
 0x2e2   :  { %v17976_v45 = vmax.f32 %v5169_v2, 0.0  ;;  %7105 = vmatpush.bf16.msra.mxu2 %v12630_v10 }
 0x2e3   :  { %v4733_v16 = vpop.f32.mrf.mxu1  ;;  %v5460_v53 = vadd.f32 %v5440_v60, %v5315_v1 }
 0x2e4   :  { %v4734_v24 = vadd.f32 %v4733_v16, %v4715_v5  ;;  %v5235_v17 = vrot.slane %v17976_v45, 6  ;;  %v5360_v36 = vrot.slane %v17976_v45, 7  ;;  %5106 = vmatpush.bf16.msra.mxu1 %v12461_v38  ;;  %v5526_v48 = vrot.slane %v17976_v45, 1  ;;  %v12909_v5 = vld [vmem:[#allocation6 + $0xed8] sm:$0xf]  ;;  %v18004_v1 = vpop.f32.mrf.mxu2 }
 0x2e5   :  { %v5651_v51 = vrot.slane %v17976_v45, 2  ;;  %v15073_v16 = vld [vmem:[#allocation6 + $0xee8] sm:$0xf0] }
 0x2e6   :  { %v5141_v3 = vmul.f32 %v17918_v0, %v4734_v24  ;;  %5036 = vmatmul.bf16.gmra.mxu1 %v20336_v52  ;;  %v5236_v55 = vsel %vm219_vm0, %v5230_v35, %v5235_v17  ;;  %v5361_v13 = vsel %vm369_vm1, %v5355_v40, %v5360_v36  ;;  %v5527_v54 = vsel %vm565_vm2, %v5525_v58, %v5526_v48  ;;  %v12889_v58 = vld [vmem:[#allocation6 + $0xeb0] sm:$0xf] }
 0x2e7   :  { %v5295_v32 = vmul.f32 %v5236_v55, %v20356_v22  ;;  %v5420_v2 = vmul.f32 %v5361_v13, %v20357_v63  ;;  %v5485_v52 = vmul.f32 %v17986_v33, %v17935_v34  ;;  %v5585_v35 = vmul.f32 %v5527_v54, %v20309_v19  ;;  %v18016_v34 = vpop.f32.mrf.mxu3  ;;  %7106 = vmatpush.bf16.msra.mxu2 %v12610_v43 }
 0x2e8   :  { %v5174_v38 = vadd.f32 %v17921_v6, %v5141_v3  ;;  %v18008_v40 = vperm.slane %v17941_v27, 3  ;;  %v5652_v60 = vsel %vm716_vm3, %v5650_v29, %v5651_v51  ;;  %v4786_v24 = vadd.f32 %v17888_v7, %v4767_v18  ;;  %v15068_v3 = vld [vmem:[#allocation6 + $0xec0] sm:$0xf0]  ;;  %v18027_v63 = vpop.f32.mrf.mxu0 }
 0x2e9   :  { %v5320_v10 = vmul.f32 %v17946_v12, %v5295_v32  ;;  %v5445_v56 = vmul.f32 %v17955_v23, %v5420_v2  ;;  %v5505_v55 = vadd.f32 %v5485_v52, %v5460_v53  ;;  %v18020_v19 = vperm.slane %v17941_v27, 4 }
 0x2ea   :  { %v18012_v4 = vmax.f32 %v5174_v38, 0.0  ;;  %v5610_v54 = vmul.f32 %v18008_v40, %v5585_v35  ;;  %v12910_v29 = vor.u32 %v15073_v16, %v12909_v5  ;;  %v5710_v2 = vmul.f32 %v5652_v60, %v20310_v61  ;;  %v18029_v35 = vld [vmem:[#allocation4 + $0xa] sm:$0x1f] }
 0x2eb   :  { %v4735_v13 = vpop.f32.mrf.mxu1  ;;  %v5465_v52 = vadd.f32 %v5445_v56, %v5320_v10  ;;  %20358 = vst [vmem:[#allocation41_spill] sm:$0xff] %v18029_v35  ;;  %v12890_v27 = vor.u32 %v15068_v3, %v12889_v58  ;;  %v5490_v60 = vmul.f32 %v17986_v33, %v17976_v45 }
 0x2ec   :  { %v5245_v18 = vrot.slane %v18012_v4, 6  ;;  %v5370_v7 = vrot.slane %v18012_v4, 7  ;;  %v20176_v32 = vrot.slane %v18012_v4, 1  ;;  %v4736_v53 = vadd.f32 %v4735_v13, %v4717_v9  ;;  %7118 = vmatpush.bf16.msra.mxu3 %v12910_v29 }
 0x2ed   :  { %v5630_v22 = vadd.f32 %v5610_v54, %v5505_v55  ;;  %v5735_v58 = vmul.f32 %v18020_v19, %v5710_v2  ;;  %v5510_v54 = vadd.f32 %v5490_v60, %v5465_v52  ;;  %v12869_v2 = vld [vmem:[#allocation6 + $0xe88] sm:$0xf]  ;;  %v18064_v52 = vperm.slane %v17914_v15, 1 }
 0x2ee   :  { %v5246_v5 = vsel %vm219_vm0, %v5235_v17, %v5245_v18  ;;  %v5371_v16 = vsel %vm369_vm1, %v5360_v36, %v5370_v7  ;;  %v5541_v43 = vsel %vm565_vm2, %v5526_v48, %v20176_v32  ;;  %v5146_v10 = vmul.f32 %v17918_v0, %v4736_v53  ;;  %v15063_v53 = vld [vmem:[#allocation6 + $0xe98] sm:$0xf0] }
 0x2ef   :  { %v5300_v38 = vmul.f32 %v5246_v5, %v16228_v8  ;;  %v5425_v9 = vmul.f32 %v5371_v16, %v20337_v37  ;;  %v5590_v56 = vmul.f32 %v5541_v43, %v20319_v41  ;;  %v20359_v17 = vrot.slane %v18012_v4, 2  ;;  %v12849_v5 = vld [vmem:[#allocation6 + $0xe60] sm:$0xf]  ;;  %v18056_v43 = vpop.f32.mrf.mxu2  ;;  %v18066_v60 = vpop.f32.mrf.mxu3 }
 0x2f0   :  { %v18047_v48 = vperm.slane %v18029_v35, 0  ;;  %v5179_v55 = vadd.f32 %v17921_v6, %v5146_v10  ;;  %7119 = vmatpush.bf16.msra.mxu3 %v12890_v27  ;;  %v4788_v0 = vadd.f32 %v17897_v11, %v17972_v59  ;;  %v5755_v29 = vadd.f32 %v5735_v58, %v5630_v22  ;;  %v15058_v27 = vld [vmem:[#allocation6 + $0xe70] sm:$0xf0] }
 0x2f1   :  { %v5666_v36 = vsel %vm716_vm3, %v5651_v51, %v20359_v17  ;;  %v5325_v3 = vmul.f32 %v17946_v12, %v5300_v38  ;;  %v5450_v45 = vmul.f32 %v17955_v23, %v5425_v9  ;;  %v5615_v51 = vmul.f32 %v18008_v40, %v5590_v56 }
 0x2f2   :  { %v5715_v13 = vmul.f32 %v5666_v36, %v20320_v28  ;;  %v5199_v38 = vmax.f32 %v5179_v55, 0.0  ;;  %v18059_v6 = vperm.slane %v17910_v57, 1  ;;  %v12870_v10 = vor.u32 %v15063_v53, %v12869_v2 }
 0x2f3   :  { %v5470_v16 = vadd.f32 %v5450_v45, %v5325_v3  ;;  %v4804_v9 = vpop.f32.mrf.mxu1  ;;  %v5495_v11 = vmul.f32 %v17986_v33, %v18012_v4  ;;  %v5635_v22 = vadd.f32 %v5615_v51, %v5510_v54  ;;  %v12850_v58 = vor.u32 %v15058_v27, %v12849_v5  ;;  %v4866_v51 = vpop.f32.mrf.mxu0 }
 0x2f4   :  { %v4805_v59 = vadd.f32 %v4804_v9, %v4786_v24  ;;  %v5255_v56 = vrot.slane %v5199_v38, 6  ;;  %v5380_v17 = vrot.slane %v5199_v38, 7  ;;  %v5740_v36 = vmul.f32 %v18020_v19, %v5715_v13  ;;  %7120 = vmatpush.bf16.msra.mxu3 %v12870_v10 }
 0x2f5   :  { %v5550_v3 = vrot.slane %v5199_v38, 1  ;;  %v5675_v45 = vrot.slane %v5199_v38, 2  ;;  %v5788_v24 = vadd.f32 %v18047_v48, %v5755_v29  ;;  %v5515_v2 = vadd.f32 %v5495_v11, %v5470_v16  ;;  %v18087_v16 = vld [vmem:[%s20066_s2 + $0x58] sm:$0x1f] }
 0x2f6   :  { %v4824_v55 = vadd.f32 %v17957_v50, %v4805_v59  ;;  %5107 = vmatmul.bf16.vlgmr.msra.gmra.mxu1 %v17811_v42  ;;  %v5256_v53 = vsel %vm219_vm0, %v5245_v18, %v5255_v56  ;;  %v5381_v54 = vsel %vm369_vm1, %v5370_v7, %v5380_v17  ;;  %v5760_v9 = vadd.f32 %v5740_v36, %v5635_v22  ;;  %v12829_v17 = vld [vmem:[#allocation6 + $0xe38] sm:$0xf]  ;;  %v15053_v36 = vld [vmem:[#allocation6 + $0xe48] sm:$0xf0] }
 0x2f7   :  { %v5305_v32 = vmul.f32 %v5256_v53, %v20338_v46  ;;  %v5430_v13 = vmul.f32 %v5381_v54, %v20324_v62  ;;  %v5580_v5 = vsel %vm565_vm2, %v5550_v3, 0.0  ;;  %v5705_v10 = vsel %vm716_vm3, %v5675_v45, 0.0 }
 0x2f8   :  { %v5600_v50 = vmul.f32 %v5580_v5, %v16383_v47  ;;  %v5132_v42 = vmul.f32 %v18059_v6, %v4824_v55  ;;  %v5793_v29 = vadd.f32 %v18047_v48, %v5760_v9  ;;  %7121 = vmatpush.bf16.msra.mxu3 %v12850_v58  ;;  %v20360_v18 = vrot.slane %v18012_v4, 1  ;;  %v18104_v5 = vpop.f32.mrf.mxu2 }
 0x2f9   :  { %v5330_v27 = vmul.f32 %v17946_v12, %v5305_v32  ;;  %v5455_v11 = vmul.f32 %v17955_v23, %v5430_v13  ;;  %v20361_v22 = vrot.slane %v18012_v4, 2  ;;  %v5500_v58 = vmul.f32 %v17986_v33, %v5199_v38  ;;  %v12809_v4 = vld [vmem:[#allocation6 + $0xe10] sm:$0xf]  ;;  %v15048_v13 = vld [vmem:[#allocation6 + $0xe20] sm:$0xf0] }
 0x2fa   :  { %v5551_v7 = vsel %vm565_vm2, %v20360_v18, %v5550_v3  ;;  %v5165_v3 = vadd.f32 %v18064_v52, %v5132_v42  ;;  %v18097_v53 = vpack.c.bf16 %v5793_v29, %v5788_v24  ;;  %v5725_v9 = vmul.f32 %v5705_v10, %v16403_v14  ;;  %v18114_v18 = vpop.f32.mrf.mxu3 }
 0x2fb   :  { %v5595_v59 = vmul.f32 %v5551_v7, %v16335_v20  ;;  %v5676_v56 = vsel %vm716_vm3, %v20361_v22, %v5675_v45  ;;  %v4806_v55 = vpop.f32.mrf.mxu1  ;;  %v5475_v32 = vadd.f32 %v5455_v11, %v5330_v27  ;;  %v4774_v45 = vadd.f32 %v17929_v26, %v17927_v39 }
 0x2fc   :  { %20362 = vst [vmem:[#allocation42_spill] sm:$0xff] %v18097_v53  ;;  %v5720_v54 = vmul.f32 %v5676_v56, %v16398_v30  ;;  %v4807_v12 = vadd.f32 %v4806_v55, %v4788_v0  ;;  %v18106_v33 = vmax.f32 %v5165_v3, 0.0  ;;  %v18109_v38 = vperm.slane %v18087_v16, 2  ;;  %7107 = vmatmul.bf16.vlgmr.msra.gmra.mxu2 %v18097_v53  ;;  %v18134_v56 = vpop.f32.mrf.mxu0  ;;  %v12789_v55 = vld [vmem:[#allocation6 + $0xde8] sm:$0xf] }
 0x2fd   :  { %v5620_v23 = vmul.f32 %v18008_v40, %v5595_v59  ;;  %v12830_v0 = vor.u32 %v15053_v36, %v12829_v17  ;;  %v5520_v42 = vadd.f32 %v5500_v58, %v5475_v32  ;;  %v5625_v10 = vmul.f32 %v18008_v40, %v5600_v50 }
 0x2fe   :  { %v4826_v24 = vadd.f32 %v18004_v1, %v4807_v12  ;;  %v5231_v39 = vrot.slane %v18106_v33, 6  ;;  %v5356_v26 = vrot.slane %v18106_v33, 7  ;;  %v5745_v7 = vmul.f32 %v18020_v19, %v5720_v54  ;;  %v15043_v54 = vld [vmem:[#allocation6 + $0xdf8] sm:$0xf0]  ;;  %v20363_v12 = vld [vmem:[#allocation30_spill] sm:$0xff] }
 0x2ff   :  { %v5640_v29 = vadd.f32 %v5620_v23, %v5515_v2  ;;  %7122 = vmatpush.bf16.msra.mxu3 %v12830_v0  ;;  %v12810_v27 = vor.u32 %v15048_v13, %v12809_v4  ;;  %v4791_v11 = vadd.f32 %v17908_v49, %v17982_v31  ;;  %v5645_v1 = vadd.f32 %v5625_v10, %v5520_v42  ;;  %v12769_v13 = vld [vmem:[#allocation6 + $0xdc0] sm:$0xf] }
 0x300   :  { %v5137_v59 = vmul.f32 %v18059_v6, %v4826_v24  ;;  %v5750_v22 = vmul.f32 %v18020_v19, %v5725_v9  ;;  %v18124_v40 = vadd.f32 %v17933_v25, %v4774_v45  ;;  %v18128_v2 = vadd.f32 %v17978_v21, %v17963_v44  ;;  %v15038_v45 = vld [vmem:[#allocation6 + $0xdd0] sm:$0xf0] }
 0x301   :  { %v18132_v50 = vadd.f32 %v18027_v63, %v18016_v34  ;;  %v5765_v17 = vadd.f32 %v5745_v7, %v5640_v29  ;;  %v18137_v49 = vadd.f32 %v4866_v51, %v18066_v60  ;;  %v5286_v31 = vsel %vm219_vm0, 0.0, %v5231_v39  ;;  %v20365_v29 = vld [vmem:[#allocation39_spill] sm:$0xff]  ;;  %v18164_v7 = vpop.f32.mrf.mxu2 }
 0x302   :  { %v5170_v19 = vadd.f32 %v18064_v52, %v5137_v59  ;;  %v5770_v25 = vadd.f32 %v5750_v22, %v5645_v1  ;;  %v5411_v36 = vsel %vm369_vm1, 0.0, %v5356_v26  ;;  %v18144_v44 = vmul.f32 %v18109_v38, %v18106_v33 }
 0x303   :  { %v5528_v21 = vrot.slane %v18106_v33, 1  ;;  %v5653_v63 = vrot.slane %v18106_v33, 2  ;;  %v4809_v34 = vpop.f32.mrf.mxu1  ;;  %7123 = vmatpush.bf16.msra.mxu3 %v12810_v27  ;;  %v18152_v3 = vperm.slane %v17910_v57, 2  ;;  %v5291_v32 = vmul.f32 %v5286_v31, %v20363_v12  ;;  %v20364_v33 = vld [vmem:[#allocation28_spill] sm:$0xff] }
 0x304   :  { %v18148_v58 = vmax.f32 %v5170_v19, 0.0  ;;  %v4810_v60 = vadd.f32 %v4809_v34, %v4791_v11  ;;  %v5803_v51 = vadd.f32 %v18047_v48, %v5770_v25  ;;  %v5798_v23 = vadd.f32 %v18047_v48, %v5765_v17  ;;  %v18180_v19 = vpop.f32.mrf.mxu3  ;;  %v18186_v25 = vld [vmem:[%s20066_s2 + $0x60] sm:$0x1f]  ;;  %v20368_v34 = vld [vmem:[#allocation31_spill] sm:$0xff] }
 0x305   :  { %v18157_v9 = vperm.slane %v17914_v15, 2  ;;  %v12790_v4 = vor.u32 %v15043_v54, %v12789_v55  ;;  %v5416_v0 = vmul.f32 %v5411_v36, %v20364_v33  ;;  %v12770_v59 = vor.u32 %v15038_v45, %v12769_v13  ;;  %v20369_v54 = vld [vmem:[#allocation21_spill] sm:$0xff]  ;;  %v15031_v13 = vld [vmem:[#allocation6 + $0xd9c] sm:$0xf]  ;;  %v18197_v45 = vpop.f32.mrf.mxu0 }
 0x306   :  { %v5237_v24 = vrot.slane %v18148_v58, 6  ;;  %v20177_v42 = vrot.slane %v18148_v58, 7  ;;  %v5529_v10 = vrot.slane %v18148_v58, 1  ;;  %5112 = vmatmul.bf16.gmra.mxu1 %v20365_v29  ;;  %v20180_v48 = vrot.slane %v18148_v58, 2  ;;  %20370 = vst [vmem:[#allocation46_spill] sm:$0xff] %v18197_v45 }
 0x307   :  { %v4829_v27 = vadd.f32 %v18056_v43, %v4810_v60  ;;  %v18168_v11 = vpack.c.bf16 %v5803_v51, %v5798_v23  ;;  %7124 = vmatpush.bf16.msra.mxu3 %v12790_v4  ;;  %v18175_v17 = vperm.slane %v18087_v16, 0  ;;  %v18178_v31 = vperm.slane %v18087_v16, 1 }
 0x308   :  { %v5238_v1 = vsel %vm219_vm0, %v5231_v39, %v5237_v24  ;;  %v5363_v22 = vsel %vm369_vm1, %v5356_v26, %v20177_v42  ;;  %v20367_v39 = vld [vmem:[#allocation32_spill] sm:$0xff]  ;;  %v5530_v26 = vsel %vm565_vm2, %v5528_v21, %v5529_v10  ;;  %v18195_v4 = vperm.slane %v18087_v16, 3 }
 0x309   :  { %20366 = vst [vmem:[#allocation43_spill] sm:$0xff] %v18168_v11  ;;  %v5142_v43 = vmul.f32 %v18059_v6, %v4829_v27  ;;  %v5296_v36 = vmul.f32 %v5238_v1, %v20367_v39  ;;  %v5421_v60 = vmul.f32 %v5363_v22, %v20368_v34  ;;  %v5316_v51 = vmul.f32 %v18175_v17, %v5291_v32  ;;  %v13069_v22 = vld [vmem:[#allocation6 + $0x1018] sm:$0xf] }
 0x30a   :  { %v5441_v55 = vmul.f32 %v18178_v31, %v5416_v0  ;;  %v5586_v23 = vmul.f32 %v5530_v26, %v20369_v54  ;;  %v5655_v32 = vsel %vm716_vm3, %v5653_v63, %v20180_v48  ;;  %v12751_v0 = vld [vmem:[#allocation6 + $0xdac] sm:$0xf0]  ;;  %v15113_v26 = vld [vmem:[#allocation6 + $0x1028] sm:$0xf0]  ;;  %v18207_v53 = vperm.slane %v18186_v25, 2 }
 0x30b   :  { %v5175_v29 = vadd.f32 %v18064_v52, %v5142_v43  ;;  %v4811_v27 = vpop.f32.mrf.mxu1  ;;  %7125 = vmatpush.bf16.msra.mxu3 %v12770_v59  ;;  %v5321_v1 = vmul.f32 %v18175_v17, %v5296_v36  ;;  %v5446_v21 = vmul.f32 %v18178_v31, %v5421_v60  ;;  %v5711_v60 = vmul.f32 %v5655_v32, %v20310_v61  ;;  %v15021_v61 = vld [vmem:[#allocation6 + $0xd4c] sm:$0xf] }
 0x30c   :  { %v4812_v42 = vadd.f32 %v4811_v27, %v18124_v40  ;;  %v5461_v45 = vadd.f32 %v5441_v55, %v5316_v51  ;;  %v5611_v43 = vmul.f32 %v18195_v4, %v5586_v23  ;;  %7112 = vmatmul.bf16.gmra.mxu2 %v18168_v11  ;;  %v18215_v63 = vperm.slane %v18087_v16, 4 }
 0x30d   :  { %v18210_v59 = vmax.f32 %v5175_v29, 0.0  ;;  %v5466_v36 = vadd.f32 %v5446_v21, %v5321_v1  ;;  %v12754_v27 = vor.u32 %v15031_v13, %v12751_v0  ;;  %v13070_v15 = vor.u32 %v15113_v26, %v13069_v22  ;;  %v18229_v13 = vpop.f32.mrf.mxu2 }
 0x30e   :  { %v4831_v48 = vadd.f32 %v18104_v5, %v4812_v42  ;;  %v5506_v40 = vadd.f32 %v18144_v44, %v5461_v45  ;;  %v5491_v51 = vmul.f32 %v18109_v38, %v18148_v58  ;;  %v18227_v5 = vperm.slane %v18029_v35, 1  ;;  %v15026_v44 = vld [vmem:[#allocation6 + $0xd74] sm:$0xf]  ;;  %v12731_v42 = vld [vmem:[#allocation6 + $0xd84] sm:$0xf0] }
 0x30f   :  { %v5247_v55 = vrot.slane %v18210_v59, 6  ;;  %v5372_v23 = vrot.slane %v18210_v59, 7  ;;  %v20182_v29 = vrot.slane %v18210_v59, 1  ;;  %v20189_v1 = vrot.slane %v18210_v59, 2  ;;  %7194 = vmatpush.bf16.msrb.mxu3 %v12754_v27  ;;  %7137 = vmatpush.bf16.msrb.mxu0 %v13070_v15  ;;  %v13049_v35 = vld [vmem:[#allocation6 + $0xff0] sm:$0xf] }
 0x310   :  { %v5147_v16 = vmul.f32 %v18059_v6, %v4831_v48  ;;  %v5631_v21 = vadd.f32 %v5611_v43, %v5506_v40  ;;  %v18234_v32 = vmul.f32 %v18109_v38, %v18210_v59  ;;  %v5736_v48 = vmul.f32 %v18215_v63, %v5711_v60 }
 0x311   :  { %v5248_v45 = vsel %vm219_vm0, %v5237_v24, %v5247_v55  ;;  %v5543_v6 = vsel %vm565_vm2, %v5529_v10, %v20182_v29  ;;  %v20371_v0 = vrot.slane %v18148_v58, 7  ;;  %v5511_v26 = vadd.f32 %v5491_v51, %v5466_v36  ;;  %v18245_v24 = vpop.f32.mrf.mxu3 }
 0x312   :  { %v5180_v22 = vadd.f32 %v18064_v52, %v5147_v16  ;;  %v5591_v43 = vmul.f32 %v5543_v6, %v20319_v41  ;;  %v5301_v40 = vmul.f32 %v5248_v45, %v16228_v8  ;;  %v20372_v10 = vrot.slane %v18148_v58, 2  ;;  %v12711_v45 = vld [vmem:[#allocation6 + $0xd5c] sm:$0xf0]  ;;  %v18259_v8 = vpop.f32.mrf.mxu0 }
 0x313   :  { %v5373_v15 = vsel %vm369_vm1, %v20371_v0, %v5372_v23  ;;  %v4880_v27 = vpop.f32.mrf.mxu1  ;;  %v5756_v29 = vadd.f32 %v5736_v48, %v5631_v21  ;;  %v12734_v11 = vor.u32 %v15026_v44, %v12731_v42  ;;  %v15108_v0 = vld [vmem:[#allocation6 + $0x1000] sm:$0xf0]  ;;  %20373 = vst [vmem:[#allocation25_spill] sm:$0xff] %v18259_v8  ;;  %v12714_v44 = vor.u32 %v15021_v61, %v12711_v45  ;;  %v13029_v42 = vld [vmem:[#allocation6 + $0xfc8] sm:$0xf] }
 0x314   :  { %v5668_v60 = vsel %vm716_vm3, %v20372_v10, %v20189_v1  ;;  %v18253_v52 = vmax.f32 %v5180_v22, 0.0  ;;  %v4881_v36 = vadd.f32 %v4880_v27, %v18128_v2  ;;  %v5616_v51 = vmul.f32 %v18195_v4, %v5591_v43  ;;  %v15103_v48 = vld [vmem:[#allocation6 + $0xfd8] sm:$0xf0]  ;;  %v15016_v22 = vld [vmem:[#allocation6 + $0xd24] sm:$0xf] }
 0x315   :  { %v5716_v16 = vmul.f32 %v5668_v60, %v20320_v28  ;;  %v5426_v6 = vmul.f32 %v5373_v15, %v20337_v37  ;;  %v5789_v58 = vadd.f32 %v18227_v5, %v5756_v29  ;;  %7195 = vmatpush.bf16.msrb.mxu3 %v12734_v11  ;;  %v13050_v21 = vor.u32 %v15108_v0, %v13049_v35  ;;  %v12691_v15 = vld [vmem:[#allocation6 + $0xd34] sm:$0xf0]  ;;  %v13009_v37 = vld [vmem:[#allocation6 + $0xfa0] sm:$0xf] }
 0x316   :  { %v5257_v10 = vrot.slane %v18253_v52, 6  ;;  %v5382_v2 = vrot.slane %v18253_v52, 7  ;;  %v5501_v43 = vmul.f32 %v18109_v38, %v18253_v52  ;;  %v5552_v27 = vrot.slane %v18253_v52, 1  ;;  %v15098_v38 = vld [vmem:[#allocation6 + $0xfb0] sm:$0xf0] }
 0x317   :  { %v5677_v60 = vrot.slane %v18253_v52, 2  ;;  %v4900_v29 = vadd.f32 %v18164_v7, %v4881_v36  ;;  %v5636_v11 = vadd.f32 %v5616_v51, %v5511_v26  ;;  %v5741_v61 = vmul.f32 %v18215_v63, %v5716_v16  ;;  %7138 = vmatpush.bf16.msrb.mxu0 %v13050_v21 }
 0x318   :  { %v5258_v35 = vsel %vm219_vm0, %v5247_v55, %v5257_v10  ;;  %v5383_v0 = vsel %vm369_vm1, %v5372_v23, %v5382_v2  ;;  %v5581_v45 = vsel %vm565_vm2, %v5552_v27, 0.0  ;;  %v13030_v1 = vor.u32 %v15103_v48, %v13029_v42  ;;  %v18278_v23 = vpop.f32.mrf.mxu2  ;;  %v15011_v2 = vld [vmem:[#allocation6 + $0xcfc] sm:$0xf] }
 0x319   :  { %v4919_v8 = vadd.f32 %v18180_v19, %v4900_v29  ;;  %v5761_v28 = vadd.f32 %v5741_v61, %v5636_v11  ;;  %7196 = vmatpush.bf16.msrb.mxu3 %v12714_v44  ;;  %v12694_v52 = vor.u32 %v15016_v22, %v12691_v15  ;;  %v13010_v41 = vor.u32 %v15098_v38, %v13009_v37  ;;  %v18289_v22 = vpop.f32.mrf.mxu3 }
 0x31a   :  { %v5306_v7 = vmul.f32 %v5258_v35, %v20338_v46  ;;  %v5326_v26 = vmul.f32 %v18175_v17, %v5301_v40  ;;  %v5431_v36 = vmul.f32 %v5383_v0, %v20324_v62  ;;  %v5451_v55 = vmul.f32 %v18178_v31, %v5426_v6  ;;  %v18301_v11 = vpop.f32.mrf.mxu0 }
 0x31b   :  { %v5133_v51 = vmul.f32 %v18152_v3, %v4919_v8  ;;  %v4882_v16 = vpop.f32.mrf.mxu1  ;;  %v5794_v21 = vadd.f32 %v18227_v5, %v5761_v28  ;;  %7139 = vmatpush.bf16.msrb.mxu0 %v13030_v1  ;;  %v20374_v19 = vrot.slane %v18210_v59, 1  ;;  %v5601_v44 = vmul.f32 %v5581_v45, %v16383_v47 }
 0x31c   :  { %v4883_v40 = vadd.f32 %v4882_v16, %v18132_v50  ;;  %v5331_v42 = vmul.f32 %v18175_v17, %v5306_v7  ;;  %v5456_v6 = vmul.f32 %v18178_v31, %v5431_v36  ;;  %v5471_v48 = vadd.f32 %v5451_v55, %v5326_v26  ;;  %v15093_v7 = vld [vmem:[#allocation6 + $0xf88] sm:$0xf0]  ;;  %v15006_v55 = vld [vmem:[#allocation6 + $0xcd4] sm:$0xf] }
 0x31d   :  { %v5553_v37 = vsel %vm565_vm2, %v20374_v19, %v5552_v27  ;;  %v5166_v8 = vadd.f32 %v18157_v9, %v5133_v51  ;;  %v18292_v10 = vpack.c.bf16 %v5794_v21, %v5789_v58  ;;  %7197 = vmatpush.bf16.msrb.mxu3 %v12694_v52  ;;  %v5626_v1 = vmul.f32 %v18195_v4, %v5601_v44  ;;  %v12671_v27 = vld [vmem:[#allocation6 + $0xd0c] sm:$0xf0] }
 0x31e   :  { %v5596_v28 = vmul.f32 %v5553_v37, %v16335_v20  ;;  %v4902_v50 = vadd.f32 %v18229_v13, %v4883_v40  ;;  %v5476_v15 = vadd.f32 %v5456_v6, %v5331_v42  ;;  %v5516_v17 = vadd.f32 %v18234_v32, %v5471_v48 }
 0x31f   :  { %v20375_v31 = vrot.slane %v18210_v59, 2  ;;  %v18303_v58 = vmax.f32 %v5166_v8, 0.0  ;;  %7126 = vmatmul.bf16.vlgmr.msra.gmra.mxu3 %v18292_v10  ;;  %7140 = vmatpush.bf16.msrb.mxu0 %v13010_v41  ;;  %v5706_v35 = vsel %vm716_vm3, %v5677_v60, 0.0  ;;  %v12674_v45 = vor.u32 %v15011_v2, %v12671_v27  ;;  %v12969_v2 = vld [vmem:[#allocation6 + $0xf50] sm:$0xf] }
 0x320   :  { %v5621_v61 = vmul.f32 %v18195_v4, %v5596_v28  ;;  %v4921_v0 = vadd.f32 %v18245_v24, %v4902_v50  ;;  %v5521_v32 = vadd.f32 %v5501_v43, %v5476_v15  ;;  %v5726_v59 = vmul.f32 %v5706_v35, %v16403_v14  ;;  %v4906_v6 = vpop.f32.mrf.mxu2  ;;  %v15088_v27 = vld [vmem:[#allocation6 + $0xf60] sm:$0xf0] }
 0x321   :  { %v5678_v29 = vsel %vm716_vm3, %v20375_v31, %v5677_v60  ;;  %v18313_v38 = vadd.f32 %v18134_v56, %v18114_v18  ;;  %v5232_v52 = vrot.slane %v18303_v58, 6  ;;  %v5357_v41 = vrot.slane %v18303_v58, 7  ;;  %v12989_v60 = vld [vmem:[#allocation6 + $0xf78] sm:$0xf]  ;;  %7198 = vmatpush.bf16.msrb.mxu3 %v12674_v45  ;;  %v12651_v18 = vld [vmem:[#allocation6 + $0xce4] sm:$0xf0] }
 0x322   :  { %v5721_v13 = vmul.f32 %v5678_v29, %v16398_v30  ;;  %v18319_v4 = vmul.f32 %v18207_v53, %v18303_v58  ;;  %v5531_v24 = vrot.slane %v18303_v58, 1  ;;  %v5138_v43 = vmul.f32 %v18152_v3, %v4921_v0  ;;  %v15001_v31 = vld [vmem:[#allocation6 + $0xcac] sm:$0xf]  ;;  %v12631_v29 = vld [vmem:[#allocation6 + $0xcbc] sm:$0xf0] }
 0x323   :  { %v5641_v26 = vadd.f32 %v5621_v61, %v5516_v17  ;;  %v5646_v36 = vadd.f32 %v5626_v1, %v5521_v32  ;;  %v5287_v56 = vsel %vm219_vm0, 0.0, %v5232_v52  ;;  %v5412_v51 = vsel %vm369_vm1, 0.0, %v5357_v41  ;;  %v4885_v16 = vpop.f32.mrf.mxu1  ;;  %v4925_v61 = vpop.f32.mrf.mxu3  ;;  %v12949_v0 = vld [vmem:[#allocation6 + $0xf28] sm:$0xf]  ;;  %v15083_v32 = vld [vmem:[#allocation6 + $0xf38] sm:$0xf0] }
 0x324   :  { %v5746_v21 = vmul.f32 %v18215_v63, %v5721_v13  ;;  %v5751_v19 = vmul.f32 %v18215_v63, %v5726_v59  ;;  %v5292_v37 = vmul.f32 %v5287_v56, %v20363_v12  ;;  %v5656_v44 = vrot.slane %v18303_v58, 2  ;;  %v14996_v59 = vld [vmem:[#allocation6 + $0xc84] sm:$0xf]  ;;  %v12929_v56 = vld [vmem:[#allocation6 + $0xf00] sm:$0xf] }
 0x325   :  { %v5171_v40 = vadd.f32 %v18157_v9, %v5138_v43  ;;  %v4886_v42 = vadd.f32 %v4885_v16, %v18137_v49  ;;  %v12990_v28 = vor.u32 %v15093_v7, %v12989_v60  ;;  %v12654_v1 = vor.u32 %v15006_v55, %v12651_v18  ;;  %v12611_v7 = vld [vmem:[#allocation6 + $0xc94] sm:$0xf0]  ;;  %v18344_v43 = vpop.f32.mrf.mxu0 }
 0x326   :  { %v5766_v48 = vadd.f32 %v5746_v21, %v5641_v26  ;;  %v5771_v8 = vadd.f32 %v5751_v19, %v5646_v36  ;;  %v5417_v50 = vmul.f32 %v5412_v51, %v20364_v33  ;;  %v18336_v17 = vperm.slane %v17910_v57, 3  ;;  %v15078_v51 = vld [vmem:[#allocation6 + $0xf10] sm:$0xf0] }
 0x327   :  { %v18332_v15 = vmax.f32 %v5171_v40, 0.0  ;;  %v4905_v63 = vadd.f32 %v18278_v23, %v4886_v42  ;;  %7141 = vmatpush.bf16.msrb.mxu0 %v12990_v28  ;;  %7199 = vmatpush.bf16.msrb.mxu3 %v12654_v1  ;;  %v12970_v13 = vor.u32 %v15088_v27, %v12969_v2  ;;  %v12634_v36 = vor.u32 %v15001_v31, %v12631_v29 }
 0x328   :  { %v5799_v49 = vadd.f32 %v18227_v5, %v5766_v48  ;;  %v5804_v35 = vadd.f32 %v18227_v5, %v5771_v8  ;;  %v12950_v55 = vor.u32 %v15083_v32, %v12949_v0  ;;  %v12614_v18 = vor.u32 %v14996_v59, %v12611_v7  ;;  %v20377_v7 = vld [vmem:[#allocation36_spill] sm:$0xff] }
 0x329   :  { %v5239_v45 = vrot.slane %v18332_v15, 6  ;;  %v5364_v23 = vrot.slane %v18332_v15, 7  ;;  %v5532_v57 = vrot.slane %v18332_v15, 1  ;;  %v5657_v60 = vrot.slane %v18332_v15, 2 }
 0x32a   :  { %v4924_v26 = vadd.f32 %v18289_v22, %v4905_v63  ;;  %v18347_v5 = vpack.c.bf16 %v5804_v35, %v5799_v49  ;;  %v18351_v21 = vperm.slane %v18186_v25, 0  ;;  %v12930_v22 = vor.u32 %v15078_v51, %v12929_v56  ;;  %v4975_v35 = vpop.f32.mrf.mxu2 }
 0x32b   :  { %v5240_v16 = vsel %vm219_vm0, %v5232_v52, %v5239_v45  ;;  %v5365_v19 = vsel %vm369_vm1, %v5357_v41, %v5364_v23  ;;  %v4887_v42 = vpop.f32.mrf.mxu1  ;;  %7142 = vmatpush.bf16.msrb.mxu0 %v12970_v13  ;;  %7200 = vmatpush.bf16.msrb.mxu3 %v12634_v36  ;;  %v18357_v8 = vperm.slane %v18186_v25, 1  ;;  %v5492_v41 = vmul.f32 %v18207_v53, %v18332_v15  ;;  %v15071_v36 = vld [vmem:[#allocation6 + $0xedc] sm:$0xf]  ;;  %v4994_v56 = vpop.f32.mrf.mxu3 }
 0x32c   :  { %20376 = vst [vmem:[#allocation22_spill] sm:$0xff] %v18347_v5  ;;  %v5143_v40 = vmul.f32 %v18152_v3, %v4924_v26  ;;  %v5297_v48 = vmul.f32 %v5240_v16, %v20367_v39  ;;  %v4888_v28 = vadd.f32 %v4887_v42, %v18313_v38  ;;  %v5317_v52 = vmul.f32 %v18351_v21, %v5292_v37  ;;  %v20378_v16 = vld [vmem:[#allocation44_spill] sm:$0xff]  ;;  %v13229_v42 = vld [vmem:[#allocation6 + $0x1158] sm:$0xf] }
 0x32d   :  { %v5422_v1 = vmul.f32 %v5365_v19, %v20368_v34  ;;  %v5442_v63 = vmul.f32 %v18357_v8, %v5417_v50  ;;  %v5533_v31 = vsel %vm565_vm2, %v5531_v24, %v5532_v57  ;;  %v18375_v49 = vperm.slane %v18186_v25, 3 }
 0x32e   :  { %v5176_v2 = vadd.f32 %v18157_v9, %v5143_v40  ;;  %v5322_v27 = vmul.f32 %v18351_v21, %v5297_v48  ;;  %v4907_v38 = vadd.f32 %v4906_v6, %v4888_v28  ;;  %v5587_v29 = vmul.f32 %v5533_v31, %v20369_v54  ;;  %v15153_v48 = vld [vmem:[#allocation6 + $0x1168] sm:$0xf0]  ;;  %v5013_v28 = vpop.f32.mrf.mxu0  ;;  %v20380_v31 = vld [vmem:[#allocation23_spill] sm:$0xff] }
 0x32f   :  { %v5447_v37 = vmul.f32 %v18357_v8, %v5422_v1  ;;  %7131 = vmatmul.bf16.gmra.mxu3 %v18347_v5  ;;  %7143 = vmatpush.bf16.msrb.mxu0 %v12950_v55  ;;  %v5462_v50 = vadd.f32 %v5442_v63, %v5317_v52  ;;  %v5658_v24 = vsel %vm716_vm3, %v5656_v44, %v5657_v60  ;;  %v18386_v6 = vperm.slane %v18186_v25, 4  ;;  %v12911_v25 = vld [vmem:[#allocation6 + $0xeec] sm:$0xf0]  ;;  %v20379_v63 = vld [vmem:[#allocation46_spill] sm:$0xff] }
 0x330   :  { %v18377_v13 = vmax.f32 %v5176_v2, 0.0  ;;  %v4926_v0 = vadd.f32 %v4925_v61, %v4907_v38  ;;  %7201 = vmatpush.bf16.msrb.mxu3 %v12614_v18  ;;  %v5612_v59 = vmul.f32 %v18375_v49, %v5587_v29  ;;  %v5712_v26 = vmul.f32 %v5658_v24, %v20377_v7  ;;  %v13209_v29 = vld [vmem:[#allocation6 + $0x1130] sm:$0xf] }
 0x331   :  { %v5467_v32 = vadd.f32 %v5447_v37, %v5322_v27  ;;  %v18394_v44 = vperm.slane %v20378_v16, 3  ;;  %v5507_v19 = vadd.f32 %v18319_v4, %v5462_v50  ;;  %v15148_v50 = vld [vmem:[#allocation6 + $0x1140] sm:$0xf0] }
 0x332   :  { %v5249_v55 = vrot.slane %v18377_v13, 6  ;;  %v20195_v51 = vrot.slane %v18377_v13, 7  ;;  %v20194_v58 = vrot.slane %v18377_v13, 1  ;;  %v20193_v61 = vrot.slane %v18377_v13, 2 }
 0x333   :  { %v5148_v18 = vmul.f32 %v18152_v3, %v4926_v0  ;;  %v5512_v40 = vadd.f32 %v5492_v41, %v5467_v32  ;;  %v4956_v2 = vpop.f32.mrf.mxu1  ;;  %7144 = vmatpush.bf16.msrb.mxu0 %v12930_v22  ;;  %v5737_v4 = vmul.f32 %v18386_v6, %v5712_v26  ;;  %v15066_v41 = vld [vmem:[#allocation6 + $0xeb4] sm:$0xf]  ;;  %v5632_v37 = vadd.f32 %v5612_v59, %v5507_v19  ;;  %v20382_v59 = vld [vmem:[#allocation35_spill] sm:$0xff]  ;;  %v15061_v19 = vld [vmem:[#allocation6 + $0xe8c] sm:$0xf] }
 0x334   :  { %v5250_v52 = vsel %vm219_vm0, %v5239_v45, %v5249_v55  ;;  %v18403_v1 = vsel %vm369_vm1, %v5364_v23, %v20195_v51  ;;  %v5545_v3 = vsel %vm565_vm2, %v5532_v57, %v20194_v58  ;;  %v4957_v45 = vadd.f32 %v4956_v2, %v20379_v63  ;;  %v12891_v23 = vld [vmem:[#allocation6 + $0xec4] sm:$0xf0]  ;;  %v20381_v57 = vld [vmem:[#allocation41_spill] sm:$0xff]  ;;  %v12871_v63 = vld [vmem:[#allocation6 + $0xe9c] sm:$0xf0] }
 0x335   :  { %v5181_v27 = vadd.f32 %v18157_v9, %v5148_v18  ;;  %v5592_v38 = vmul.f32 %v5545_v3, %v20380_v31  ;;  %v5670_v22 = vsel %vm716_vm3, %v5657_v60, %v20193_v61  ;;  %v18420_v24 = vperm.slane %v20381_v57, 2  ;;  %v13189_v60 = vld [vmem:[#allocation6 + $0x1108] sm:$0xf]  ;;  %v15143_v61 = vld [vmem:[#allocation6 + $0x1118] sm:$0xf0] }
 0x336   :  { %v12914_v0 = vor.u32 %v15071_v36, %v12911_v25  ;;  %v13230_v32 = vor.u32 %v15153_v48, %v13229_v42  ;;  %v4976_v26 = vadd.f32 %v4975_v35, %v4957_v45  ;;  %v5717_v18 = vmul.f32 %v5670_v22, %v20382_v59  ;;  %v4977_v42 = vpop.f32.mrf.mxu2  ;;  %v20383_v22 = vld [vmem:[#allocation37_spill] sm:$0xff] }
 0x337   :  { %v18422_v9 = vmax.f32 %v5181_v27, 0.0  ;;  %v5617_v16 = vmul.f32 %v18375_v49, %v5592_v38  ;;  %v5757_v2 = vadd.f32 %v5737_v4, %v5632_v37  ;;  %v12894_v3 = vor.u32 %v15066_v41, %v12891_v23  ;;  %v15056_v37 = vld [vmem:[#allocation6 + $0xe64] sm:$0xf]  ;;  %v12851_v23 = vld [vmem:[#allocation6 + $0xe74] sm:$0xf0] }
 0x338   :  { %7213 = vmatpush.bf16.msra.mxu0 %v12914_v0  ;;  %7156 = vmatpush.bf16.msrb.mxu1 %v13230_v32  ;;  %v13210_v15 = vor.u32 %v15148_v50, %v13209_v29  ;;  %v4995_v48 = vadd.f32 %v4994_v56, %v4976_v26  ;;  %v5742_v4 = vmul.f32 %v18386_v6, %v5717_v18  ;;  %v13169_v29 = vld [vmem:[#allocation6 + $0x10e0] sm:$0xf]  ;;  %v4996_v32 = vpop.f32.mrf.mxu3 }
 0x339   :  { %v5259_v57 = vrot.slane %v18422_v9, 6  ;;  %v5384_v36 = vrot.slane %v18422_v9, 7  ;;  %v5554_v25 = vrot.slane %v18422_v9, 1  ;;  %v5679_v35 = vrot.slane %v18422_v9, 2 }
 0x33a   :  { %v5637_v27 = vadd.f32 %v5617_v16, %v5512_v40  ;;  %v5790_v45 = vadd.f32 %v18420_v24, %v5757_v2  ;;  %v12874_v41 = vor.u32 %v15061_v19, %v12871_v63  ;;  %v13190_v38 = vor.u32 %v15143_v61, %v13189_v60  ;;  %v15138_v40 = vld [vmem:[#allocation6 + $0x10f0] sm:$0xf0]  ;;  %v20384_v16 = vld [vmem:[#allocation25_spill] sm:$0xff] }
 0x33b   :  { %v5260_v50 = vsel %vm219_vm0, %v5249_v55, %v5259_v57  ;;  %v5302_v0 = vmul.f32 %v5250_v52, %v20383_v22  ;;  %v5014_v58 = vadd.f32 %v5013_v28, %v4995_v48  ;;  %v4958_v51 = vpop.f32.mrf.mxu1  ;;  %v12854_v56 = vor.u32 %v15056_v37, %v12851_v23  ;;  %v5015_v55 = vpop.f32.mrf.mxu0 }
 0x33c   :  { %v5762_v5 = vadd.f32 %v5742_v4, %v5637_v27  ;;  %7214 = vmatpush.bf16.msra.mxu0 %v12894_v3  ;;  %7157 = vmatpush.bf16.msrb.mxu1 %v13210_v15  ;;  %v5582_v26 = vsel %vm565_vm2, %v5554_v25, 0.0  ;;  %v4959_v18 = vadd.f32 %v4958_v51, %v20384_v16  ;;  %v13170_v61 = vor.u32 %v15138_v40, %v13169_v29  ;;  %v20386_v15 = vld [vmem:[#allocation45_spill] sm:$0xff] }
 0x33d   :  { %v5307_v19 = vmul.f32 %v5260_v50, %v20338_v46  ;;  %v5327_v2 = vmul.f32 %v18351_v21, %v5302_v0  ;;  %v5134_v52 = vmul.f32 %v18336_v17, %v5014_v58  ;;  %v20385_v63 = vrot.slane %v18377_v13, 7  ;;  %v20387_v58 = vld [vmem:[#allocation42_spill] sm:$0xff] }
 0x33e   :  { %v5795_v28 = vadd.f32 %v18420_v24, %v5762_v5  ;;  %v5427_v60 = vmul.f32 %v18403_v1, %v20386_v15  ;;  %v4978_v57 = vadd.f32 %v4977_v42, %v4959_v18  ;;  %v5502_v27 = vmul.f32 %v18207_v53, %v18422_v9  ;;  %v4980_v40 = vpop.f32.mrf.mxu2  ;;  %v15051_v18 = vld [vmem:[#allocation6 + $0xe3c] sm:$0xf] }
 0x33f   :  { %v5385_v3 = vsel %vm369_vm1, %v20385_v63, %v5384_v36  ;;  %v5332_v51 = vmul.f32 %v18351_v21, %v5307_v19  ;;  %v5167_v4 = vadd.f32 %v18394_v44, %v5134_v52  ;;  %7202 = vmatmul.bf16.vlgmr.msrb.gmra.mxu3 %v20387_v58  ;;  %v20389_v21 = vrot.slane %v18377_v13, 1  ;;  %v12831_v19 = vld [vmem:[#allocation6 + $0xe4c] sm:$0xf0]  ;;  %v15133_v63 = vld [vmem:[#allocation6 + $0x10c8] sm:$0xf0] }
 0x340   :  { %v5432_v48 = vmul.f32 %v5385_v3, %v20324_v62  ;;  %v18451_v5 = vpack.c.bf16 %v5795_v28, %v5790_v45  ;;  %7215 = vmatpush.bf16.msra.mxu0 %v12874_v41  ;;  %v5452_v36 = vmul.f32 %v18357_v8, %v5427_v60  ;;  %v4997_v37 = vadd.f32 %v4996_v32, %v4978_v57  ;;  %v13149_v28 = vld [vmem:[#allocation6 + $0x10b8] sm:$0xf]  ;;  %v4999_v3 = vpop.f32.mrf.mxu3  ;;  %v15046_v57 = vld [vmem:[#allocation6 + $0xe14] sm:$0xf] }
 0x341   :  { %7158 = vmatpush.bf16.msrb.mxu1 %v13190_v38  ;;  %v5555_v42 = vsel %vm565_vm2, %v20389_v21, %v5554_v25  ;;  %v5602_v23 = vmul.f32 %v5582_v26, %v16383_v47  ;;  %v18459_v9 = vmax.f32 %v5167_v4, 0.0  ;;  %v20390_v41 = vrot.slane %v18377_v13, 2 }
 0x342   :  { %20388 = vst [vmem:[#allocation24_spill] sm:$0xff] %v18451_v5  ;;  %v5457_v1 = vmul.f32 %v18357_v8, %v5432_v48  ;;  %7145 = vmatmul.bf16.vlgmr.msrb.gmra.mxu0 %v18451_v5  ;;  %v5472_v29 = vadd.f32 %v5452_v36, %v5327_v2  ;;  %v5597_v45 = vmul.f32 %v5555_v42, %v16335_v20  ;;  %v5707_v8 = vsel %vm716_vm3, %v5679_v35, 0.0 }
 0x343   :  { %v5680_v50 = vsel %vm716_vm3, %v20390_v41, %v5679_v35  ;;  %v5016_v38 = vadd.f32 %v5015_v55, %v4997_v37  ;;  %v5497_v25 = vmul.f32 %v18207_v53, %v18377_v13  ;;  %v4961_v26 = vpop.f32.mrf.mxu1  ;;  %v5627_v16 = vmul.f32 %v18375_v49, %v5602_v23  ;;  %v5018_v37 = vpop.f32.mrf.mxu0 }
 0x344   :  { %v5477_v0 = vadd.f32 %v5457_v1, %v5332_v51  ;;  %v5722_v32 = vmul.f32 %v5680_v50, %v16398_v30  ;;  %7216 = vmatpush.bf16.msra.mxu0 %v12854_v56  ;;  %v5233_v2 = vrot.slane %v18459_v9, 6  ;;  %v4962_v55 = vadd.f32 %v4961_v26, %v18301_v11  ;;  %v12811_v51 = vld [vmem:[#allocation6 + $0xe24] sm:$0xf0] }
 0x345   :  { %v5139_v52 = vmul.f32 %v18336_v17, %v5016_v38  ;;  %7159 = vmatpush.bf16.msrb.mxu1 %v13170_v61  ;;  %v5358_v53 = vrot.slane %v18459_v9, 7  ;;  %v5517_v13 = vadd.f32 %v5497_v25, %v5472_v29  ;;  %v5622_v56 = vmul.f32 %v18375_v49, %v5597_v45  ;;  %v13129_v61 = vld [vmem:[#allocation6 + $0x1090] sm:$0xf]  ;;  %v18480_v29 = vld [vmem:[#allocation6 + $0xdec] sm:$0xf] }
 0x346   :  { %v5522_v35 = vadd.f32 %v5502_v27, %v5477_v0  ;;  %v5727_v60 = vmul.f32 %v5707_v8, %v16403_v14  ;;  %v4981_v4 = vadd.f32 %v4980_v40, %v4962_v55  ;;  %v5747_v11 = vmul.f32 %v18386_v6, %v5722_v32  ;;  %v15128_v27 = vld [vmem:[#allocation6 + $0x10a0] sm:$0xf0]  ;;  %v12791_v49 = vld [vmem:[#allocation6 + $0xdfc] sm:$0xf0]  ;;  %v13109_v40 = vld [vmem:[#allocation6 + $0x1068] sm:$0xf] }
 0x347   :  { %v5172_v48 = vadd.f32 %v18394_v44, %v5139_v52  ;;  %v5642_v1 = vadd.f32 %v5622_v56, %v5517_v13  ;;  %v12834_v42 = vor.u32 %v15051_v18, %v12831_v19  ;;  %v13150_v23 = vor.u32 %v15133_v63, %v13149_v28  ;;  %v18493_v52 = vld [vmem:[%s20066_s2 + $0x68] sm:$0x1f] }
 0x348   :  { %v5647_v36 = vadd.f32 %v5627_v16, %v5522_v35  ;;  %v5752_v21 = vmul.f32 %v18386_v6, %v5727_v60  ;;  %v5534_v45 = vrot.slane %v18459_v9, 1  ;;  %v5000_v50 = vadd.f32 %v4999_v3, %v4981_v4  ;;  %v15123_v6 = vld [vmem:[#allocation6 + $0x1078] sm:$0xf0] }
 0x349   :  { %v18483_v41 = vmax.f32 %v5172_v48, 0.0  ;;  %v12814_v38 = vor.u32 %v15046_v57, %v12811_v51  ;;  %v5288_v0 = vsel %vm219_vm0, 0.0, %v5233_v2  ;;  %v5767_v8 = vadd.f32 %v5747_v11, %v5642_v1  ;;  %7217 = vmatpush.bf16.msra.mxu0 %v12834_v42  ;;  %7160 = vmatpush.bf16.msrb.mxu1 %v13150_v23  ;;  %v4982_v51 = vpop.f32.mrf.mxu2  ;;  %v20391_v23 = vld [vmem:[#allocation43_spill] sm:$0xff] }
 0x34a   :  { %v5772_v32 = vadd.f32 %v5752_v21, %v5647_v36  ;;  %v13130_v25 = vor.u32 %v15128_v27, %v13129_v61  ;;  %v5413_v26 = vsel %vm369_vm1, 0.0, %v5358_v53  ;;  %v12794_v19 = vor.u32 %v18480_v29, %v12791_v49  ;;  %v13089_v61 = vld [vmem:[#allocation6 + $0x1040] sm:$0xf]  ;;  %v15118_v27 = vld [vmem:[#allocation6 + $0x1050] sm:$0xf0]  ;;  %v5001_v21 = vpop.f32.mrf.mxu3 }
 0x34b   :  { %v5241_v16 = vrot.slane %v18483_v41, 6  ;;  %v5366_v18 = vrot.slane %v18483_v41, 7  ;;  %v5019_v55 = vadd.f32 %v5018_v37, %v5000_v50  ;;  %v4963_v35 = vpop.f32.mrf.mxu1  ;;  %v5800_v28 = vadd.f32 %v18420_v24, %v5767_v8  ;;  %v12771_v29 = vld [vmem:[#allocation6 + $0xdd4] sm:$0xf0]  ;;  %v12757_v8 = vld [vmem:[#allocation6 + $0xda0] sm:$0xf] }
 0x34c   :  { %v5805_v63 = vadd.f32 %v18420_v24, %v5772_v32  ;;  %v18498_v3 = vperm.slane %v18493_v52, 0  ;;  %v5535_v13 = vrot.slane %v18483_v41, 1  ;;  %v5660_v56 = vrot.slane %v18483_v41, 2  ;;  %v15034_v32 = vld [vmem:[#allocation6 + $0xdb0] sm:$0xf0] }
 0x34d   :  { %v4964_v60 = vadd.f32 %v4963_v35, %v18344_v43  ;;  %v13110_v57 = vor.u32 %v15123_v6, %v13109_v40  ;;  %v5144_v48 = vmul.f32 %v18336_v17, %v5019_v55  ;;  %7218 = vmatpush.bf16.msra.mxu0 %v12814_v38  ;;  %7161 = vmatpush.bf16.msrb.mxu1 %v13130_v25  ;;  %v18510_v36 = vperm.slane %v18493_v52, 1  ;;  %v5020_v6 = vpop.f32.mrf.mxu0 }
 0x34e   :  { %v18504_v4 = vpack.c.bf16 %v5805_v63, %v5800_v28  ;;  %v5242_v24 = vsel %vm219_vm0, %v5233_v2, %v5241_v16  ;;  %v5293_v43 = vmul.f32 %v5288_v0, %v20363_v12  ;;  %v5367_v1 = vsel %vm369_vm1, %v5358_v53, %v5366_v18  ;;  %v15036_v2 = vld [vmem:[#allocation6 + $0xdc4] sm:$0xf] }
 0x34f   :  { %v4983_v11 = vadd.f32 %v4982_v51, %v4964_v60  ;;  %v5298_v37 = vmul.f32 %v5242_v24, %v20367_v39  ;;  %v5177_v42 = vadd.f32 %v18394_v44, %v5144_v48  ;;  %7207 = vmatmul.bf16.gmra.mxu3 %v20391_v23  ;;  %v5418_v49 = vmul.f32 %v5413_v26, %v20364_v33 }
 0x350   :  { %v5423_v50 = vmul.f32 %v5367_v1, %v20368_v34  ;;  %v18522_v38 = vperm.slane %v18493_v52, 2  ;;  %v5318_v25 = vmul.f32 %v18498_v3, %v5293_v43  ;;  %v5536_v40 = vsel %vm565_vm2, %v5534_v45, %v5535_v13 }
 0x351   :  { %v5002_v0 = vadd.f32 %v5001_v21, %v4983_v11  ;;  %v5323_v53 = vmul.f32 %v18498_v3, %v5298_v37  ;;  %v18527_v55 = vmax.f32 %v5177_v42, 0.0  ;;  %7162 = vmatpush.bf16.msrb.mxu1 %v13110_v57  ;;  %v13090_v26 = vor.u32 %v15118_v27, %v13089_v61  ;;  %7219 = vmatpush.bf16.msra.mxu0 %v12794_v19 }
 0x352   :  { %7150 = vmatmul.bf16.gmra.mxu0 %v18504_v4  ;;  %v5443_v35 = vmul.f32 %v18510_v36, %v5418_v49  ;;  %v5448_v28 = vmul.f32 %v18510_v36, %v5423_v50  ;;  %v12774_v60 = vor.u32 %v15036_v2, %v12771_v29  ;;  %v5588_v51 = vmul.f32 %v5536_v40, %v20369_v54  ;;  %v15111_v29 = vld [vmem:[#allocation6 + $0x101c] sm:$0xf]  ;;  %v15106_v40 = vld [vmem:[#allocation6 + $0xff4] sm:$0xf] }
 0x353   :  { %v5021_v63 = vadd.f32 %v5020_v6, %v5002_v0  ;;  %v18534_v48 = vperm.slane %v18493_v52, 3  ;;  %v5659_v45 = vrot.slane %v18459_v9, 2  ;;  %v20199_v24 = vrot.slane %v18527_v55, 1  ;;  %v18539_v57 = vpop.f32.mrf.mxu1  ;;  %v13051_v6 = vld [vmem:[#allocation6 + $0x1004] sm:$0xf0] }
 0x354   :  { %v20198_v11 = vrot.slane %v18527_v55, 2  ;;  %v12758_v61 = vor.u32 %v15034_v32, %v12757_v8  ;;  %v5463_v43 = vadd.f32 %v5443_v35, %v5318_v25  ;;  %v5468_v37 = vadd.f32 %v5448_v28, %v5323_v53  ;;  %v15029_v8 = vld [vmem:[#allocation6 + $0xd88] sm:$0xf0] }
 0x355   :  { %v5149_v27 = vmul.f32 %v18336_v17, %v5021_v63  ;;  %v5488_v19 = vmul.f32 %v18522_v38, %v18459_v9  ;;  %7163 = vmatpush.bf16.msrb.mxu1 %v13090_v26  ;;  %v5547_v1 = vsel %vm565_vm2, %v5535_v13, %v20199_v24  ;;  %v5613_v21 = vmul.f32 %v18534_v48, %v5588_v51  ;;  %v13071_v17 = vld [vmem:[#allocation6 + $0x102c] sm:$0xf0]  ;;  %v12737_v13 = vld [vmem:[#allocation6 + $0xd78] sm:$0xf] }
 0x356   :  { %v5661_v42 = vsel %vm716_vm3, %v5659_v45, %v5660_v56  ;;  %v5672_v2 = vsel %vm716_vm3, %v5660_v56, %v20198_v11  ;;  %v5251_v49 = vrot.slane %v18527_v55, 6  ;;  %7220 = vmatpush.bf16.msra.mxu0 %v12774_v60  ;;  %v5493_v9 = vmul.f32 %v18522_v38, %v18483_v41  ;;  %v12717_v63 = vld [vmem:[#allocation6 + $0xd50] sm:$0xf]  ;;  %v15024_v60 = vld [vmem:[#allocation6 + $0xd60] sm:$0xf0] }
 0x357   :  { %v5182_v50 = vadd.f32 %v18394_v44, %v5149_v27  ;;  %v5508_v0 = vadd.f32 %v5488_v19, %v5463_v43  ;;  %v5593_v32 = vmul.f32 %v5547_v1, %v20380_v31  ;;  %v5713_v25 = vmul.f32 %v5661_v42, %v20377_v7  ;;  %v18569_v19 = vld [vmem:[#allocation4 + $0xa] sm:$0x1f]  ;;  %v15101_v42 = vld [vmem:[#allocation6 + $0xfcc] sm:$0xf] }
 0x358   :  { %v5718_v56 = vmul.f32 %v5672_v2, %v20382_v59  ;;  %v18560_v53 = vperm.slane %v18493_v52, 4  ;;  %v5376_v44 = vrot.slane %v18527_v55, 7  ;;  %v13074_v28 = vor.u32 %v15111_v29, %v13071_v17  ;;  %v13031_v2 = vld [vmem:[#allocation6 + $0xfdc] sm:$0xf0]  ;;  %v18574_v29 = vpop.f32.mrf.mxu2 }
 0x359   :  { %v18563_v26 = vmax.f32 %v5182_v50, 0.0  ;;  %v5633_v35 = vadd.f32 %v5613_v21, %v5508_v0  ;;  %v5513_v51 = vadd.f32 %v5493_v9, %v5468_v37  ;;  %v5618_v45 = vmul.f32 %v18534_v48, %v5593_v32 }
 0x35a   :  { %7289 = vmatpush.bf16.msrb.mxu0 %v12758_v61  ;;  %v5738_v61 = vmul.f32 %v18560_v53, %v5713_v25  ;;  %v12738_v27 = vor.u32 %v15029_v8, %v12737_v13  ;;  %v5743_v52 = vmul.f32 %v18560_v53, %v5718_v56  ;;  %v18572_v1 = vperm.slane %v18569_v19, 3  ;;  %7232 = vmatpush.bf16.msra.mxu1 %v13074_v28  ;;  %v12697_v13 = vld [vmem:[#allocation6 + $0xd28] sm:$0xf]  ;;  %v15019_v8 = vld [vmem:[#allocation6 + $0xd38] sm:$0xf0] }
 0x35b   :  { %v5261_v43 = vrot.slane %v18563_v26, 6  ;;  %v13054_v21 = vor.u32 %v15106_v40, %v13051_v6  ;;  %v5386_v37 = vrot.slane %v18563_v26, 7  ;;  %v18577_v17 = vpop.f32.mrf.mxu1  ;;  %v5638_v50 = vadd.f32 %v5618_v45, %v5513_v51  ;;  %v15096_v28 = vld [vmem:[#allocation6 + $0xfa4] sm:$0xf]  ;;  %v13011_v40 = vld [vmem:[#allocation6 + $0xfb4] sm:$0xf0]  ;;  %v18589_v51 = vpop.f32.mrf.mxu3 }
 0x35c   :  { %v5758_v9 = vadd.f32 %v5738_v61, %v5633_v35  ;;  %v12718_v0 = vor.u32 %v15024_v60, %v12717_v63  ;;  %v5556_v32 = vrot.slane %v18563_v26, 1  ;;  %v13034_v56 = vor.u32 %v15101_v42, %v13031_v2 }
 0x35d   :  { %v5763_v25 = vadd.f32 %v5743_v52, %v5638_v50  ;;  %v5252_v6 = vsel %vm219_vm0, %v5241_v16, %v5251_v49  ;;  %v5262_v11 = vsel %vm219_vm0, %v5251_v49, %v5261_v43  ;;  %v12698_v24 = vor.u32 %v15019_v8, %v12697_v13  ;;  %v12677_v43 = vld [vmem:[#allocation6 + $0xd00] sm:$0xf]  ;;  %v15014_v52 = vld [vmem:[#allocation6 + $0xd10] sm:$0xf0]  ;;  %v15091_v13 = vld [vmem:[#allocation6 + $0xf7c] sm:$0xf] }
 0x35e   :  { %7290 = vmatpush.bf16.msrb.mxu0 %v12738_v27  ;;  %7233 = vmatpush.bf16.msra.mxu1 %v13054_v21  ;;  %v5303_v35 = vmul.f32 %v5252_v6, %v20383_v22  ;;  %v5308_v63 = vmul.f32 %v5262_v11, %v20338_v46  ;;  %v5377_v60 = vsel %vm369_vm1, %v5366_v18, %v5376_v44  ;;  %v20392_v2 = vrot.slane %v18527_v55, 1  ;;  %v12991_v8 = vld [vmem:[#allocation6 + $0xf8c] sm:$0xf0] }
 0x35f   :  { %v5791_v45 = vadd.f32 %v18572_v1, %v5758_v9  ;;  %v5796_v61 = vadd.f32 %v18572_v1, %v5763_v25  ;;  %v5387_v16 = vsel %vm369_vm1, %v5376_v44, %v5386_v37  ;;  %v5428_v49 = vmul.f32 %v5377_v60, %v20386_v15  ;;  %v18610_v25 = vpop.f32.mrf.mxu0 }
 0x360   :  { %v13014_v27 = vor.u32 %v15096_v28, %v13011_v40  ;;  %v5328_v11 = vmul.f32 %v18498_v3, %v5303_v35  ;;  %v5333_v41 = vmul.f32 %v18498_v3, %v5308_v63  ;;  %v5433_v18 = vmul.f32 %v5387_v16, %v20324_v62  ;;  %v18620_v63 = vpop.f32.mrf.mxu2 }
 0x361   :  { %v18599_v21 = vpack.c.bf16 %v5796_v61, %v5791_v45  ;;  %v5453_v42 = vmul.f32 %v18510_v36, %v5428_v49  ;;  %v5557_v44 = vsel %vm565_vm2, %v20392_v2, %v5556_v32  ;;  %v5583_v37 = vsel %vm565_vm2, %v5556_v32, 0.0  ;;  %v12657_v49 = vld [vmem:[#allocation6 + $0xcd8] sm:$0xf] }
 0x362   :  { %7291 = vmatpush.bf16.msrb.mxu0 %v12718_v0  ;;  %7234 = vmatpush.bf16.msra.mxu1 %v13034_v56  ;;  %v5458_v50 = vmul.f32 %v18510_v36, %v5433_v18  ;;  %v5598_v9 = vmul.f32 %v5557_v44, %v16335_v20  ;;  %v5603_v3 = vmul.f32 %v5583_v37, %v16383_v47  ;;  %v5681_v0 = vrot.slane %v18563_v26, 2  ;;  %v15086_v18 = vld [vmem:[#allocation6 + $0xf54] sm:$0xf]  ;;  %v12637_v37 = vld [vmem:[#allocation6 + $0xcb0] sm:$0xf] }
 0x363   :  { %7221 = vmatmul.bf16.vlgmr.msra.gmra.mxu0 %v18292_v10  ;;  %7164 = vmatmul.bf16.vlgmr.msrb.gmra.mxu1 %v18599_v21  ;;  %v18613_v28 = vpop.f32.mrf.mxu1  ;;  %v12678_v40 = vor.u32 %v15014_v52, %v12677_v43  ;;  %v5473_v32 = vadd.f32 %v5453_v42, %v5328_v11  ;;  %v5498_v36 = vmul.f32 %v18522_v38, %v18527_v55  ;;  %v20393_v45 = vrot.slane %v18527_v55, 2  ;;  %v15009_v43 = vld [vmem:[#allocation6 + $0xce8] sm:$0xf0]  ;;  %v12971_v42 = vld [vmem:[#allocation6 + $0xf64] sm:$0xf0] }
 0x364   :  { %v5478_v56 = vadd.f32 %v5458_v50, %v5333_v41  ;;  %v5503_v6 = vmul.f32 %v18522_v38, %v18563_v26  ;;  %v5623_v35 = vmul.f32 %v18534_v48, %v5598_v9  ;;  %v12994_v16 = vor.u32 %v15091_v13, %v12991_v8  ;;  %v15004_v50 = vld [vmem:[#allocation6 + $0xcc0] sm:$0xf0]  ;;  %v13389_v9 = vld [vmem:[#allocation6 + $0x1298] sm:$0xf]  ;;  %v15191_v13 = vld [vmem:[#allocation6 + $0x129c] sm:$0xf] }
 0x365   :  { %v5518_v60 = vadd.f32 %v5498_v36, %v5473_v32  ;;  %v5682_v61 = vsel %vm716_vm3, %v20393_v45, %v5681_v0  ;;  %v5628_v11 = vmul.f32 %v18534_v48, %v5603_v3  ;;  %v12658_v44 = vor.u32 %v15009_v43, %v12657_v49  ;;  %v15193_v3 = vld [vmem:[#allocation6 + $0x12a8] sm:$0xf0]  ;;  %v13391_v8 = vld [vmem:[#allocation6 + $0x12ac] sm:$0xf0]  ;;  %v13371_v43 = vld [vmem:[#allocation6 + $0x1284] sm:$0xf0] }
 0x366   :  { %7292 = vmatpush.bf16.msrb.mxu0 %v12698_v24  ;;  %v5708_v24 = vsel %vm716_vm3, %v5681_v0, 0.0  ;;  %7235 = vmatpush.bf16.msra.mxu1 %v13014_v27  ;;  %v5523_v52 = vadd.f32 %v5503_v6, %v5478_v56  ;;  %v5723_v38 = vmul.f32 %v5682_v61, %v16398_v30  ;;  %v18630_v0 = vpop.f32.mrf.mxu3  ;;  %v5052_v48 = vadd.f32 %v18574_v29, %v18539_v57  ;;  %v15081_v36 = vld [vmem:[#allocation6 + $0xf2c] sm:$0xf]  ;;  %v12951_v56 = vld [vmem:[#allocation6 + $0xf3c] sm:$0xf0] }
 0x367   :  { %v5728_v26 = vmul.f32 %v5708_v24, %v16403_v14  ;;  %v5643_v41 = vadd.f32 %v5623_v35, %v5518_v60  ;;  %v12974_v32 = vor.u32 %v15086_v18, %v12971_v42  ;;  %v13390_v6 = vor.u32 %v15193_v3, %v13389_v9  ;;  %v12617_v24 = vld [vmem:[#allocation6 + $0xc88] sm:$0xf]  ;;  %v13369_v49 = vld [vmem:[#allocation6 + $0x1270] sm:$0xf]  ;;  %v15188_v57 = vld [vmem:[#allocation6 + $0x1280] sm:$0xf0] }
 0x368   :  { %v5648_v55 = vadd.f32 %v5628_v11, %v5523_v52  ;;  %v5748_v27 = vmul.f32 %v18560_v53, %v5723_v38  ;;  %v13394_v35 = vor.u32 %v15191_v13, %v13391_v8  ;;  %v12638_v61 = vor.u32 %v15004_v50, %v12637_v37  ;;  %v15186_v29 = vld [vmem:[#allocation6 + $0x1274] sm:$0xf]  ;;  %v18637_v52 = vpop.f32.mrf.mxu0  ;;  %v15076_v37 = vld [vmem:[#allocation6 + $0xf04] sm:$0xf]  ;;  %v12931_v50 = vld [vmem:[#allocation6 + $0xf14] sm:$0xf0] }
 0x369   :  { %v5753_v2 = vmul.f32 %v18560_v53, %v5728_v26  ;;  %7175 = vmatpush.bf16.msrb.mxu2 %v13390_v6  ;;  %v14999_v53 = vld [vmem:[#allocation6 + $0xc98] sm:$0xf0]  ;;  %v13370_v11 = vor.u32 %v15188_v57, %v13369_v49  ;;  %v13374_v38 = vor.u32 %v15186_v29, %v13371_v43  ;;  %v13397_v26 = vld [vmem:[#allocation6 + $0x12a0] sm:$0xf]  ;;  %v15194_v18 = vld [vmem:[#allocation6 + $0x12b0] sm:$0xf0]  ;;  %v12954_v42 = vor.u32 %v15081_v36, %v12951_v56 }
 0x36a   :  { %7293 = vmatpush.bf16.msrb.mxu0 %v12678_v40  ;;  %7236 = vmatpush.bf16.msra.mxu1 %v12994_v16  ;;  %v5768_v45 = vadd.f32 %v5748_v27, %v5643_v41  ;;  %v5071_v41 = vadd.f32 %v18589_v51, %v5052_v48  ;;  %v13398_v9 = vor.u32 %v15194_v18, %v13397_v26  ;;  %v12917_v27 = vld [vmem:[#allocation6 + $0xee0] sm:$0xf]  ;;  %v15074_v3 = vld [vmem:[#allocation6 + $0xef0] sm:$0xf0]  ;;  %v15519_v48 = vld [vmem:[#allocation7 + $0x5] sm:$0x1f] }
 0x36b   :  { %v5773_v40 = vadd.f32 %v5753_v2, %v5648_v55  ;;  %v18635_v60 = vpop.f32.mrf.mxu1  ;;  %7270 = vmatpush.bf16.msra.mxu3 %v13394_v35  ;;  %v5056_v55 = vpop.f32.mrf.mxu2  ;;  %v20394_v13 = vld [vmem:[#allocation22_spill] sm:$0xff]  ;;  %v5054_v36 = vadd.f32 %v18620_v63, %v18577_v17  ;;  %v18654_v6 = vld [vmem:[%s20066_s2 + $0x70] sm:$0x1f]  ;;  %v12918_v35 = vor.u32 %v15074_v3, %v12917_v27  ;;  %v13349_v17 = vld [vmem:[#allocation6 + $0x1248] sm:$0xf] }
 0x36c   :  { %v5801_v2 = vadd.f32 %v18572_v1, %v5768_v45  ;;  %v5090_v51 = vadd.f32 %v18610_v25, %v5071_v41  ;;  %v15520_v45 = vld [vmem:[#allocation9 + $0x5] sm:$0x1f]  ;;  %v18662_v49 = vperm.slane %v18654_v6, 1  ;;  %v15181_v57 = vld [vmem:[#allocation6 + $0x124c] sm:$0xf]  ;;  %v5057_v18 = vadd.f32 %v5056_v55, %v18613_v28 }
 0x36d   :  { %v5806_v16 = vadd.f32 %v18572_v1, %v5773_v40  ;;  %7176 = vmatpush.bf16.msrb.mxu2 %v13370_v11  ;;  %v18646_v40 = vperm.slane %v15519_v48, 4  ;;  %v12934_v1 = vor.u32 %v15076_v37, %v12931_v50  ;;  %v15183_v63 = vld [vmem:[#allocation6 + $0x1258] sm:$0xf0]  ;;  %v13351_v43 = vld [vmem:[#allocation6 + $0x125c] sm:$0xf0]  ;;  %v5073_v26 = vadd.f32 %v18630_v0, %v5054_v36 }
 0x36e   :  { %7294 = vmatpush.bf16.msrb.mxu0 %v12658_v44  ;;  %7237 = vmatpush.bf16.msra.mxu1 %v12974_v32  ;;  %v12618_v44 = vor.u32 %v14999_v53, %v12617_v24  ;;  %v5075_v32 = vpop.f32.mrf.mxu3  ;;  %v18659_v24 = vperm.slane %v18654_v6, 0  ;;  %v13350_v29 = vor.u32 %v15183_v63, %v13349_v17  ;;  %v15189_v11 = vld [vmem:[#allocation6 + $0x1288] sm:$0xf0]  ;;  %v13354_v41 = vor.u32 %v15181_v57, %v13351_v43  ;;  %v13329_v37 = vld [vmem:[#allocation6 + $0x1220] sm:$0xf] }
 0x36f   :  { %7271 = vmatpush.bf16.msra.mxu3 %v13374_v38  ;;  %v18643_v8 = vpack.c.bf16 %v5806_v16, %v5801_v2  ;;  %v13377_v16 = vld [vmem:[#allocation6 + $0x1278] sm:$0xf]  ;;  %v15178_v27 = vld [vmem:[#allocation6 + $0x1230] sm:$0xf0]  ;;  %v15176_v3 = vld [vmem:[#allocation6 + $0x1224] sm:$0xf]  ;;  %v5076_v57 = vadd.f32 %v5075_v32, %v5057_v18 }
 0x370   :  { %v18665_v38 = vpop.f32.mrf.mxu0  ;;  %v12897_v2 = vld [vmem:[#allocation6 + $0xeb8] sm:$0xf]  ;;  %v13357_v36 = vld [vmem:[#allocation6 + $0x1250] sm:$0xf]  ;;  %v15184_v28 = vld [vmem:[#allocation6 + $0x1260] sm:$0xf0] }
 0x371   :  { %7177 = vmatpush.bf16.msrb.mxu2 %v13350_v29  ;;  %v12877_v55 = vld [vmem:[#allocation6 + $0xe90] sm:$0xf]  ;;  %v15064_v17 = vld [vmem:[#allocation6 + $0xea0] sm:$0xf0]  ;;  %v13309_v63 = vld [vmem:[#allocation6 + $0x11f8] sm:$0xf] }
 0x372   :  { %7295 = vmatpush.bf16.msrb.mxu0 %v12638_v61  ;;  %7238 = vmatpush.bf16.msra.mxu1 %v12954_v42  ;;  %v18656_v61 = vperm.slane %v15520_v45, 4  ;;  %v13378_v42 = vor.u32 %v15189_v11, %v13377_v16  ;;  %v13358_v45 = vor.u32 %v15184_v28, %v13357_v36  ;;  %v12878_v43 = vor.u32 %v15064_v17, %v12877_v55  ;;  %v15173_v16 = vld [vmem:[#allocation6 + $0x1208] sm:$0xf0]  ;;  %v15171_v11 = vld [vmem:[#allocation6 + $0x11fc] sm:$0xf] }
 0x373   :  { %7226 = vmatmul.bf16.gmra.mxu0 %v20394_v13  ;;  %7169 = vmatmul.bf16.gmra.mxu1 %v18643_v8  ;;  %v5108_v56 = vpop.f32.mrf.mxu1  ;;  %v5058_v48 = vpop.f32.mrf.mxu2  ;;  %v13310_v18 = vor.u32 %v15173_v16, %v13309_v63  ;;  %v15059_v36 = vld [vmem:[#allocation6 + $0xe78] sm:$0xf0]  ;;  %v13289_v28 = vld [vmem:[#allocation6 + $0x11d0] sm:$0xf]  ;;  %v15168_v17 = vld [vmem:[#allocation6 + $0x11e0] sm:$0xf0] }
 0x374   :  { %v5109_v25 = vadd.f32 %v5108_v56, %v5090_v51  ;;  %v13331_v51 = vld [vmem:[#allocation6 + $0x1234] sm:$0xf0]  ;;  %7272 = vmatpush.bf16.msra.mxu3 %v13354_v41  ;;  %v5059_v56 = vadd.f32 %v5058_v48, %v18635_v60  ;;  %v13311_v41 = vld [vmem:[#allocation6 + $0x120c] sm:$0xf0]  ;;  %v13291_v63 = vld [vmem:[#allocation6 + $0x11e4] sm:$0xf0] }
 0x375   :  { %v13334_v0 = vor.u32 %v15176_v3, %v13331_v51 }
 0x376   :  { %7296 = vmatpush.bf16.msrb.mxu0 %v12618_v44  ;;  %v5135_v53 = vmul.f32 %v18646_v40, %v5109_v25  ;;  %7239 = vmatpush.bf16.msra.mxu1 %v12934_v1  ;;  %v15069_v44 = vld [vmem:[#allocation6 + $0xec8] sm:$0xf0]  ;;  %v13330_v1 = vor.u32 %v15178_v27, %v13329_v37  ;;  %v18674_v25 = vperm.slane %v18654_v6, 2  ;;  %v18681_v37 = vperm.slane %v18654_v6, 3  ;;  %v5077_v32 = vpop.f32.mrf.mxu3  ;;  %v12857_v27 = vld [vmem:[#allocation6 + $0xe68] sm:$0xf] }
 0x377   :  { %v5078_v3 = vadd.f32 %v5077_v32, %v5059_v56  ;;  %v15166_v56 = vld [vmem:[#allocation6 + $0x11d4] sm:$0xf]  ;;  %v12837_v32 = vld [vmem:[#allocation6 + $0xe40] sm:$0xf] }
 0x378   :  { %v5168_v50 = vadd.f32 %v18656_v61, %v5135_v53  ;;  %v5092_v53 = vadd.f32 %v18637_v52, %v5073_v26  ;;  %7178 = vmatpush.bf16.msrb.mxu2 %v13330_v1  ;;  %7273 = vmatpush.bf16.msra.mxu3 %v13334_v0  ;;  %v13294_v16 = vor.u32 %v15166_v56, %v13291_v63  ;;  %v15163_v52 = vld [vmem:[#allocation6 + $0x11b8] sm:$0xf0]  ;;  %v13297_v56 = vld [vmem:[#allocation6 + $0x11d8] sm:$0xf]  ;;  %v15169_v63 = vld [vmem:[#allocation6 + $0x11e8] sm:$0xf0] }
 0x37a   :  { %7365 = vmatpush.bf16.msra.mxu0 %v13398_v9  ;;  %7308 = vmatpush.bf16.msrb.mxu1 %v12918_v35  ;;  %v12898_v9 = vor.u32 %v15069_v44, %v12897_v2  ;;  %v18671_v35 = vmax.f32 %v5168_v50, 0.0  ;;  %v13337_v44 = vld [vmem:[#allocation6 + $0x1228] sm:$0xf]  ;;  %v13314_v50 = vor.u32 %v15171_v11, %v13311_v41  ;;  %v13317_v11 = vld [vmem:[#allocation6 + $0x1200] sm:$0xf] }
 0x37b   :  { %v5110_v29 = vpop.f32.mrf.mxu1  ;;  %v15174_v41 = vld [vmem:[#allocation6 + $0x1210] sm:$0xf0]  ;;  %v12817_v2 = vld [vmem:[#allocation6 + $0xe18] sm:$0xf] }
 0x37c   :  { %v20200_v60 = vrot.slane %v18671_v35, 7  ;;  %v5111_v26 = vadd.f32 %v5110_v29, %v5092_v53  ;;  %7179 = vmatpush.bf16.msrb.mxu2 %v13310_v18  ;;  %v12858_v53 = vor.u32 %v15059_v36, %v12857_v27  ;;  %v13290_v29 = vor.u32 %v15168_v17, %v13289_v28  ;;  %7274 = vmatpush.bf16.msra.mxu3 %v13314_v50  ;;  %v15161_v28 = vld [vmem:[#allocation6 + $0x11ac] sm:$0xf]  ;;  %v13271_v17 = vld [vmem:[#allocation6 + $0x11bc] sm:$0xf0] }
 0x37d   :  { %v5095_v18 = vadd.f32 %v18665_v38, %v5076_v57  ;;  %v13318_v36 = vor.u32 %v15174_v41, %v13317_v11  ;;  %v18706_v38 = vperm.slane %v18654_v6, 4  ;;  %v15049_v11 = vld [vmem:[#allocation6 + $0xe28] sm:$0xf0]  ;;  %v13249_v41 = vld [vmem:[#allocation6 + $0x1180] sm:$0xf] }
 0x37e   :  { %7366 = vmatpush.bf16.msra.mxu0 %v13378_v42  ;;  %7309 = vmatpush.bf16.msrb.mxu1 %v12898_v9  ;;  %v20201_v42 = vrot.slane %v18671_v35, 6  ;;  %v15179_v9 = vld [vmem:[#allocation6 + $0x1238] sm:$0xf0]  ;;  %v5414_v48 = vsel %vm369_vm1, 0.0, %v20200_v60  ;;  %v13298_v60 = vor.u32 %v15169_v63, %v13297_v56  ;;  %v13237_v63 = vld [vmem:[#allocation6 + $0x1160] sm:$0xf] }
 0x37f   :  { %v13338_v1 = vor.u32 %v15179_v9, %v13337_v44  ;;  %v5419_v0 = vmul.f32 %v5414_v48, %v20364_v33  ;;  %v5096_v44 = vpop.f32.mrf.mxu0  ;;  %v13251_v33 = vld [vmem:[#allocation6 + $0x1194] sm:$0xf0] }
 0x380   :  { %v5289_v51 = vsel %vm219_vm0, 0.0, %v20201_v42  ;;  %v18698_v27 = vadd.f32 %v5096_v44, %v5078_v3  ;;  %7180 = vmatpush.bf16.msrb.mxu2 %v13290_v29  ;;  %v15158_v44 = vld [vmem:[#allocation6 + $0x1190] sm:$0xf0]  ;;  %7275 = vmatpush.bf16.msra.mxu3 %v13294_v16  ;;  %v15156_v42 = vld [vmem:[#allocation6 + $0x1184] sm:$0xf]  ;;  %v20396_v16 = vrot.slane %v18671_v35, 7 }
 0x381   :  { %v5294_v55 = vmul.f32 %v5289_v51, %v20363_v12  ;;  %v5444_v51 = vmul.f32 %v18662_v49, %v5419_v0  ;;  %v5489_v0 = vmul.f32 %v18674_v25, %v18671_v35  ;;  %v13277_v29 = vld [vmem:[#allocation6 + $0x11b0] sm:$0xf] }
 0x382   :  { %7367 = vmatpush.bf16.msra.mxu0 %v13358_v45  ;;  %v5140_v45 = vmul.f32 %v18646_v40, %v5111_v26  ;;  %7310 = vmatpush.bf16.msrb.mxu1 %v12878_v43  ;;  %v15054_v43 = vld [vmem:[#allocation6 + $0xe50] sm:$0xf0]  ;;  %v13269_v26 = vld [vmem:[#allocation6 + $0x11a8] sm:$0xf] }
 0x383   :  { %v5319_v9 = vmul.f32 %v18659_v24, %v5294_v55  ;;  %7297 = vmatmul.bf16.vlgmr.msrb.gmra.mxu0 %v20387_v58  ;;  %7240 = vmatmul.bf16.vlgmr.msra.gmra.mxu1 %v18451_v5  ;;  %v5113_v50 = vpop.f32.mrf.mxu1  ;;  %v12838_v3 = vor.u32 %v15054_v43, %v12837_v32  ;;  %v15164_v32 = vld [vmem:[#allocation6 + $0x11c0] sm:$0xf0]  ;;  %v20395_v43 = vrot.slane %v18671_v35, 6 }
 0x384   :  { %v5173_v48 = vadd.f32 %v18656_v61, %v5140_v45  ;;  %v5114_v57 = vadd.f32 %v5113_v50, %v5095_v18  ;;  %v13231_v50 = vld [vmem:[#allocation6 + $0x116c] sm:$0xf0]  ;;  %v15044_v5 = vld [vmem:[#allocation6 + $0xe00] sm:$0xf0] }
 0x385   :  { %v5464_v55 = vadd.f32 %v5444_v51, %v5319_v9 }
 0x386   :  { %7368 = vmatpush.bf16.msra.mxu0 %v13338_v1  ;;  %v18702_v45 = vmax.f32 %v5173_v48, 0.0  ;;  %7311 = vmatpush.bf16.msrb.mxu1 %v12858_v53  ;;  %v13270_v1 = vor.u32 %v15163_v52, %v13269_v26  ;;  %v13274_v48 = vor.u32 %v15161_v28, %v13271_v17  ;;  %v5145_v52 = vmul.f32 %v18646_v40, %v5114_v57  ;;  %v12797_v53 = vld [vmem:[#allocation6 + $0xdf0] sm:$0xf] }
 0x387   :  { %v18710_v12 = vadd.f32 %v5489_v0, %v5464_v55  ;;  %v12818_v28 = vor.u32 %v15049_v11, %v12817_v2  ;;  %v13250_v17 = vor.u32 %v15158_v44, %v13249_v41  ;;  %v13254_v57 = vor.u32 %v15156_v42, %v13251_v33 }
 0x388   :  { %v5243_v9 = vrot.slane %v18702_v45, 6  ;;  %v5368_v51 = vrot.slane %v18702_v45, 7  ;;  %v5538_v6 = vrot.slane %v18702_v45, 1  ;;  %v5178_v0 = vadd.f32 %v18656_v61, %v5145_v52  ;;  %7181 = vmatpush.bf16.msrb.mxu2 %v13270_v1  ;;  %7276 = vmatpush.bf16.msra.mxu3 %v13274_v48  ;;  %v13257_v52 = vld [vmem:[#allocation6 + $0x1188] sm:$0xf] }
 0x389   :  { %v20398_v11 = vrot.slane %v18702_v45, 2  ;;  %v20399_v41 = vrot.slane %v18671_v35, 2 }
 0x38a   :  { %7369 = vmatpush.bf16.msra.mxu0 %v13318_v36  ;;  %v5244_v26 = vsel %vm219_vm0, %v20395_v43, %v5243_v9  ;;  %v5369_v18 = vsel %vm369_vm1, %v20396_v16, %v5368_v51  ;;  %7312 = vmatpush.bf16.msrb.mxu1 %v12838_v3  ;;  %v15151_v36 = vld [vmem:[#allocation6 + $0x115c] sm:$0xf]  ;;  %v13278_v43 = vor.u32 %v15164_v32, %v13277_v29  ;;  %v20397_v16 = vrot.slane %v18671_v35, 1  ;;  %v15154_v3 = vld [vmem:[#allocation6 + $0x1170] sm:$0xf0] }
 0x38b   :  { %v5299_v56 = vmul.f32 %v5244_v26, %v20367_v39  ;;  %v5424_v55 = vmul.f32 %v5369_v18, %v20368_v34  ;;  %v5664_v44 = vsel %vm716_vm3, %v20399_v41, %v20398_v11  ;;  %v18732_v1 = vmax.f32 %v5178_v0, 0.0  ;;  %v15159_v29 = vld [vmem:[#allocation6 + $0x1198] sm:$0xf0]  ;;  %v5115_v26 = vpop.f32.mrf.mxu1 }
 0x38c   :  { %v5539_v2 = vsel %vm565_vm2, %v20397_v16, %v5538_v6  ;;  %v5494_v32 = vmul.f32 %v18674_v25, %v18702_v45  ;;  %v5714_v35 = vmul.f32 %v5664_v44, %v20377_v7  ;;  %v13234_v18 = vor.u32 %v15151_v36, %v13231_v50  ;;  %7182 = vmatpush.bf16.msrb.mxu2 %v13250_v17  ;;  %v12777_v36 = vld [vmem:[#allocation6 + $0xdc8] sm:$0xf]  ;;  %v15039_v50 = vld [vmem:[#allocation6 + $0xdd8] sm:$0xf0] }
 0x38d   :  { %v5324_v48 = vmul.f32 %v18659_v24, %v5299_v56  ;;  %v5449_v33 = vmul.f32 %v18662_v49, %v5424_v55  ;;  %v5589_v42 = vmul.f32 %v5539_v2, %v20369_v54  ;;  %v13238_v16 = vor.u32 %v15154_v3, %v13237_v63  ;;  %7277 = vmatpush.bf16.msra.mxu3 %v13254_v57 }
 0x38e   :  { %7370 = vmatpush.bf16.msra.mxu0 %v13298_v60  ;;  %v5253_v0 = vrot.slane %v18732_v1, 6  ;;  %v5378_v60 = vrot.slane %v18732_v1, 7  ;;  %v5548_v56 = vrot.slane %v18732_v1, 1  ;;  %7313 = vmatpush.bf16.msrb.mxu1 %v12818_v28  ;;  %v12798_v55 = vor.u32 %v15044_v5, %v12797_v53  ;;  %v15146_v53 = vld [vmem:[#allocation6 + $0x1134] sm:$0xf] }
 0x38f   :  { %v20206_v2 = vrot.slane %v18732_v1, 2  ;;  %v5116_v11 = vadd.f32 %v5115_v26, %v18698_v27  ;;  %v5614_v41 = vmul.f32 %v18681_v37, %v5589_v42  ;;  %v13258_v44 = vor.u32 %v15159_v29, %v13257_v52  ;;  %v13217_v52 = vld [vmem:[#allocation6 + $0x1138] sm:$0xf]  ;;  %v15149_v29 = vld [vmem:[#allocation6 + $0x1148] sm:$0xf0] }
 0x390   :  { %7251 = vmatpush.bf16.msra.mxu2 %v13234_v18  ;;  %v5254_v63 = vsel %vm219_vm0, %v5243_v9, %v5253_v0  ;;  %v5379_v28 = vsel %vm369_vm1, %v5368_v51, %v5378_v60  ;;  %v5549_v5 = vsel %vm565_vm2, %v5538_v6, %v5548_v56  ;;  %v5469_v27 = vadd.f32 %v5449_v33, %v5324_v48  ;;  %v13211_v9 = vld [vmem:[#allocation6 + $0x1144] sm:$0xf0]  ;;  %v15152_v26 = vld [vmem:[#allocation6 + $0x1164] sm:$0xf] }
 0x391   :  { %v5304_v17 = vmul.f32 %v5254_v63, %v20383_v22  ;;  %v5429_v57 = vmul.f32 %v5379_v28, %v20386_v15  ;;  %v5150_v3 = vmul.f32 %v18646_v40, %v5116_v11  ;;  %v5739_v42 = vmul.f32 %v18706_v38, %v5714_v35  ;;  %7346 = vmatpush.bf16.msrb.mxu3 %v13238_v16  ;;  %v13239_v40 = vld [vmem:[#allocation6 + $0x1174] sm:$0xf0]  ;;  %v13191_v28 = vld [vmem:[#allocation6 + $0x111c] sm:$0xf0] }
 0x392   :  { %7371 = vmatpush.bf16.msra.mxu0 %v13278_v43  ;;  %7314 = vmatpush.bf16.msrb.mxu1 %v12798_v55  ;;  %v5594_v51 = vmul.f32 %v5549_v5, %v20380_v31  ;;  %v5634_v6 = vadd.f32 %v5614_v41, %v18710_v12  ;;  %v20400_v43 = vrot.slane %v18702_v45, 2  ;;  %v12778_v33 = vor.u32 %v15039_v50, %v12777_v36  ;;  %v15032_v12 = vld [vmem:[#allocation6 + $0xda4] sm:$0xf]  ;;  %v12759_v11 = vld [vmem:[#allocation6 + $0xdb4] sm:$0xf0] }
 0x393   :  { %v5329_v35 = vmul.f32 %v18659_v24, %v5304_v17  ;;  %v5454_v18 = vmul.f32 %v18662_v49, %v5429_v57  ;;  %v5183_v16 = vadd.f32 %v18656_v61, %v5150_v3  ;;  %7302 = vmatmul.bf16.gmra.mxu0 %v20391_v23  ;;  %v5514_v41 = vadd.f32 %v5494_v32, %v5469_v27  ;;  %v15141_v50 = vld [vmem:[#allocation6 + $0x110c] sm:$0xf]  ;;  %v13197_v5 = vld [vmem:[#allocation6 + $0x1110] sm:$0xf] }
 0x394   :  { %v5674_v48 = vsel %vm716_vm3, %v20400_v43, %v20206_v2  ;;  %v5619_v45 = vmul.f32 %v18681_v37, %v5594_v51  ;;  %v13214_v63 = vor.u32 %v15146_v53, %v13211_v9  ;;  %v13218_v36 = vor.u32 %v15149_v29, %v13217_v52  ;;  %7245 = vmatmul.bf16.gmra.mxu1 %v18504_v4  ;;  %v15144_v43 = vld [vmem:[#allocation6 + $0x1120] sm:$0xf0]  ;;  %v13219_v53 = vld [vmem:[#allocation6 + $0x114c] sm:$0xf0]  ;;  %v15027_v9 = vld [vmem:[#allocation6 + $0xd7c] sm:$0xf] }
 0x395   :  { %v5719_v55 = vmul.f32 %v5674_v48, %v20382_v59  ;;  %v18772_v17 = vmax.f32 %v5183_v16, 0.0  ;;  %v5759_v61 = vadd.f32 %v5739_v42, %v5634_v6  ;;  %v18776_v57 = vperm.slane %v18569_v19, 4  ;;  %v15147_v48 = vld [vmem:[#allocation6 + $0x113c] sm:$0xf]  ;;  %v12739_v52 = vld [vmem:[#allocation6 + $0xd8c] sm:$0xf0] }
 0x396   :  { %7372 = vmatpush.bf16.msra.mxu0 %v13258_v44  ;;  %v13242_v3 = vor.u32 %v15152_v26, %v13239_v40  ;;  %v5639_v32 = vadd.f32 %v5619_v45, %v5514_v41  ;;  %7315 = vmatpush.bf16.msrb.mxu1 %v12778_v33  ;;  %v12762_v44 = vor.u32 %v15032_v12, %v12759_v11  ;;  %v15136_v19 = vld [vmem:[#allocation6 + $0x10e4] sm:$0xf]  ;;  %v13171_v6 = vld [vmem:[#allocation6 + $0x10f4] sm:$0xf0]  ;;  %v13177_v26 = vld [vmem:[#allocation6 + $0x10e8] sm:$0xf] }
 0x397   :  { %v5744_v27 = vmul.f32 %v18706_v38, %v5719_v55  ;;  %7252 = vmatpush.bf16.msra.mxu2 %v13214_v63  ;;  %v5474_v29 = vadd.f32 %v5454_v18, %v5329_v35  ;;  %v5263_v51 = vrot.slane %v18772_v17, 6  ;;  %v5388_v42 = vrot.slane %v18772_v17, 7  ;;  %7347 = vmatpush.bf16.msrb.mxu3 %v13218_v36  ;;  %v15139_v12 = vld [vmem:[#allocation6 + $0x10f8] sm:$0xf0]  ;;  %v15142_v11 = vld [vmem:[#allocation6 + $0x1114] sm:$0xf] }
 0x398   :  { %v5558_v40 = vrot.slane %v18772_v17, 1  ;;  %v5683_v16 = vrot.slane %v18772_v17, 2  ;;  %v13194_v55 = vor.u32 %v15141_v50, %v13191_v28  ;;  %v13198_v41 = vor.u32 %v15144_v43, %v13197_v5  ;;  %v13199_v63 = vld [vmem:[#allocation6 + $0x1124] sm:$0xf0]  ;;  %v15022_v36 = vld [vmem:[#allocation6 + $0xd54] sm:$0xf] }
 0x399   :  { %v5764_v33 = vadd.f32 %v5744_v27, %v5639_v32  ;;  %v5264_v35 = vsel %vm219_vm0, %v5253_v0, %v5263_v51  ;;  %v5389_v18 = vsel %vm369_vm1, %v5378_v60, %v5388_v42  ;;  %v13222_v45 = vor.u32 %v15147_v48, %v13219_v53  ;;  %v15131_v51 = vld [vmem:[#allocation6 + $0x10bc] sm:$0xf]  ;;  %v13151_v42 = vld [vmem:[#allocation6 + $0x10cc] sm:$0xf0] }
 0x39a   :  { %7441 = vmatpush.bf16.msrb.mxu0 %v13242_v3  ;;  %7384 = vmatpush.bf16.msra.mxu1 %v12762_v44  ;;  %v12719_v3 = vld [vmem:[#allocation6 + $0xd64] sm:$0xf0]  ;;  %v5309_v2 = vmul.f32 %v5264_v35, %v20338_v46  ;;  %v5434_v32 = vmul.f32 %v5389_v18, %v20324_v62  ;;  %v5584_v50 = vsel %vm565_vm2, %v5558_v40, 0.0  ;;  %v5792_v28 = vadd.f32 %v18776_v57, %v5759_v61  ;;  %v13157_v18 = vld [vmem:[#allocation6 + $0x10c0] sm:$0xf] }
 0x39b   :  { %7253 = vmatpush.bf16.msra.mxu2 %v13194_v55  ;;  %v5604_v0 = vmul.f32 %v5584_v50, %v16383_v47  ;;  %v5709_v27 = vsel %vm716_vm3, %v5683_v16, 0.0  ;;  %v5797_v60 = vadd.f32 %v18776_v57, %v5764_v33  ;;  %7348 = vmatpush.bf16.msrb.mxu3 %v13198_v41  ;;  %v12742_v5 = vor.u32 %v15027_v9, %v12739_v52  ;;  %v15134_v41 = vld [vmem:[#allocation6 + $0x10d0] sm:$0xf0] }
 0x39c   :  { %v13174_v43 = vor.u32 %v15136_v19, %v13171_v6  ;;  %v13178_v48 = vor.u32 %v15139_v12, %v13177_v26  ;;  %v13202_v44 = vor.u32 %v15142_v11, %v13199_v63  ;;  %v12722_v53 = vor.u32 %v15022_v36, %v12719_v3  ;;  %v15017_v26 = vld [vmem:[#allocation6 + $0xd2c] sm:$0xf]  ;;  %v12699_v11 = vld [vmem:[#allocation6 + $0xd3c] sm:$0xf0]  ;;  %v13137_v63 = vld [vmem:[#allocation6 + $0x1098] sm:$0xf] }
 0x39d   :  { %v18796_v35 = vpack.c.bf16 %v5797_v60, %v5792_v28  ;;  %v5334_v61 = vmul.f32 %v18659_v24, %v5309_v2  ;;  %v5459_v55 = vmul.f32 %v18662_v49, %v5434_v32  ;;  %v5559_v33 = vsel %vm565_vm2, %v5548_v56, %v5558_v40  ;;  %v15137_v49 = vld [vmem:[#allocation6 + $0x10ec] sm:$0xf]  ;;  %v13179_v2 = vld [vmem:[#allocation6 + $0x10fc] sm:$0xf0]  ;;  %v13159_v60 = vld [vmem:[#allocation6 + $0x10d4] sm:$0xf0] }
 0x39e   :  { %7442 = vmatpush.bf16.msrb.mxu0 %v13222_v45  ;;  %7385 = vmatpush.bf16.msra.mxu1 %v12742_v5  ;;  %v5499_v9 = vmul.f32 %v18674_v25, %v18732_v1  ;;  %v5504_v52 = vmul.f32 %v18674_v25, %v18772_v17  ;;  %v5599_v19 = vmul.f32 %v5559_v33, %v16335_v20  ;;  %v20401_v6 = vrot.slane %v18732_v1, 2  ;;  %v15126_v25 = vld [vmem:[#allocation6 + $0x1094] sm:$0xf]  ;;  %v13131_v17 = vld [vmem:[#allocation6 + $0x10a4] sm:$0xf0] }
 0x39f   :  { %7254 = vmatpush.bf16.msra.mxu2 %v13174_v43  ;;  %7278 = vmatmul.bf16.vlgmr.msra.gmra.mxu3 %v18796_v35  ;;  %v5479_v56 = vadd.f32 %v5459_v55, %v5334_v61  ;;  %v5729_v40 = vmul.f32 %v5709_v27, %v16403_v14  ;;  %v13154_v12 = vor.u32 %v15131_v51, %v13151_v42  ;;  %v15129_v28 = vld [vmem:[#allocation6 + $0x10a8] sm:$0xf0]  ;;  %v15132_v27 = vld [vmem:[#allocation6 + $0x10c4] sm:$0xf]  ;;  %v13111_v61 = vld [vmem:[#allocation6 + $0x107c] sm:$0xf0] }
 0x3a0   :  { %v5684_v24 = vsel %vm716_vm3, %v20401_v6, %v5683_v16  ;;  %7183 = vmatmul.bf16.vlgmr.msrb.gmra.mxu2 %v18796_v35  ;;  %v5519_v45 = vadd.f32 %v5499_v9, %v5474_v29  ;;  %7349 = vmatpush.bf16.msrb.mxu3 %v13178_v48  ;;  %v5624_v1 = vmul.f32 %v18681_v37, %v5599_v19  ;;  %v15012_v29 = vld [vmem:[#allocation6 + $0xd04] sm:$0xf]  ;;  %v15121_v42 = vld [vmem:[#allocation6 + $0x106c] sm:$0xf]  ;;  %v13117_v55 = vld [vmem:[#allocation6 + $0x1070] sm:$0xf] }
 0x3a1   :  { %v13158_v16 = vor.u32 %v15134_v41, %v13157_v18  ;;  %v5524_v36 = vadd.f32 %v5504_v52, %v5479_v56  ;;  %v5629_v3 = vmul.f32 %v18681_v37, %v5604_v0  ;;  %v5724_v32 = vmul.f32 %v5684_v24, %v16398_v30  ;;  %v15124_v41 = vld [vmem:[#allocation6 + $0x1080] sm:$0xf0]  ;;  %v15127_v9 = vld [vmem:[#allocation6 + $0x109c] sm:$0xf]  ;;  %v13139_v52 = vld [vmem:[#allocation6 + $0x10ac] sm:$0xf0] }
 0x3a2   :  { %7443 = vmatpush.bf16.msrb.mxu0 %v13202_v44  ;;  %7386 = vmatpush.bf16.msra.mxu1 %v12722_v53  ;;  %v13182_v50 = vor.u32 %v15137_v49, %v13179_v2  ;;  %v12702_v5 = vor.u32 %v15017_v26, %v12699_v11  ;;  %v13134_v43 = vor.u32 %v15126_v25, %v13131_v17  ;;  %v12679_v53 = vld [vmem:[#allocation6 + $0xd14] sm:$0xf0]  ;;  %v15007_v24 = vld [vmem:[#allocation6 + $0xcdc] sm:$0xf]  ;;  %v12659_v2 = vld [vmem:[#allocation6 + $0xcec] sm:$0xf0] }
 0x3a3   :  { %7255 = vmatpush.bf16.msra.mxu2 %v13154_v12  ;;  %7373 = vmatmul.bf16.vlgmr.msra.gmra.mxu0 %v18796_v35  ;;  %v5644_v48 = vadd.f32 %v5624_v1, %v5519_v45  ;;  %v5649_v44 = vadd.f32 %v5629_v3, %v5524_v36  ;;  %v5754_v51 = vmul.f32 %v18706_v38, %v5729_v40  ;;  %v15116_v26 = vld [vmem:[#allocation6 + $0x1044] sm:$0xf]  ;;  %v13091_v56 = vld [vmem:[#allocation6 + $0x1054] sm:$0xf0]  ;;  %v13097_v11 = vld [vmem:[#allocation6 + $0x1048] sm:$0xf] }
 0x3a4   :  { %7350 = vmatpush.bf16.msrb.mxu3 %v13158_v16  ;;  %v13138_v37 = vor.u32 %v15129_v28, %v13137_v63  ;;  %v13162_v0 = vor.u32 %v15132_v27, %v13159_v60  ;;  %7316 = vmatmul.bf16.vlgmr.msrb.gmra.mxu1 %v18292_v10  ;;  %v5749_v33 = vmul.f32 %v18706_v38, %v5724_v32  ;;  %v15119_v25 = vld [vmem:[#allocation6 + $0x1058] sm:$0xf0]  ;;  %v15122_v17 = vld [vmem:[#allocation6 + $0x1074] sm:$0xf]  ;;  %v13119_v45 = vld [vmem:[#allocation6 + $0x1084] sm:$0xf0] }
 0x3a5   :  { %v5774_v18 = vadd.f32 %v5754_v51, %v5649_v44  ;;  %v12682_v19 = vor.u32 %v15012_v29, %v12679_v53  ;;  %v13114_v6 = vor.u32 %v15121_v42, %v13111_v61  ;;  %v13118_v40 = vor.u32 %v15124_v41, %v13117_v55  ;;  %v13077_v1 = vld [vmem:[#allocation6 + $0x1020] sm:$0xf]  ;;  %v15114_v36 = vld [vmem:[#allocation6 + $0x1030] sm:$0xf0]  ;;  %v15112_v3 = vld [vmem:[#allocation6 + $0x1024] sm:$0xf] }
 0x3a6   :  { %7444 = vmatpush.bf16.msrb.mxu0 %v13182_v50  ;;  %7387 = vmatpush.bf16.msra.mxu1 %v12702_v5  ;;  %v5769_v49 = vadd.f32 %v5749_v33, %v5644_v48  ;;  %v13142_v12 = vor.u32 %v15127_v9, %v13139_v52  ;;  %v12662_v16 = vor.u32 %v15007_v24, %v12659_v2  ;;  %v13079_v32 = vld [vmem:[#allocation6 + $0x1034] sm:$0xf0]  ;;  %v15002_v28 = vld [vmem:[#allocation6 + $0xcb4] sm:$0xf]  ;;  %v12639_v27 = vld [vmem:[#allocation6 + $0xcc4] sm:$0xf0] }
 0x3a7   :  { %7256 = vmatpush.bf16.msra.mxu2 %v13134_v43  ;;  %v5807_v38 = vadd.f32 %v18776_v57, %v5774_v18  ;;  %v13094_v63 = vor.u32 %v15116_v26, %v13091_v56  ;;  %v13098_v60 = vor.u32 %v15119_v25, %v13097_v11  ;;  %v13122_v5 = vor.u32 %v15122_v17, %v13119_v45  ;;  %v15117_v44 = vld [vmem:[#allocation6 + $0x104c] sm:$0xf]  ;;  %v13099_v51 = vld [vmem:[#allocation6 + $0x105c] sm:$0xf0]  ;;  %v13059_v55 = vld [vmem:[#allocation6 + $0x100c] sm:$0xf0] }
 0x3a8   :  { %7351 = vmatpush.bf16.msrb.mxu3 %v13138_v37  ;;  %v5802_v50 = vadd.f32 %v18776_v57, %v5769_v49  ;;  %v13078_v29 = vor.u32 %v15114_v36, %v13077_v1  ;;  %v13082_v48 = vor.u32 %v15112_v3, %v13079_v32  ;;  %v14997_v53 = vld [vmem:[#allocation6 + $0xc8c] sm:$0xf]  ;;  %v12642_v42 = vor.u32 %v15002_v28, %v12639_v27  ;;  %v12619_v61 = vld [vmem:[#allocation6 + $0xc9c] sm:$0xf0]  ;;  %v13057_v37 = vld [vmem:[#allocation6 + $0xff8] sm:$0xf] }
 0x3a9   :  { %v15107_v57 = vld [vmem:[#allocation6 + $0xffc] sm:$0xf]  ;;  %v13085_v33 = vld [vmem:[#allocation6 + $0x1028] sm:$0xf]  ;;  %v13102_v18 = vor.u32 %v15117_v44, %v13099_v51  ;;  %v15192_v9 = vld [vmem:[#allocation6 + $0x12a4] sm:$0xf] }
 0x3aa   :  { %7445 = vmatpush.bf16.msrb.mxu0 %v13162_v0  ;;  %7388 = vmatpush.bf16.msra.mxu1 %v12682_v19  ;;  %v18823_v43 = vpack.c.bf16 %v5807_v38, %v5802_v50  ;;  %v15109_v0 = vld [vmem:[#allocation6 + $0x1008] sm:$0xf0]  ;;  %v15115_v41 = vld [vmem:[#allocation6 + $0x1038] sm:$0xf0]  ;;  %v13399_v52 = vld [vmem:[#allocation6 + $0x12b4] sm:$0xf0]  ;;  %v13062_v24 = vor.u32 %v15107_v57, %v13059_v55 }
 0x3ab   :  { %7257 = vmatpush.bf16.msra.mxu2 %v13114_v6  ;;  %v13058_v19 = vor.u32 %v15109_v0, %v13057_v37  ;;  %v12622_v6 = vor.u32 %v14997_v53, %v12619_v61  ;;  %v13037_v49 = vld [vmem:[#allocation6 + $0xfd0] sm:$0xf]  ;;  %v15104_v2 = vld [vmem:[#allocation6 + $0xfe0] sm:$0xf0]  ;;  %v13086_v26 = vor.u32 %v15115_v41, %v13085_v33  ;;  %v13402_v56 = vor.u32 %v15192_v9, %v13399_v52  ;;  %v13065_v11 = vld [vmem:[#allocation6 + $0x1000] sm:$0xf] }
 0x3ac   :  { %7352 = vmatpush.bf16.msrb.mxu3 %v13118_v40  ;;  %20402 = vst [vmem:[#allocation38_spill] sm:$0xff] %v18823_v43  ;;  %v15102_v40 = vld [vmem:[#allocation6 + $0xfd4] sm:$0xf]  ;;  %v15187_v38 = vld [vmem:[#allocation6 + $0x127c] sm:$0xf]  ;;  %v13038_v45 = vor.u32 %v15104_v2, %v13037_v49 }
 0x3ad   :  { %v15110_v25 = vld [vmem:[#allocation6 + $0x1010] sm:$0xf0]  ;;  %v13379_v17 = vld [vmem:[#allocation6 + $0x128c] sm:$0xf0]  ;;  %v15097_v32 = vld [vmem:[#allocation6 + $0xfac] sm:$0xf] }
 0x3ae   :  { %7446 = vmatpush.bf16.msrb.mxu0 %v13142_v12  ;;  %7389 = vmatpush.bf16.msra.mxu1 %v12662_v16  ;;  %v13039_v12 = vld [vmem:[#allocation6 + $0xfe4] sm:$0xf0]  ;;  %v13066_v36 = vor.u32 %v15110_v25, %v13065_v11  ;;  %v13382_v3 = vor.u32 %v15187_v38, %v13379_v17  ;;  %v13019_v50 = vld [vmem:[#allocation6 + $0xfbc] sm:$0xf0]  ;;  %v13045_v28 = vld [vmem:[#allocation6 + $0xfd8] sm:$0xf] }
 0x3af   :  { %7258 = vmatpush.bf16.msra.mxu2 %v13094_v63  ;;  %7283 = vmatmul.bf16.gmra.mxu3 %v18823_v43  ;;  %v13042_v1 = vor.u32 %v15102_v40, %v13039_v12  ;;  %v13017_v16 = vld [vmem:[#allocation6 + $0xfa8] sm:$0xf]  ;;  %v15099_v63 = vld [vmem:[#allocation6 + $0xfb8] sm:$0xf0]  ;;  %v12997_v44 = vld [vmem:[#allocation6 + $0xf80] sm:$0xf] }
 0x3b0   :  { %7188 = vmatmul.bf16.gmra.mxu2 %v18823_v43  ;;  %7353 = vmatpush.bf16.msrb.mxu3 %v13098_v60  ;;  %v13018_v27 = vor.u32 %v15099_v63, %v13017_v16  ;;  %v15105_v60 = vld [vmem:[#allocation6 + $0xfe8] sm:$0xf0]  ;;  %v15094_v51 = vld [vmem:[#allocation6 + $0xf90] sm:$0xf0]  ;;  %v15092_v53 = vld [vmem:[#allocation6 + $0xf84] sm:$0xf] }
 0x3b1   :  { %v13046_v61 = vor.u32 %v15105_v60, %v13045_v28  ;;  %v13025_v0 = vld [vmem:[#allocation6 + $0xfb0] sm:$0xf]  ;;  %v12998_v57 = vor.u32 %v15094_v51, %v12997_v44  ;;  %v15100_v55 = vld [vmem:[#allocation6 + $0xfc0] sm:$0xf0]  ;;  %v15177_v33 = vld [vmem:[#allocation6 + $0x122c] sm:$0xf] }
 0x3b2   :  { %7447 = vmatpush.bf16.msrb.mxu0 %v13122_v5  ;;  %7390 = vmatpush.bf16.msra.mxu1 %v12642_v42  ;;  %v15182_v5 = vld [vmem:[#allocation6 + $0x1254] sm:$0xf]  ;;  %v12999_v42 = vld [vmem:[#allocation6 + $0xf94] sm:$0xf0]  ;;  %v15089_v52 = vld [vmem:[#allocation6 + $0xf68] sm:$0xf0] }
 0x3b3   :  { %7327 = vmatpush.bf16.msrb.mxu2 %v13078_v29  ;;  %7378 = vmatmul.bf16.gmra.mxu0 %v18823_v43  ;;  %v13359_v29 = vld [vmem:[#allocation6 + $0x1264] sm:$0xf0]  ;;  %v13002_v41 = vor.u32 %v15092_v53, %v12999_v42  ;;  %v12977_v9 = vld [vmem:[#allocation6 + $0xf58] sm:$0xf]  ;;  %v15172_v40 = vld [vmem:[#allocation6 + $0x1204] sm:$0xf] }
 0x3b4   :  { %7422 = vmatpush.bf16.msra.mxu3 %v13082_v48  ;;  %7321 = vmatmul.bf16.gmra.mxu1 %v20394_v13  ;;  %v13022_v48 = vor.u32 %v15097_v32, %v13019_v50  ;;  %v13362_v37 = vor.u32 %v15182_v5, %v13359_v29  ;;  %v13005_v2 = vld [vmem:[#allocation6 + $0xf88] sm:$0xf]  ;;  %v13319_v12 = vld [vmem:[#allocation6 + $0x1214] sm:$0xf0]  ;;  %v12957_v25 = vld [vmem:[#allocation6 + $0xf30] sm:$0xf] }
 0x3b5   :  { %v15084_v38 = vld [vmem:[#allocation6 + $0xf40] sm:$0xf0]  ;;  %v15082_v17 = vld [vmem:[#allocation6 + $0xf34] sm:$0xf]  ;;  %v13322_v16 = vor.u32 %v15172_v40, %v13319_v12  ;;  %v12985_v63 = vld [vmem:[#allocation6 + $0xf60] sm:$0xf] }
 0x3b6   :  { %7448 = vmatpush.bf16.msrb.mxu0 %v13102_v18  ;;  %7391 = vmatpush.bf16.msra.mxu1 %v12622_v6  ;;  %v13339_v18 = vld [vmem:[#allocation6 + $0x123c] sm:$0xf0]  ;;  %v12979_v6 = vld [vmem:[#allocation6 + $0xf6c] sm:$0xf0]  ;;  %v15167_v32 = vld [vmem:[#allocation6 + $0x11dc] sm:$0xf] }
 0x3b7   :  { %7328 = vmatpush.bf16.msrb.mxu2 %v13058_v19  ;;  %v15087_v19 = vld [vmem:[#allocation6 + $0xf5c] sm:$0xf]  ;;  %v13342_v49 = vor.u32 %v15177_v33, %v13339_v18  ;;  %v13299_v50 = vld [vmem:[#allocation6 + $0x11ec] sm:$0xf0]  ;;  %v15077_v5 = vld [vmem:[#allocation6 + $0xf0c] sm:$0xf] }
 0x3b8   :  { %7423 = vmatpush.bf16.msra.mxu3 %v13062_v24  ;;  %v13026_v24 = vor.u32 %v15100_v55, %v13025_v0  ;;  %v12982_v11 = vor.u32 %v15087_v19, %v12979_v6  ;;  %v15079_v60 = vld [vmem:[#allocation6 + $0xf18] sm:$0xf0]  ;;  %v12939_v29 = vld [vmem:[#allocation6 + $0xf1c] sm:$0xf0]  ;;  %v12919_v44 = vld [vmem:[#allocation6 + $0xef4] sm:$0xf0]  ;;  %v13302_v53 = vor.u32 %v15167_v32, %v13299_v50 }
 0x3b9   :  { %v12965_v42 = vld [vmem:[#allocation6 + $0xf38] sm:$0xf]  ;;  %v15162_v0 = vld [vmem:[#allocation6 + $0x11b4] sm:$0xf]  ;;  %v12942_v55 = vor.u32 %v15077_v5, %v12939_v29  ;;  %v12925_v18 = vld [vmem:[#allocation6 + $0xee8] sm:$0xf] }
 0x3ba   :  { %7517 = vmatpush.bf16.msra.mxu0 %v13086_v26  ;;  %7460 = vmatpush.bf16.msrb.mxu1 %v13402_v56  ;;  %v12978_v26 = vor.u32 %v15089_v52, %v12977_v9  ;;  %v15095_v56 = vld [vmem:[#allocation6 + $0xf98] sm:$0xf0]  ;;  %v12899_v52 = vld [vmem:[#allocation6 + $0xecc] sm:$0xf0]  ;;  %v12905_v12 = vld [vmem:[#allocation6 + $0xec0] sm:$0xf] }
 0x3bb   :  { %7329 = vmatpush.bf16.msrb.mxu2 %v13038_v45  ;;  %v12959_v45 = vld [vmem:[#allocation6 + $0xf44] sm:$0xf0]  ;;  %v15067_v9 = vld [vmem:[#allocation6 + $0xebc] sm:$0xf]  ;;  %v12885_v32 = vld [vmem:[#allocation6 + $0xe98] sm:$0xf] }
 0x3bc   :  { %7424 = vmatpush.bf16.msra.mxu3 %v13042_v1  ;;  %v13006_v1 = vor.u32 %v15095_v56, %v13005_v2  ;;  %v12962_v28 = vor.u32 %v15082_v17, %v12959_v45  ;;  %v15080_v2 = vld [vmem:[#allocation6 + $0xf20] sm:$0xf0]  ;;  %v13259_v56 = vld [vmem:[#allocation6 + $0x119c] sm:$0xf0]  ;;  %v12902_v40 = vor.u32 %v15067_v9, %v12899_v52  ;;  %v15062_v17 = vld [vmem:[#allocation6 + $0xe94] sm:$0xf] }
 0x3bd   :  { %v12879_v45 = vld [vmem:[#allocation6 + $0xea4] sm:$0xf0]  ;;  %v15065_v50 = vld [vmem:[#allocation6 + $0xea8] sm:$0xf0]  ;;  %v12859_v5 = vld [vmem:[#allocation6 + $0xe7c] sm:$0xf0] }
 0x3be   :  { %7518 = vmatpush.bf16.msra.mxu0 %v13066_v36  ;;  %7461 = vmatpush.bf16.msrb.mxu1 %v13382_v3  ;;  %v12958_v36 = vor.u32 %v15084_v38, %v12957_v25  ;;  %v15090_v3 = vld [vmem:[#allocation6 + $0xf70] sm:$0xf0]  ;;  %v13245_v25 = vld [vmem:[#allocation6 + $0x1168] sm:$0xf]  ;;  %v15155_v38 = vld [vmem:[#allocation6 + $0x1178] sm:$0xf0]  ;;  %v12886_v29 = vor.u32 %v15065_v50, %v12885_v32 }
 0x3bf   :  { %7330 = vmatpush.bf16.msrb.mxu2 %v13018_v27  ;;  %7354 = vmatmul.bf16.vlgmr.msrb.gmra.mxu3 %v18599_v21  ;;  %v12937_v27 = vld [vmem:[#allocation6 + $0xf08] sm:$0xf]  ;;  %v12986_v51 = vor.u32 %v15090_v3, %v12985_v63  ;;  %v12882_v3 = vor.u32 %v15062_v17, %v12879_v45  ;;  %v13185_v9 = vld [vmem:[#allocation6 + $0x10f0] sm:$0xf]  ;;  %v15140_v52 = vld [vmem:[#allocation6 + $0x1100] sm:$0xf0]  ;;  %v18839_v17 = vpop.f32.mrf.mxu3  ;;  %v18841_v45 = vpop.f32.mrf.mxu0 }
 0x3c0   :  { %7425 = vmatpush.bf16.msra.mxu3 %v13022_v48  ;;  %7259 = vmatmul.bf16.vlgmr.msra.gmra.mxu2 %v18599_v21  ;;  %v15072_v48 = vld [vmem:[#allocation6 + $0xee4] sm:$0xf]  ;;  %v15045_v32 = vld [vmem:[#allocation6 + $0xe08] sm:$0xf0]  ;;  %v13145_v50 = vld [vmem:[#allocation6 + $0x10a0] sm:$0xf] }
 0x3c1   :  { %v12922_v33 = vor.u32 %v15072_v48, %v12919_v44 }
 0x3c2   :  { %7519 = vmatpush.bf16.msra.mxu0 %v13046_v61  ;;  %7462 = vmatpush.bf16.msrb.mxu1 %v13362_v37  ;;  %v12938_v61 = vor.u32 %v15079_v60, %v12937_v27  ;;  %v15085_v37 = vld [vmem:[#allocation6 + $0xf48] sm:$0xf0]  ;;  %v15150_v27 = vld [vmem:[#allocation6 + $0x1150] sm:$0xf0] }
 0x3c3   :  { %7331 = vmatpush.bf16.msrb.mxu2 %v12998_v57  ;;  %7449 = vmatmul.bf16.vlgmr.msrb.gmra.mxu0 %v18599_v21  ;;  %v13279_v57 = vld [vmem:[#allocation6 + $0x11c4] sm:$0xf0]  ;;  %v12966_v19 = vor.u32 %v15085_v37, %v12965_v42  ;;  %v15057_v60 = vld [vmem:[#allocation6 + $0xe6c] sm:$0xf]  ;;  %v13205_v42 = vld [vmem:[#allocation6 + $0x1118] sm:$0xf] }
 0x3c4   :  { %7426 = vmatpush.bf16.msra.mxu3 %v13002_v41  ;;  %7392 = vmatmul.bf16.vlgmr.msra.gmra.mxu1 %v20387_v58  ;;  %v15075_v41 = vld [vmem:[#allocation6 + $0xef8] sm:$0xf0]  ;;  %v13282_v6 = vor.u32 %v15162_v0, %v13279_v57  ;;  %v12862_v44 = vor.u32 %v15057_v60, %v12859_v5  ;;  %v15052_v37 = vld [vmem:[#allocation6 + $0xe44] sm:$0xf]  ;;  %v12839_v0 = vld [vmem:[#allocation6 + $0xe54] sm:$0xf0] }
 0x3c5   :  { %v12779_v60 = vld [vmem:[#allocation6 + $0xddc] sm:$0xf0]  ;;  %v12765_v5 = vld [vmem:[#allocation6 + $0xda8] sm:$0xf] }
 0x3c6   :  { %7520 = vmatpush.bf16.msra.mxu0 %v13026_v24  ;;  %7463 = vmatpush.bf16.msrb.mxu1 %v13342_v49  ;;  %v12945_v24 = vld [vmem:[#allocation6 + $0xf10] sm:$0xf]  ;;  %v12926_v49 = vor.u32 %v15075_v41, %v12925_v18  ;;  %v12845_v18 = vld [vmem:[#allocation6 + $0xe48] sm:$0xf]  ;;  %v15055_v41 = vld [vmem:[#allocation6 + $0xe58] sm:$0xf0] }
 0x3c7   :  { %7332 = vmatpush.bf16.msrb.mxu2 %v12978_v26  ;;  %v15157_v26 = vld [vmem:[#allocation6 + $0x118c] sm:$0xf] }
 0x3c8   :  { %7427 = vmatpush.bf16.msra.mxu3 %v12982_v11  ;;  %v15070_v11 = vld [vmem:[#allocation6 + $0xed0] sm:$0xf0] }
 0x3c9   :  { %v12906_v63 = vor.u32 %v15070_v11, %v12905_v12  ;;  %v20403_v12 = vld [vmem:[#allocation24_spill] sm:$0xff]  ;;  %v15135_v11 = vld [vmem:[#allocation6 + $0x10d8] sm:$0xf0] }
 0x3ca   :  { %7521 = vmatpush.bf16.msra.mxu0 %v13006_v1  ;;  %7464 = vmatpush.bf16.msrb.mxu1 %v13322_v16  ;;  %v12946_v1 = vor.u32 %v15080_v2, %v12945_v24  ;;  %v13262_v16 = vor.u32 %v15157_v26, %v13259_v56  ;;  %v12846_v24 = vor.u32 %v15055_v41, %v12845_v18  ;;  %v12825_v26 = vld [vmem:[#allocation6 + $0xe20] sm:$0xf]  ;;  %v15050_v56 = vld [vmem:[#allocation6 + $0xe30] sm:$0xf0]  ;;  %v18847_v18 = vpop.f32.mrf.mxu3  ;;  %v18849_v41 = vpop.f32.mrf.mxu0 }
 0x3cb   :  { %7333 = vmatpush.bf16.msrb.mxu2 %v12958_v36  ;;  %v13246_v36 = vor.u32 %v15155_v38, %v13245_v25  ;;  %v15042_v25 = vld [vmem:[#allocation6 + $0xdf4] sm:$0xf]  ;;  %v12799_v38 = vld [vmem:[#allocation6 + $0xe04] sm:$0xf0] }
 0x3cc   :  { %7428 = vmatpush.bf16.msra.mxu3 %v12962_v28  ;;  %v13225_v28 = vld [vmem:[#allocation6 + $0x1140] sm:$0xf] }
 0x3cd   :  { %v13226_v48 = vor.u32 %v15150_v27, %v13225_v28  ;;  %v15130_v28 = vld [vmem:[#allocation6 + $0x10b0] sm:$0xf0]  ;;  %v15037_v27 = vld [vmem:[#allocation6 + $0xdcc] sm:$0xf] }
 0x3ce   :  { %7522 = vmatpush.bf16.msra.mxu0 %v12986_v51  ;;  %7465 = vmatpush.bf16.msrb.mxu1 %v13302_v53  ;;  %v12865_v51 = vld [vmem:[#allocation6 + $0xe70] sm:$0xf]  ;;  %v15060_v53 = vld [vmem:[#allocation6 + $0xe80] sm:$0xf0] }
 0x3cf   :  { %7334 = vmatpush.bf16.msrb.mxu2 %v12938_v61  ;;  %7359 = vmatmul.bf16.gmra.mxu3 %v18643_v8  ;;  %v15145_v61 = vld [vmem:[#allocation6 + $0x1128] sm:$0xf0]  ;;  %v12866_v57 = vor.u32 %v15060_v53, %v12865_v51  ;;  %v12782_v51 = vor.u32 %v15037_v27, %v12779_v60  ;;  %v12785_v53 = vld [vmem:[#allocation6 + $0xdd0] sm:$0xf] }
 0x3d0   :  { %7429 = vmatpush.bf16.msra.mxu3 %v12942_v55  ;;  %7264 = vmatmul.bf16.gmra.mxu2 %v18643_v8  ;;  %v13206_v55 = vor.u32 %v15145_v61, %v13205_v42  ;;  %v15040_v42 = vld [vmem:[#allocation6 + $0xde0] sm:$0xf0]  ;;  %v13125_v61 = vld [vmem:[#allocation6 + $0x1078] sm:$0xf]  ;;  %v15005_v60 = vld [vmem:[#allocation6 + $0xcc8] sm:$0xf0] }
 0x3d2   :  { %7523 = vmatpush.bf16.msra.mxu0 %v12966_v19  ;;  %7466 = vmatpush.bf16.msrb.mxu1 %v13282_v6  ;;  %v15047_v19 = vld [vmem:[#allocation6 + $0xe1c] sm:$0xf]  ;;  %v12819_v6 = vld [vmem:[#allocation6 + $0xe2c] sm:$0xf0] }
 0x3d3   :  { %7403 = vmatpush.bf16.msra.mxu2 %v12922_v33  ;;  %7454 = vmatmul.bf16.gmra.mxu0 %v18643_v8  ;;  %v12842_v33 = vor.u32 %v15052_v37, %v12839_v0  ;;  %v12822_v2 = vor.u32 %v15047_v19, %v12819_v6  ;;  %v15125_v37 = vld [vmem:[#allocation6 + $0x1088] sm:$0xf0]  ;;  %v15120_v19 = vld [vmem:[#allocation6 + $0x1060] sm:$0xf0] }
 0x3d4   :  { %7498 = vmatpush.bf16.msrb.mxu3 %v12926_v49  ;;  %7397 = vmatmul.bf16.gmra.mxu1 %v20391_v23  ;;  %v13186_v49 = vor.u32 %v15140_v52, %v13185_v9  ;;  %v13126_v9 = vor.u32 %v15125_v37, %v13125_v61  ;;  %v13105_v52 = vld [vmem:[#allocation6 + $0x1050] sm:$0xf]  ;;  %v15195_v61 = vld [vmem:[#allocation6 + $0x12b8] sm:$0xf0] }
 0x3d6   :  { %7524 = vmatpush.bf16.msra.mxu0 %v12946_v1  ;;  %7467 = vmatpush.bf16.msrb.mxu1 %v13262_v16  ;;  %v12826_v1 = vor.u32 %v15050_v56, %v12825_v26  ;;  %v13106_v26 = vor.u32 %v15120_v19, %v13105_v52 }
 0x3d7   :  { %7404 = vmatpush.bf16.msra.mxu2 %v12902_v40  ;;  %v13165_v40 = vld [vmem:[#allocation6 + $0x10c8] sm:$0xf] }
 0x3d8   :  { %7499 = vmatpush.bf16.msrb.mxu3 %v12906_v63  ;;  %v13166_v63 = vor.u32 %v15135_v11, %v13165_v40  ;;  %v12705_v40 = vld [vmem:[#allocation6 + $0xd30] sm:$0xf]  ;;  %v18856_v11 = vpop.f32.mrf.mxu3 }
 0x3da   :  { %7536 = vmatpush.bf16.msra.mxu1 %v13246_v36  ;;  %v12802_v36 = vor.u32 %v15042_v25, %v12799_v38  ;;  %v18858_v25 = vpop.f32.mrf.mxu0 }
 0x3db   :  { %7405 = vmatpush.bf16.msra.mxu2 %v12882_v3  ;;  %v12805_v3 = vld [vmem:[#allocation6 + $0xdf8] sm:$0xf] }
 0x3dc   :  { %7500 = vmatpush.bf16.msrb.mxu3 %v12886_v29  ;;  %v15035_v29 = vld [vmem:[#allocation6 + $0xdb8] sm:$0xf0] }
 0x3dd   :  { %v12766_v0 = vor.u32 %v15035_v29, %v12765_v5 }
 0x3de   :  { %7537 = vmatpush.bf16.msra.mxu1 %v13226_v48  ;;  %v12806_v48 = vor.u32 %v15045_v32, %v12805_v3  ;;  %v12665_v32 = vld [vmem:[#allocation6 + $0xce0] sm:$0xf] }
 0x3df   :  { %7406 = vmatpush.bf16.msra.mxu2 %v12862_v44  ;;  %7430 = vmatmul.bf16.vlgmr.msra.gmra.mxu3 %v20403_v12  ;;  %v13146_v44 = vor.u32 %v15130_v28, %v13145_v50  ;;  %v15010_v50 = vld [vmem:[#allocation6 + $0xcf0] sm:$0xf0]  ;;  %v7108_v28 = vpop.f32.mrf.mxu2 }
 0x3e0   :  { %7501 = vmatpush.bf16.msrb.mxu3 %v12866_v57  ;;  %7335 = vmatmul.bf16.vlgmr.msrb.gmra.mxu2 %v20403_v12  ;;  %v18843_v16 = vpop.f32.mrf.mxu1  ;;  %v12786_v57 = vor.u32 %v15040_v42, %v12785_v53  ;;  %v12666_v27 = vor.u32 %v15010_v50, %v12665_v32  ;;  %v18863_v5 = vpop.f32.mrf.mxu3  ;;  %v15000_v53 = vld [vmem:[#allocation6 + $0xca0] sm:$0xf0]  ;;  %v13405_v42 = vld [vmem:[#allocation6 + $0x12a8] sm:$0xf] }
 0x3e1   :  { %v15228_v32 = vld [vmem:[#allocation6 + $0x13c0] sm:$0xf0] }
 0x3e2   :  { %7538 = vmatpush.bf16.msra.mxu1 %v13206_v55  ;;  %v12745_v55 = vld [vmem:[#allocation6 + $0xd80] sm:$0xf]  ;;  %v18865_v29 = vpop.f32.mrf.mxu0 }
 0x3e3   :  { %7407 = vmatpush.bf16.msra.mxu2 %v12842_v33  ;;  %7525 = vmatmul.bf16.vlgmr.msra.gmra.mxu0 %v20403_v12  ;;  %v15030_v33 = vld [vmem:[#allocation6 + $0xd90] sm:$0xf0]  ;;  %v15020_v12 = vld [vmem:[#allocation6 + $0xd40] sm:$0xf0] }
 0x3e4   :  { %7502 = vmatpush.bf16.msrb.mxu3 %v12846_v24  ;;  %7468 = vmatmul.bf16.vlgmr.msrb.gmra.mxu1 %v18796_v35  ;;  %v12746_v24 = vor.u32 %v15030_v33, %v12745_v55  ;;  %v12706_v38 = vor.u32 %v15020_v12, %v12705_v40  ;;  %v13554_v12 = vld [vmem:[#allocation6 + $0x13d8] sm:$0xf] }
 0x3e6   :  { %7539 = vmatpush.bf16.msra.mxu1 %v13186_v49  ;;  %v12725_v49 = vld [vmem:[#allocation6 + $0xd58] sm:$0xf] }
 0x3e7   :  { %7408 = vmatpush.bf16.msra.mxu2 %v12822_v2  ;;  %v15025_v2 = vld [vmem:[#allocation6 + $0xd68] sm:$0xf0] }
 0x3e8   :  { %7503 = vmatpush.bf16.msrb.mxu3 %v12826_v1  ;;  %v18851_v6 = vpop.f32.mrf.mxu1  ;;  %v12726_v56 = vor.u32 %v15025_v2, %v12725_v49  ;;  %v12685_v1 = vld [vmem:[#allocation6 + $0xd08] sm:$0xf]  ;;  %v18872_v55 = vpop.f32.mrf.mxu3  ;;  %v15190_v49 = vld [vmem:[#allocation6 + $0x1290] sm:$0xf0]  ;;  %v13365_v2 = vld [vmem:[#allocation6 + $0x1258] sm:$0xf] }
 0x3ea   :  { %7540 = vmatpush.bf16.msra.mxu1 %v13166_v63  ;;  %v15015_v63 = vld [vmem:[#allocation6 + $0xd18] sm:$0xf0]  ;;  %v18874_v33 = vpop.f32.mrf.mxu0 }
 0x3eb   :  { %7409 = vmatpush.bf16.msra.mxu2 %v12802_v36  ;;  %v12686_v3 = vor.u32 %v15015_v63, %v12685_v1  ;;  %v15180_v1 = vld [vmem:[#allocation6 + $0x1240] sm:$0xf0] }
 0x3ec   :  { %7504 = vmatpush.bf16.msrb.mxu3 %v12806_v48 }
 0x3ee   :  { %7541 = vmatpush.bf16.msra.mxu1 %v13146_v44 }
 0x3ef   :  { %7410 = vmatpush.bf16.msra.mxu2 %v12782_v51  ;;  %7435 = vmatmul.bf16.gmra.mxu3 %v18504_v4  ;;  %v12625_v51 = vld [vmem:[#allocation6 + $0xc90] sm:$0xf] }
 0x3f0   :  { %7505 = vmatpush.bf16.msrb.mxu3 %v12786_v57  ;;  %7340 = vmatmul.bf16.gmra.mxu2 %v18504_v4  ;;  %v18861_v36 = vpop.f32.mrf.mxu1  ;;  %v12626_v37 = vor.u32 %v15000_v53, %v12625_v51  ;;  %v7110_v57 = vpop.f32.mrf.mxu2  ;;  %v13325_v51 = vld [vmem:[#allocation6 + $0x1208] sm:$0xf]  ;;  %v15175_v53 = vld [vmem:[#allocation6 + $0x1218] sm:$0xf0] }
 0x3f1   :  { %v18882_v52 = vpop.f32.mrf.mxu3 }
 0x3f2   :  { %7542 = vmatpush.bf16.msra.mxu1 %v13126_v9  ;;  %v18884_v19 = vpop.f32.mrf.mxu0 }
 0x3f3   :  { %7479 = vmatpush.bf16.msrb.mxu2 %v12766_v0  ;;  %7530 = vmatmul.bf16.gmra.mxu0 %v18504_v4  ;;  %v12645_v4 = vld [vmem:[#allocation6 + $0xcb8] sm:$0xf]  ;;  %v13406_v0 = vor.u32 %v15195_v61, %v13405_v42  ;;  %v18898_v61 = vld [vmem:[#allocation7 + $0xa] sm:$0x1f] }
 0x3f4   :  { %7473 = vmatmul.bf16.gmra.mxu1 %v18823_v43  ;;  %v12646_v44 = vor.u32 %v15005_v60, %v12645_v4 }
 0x3f6   :  { %7543 = vmatpush.bf16.msra.mxu1 %v13106_v26 }
 0x3f7   :  { %7480 = vmatpush.bf16.msrb.mxu2 %v12746_v24  ;;  %v13385_v24 = vld [vmem:[#allocation6 + $0x1280] sm:$0xf] }
 0x3f8   :  { %v18869_v48 = vpop.f32.mrf.mxu1  ;;  %v18880_v9 = vpop.f32.mrf.mxu2  ;;  %v13386_v26 = vor.u32 %v15190_v49, %v13385_v24  ;;  %v13326_v24 = vor.u32 %v15175_v53, %v13325_v51 }
 0x3f9   :  { %v18891_v4 = vpop.f32.mrf.mxu3 }
 0x3fa   :  { %v18893_v60 = vpop.f32.mrf.mxu0 }
 0x3fb   :  { %7481 = vmatpush.bf16.msrb.mxu2 %v12726_v56  ;;  %v15185_v56 = vld [vmem:[#allocation6 + $0x1268] sm:$0xf0] }
 0x3fc   :  { %v13366_v40 = vor.u32 %v15185_v56, %v13365_v2  ;;  %v18906_v2 = vperm.slane %v18898_v61, 0  ;;  %v13305_v56 = vld [vmem:[#allocation6 + $0x11e0] sm:$0xf] }
 0x3ff   :  { %7482 = vmatpush.bf16.msrb.mxu2 %v12706_v38  ;;  %7506 = vmatmul.bf16.vlgmr.msrb.gmra.mxu3 %v18292_v10  ;;  %v13345_v38 = vld [vmem:[#allocation6 + $0x1230] sm:$0xf] }
 0x400   :  { %7411 = vmatmul.bf16.vlgmr.msra.gmra.mxu2 %v18292_v10  ;;  %v18876_v10 = vpop.f32.mrf.mxu1  ;;  %v18889_v50 = vpop.f32.mrf.mxu2 }
 0x403   :  { %7483 = vmatpush.bf16.msrb.mxu2 %v12686_v3  ;;  %v13534_v3 = vld [vmem:[#allocation6 + $0x13b0] sm:$0xf] }
 0x404   :  { %7544 = vmatmul.bf16.vlgmr.msra.gmra.mxu1 %v18599_v21 }
 0x407   :  { %7484 = vmatpush.bf16.msrb.mxu2 %v12666_v27  ;;  %v13535_v27 = vor.u32 %v15228_v32, %v13534_v3  ;;  %v18915_v3 = vpop.f32.mrf.mxu0 }
 0x408   :  { %v18886_v21 = vpop.f32.mrf.mxu1 }
 0x40b   :  { %7485 = vmatpush.bf16.msrb.mxu2 %v12646_v44  ;;  %v7128_v44 = vadd.f32 %v18839_v17, %v7108_v28 }
 0x40f   :  { %7486 = vmatpush.bf16.msrb.mxu2 %v12626_v37  ;;  %7511 = vmatmul.bf16.gmra.mxu3 %v20394_v13  ;;  %v7147_v37 = vadd.f32 %v18841_v45, %v7128_v44  ;;  %v15170_v45 = vld [vmem:[#allocation6 + $0x11f0] sm:$0xf0] }
 0x410   :  { %7416 = vmatmul.bf16.gmra.mxu2 %v20394_v13  ;;  %v15233_v13 = vld [vmem:[#allocation6 + $0x13e8] sm:$0xf0] }
 0x411   :  { %v13555_v63 = vor.u32 %v15233_v13, %v13554_v12  ;;  %v18896_v42 = vpop.f32.mrf.mxu1  ;;  %v7166_v49 = vadd.f32 %v18843_v16, %v7147_v37  ;;  %v13306_v12 = vor.u32 %v15170_v45, %v13305_v56  ;;  %v13285_v13 = vld [vmem:[#allocation6 + $0x11b8] sm:$0xf]  ;;  %v7130_v16 = vadd.f32 %v18847_v18, %v7110_v57 }
 0x412   :  { %20404 = vst [vmem:[#allocation26_spill] sm:$0xff] %v18896_v42  ;;  %v13474_v57 = vld [vmem:[#allocation6 + $0x1338] sm:$0xf] }
 0x413   :  { %7555 = vmatpush.bf16.msra.mxu2 %v13406_v0  ;;  %9555 = vmatpush.bf16.msra.mxu3 %v13555_v63  ;;  %v18902_v0 = vld [vmem:[#allocation9 + $0xa] sm:$0x1f]  ;;  %v18913_v63 = vpop.f32.mrf.mxu3  ;;  %v7149_v51 = vadd.f32 %v18849_v41, %v7130_v16 }
 0x414   :  { %7549 = vmatmul.bf16.gmra.mxu1 %v18643_v8  ;;  %v13346_v8 = vor.u32 %v15180_v1, %v13345_v38  ;;  %20405 = vst [vmem:[#allocation29_spill] sm:$0xff] %v18902_v0  ;;  %v15223_v38 = vld [vmem:[#allocation6 + $0x1398] sm:$0xf0]  ;;  %v15165_v1 = vld [vmem:[#allocation6 + $0x11c8] sm:$0xf0] }
 0x415   :  { %v13286_v37 = vor.u32 %v15165_v1, %v13285_v13  ;;  %v7168_v56 = vadd.f32 %v18851_v6, %v7149_v51  ;;  %v7133_v6 = vadd.f32 %v18856_v11, %v18880_v9  ;;  %v7135_v11 = vadd.f32 %v18863_v5, %v18889_v50  ;;  %v15203_v5 = vld [vmem:[#allocation6 + $0x12f8] sm:$0xf0] }
 0x417   :  { %7556 = vmatpush.bf16.msra.mxu2 %v13386_v26  ;;  %9556 = vmatpush.bf16.msra.mxu3 %v13535_v27  ;;  %v18909_v26 = vperm.slane %v18902_v0, 0  ;;  %v13494_v27 = vld [vmem:[#allocation6 + $0x1360] sm:$0xf]  ;;  %v7152_v9 = vadd.f32 %v18858_v25, %v7133_v6  ;;  %v18960_v25 = vadd.f32 %v18874_v33, %v18872_v55  ;;  %v18974_v6 = vadd.f32 %v18893_v60, %v18891_v4 }
 0x418   :  { %v13414_v60 = vld [vmem:[#allocation6 + $0x12c0] sm:$0xf] }
 0x419   :  { %v18919_v53 = vpop.f32.mrf.mxu1 }
 0x41a   :  { %20406 = vst [vmem:[#allocation40_spill] sm:$0xff] %v18919_v53  ;;  %v20408_v53 = vld [vmem:[#allocation28_spill] sm:$0xff] }
 0x41b   :  { %7557 = vmatpush.bf16.msra.mxu2 %v13366_v40  ;;  %v13514_v40 = vld [vmem:[#allocation6 + $0x1388] sm:$0xf] }
 0x41c   :  { %v13515_v32 = vor.u32 %v15223_v38, %v13514_v40  ;;  %v18927_v40 = vld [vmem:[%s20066_s2 + $0x78] sm:$0x1f] }
 0x41d   :  { %v18941_v42 = vperm.slane %v18927_v40, 1 }
 0x41e   :  { %9557 = vmatpush.bf16.msra.mxu3 %v13515_v32 }
 0x41f   :  { %7558 = vmatpush.bf16.msra.mxu2 %v13346_v8  ;;  %v15218_v8 = vld [vmem:[#allocation6 + $0x1370] sm:$0xf0] }
 0x420   :  { %7487 = vmatmul.bf16.vlgmr.msrb.gmra.mxu2 %v20387_v58 }
 0x423   :  { %v7184_v17 = vpop.f32.mrf.mxu2  ;;  %7559 = vmatpush.bf16.msra.mxu2 %v13326_v24  ;;  %v13495_v24 = vor.u32 %v15218_v8, %v13494_v27  ;;  %v13454_v27 = vld [vmem:[#allocation6 + $0x1310] sm:$0xf]  ;;  %v15208_v8 = vld [vmem:[#allocation6 + $0x1320] sm:$0xf0] }
 0x424   :  { %v7185_v28 = vadd.f32 %v7184_v17, %v7166_v49  ;;  %v13265_v49 = vld [vmem:[#allocation6 + $0x1190] sm:$0xf]  ;;  %v15160_v17 = vld [vmem:[#allocation6 + $0x11a0] sm:$0xf0] }
 0x425   :  { %9558 = vmatpush.bf16.msra.mxu3 %v13495_v24  ;;  %v13266_v13 = vor.u32 %v15160_v17, %v13265_v49  ;;  %v18950_v49 = vpop.f32.mrf.mxu0 }
 0x426   :  { %v7587_v58 = vmul.f32 %v18906_v2, %v7185_v28  ;;  %v15213_v28 = vld [vmem:[#allocation6 + $0x1348] sm:$0xf0] }
 0x427   :  { %7560 = vmatpush.bf16.msra.mxu2 %v13306_v12  ;;  %v18932_v12 = vperm.slane %v18927_v40, 0  ;;  %v13475_v1 = vor.u32 %v15213_v28, %v13474_v57  ;;  %v13455_v57 = vor.u32 %v15208_v8, %v13454_v27  ;;  %v7154_v28 = vadd.f32 %v18865_v29, %v7135_v11 }
 0x428   :  { %v7620_v44 = vadd.f32 %v18909_v26, %v7587_v58 }
 0x429   :  { %9559 = vmatpush.bf16.msra.mxu3 %v13475_v1  ;;  %v7173_v55 = vadd.f32 %v18869_v48, %v7154_v28  ;;  %v15198_v48 = vld [vmem:[#allocation6 + $0x12d0] sm:$0xf0] }
 0x42a   :  { %v18921_v18 = vmax.f32 %v7620_v44, 0.0  ;;  %v20407_v44 = vld [vmem:[#allocation30_spill] sm:$0xff] }
 0x42b   :  { %v7186_v45 = vpop.f32.mrf.mxu2  ;;  %7561 = vmatpush.bf16.msra.mxu2 %v13286_v37  ;;  %v18943_v37 = vpop.f32.mrf.mxu3 }
 0x42c   :  { %v7686_v41 = vrot.slane %v18921_v18, 6  ;;  %v7811_v58 = vrot.slane %v18921_v18, 7  ;;  %v7187_v38 = vadd.f32 %v7186_v45, %v7168_v56  ;;  %v7171_v56 = vadd.f32 %v18861_v36, %v7152_v9 }
 0x42d   :  { %v18956_v45 = vperm.slane %v18927_v40, 2  ;;  %v18970_v36 = vadd.f32 %v18884_v19, %v18882_v52  ;;  %9560 = vmatpush.bf16.msra.mxu3 %v13455_v57 }
 0x42e   :  { %v7741_v16 = vsel %vm219_vm0, 0.0, %v7686_v41  ;;  %v7866_v32 = vsel %vm369_vm1, 0.0, %v7811_v58  ;;  %v7592_v24 = vmul.f32 %v18906_v2, %v7187_v38  ;;  %v13434_v38 = vld [vmem:[#allocation6 + $0x12e8] sm:$0xf] }
 0x42f   :  { %v7746_v51 = vmul.f32 %v7741_v16, %v20407_v44  ;;  %v7871_v43 = vmul.f32 %v7866_v32, %v20408_v53  ;;  %7562 = vmatpush.bf16.msra.mxu2 %v13266_v13  ;;  %v18964_v13 = vpop.f32.mrf.mxu1  ;;  %v7981_v16 = vrot.slane %v18921_v18, 1  ;;  %v13435_v27 = vor.u32 %v15203_v5, %v13434_v38  ;;  %v13714_v38 = vld [vmem:[#allocation6 + $0x1518] sm:$0xf]  ;;  %v15273_v5 = vld [vmem:[#allocation6 + $0x1528] sm:$0xf0] }
 0x430   :  { %7492 = vmatmul.bf16.gmra.mxu2 %v20391_v23  ;;  %v7625_v17 = vadd.f32 %v18909_v26, %v7592_v24  ;;  %v7941_v8 = vmul.f32 %v18956_v45, %v18921_v18  ;;  %v8106_v24 = vrot.slane %v18921_v18, 2 }
 0x431   :  { %v7771_v23 = vmul.f32 %v18932_v12, %v7746_v51  ;;  %v7896_v50 = vmul.f32 %v18941_v42, %v7871_v43  ;;  %9561 = vmatpush.bf16.msra.mxu3 %v13435_v27  ;;  %v19006_v27 = vpop.f32.mrf.mxu0 }
 0x432   :  { %v18966_v1 = vmax.f32 %v7625_v17, 0.0 }
 0x433   :  { %v7189_v29 = vpop.f32.mrf.mxu2  ;;  %v7916_v51 = vadd.f32 %v7896_v50, %v7771_v23  ;;  %v13415_v23 = vor.u32 %v15198_v48, %v13414_v60 }
 0x434   :  { %v7190_v33 = vadd.f32 %v7189_v29, %v7171_v56  ;;  %v7691_v43 = vrot.slane %v18966_v1, 6  ;;  %v7816_v32 = vrot.slane %v18966_v1, 7  ;;  %v7982_v52 = vrot.slane %v18966_v1, 1  ;;  %v18992_v29 = vpop.f32.mrf.mxu3 }
 0x435   :  { %v8107_v19 = vrot.slane %v18966_v1, 2  ;;  %v7961_v60 = vadd.f32 %v7941_v8, %v7916_v51  ;;  %9562 = vmatpush.bf16.msra.mxu3 %v13415_v23 }
 0x436   :  { %v7597_v4 = vmul.f32 %v18906_v2, %v7190_v33  ;;  %v7692_v11 = vsel %vm219_vm0, %v7686_v41, %v7691_v43  ;;  %v7817_v9 = vsel %vm369_vm1, %v7811_v58, %v7816_v32  ;;  %v7983_v56 = vsel %vm565_vm2, %v7981_v16, %v7982_v52 }
 0x437   :  { %v7751_v17 = vmul.f32 %v7692_v11, %v20367_v39  ;;  %v7876_v57 = vmul.f32 %v7817_v9, %v20368_v34  ;;  %v8041_v18 = vmul.f32 %v7983_v56, %v20369_v54  ;;  %v18996_v41 = vperm.slane %v18927_v40, 3  ;;  %v13694_v11 = vld [vmem:[#allocation6 + $0x14f0] sm:$0xf]  ;;  %v15268_v9 = vld [vmem:[#allocation6 + $0x1500] sm:$0xf0]  ;;  %v19018_v53 = vpop.f32.mrf.mxu1 }
 0x438   :  { %v7630_v28 = vadd.f32 %v18909_v26, %v7597_v4  ;;  %v8108_v58 = vsel %vm716_vm3, %v8106_v24, %v8107_v19  ;;  %v19002_v33 = vperm.slane %v18898_v61, 1  ;;  %v19010_v54 = vperm.slane %v18927_v40, 4  ;;  %v19021_v40 = vld [vmem:[#allocation4 + $0xf] sm:$0x1f] }
 0x439   :  { %v7776_v16 = vmul.f32 %v18932_v12, %v7751_v17  ;;  %v7901_v4 = vmul.f32 %v18941_v42, %v7876_v57  ;;  %v8066_v56 = vmul.f32 %v18996_v41, %v8041_v18  ;;  %v13715_v24 = vor.u32 %v15273_v5, %v13714_v38  ;;  %20409 = vst [vmem:[#allocation27_spill] sm:$0xff] %v19021_v40 }
 0x43a   :  { %v18999_v50 = vmax.f32 %v7630_v28, 0.0  ;;  %v8166_v57 = vmul.f32 %v8108_v58, %v20377_v7  ;;  %v7946_v39 = vmul.f32 %v18956_v45, %v18966_v1  ;;  %v13695_v38 = vor.u32 %v15268_v9, %v13694_v11 }
 0x43b   :  { %v7191_v48 = vpop.f32.mrf.mxu2  ;;  %9574 = vmatpush.bf16.msrb.mxu0 %v13715_v24  ;;  %v7921_v7 = vadd.f32 %v7901_v4, %v7776_v16  ;;  %v8086_v23 = vadd.f32 %v8066_v56, %v7961_v60  ;;  %v13674_v56 = vld [vmem:[#allocation6 + $0x14c8] sm:$0xf]  ;;  %v15263_v24 = vld [vmem:[#allocation6 + $0x14d8] sm:$0xf0] }
 0x43c   :  { %v7701_v28 = vrot.slane %v18999_v50, 6  ;;  %v7826_v34 = vrot.slane %v18999_v50, 7  ;;  %v7996_v17 = vrot.slane %v18999_v50, 1  ;;  %v8121_v8 = vrot.slane %v18999_v50, 2 }
 0x43d   :  { %v7192_v51 = vadd.f32 %v7191_v48, %v7173_v55  ;;  %v7966_v60 = vadd.f32 %v7946_v39, %v7921_v7  ;;  %v19055_v7 = vpop.f32.mrf.mxu0 }
 0x43e   :  { %v7702_v5 = vsel %vm219_vm0, %v7691_v43, %v7701_v28  ;;  %v7827_v18 = vsel %vm369_vm1, %v7816_v32, %v7826_v34  ;;  %v7997_v58 = vsel %vm565_vm2, %v7982_v52, %v7996_v17  ;;  %v8122_v43 = vsel %vm716_vm3, %v8107_v19, %v8121_v8 }
 0x43f   :  { %v7756_v1 = vmul.f32 %v7702_v5, %v20383_v22  ;;  %v7881_v44 = vmul.f32 %v7827_v18, %v20386_v15  ;;  %v7602_v55 = vmul.f32 %v18906_v2, %v7192_v51  ;;  %v8046_v11 = vmul.f32 %v7997_v58, %v20380_v31  ;;  %9575 = vmatpush.bf16.msrb.mxu0 %v13695_v38  ;;  %v19049_v5 = vpop.f32.mrf.mxu3  ;;  %v15258_v38 = vld [vmem:[#allocation6 + $0x14b0] sm:$0xf0] }
 0x440   :  { %7563 = vmatmul.bf16.vlgmr.msra.gmra.mxu2 %v18796_v35  ;;  %v8191_v32 = vmul.f32 %v19010_v54, %v8166_v57  ;;  %v19038_v52 = vperm.slane %v19021_v40, 0  ;;  %v8171_v9 = vmul.f32 %v8122_v43, %v20382_v59  ;;  %v7242_v35 = vadd.f32 %v18876_v10, %v18960_v25  ;;  %v13654_v57 = vld [vmem:[#allocation6 + $0x14a0] sm:$0xf] }
 0x441   :  { %v7781_v16 = vmul.f32 %v18932_v12, %v7756_v1  ;;  %v7906_v4 = vmul.f32 %v18941_v42, %v7881_v44  ;;  %v7635_v2 = vadd.f32 %v18909_v26, %v7602_v55  ;;  %v7244_v19 = vadd.f32 %v18886_v21, %v18970_v36 }
 0x442   :  { %v8071_v48 = vmul.f32 %v18996_v41, %v8046_v11  ;;  %v8211_v18 = vadd.f32 %v8191_v32, %v8086_v23  ;;  %v13675_v58 = vor.u32 %v15263_v24, %v13674_v56  ;;  %v19052_v10 = vperm.slane %v18902_v0, 1 }
 0x443   :  { %v7926_v51 = vadd.f32 %v7906_v4, %v7781_v16  ;;  %v7655_v44 = vmax.f32 %v7635_v2, 0.0  ;;  %v7260_v26 = vpop.f32.mrf.mxu2  ;;  %v8196_v39 = vmul.f32 %v19010_v54, %v8171_v9  ;;  %v7951_v21 = vmul.f32 %v18956_v45, %v18999_v50  ;;  %v7322_v2 = vpop.f32.mrf.mxu1  ;;  %v13614_v50 = vld [vmem:[#allocation6 + $0x1450] sm:$0xf] }
 0x444   :  { %v7261_v1 = vadd.f32 %v7260_v26, %v7242_v35  ;;  %v8091_v25 = vadd.f32 %v8071_v48, %v7966_v60  ;;  %9576 = vmatpush.bf16.msrb.mxu0 %v13675_v58  ;;  %v13655_v11 = vor.u32 %v15258_v38, %v13654_v57  ;;  %v8244_v60 = vadd.f32 %v19038_v52, %v8211_v18 }
 0x445   :  { %v7711_v36 = vrot.slane %v7655_v44, 6  ;;  %v7836_v55 = vrot.slane %v7655_v44, 7  ;;  %v8006_v43 = vrot.slane %v7655_v44, 1  ;;  %v8131_v23 = vrot.slane %v7655_v44, 2 }
 0x446   :  { %v7280_v32 = vadd.f32 %v18943_v37, %v7261_v1  ;;  %v8216_v16 = vadd.f32 %v8196_v39, %v8091_v25  ;;  %v7971_v4 = vadd.f32 %v7951_v21, %v7926_v51  ;;  %v13634_v25 = vld [vmem:[#allocation6 + $0x1478] sm:$0xf]  ;;  %v15253_v39 = vld [vmem:[#allocation6 + $0x1488] sm:$0xf0]  ;;  %v7956_v21 = vmul.f32 %v18956_v45, %v7655_v44 }
 0x447   :  { %v7712_v35 = vsel %vm219_vm0, %v7701_v28, %v7711_v36  ;;  %v7837_v9 = vsel %vm369_vm1, %v7826_v34, %v7836_v55  ;;  %v8036_v24 = vsel %vm565_vm2, %v8006_v43, 0.0  ;;  %v8161_v57 = vsel %vm716_vm3, %v8131_v23, 0.0  ;;  %v19076_v28 = vld [vmem:[%s20066_s2 + $0x80] sm:$0x1f] }
 0x448   :  { %v7761_v48 = vmul.f32 %v7712_v35, %v20338_v46  ;;  %v7886_v56 = vmul.f32 %v7837_v9, %v20324_v62  ;;  %v8056_v26 = vmul.f32 %v8036_v24, %v16383_v47  ;;  %v7588_v37 = vmul.f32 %v19002_v33, %v7280_v32  ;;  %9577 = vmatpush.bf16.msrb.mxu0 %v13655_v11 }
 0x449   :  { %v8249_v51 = vadd.f32 %v19038_v52, %v8216_v16  ;;  %v8007_v34 = vsel %vm565_vm2, %v7996_v17, %v8006_v43  ;;  %v8132_v1 = vsel %vm716_vm3, %v8121_v8, %v8131_v23  ;;  %v8181_v32 = vmul.f32 %v8161_v57, %v16403_v14  ;;  %v15248_v16 = vld [vmem:[#allocation6 + $0x1460] sm:$0xf0]  ;;  %v19093_v23 = vpop.f32.mrf.mxu3 }
 0x44a   :  { %v7786_v18 = vmul.f32 %v18932_v12, %v7761_v48  ;;  %v7911_v58 = vmul.f32 %v18941_v42, %v7886_v56  ;;  %v8051_v38 = vmul.f32 %v8007_v34, %v16335_v20  ;;  %v7621_v17 = vadd.f32 %v19052_v10, %v7588_v37  ;;  %v19103_v56 = vpop.f32.mrf.mxu0  ;;  %v20411_v37 = vld [vmem:[#allocation26_spill] sm:$0xff] }
 0x44b   :  { %v7262_v36 = vpop.f32.mrf.mxu2  ;;  %v19086_v55 = vpack.c.bf16 %v8249_v51, %v8244_v60  ;;  %v8176_v11 = vmul.f32 %v8132_v1, %v16398_v30  ;;  %v7230_v8 = vadd.f32 %v18915_v3, %v18913_v63  ;;  %v19098_v44 = vperm.slane %v19076_v28, 2  ;;  %v19122_v1 = vpop.f32.mrf.mxu1 }
 0x44c   :  { %v7263_v12 = vadd.f32 %v7262_v36, %v7244_v19  ;;  %v7931_v43 = vadd.f32 %v7911_v58, %v7786_v18  ;;  %v8076_v42 = vmul.f32 %v18996_v41, %v8051_v38  ;;  %v19095_v45 = vmax.f32 %v7621_v17, 0.0 }
 0x44d   :  { %20410 = vst [vmem:[#allocation33_spill] sm:$0xff] %v19086_v55  ;;  %9563 = vmatmul.bf16.vlgmr.msra.gmra.mxu3 %v19086_v55  ;;  %v13635_v19 = vor.u32 %v15253_v39, %v13634_v25  ;;  %v8081_v60 = vmul.f32 %v18996_v41, %v8056_v26  ;;  %v8201_v24 = vmul.f32 %v19010_v54, %v8176_v11  ;;  %v19138_v11 = vperm.slane %v18898_v61, 2 }
 0x44e   :  { %v7282_v35 = vadd.f32 %v18992_v29, %v7263_v12  ;;  %v7976_v9 = vadd.f32 %v7956_v21, %v7931_v43  ;;  %v8096_v48 = vadd.f32 %v8076_v42, %v7971_v4  ;;  %v7687_v63 = vrot.slane %v19095_v45, 6  ;;  %v20412_v29 = vld [vmem:[#allocation38_spill] sm:$0xff]  ;;  %v20413_v4 = vld [vmem:[#allocation40_spill] sm:$0xff]  ;;  %v15243_v43 = vld [vmem:[#allocation6 + $0x1438] sm:$0xf0] }
 0x44f   :  { %v7812_v3 = vrot.slane %v19095_v45, 7  ;;  %9578 = vmatpush.bf16.msrb.mxu0 %v13635_v19  ;;  %v13615_v57 = vor.u32 %v15248_v16, %v13614_v50  ;;  %v7247_v51 = vadd.f32 %v20411_v37, %v18974_v6  ;;  %v8206_v41 = vmul.f32 %v19010_v54, %v8181_v32  ;;  %v13594_v12 = vld [vmem:[#allocation6 + $0x1428] sm:$0xf]  ;;  %v20414_v42 = vld [vmem:[#allocation30_spill] sm:$0xff] }
 0x450   :  { %v7593_v34 = vmul.f32 %v19002_v33, %v7282_v35  ;;  %7568 = vmatmul.bf16.gmra.mxu2 %v20412_v29  ;;  %v8101_v18 = vadd.f32 %v8081_v60, %v7976_v9  ;;  %v7249_v26 = vadd.f32 %v20413_v4, %v7230_v8  ;;  %v19116_v58 = vadd.f32 %v18964_v13, %v18950_v49  ;;  %v15238_v19 = vld [vmem:[#allocation6 + $0x1410] sm:$0xf0]  ;;  %v20415_v35 = vld [vmem:[#allocation28_spill] sm:$0xff] }
 0x451   :  { %v19120_v38 = vadd.f32 %v19018_v53, %v19006_v27  ;;  %v8221_v6 = vadd.f32 %v8201_v24, %v8096_v48  ;;  %v19125_v25 = vadd.f32 %v7322_v2, %v19055_v7  ;;  %v7742_v39 = vsel %vm219_vm0, 0.0, %v7687_v63 }
 0x452   :  { %v7626_v54 = vadd.f32 %v19052_v10, %v7593_v34  ;;  %v8226_v21 = vadd.f32 %v8206_v41, %v8101_v18  ;;  %v7867_v17 = vsel %vm369_vm1, 0.0, %v7812_v3  ;;  %v7942_v49 = vmul.f32 %v19098_v44, %v19095_v45 }
 0x453   :  { %v7984_v13 = vrot.slane %v19095_v45, 1  ;;  %v8109_v53 = vrot.slane %v19095_v45, 2  ;;  %v7265_v27 = vpop.f32.mrf.mxu2  ;;  %9579 = vmatpush.bf16.msrb.mxu0 %v13615_v57  ;;  %v7747_v32 = vmul.f32 %v7742_v39, %v20414_v42  ;;  %v8254_v50 = vadd.f32 %v19038_v52, %v8221_v6  ;;  %v13574_v45 = vld [vmem:[#allocation6 + $0x1400] sm:$0xf]  ;;  %v19149_v57 = vpop.f32.mrf.mxu3  ;;  %v19171_v39 = vld [vmem:[%s20066_s2 + $0x88] sm:$0x1f] }
 0x454   :  { %v19134_v36 = vmax.f32 %v7626_v54, 0.0  ;;  %v7266_v7 = vadd.f32 %v7265_v27, %v7247_v51  ;;  %v8259_v2 = vadd.f32 %v19038_v52, %v8226_v21  ;;  %v19143_v16 = vperm.slane %v18902_v0, 2  ;;  %v19165_v6 = vpop.f32.mrf.mxu0  ;;  %v20418_v21 = vld [vmem:[#allocation31_spill] sm:$0xff] }
 0x455   :  { %v13595_v8 = vor.u32 %v15243_v43, %v13594_v12  ;;  %v7872_v9 = vmul.f32 %v7867_v17, %v20415_v35  ;;  %v13575_v34 = vor.u32 %v15238_v19, %v13574_v45  ;;  %v19160_v41 = vperm.slane %v19076_v28, 0 }
 0x456   :  { %v7693_v60 = vrot.slane %v19134_v36, 6  ;;  %v20212_v48 = vrot.slane %v19134_v36, 7  ;;  %v7985_v24 = vrot.slane %v19134_v36, 1  ;;  %v20216_v37 = vrot.slane %v19134_v36, 2 }
 0x457   :  { %v7285_v52 = vadd.f32 %v19049_v5, %v7266_v7  ;;  %v19153_v51 = vpack.c.bf16 %v8259_v2, %v8254_v50  ;;  %9580 = vmatpush.bf16.msrb.mxu0 %v13595_v8  ;;  %v19163_v4 = vperm.slane %v19076_v28, 1  ;;  %v7772_v27 = vmul.f32 %v19160_v41, %v7747_v32  ;;  %v20419_v2 = vld [vmem:[#allocation21_spill] sm:$0xff]  ;;  %v15231_v50 = vld [vmem:[#allocation6 + $0x13dc] sm:$0xf]  ;;  %v19182_v8 = vpop.f32.mrf.mxu1 }
 0x458   :  { %v7694_v29 = vsel %vm219_vm0, %v7687_v63, %v7693_v60  ;;  %v7819_v18 = vsel %vm369_vm1, %v7812_v3, %v20212_v48  ;;  %v20417_v63 = vld [vmem:[#allocation32_spill] sm:$0xff]  ;;  %v7986_v3 = vsel %vm565_vm2, %v7984_v13, %v7985_v24  ;;  %v19180_v43 = vperm.slane %v19076_v28, 3  ;;  %20420 = vst [vmem:[#allocation39_spill] sm:$0xff] %v19182_v8 }
 0x459   :  { %20416 = vst [vmem:[#allocation34_spill] sm:$0xff] %v19153_v51  ;;  %v7598_v5 = vmul.f32 %v19002_v33, %v7285_v52  ;;  %v7752_v54 = vmul.f32 %v7694_v29, %v20417_v63  ;;  %v7877_v17 = vmul.f32 %v7819_v18, %v20418_v21  ;;  %v7897_v7 = vmul.f32 %v19163_v4, %v7872_v9  ;;  %v13556_v9 = vld [vmem:[#allocation6 + $0x13ec] sm:$0xf0]  ;;  %v13874_v29 = vld [vmem:[#allocation6 + $0x1658] sm:$0xf] }
 0x45a   :  { %v8042_v12 = vmul.f32 %v7986_v3, %v20419_v2  ;;  %v8111_v32 = vsel %vm716_vm3, %v8109_v53, %v20216_v37  ;;  %v15313_v18 = vld [vmem:[#allocation6 + $0x1668] sm:$0xf0]  ;;  %v19191_v48 = vperm.slane %v19171_v39, 2  ;;  %v19199_v0 = vperm.slane %v19076_v28, 4 }
 0x45b   :  { %v7631_v45 = vadd.f32 %v19052_v10, %v7598_v5  ;;  %v7267_v19 = vpop.f32.mrf.mxu2  ;;  %9581 = vmatpush.bf16.msrb.mxu0 %v13575_v34  ;;  %v7777_v52 = vmul.f32 %v19160_v41, %v7752_v54  ;;  %v7902_v13 = vmul.f32 %v19163_v4, %v7877_v17  ;;  %v7917_v55 = vadd.f32 %v7897_v7, %v7772_v27  ;;  %v20421_v54 = vld [vmem:[#allocation36_spill] sm:$0xff] }
 0x45c   :  { %v7268_v3 = vadd.f32 %v7267_v19, %v7249_v26  ;;  %v8067_v5 = vmul.f32 %v19180_v43, %v8042_v12  ;;  %v8167_v17 = vmul.f32 %v8111_v32, %v20421_v54  ;;  %v13559_v26 = vor.u32 %v15231_v50, %v13556_v9  ;;  %v15221_v54 = vld [vmem:[#allocation6 + $0x138c] sm:$0xf] }
 0x45d   :  { %v19194_v8 = vmax.f32 %v7631_v45, 0.0  ;;  %9568 = vmatmul.bf16.gmra.mxu3 %v19153_v51  ;;  %v7922_v34 = vadd.f32 %v7902_v13, %v7777_v52  ;;  %v7962_v37 = vadd.f32 %v7942_v49, %v7917_v55  ;;  %v13875_v19 = vor.u32 %v15313_v18, %v13874_v29  ;;  %v15226_v55 = vld [vmem:[#allocation6 + $0x13b4] sm:$0xf]  ;;  %v19212_v49 = vpop.f32.mrf.mxu3 }
 0x45e   :  { %v7287_v53 = vadd.f32 %v19093_v23, %v7268_v3  ;;  %v7947_v27 = vmul.f32 %v19098_v44, %v19134_v36  ;;  %v19210_v32 = vperm.slane %v19021_v40, 1  ;;  %v13536_v23 = vld [vmem:[#allocation6 + $0x13c4] sm:$0xf0]  ;;  %v20422_v29 = vrot.slane %v19134_v36, 7  ;;  %v13854_v40 = vld [vmem:[#allocation6 + $0x1630] sm:$0xf] }
 0x45f   :  { %v7703_v7 = vrot.slane %v19194_v8, 6  ;;  %v7828_v12 = vrot.slane %v19194_v8, 7  ;;  %v20217_v45 = vrot.slane %v19194_v8, 1  ;;  %v20221_v52 = vrot.slane %v19194_v8, 2  ;;  %9650 = vmatpush.bf16.msra.mxu0 %v13559_v26  ;;  %9593 = vmatpush.bf16.msrb.mxu1 %v13875_v19 }
 0x460   :  { %v7603_v13 = vmul.f32 %v19002_v33, %v7287_v53  ;;  %v8087_v28 = vadd.f32 %v8067_v5, %v7962_v37  ;;  %v19217_v9 = vmul.f32 %v19098_v44, %v19194_v8  ;;  %v8192_v37 = vmul.f32 %v19199_v0, %v8167_v17 }
 0x461   :  { %v7704_v50 = vsel %vm219_vm0, %v7693_v60, %v7703_v7  ;;  %v7999_v33 = vsel %vm565_vm2, %v7985_v24, %v20217_v45  ;;  %v7829_v18 = vsel %vm369_vm1, %v20422_v29, %v7828_v12  ;;  %v7967_v5 = vadd.f32 %v7947_v27, %v7922_v34  ;;  %v19228_v60 = vpop.f32.mrf.mxu0  ;;  %v15308_v29 = vld [vmem:[#allocation6 + $0x1640] sm:$0xf0] }
 0x462   :  { %v7636_v3 = vadd.f32 %v19052_v10, %v7603_v13  ;;  %v8047_v53 = vmul.f32 %v7999_v33, %v20380_v31  ;;  %v7757_v26 = vmul.f32 %v7704_v50, %v20383_v22  ;;  %v20423_v24 = vrot.slane %v19134_v36, 2  ;;  %v13516_v50 = vld [vmem:[#allocation6 + $0x139c] sm:$0xf0]  ;;  %v19241_v33 = vpop.f32.mrf.mxu1 }
 0x463   :  { %v7336_v19 = vpop.f32.mrf.mxu2  ;;  %v8212_v45 = vadd.f32 %v8192_v37, %v8087_v28  ;;  %v13539_v51 = vor.u32 %v15226_v55, %v13536_v23  ;;  %20424 = vst [vmem:[#allocation44_spill] sm:$0xff] %v19241_v33  ;;  %v7882_v36 = vmul.f32 %v7829_v18, %v20386_v15  ;;  %v13855_v28 = vor.u32 %v15308_v29, %v13854_v40  ;;  %v13834_v23 = vld [vmem:[#allocation6 + $0x1608] sm:$0xf]  ;;  %v15303_v37 = vld [vmem:[#allocation6 + $0x1618] sm:$0xf0] }
 0x464   :  { %v8124_v17 = vsel %vm716_vm3, %v20423_v24, %v20221_v52  ;;  %v19236_v10 = vmax.f32 %v7636_v3, 0.0  ;;  %v7337_v34 = vadd.f32 %v7336_v19, %v19116_v58  ;;  %v8072_v27 = vmul.f32 %v19180_v43, %v8047_v53  ;;  %v15216_v3 = vld [vmem:[#allocation6 + $0x1364] sm:$0xf]  ;;  %v13814_v33 = vld [vmem:[#allocation6 + $0x15e0] sm:$0xf] }
 0x465   :  { %v8172_v13 = vmul.f32 %v8124_v17, %v20382_v59  ;;  %v8245_v24 = vadd.f32 %v19210_v32, %v8212_v45  ;;  %9651 = vmatpush.bf16.msra.mxu0 %v13539_v51  ;;  %v13519_v55 = vor.u32 %v15221_v54, %v13516_v50  ;;  %v13496_v17 = vld [vmem:[#allocation6 + $0x1374] sm:$0xf0]  ;;  %9594 = vmatpush.bf16.msrb.mxu1 %v13855_v28 }
 0x466   :  { %v7713_v52 = vrot.slane %v19236_v10, 6  ;;  %v7838_v58 = vrot.slane %v19236_v10, 7  ;;  %v7957_v53 = vmul.f32 %v19098_v44, %v19236_v10  ;;  %v8008_v19 = vrot.slane %v19236_v10, 1  ;;  %v15298_v44 = vld [vmem:[#allocation6 + $0x15f0] sm:$0xf0] }
 0x467   :  { %v8133_v18 = vrot.slane %v19236_v10, 2  ;;  %v7356_v45 = vadd.f32 %v19149_v57, %v7337_v34  ;;  %v8092_v51 = vadd.f32 %v8072_v27, %v7967_v5  ;;  %v8197_v40 = vmul.f32 %v19199_v0, %v8172_v13 }
 0x468   :  { %v7714_v54 = vsel %vm219_vm0, %v7703_v7, %v7713_v52  ;;  %v7839_v29 = vsel %vm369_vm1, %v7828_v12, %v7838_v58  ;;  %v8037_v50 = vsel %vm565_vm2, %v8008_v19, 0.0  ;;  %v13835_v15 = vor.u32 %v15303_v37, %v13834_v23  ;;  %v19261_v12 = vpop.f32.mrf.mxu3  ;;  %v15211_v58 = vld [vmem:[#allocation6 + $0x133c] sm:$0xf] }
 0x469   :  { %v7375_v22 = vadd.f32 %v19165_v6, %v7356_v45  ;;  %v8217_v59 = vadd.f32 %v8197_v40, %v8092_v51  ;;  %9652 = vmatpush.bf16.msra.mxu0 %v13519_v55  ;;  %v13499_v10 = vor.u32 %v15216_v3, %v13496_v17  ;;  %v13815_v31 = vor.u32 %v15298_v44, %v13814_v33  ;;  %v19272_v37 = vpop.f32.mrf.mxu0 }
 0x46a   :  { %v7762_v57 = vmul.f32 %v7714_v54, %v20338_v46  ;;  %v7782_v5 = vmul.f32 %v19160_v41, %v7757_v26  ;;  %v7887_v34 = vmul.f32 %v7839_v29, %v20324_v62  ;;  %v7907_v7 = vmul.f32 %v19163_v4, %v7882_v36  ;;  %9595 = vmatpush.bf16.msrb.mxu1 %v13835_v15  ;;  %v19284_v51 = vpop.f32.mrf.mxu1 }
 0x46b   :  { %v7589_v52 = vmul.f32 %v19138_v11, %v7375_v22  ;;  %v7338_v27 = vpop.f32.mrf.mxu2  ;;  %v8250_v13 = vadd.f32 %v19210_v32, %v8217_v59  ;;  %v20425_v6 = vrot.slane %v19194_v8, 1  ;;  %v8057_v28 = vmul.f32 %v8037_v50, %v16383_v47 }
 0x46c   :  { %v7339_v26 = vadd.f32 %v7338_v27, %v19120_v38  ;;  %v7787_v55 = vmul.f32 %v19160_v41, %v7762_v57  ;;  %v7912_v36 = vmul.f32 %v19163_v4, %v7887_v34  ;;  %v7927_v23 = vadd.f32 %v7907_v7, %v7782_v5  ;;  %v15293_v57 = vld [vmem:[#allocation6 + $0x15c8] sm:$0xf0]  ;;  %v15206_v7 = vld [vmem:[#allocation6 + $0x1314] sm:$0xf] }
 0x46d   :  { %v8009_v33 = vsel %vm565_vm2, %v20425_v6, %v8008_v19  ;;  %v7622_v22 = vadd.f32 %v19143_v16, %v7589_v52  ;;  %v19275_v3 = vpack.c.bf16 %v8250_v13, %v8245_v24  ;;  %9653 = vmatpush.bf16.msra.mxu0 %v13499_v10  ;;  %v8082_v15 = vmul.f32 %v19180_v43, %v8057_v28  ;;  %v13476_v19 = vld [vmem:[#allocation6 + $0x134c] sm:$0xf0] }
 0x46e   :  { %v8052_v59 = vmul.f32 %v8009_v33, %v16335_v20  ;;  %v7358_v38 = vadd.f32 %v19212_v49, %v7339_v26  ;;  %v7932_v17 = vadd.f32 %v7912_v36, %v7787_v55  ;;  %v7972_v41 = vadd.f32 %v19217_v9, %v7927_v23  ;;  %9596 = vmatpush.bf16.msrb.mxu1 %v13815_v31 }
 0x46f   :  { %v20426_v4 = vrot.slane %v19194_v8, 2  ;;  %v19286_v24 = vmax.f32 %v7622_v22, 0.0  ;;  %9582 = vmatmul.bf16.vlgmr.msrb.gmra.mxu0 %v19275_v3  ;;  %v8162_v54 = vsel %vm716_vm3, %v8133_v18, 0.0  ;;  %v13479_v50 = vor.u32 %v15211_v58, %v13476_v19  ;;  %v13774_v58 = vld [vmem:[#allocation6 + $0x1590] sm:$0xf] }
 0x470   :  { %v8077_v40 = vmul.f32 %v19180_v43, %v8052_v59  ;;  %v7377_v29 = vadd.f32 %v19228_v60, %v7358_v38  ;;  %v7977_v9 = vadd.f32 %v7957_v53, %v7932_v17  ;;  %v8182_v8 = vmul.f32 %v8162_v54, %v16403_v14  ;;  %v7362_v36 = vpop.f32.mrf.mxu3  ;;  %v15288_v19 = vld [vmem:[#allocation6 + $0x15a0] sm:$0xf0] }
 0x471   :  { %v8134_v45 = vsel %vm716_vm3, %v20426_v4, %v8133_v18  ;;  %v19296_v44 = vadd.f32 %v19122_v1, %v19103_v56  ;;  %v7688_v10 = vrot.slane %v19286_v24, 6  ;;  %v7813_v31 = vrot.slane %v19286_v24, 7  ;;  %v13794_v18 = vld [vmem:[#allocation6 + $0x15b8] sm:$0xf]  ;;  %9654 = vmatpush.bf16.msra.mxu0 %v13479_v50  ;;  %v13456_v56 = vld [vmem:[#allocation6 + $0x1324] sm:$0xf0] }
 0x472   :  { %v8177_v49 = vmul.f32 %v8134_v45, %v16398_v30  ;;  %v19302_v43 = vmul.f32 %v19191_v48, %v19286_v24  ;;  %v7987_v60 = vrot.slane %v19286_v24, 1  ;;  %v7594_v53 = vmul.f32 %v19138_v11, %v7377_v29  ;;  %v15201_v4 = vld [vmem:[#allocation6 + $0x12ec] sm:$0xf]  ;;  %v13436_v45 = vld [vmem:[#allocation6 + $0x12fc] sm:$0xf0] }
 0x473   :  { %v8097_v5 = vadd.f32 %v8077_v40, %v7972_v41  ;;  %v8102_v34 = vadd.f32 %v8082_v15, %v7977_v9  ;;  %v7743_v1 = vsel %vm219_vm0, 0.0, %v7688_v10  ;;  %v7868_v52 = vsel %vm369_vm1, 0.0, %v7813_v31  ;;  %v7341_v27 = vpop.f32.mrf.mxu2  ;;  %v7381_v40 = vpop.f32.mrf.mxu0  ;;  %v13754_v29 = vld [vmem:[#allocation6 + $0x1568] sm:$0xf]  ;;  %v15283_v9 = vld [vmem:[#allocation6 + $0x1578] sm:$0xf0] }
 0x474   :  { %v8202_v13 = vmul.f32 %v19199_v0, %v8177_v49  ;;  %v8207_v6 = vmul.f32 %v19199_v0, %v8182_v8  ;;  %v7748_v33 = vmul.f32 %v7743_v1, %v20414_v42  ;;  %v8112_v28 = vrot.slane %v19286_v24, 2  ;;  %v15196_v8 = vld [vmem:[#allocation6 + $0x12c4] sm:$0xf]  ;;  %v13734_v1 = vld [vmem:[#allocation6 + $0x1540] sm:$0xf] }
 0x475   :  { %v7627_v26 = vadd.f32 %v19143_v16, %v7594_v53  ;;  %v7342_v55 = vadd.f32 %v7341_v27, %v19125_v25  ;;  %v13795_v59 = vor.u32 %v15293_v57, %v13794_v18  ;;  %v13459_v15 = vor.u32 %v15206_v7, %v13456_v56  ;;  %v13416_v57 = vld [vmem:[#allocation6 + $0x12d4] sm:$0xf0]  ;;  %v19327_v53 = vpop.f32.mrf.mxu1 }
 0x476   :  { %v8222_v23 = vadd.f32 %v8202_v13, %v8097_v5  ;;  %v8227_v22 = vadd.f32 %v8207_v6, %v8102_v34  ;;  %v7873_v38 = vmul.f32 %v7868_v52, %v20415_v35  ;;  %v19319_v41 = vperm.slane %v18898_v61, 3  ;;  %v15278_v52 = vld [vmem:[#allocation6 + $0x1550] sm:$0xf0] }
 0x477   :  { %v19315_v17 = vmax.f32 %v7627_v26, 0.0  ;;  %v7361_v0 = vadd.f32 %v19261_v12, %v7342_v55  ;;  %9597 = vmatpush.bf16.msrb.mxu1 %v13795_v59  ;;  %9655 = vmatpush.bf16.msra.mxu0 %v13459_v15  ;;  %v13775_v49 = vor.u32 %v15288_v19, %v13774_v58  ;;  %v13439_v34 = vor.u32 %v15201_v4, %v13436_v45 }
 0x478   :  { %v8255_v25 = vadd.f32 %v19210_v32, %v8222_v23  ;;  %v8260_v54 = vadd.f32 %v19210_v32, %v8227_v22  ;;  %v13755_v7 = vor.u32 %v15283_v9, %v13754_v29  ;;  %v13419_v56 = vor.u32 %v15196_v8, %v13416_v57  ;;  %v20428_v57 = vld [vmem:[#allocation36_spill] sm:$0xff] }
 0x479   :  { %v7695_v50 = vrot.slane %v19315_v17, 6  ;;  %v7820_v12 = vrot.slane %v19315_v17, 7  ;;  %v7988_v61 = vrot.slane %v19315_v17, 1  ;;  %v8113_v18 = vrot.slane %v19315_v17, 2 }
 0x47a   :  { %v7380_v5 = vadd.f32 %v19272_v37, %v7361_v0  ;;  %v19330_v32 = vpack.c.bf16 %v8260_v54, %v8255_v25  ;;  %v19334_v13 = vperm.slane %v19171_v39, 0  ;;  %v13735_v37 = vor.u32 %v15278_v52, %v13734_v1  ;;  %v7431_v54 = vpop.f32.mrf.mxu3 }
 0x47b   :  { %v7696_v27 = vsel %vm219_vm0, %v7688_v10, %v7695_v50  ;;  %v7821_v6 = vsel %vm369_vm1, %v7813_v31, %v7820_v12  ;;  %v7343_v55 = vpop.f32.mrf.mxu2  ;;  %9598 = vmatpush.bf16.msrb.mxu1 %v13775_v49  ;;  %9656 = vmatpush.bf16.msra.mxu0 %v13439_v34  ;;  %v19340_v22 = vperm.slane %v19171_v39, 1  ;;  %v7948_v31 = vmul.f32 %v19191_v48, %v19315_v17  ;;  %v15271_v34 = vld [vmem:[#allocation6 + $0x151c] sm:$0xf]  ;;  %v7450_v1 = vpop.f32.mrf.mxu0 }
 0x47c   :  { %20427 = vst [vmem:[#allocation46_spill] sm:$0xff] %v19330_v32  ;;  %v7599_v26 = vmul.f32 %v19138_v11, %v7380_v5  ;;  %v7753_v23 = vmul.f32 %v7696_v27, %v20417_v63  ;;  %v7344_v59 = vadd.f32 %v7343_v55, %v19296_v44  ;;  %v7773_v10 = vmul.f32 %v19334_v13, %v7748_v33  ;;  %v20429_v27 = vld [vmem:[#allocation29_spill] sm:$0xff]  ;;  %v14034_v55 = vld [vmem:[#allocation6 + $0x1798] sm:$0xf] }
 0x47d   :  { %v7878_v15 = vmul.f32 %v7821_v6, %v20418_v21  ;;  %v7898_v0 = vmul.f32 %v19340_v22, %v7873_v38  ;;  %v7989_v4 = vsel %vm565_vm2, %v7987_v60, %v7988_v61  ;;  %v19358_v25 = vperm.slane %v19171_v39, 3 }
 0x47e   :  { %v7632_v58 = vadd.f32 %v19143_v16, %v7599_v26  ;;  %v7778_v19 = vmul.f32 %v19334_v13, %v7753_v23  ;;  %v7363_v44 = vadd.f32 %v7362_v36, %v7344_v59  ;;  %v8043_v45 = vmul.f32 %v7989_v4, %v20419_v2  ;;  %v15353_v23 = vld [vmem:[#allocation6 + $0x17a8] sm:$0xf0]  ;;  %v7469_v59 = vpop.f32.mrf.mxu1  ;;  %v20431_v4 = vld [vmem:[#allocation23_spill] sm:$0xff] }
 0x47f   :  { %v7903_v33 = vmul.f32 %v19340_v22, %v7878_v15  ;;  %9587 = vmatmul.bf16.gmra.mxu0 %v19330_v32  ;;  %9599 = vmatpush.bf16.msrb.mxu1 %v13755_v7  ;;  %v7918_v38 = vadd.f32 %v7898_v0, %v7773_v10  ;;  %v8114_v60 = vsel %vm716_vm3, %v8112_v28, %v8113_v18  ;;  %v19369_v36 = vperm.slane %v19171_v39, 4  ;;  %v13716_v39 = vld [vmem:[#allocation6 + $0x152c] sm:$0xf0]  ;;  %v20430_v0 = vld [vmem:[#allocation39_spill] sm:$0xff] }
 0x480   :  { %v19360_v49 = vmax.f32 %v7632_v58, 0.0  ;;  %v7382_v29 = vadd.f32 %v7381_v40, %v7363_v44  ;;  %9657 = vmatpush.bf16.msra.mxu0 %v13419_v56  ;;  %v8068_v8 = vmul.f32 %v19358_v25, %v8043_v45  ;;  %v8168_v5 = vmul.f32 %v8114_v60, %v20428_v57  ;;  %v14014_v45 = vld [vmem:[#allocation6 + $0x1770] sm:$0xf] }
 0x481   :  { %v7923_v9 = vadd.f32 %v7903_v33, %v7778_v19  ;;  %v19377_v28 = vperm.slane %v20429_v27, 3  ;;  %v7963_v6 = vadd.f32 %v19302_v43, %v7918_v38  ;;  %v15348_v38 = vld [vmem:[#allocation6 + $0x1780] sm:$0xf0] }
 0x482   :  { %v7705_v7 = vrot.slane %v19360_v49, 6  ;;  %v20228_v52 = vrot.slane %v19360_v49, 7  ;;  %v20227_v24 = vrot.slane %v19360_v49, 1  ;;  %v20226_v40 = vrot.slane %v19360_v49, 2 }
 0x483   :  { %v7604_v56 = vmul.f32 %v19138_v11, %v7382_v29  ;;  %v7968_v26 = vadd.f32 %v7948_v31, %v7923_v9  ;;  %v7412_v58 = vpop.f32.mrf.mxu2  ;;  %9600 = vmatpush.bf16.msrb.mxu1 %v13735_v37  ;;  %v8193_v43 = vmul.f32 %v19369_v36, %v8168_v5  ;;  %v15266_v31 = vld [vmem:[#allocation6 + $0x14f4] sm:$0xf]  ;;  %v8088_v33 = vadd.f32 %v8068_v8, %v7963_v6  ;;  %v20433_v8 = vld [vmem:[#allocation35_spill] sm:$0xff]  ;;  %v15261_v6 = vld [vmem:[#allocation6 + $0x14cc] sm:$0xf] }
 0x484   :  { %v7706_v10 = vsel %vm219_vm0, %v7695_v50, %v7705_v7  ;;  %v19386_v15 = vsel %vm369_vm1, %v7820_v12, %v20228_v52  ;;  %v8001_v11 = vsel %vm565_vm2, %v7988_v61, %v20227_v24  ;;  %v7413_v50 = vadd.f32 %v7412_v58, %v20430_v0  ;;  %v13696_v12 = vld [vmem:[#allocation6 + $0x1504] sm:$0xf0]  ;;  %v20432_v61 = vld [vmem:[#allocation27_spill] sm:$0xff] }
 0x485   :  { %v7637_v19 = vadd.f32 %v19143_v16, %v7604_v56  ;;  %v8048_v44 = vmul.f32 %v8001_v11, %v20431_v4  ;;  %v8126_v37 = vsel %vm716_vm3, %v8113_v18, %v20226_v40  ;;  %v19403_v60 = vperm.slane %v20432_v61, 2  ;;  %v13676_v0 = vld [vmem:[#allocation6 + $0x14dc] sm:$0xf0]  ;;  %v13994_v18 = vld [vmem:[#allocation6 + $0x1748] sm:$0xf] }
 0x486   :  { %v13719_v29 = vor.u32 %v15271_v34, %v13716_v39  ;;  %v14035_v9 = vor.u32 %v15353_v23, %v14034_v55  ;;  %v7432_v5 = vadd.f32 %v7431_v54, %v7413_v50  ;;  %v8173_v56 = vmul.f32 %v8126_v37, %v20433_v8  ;;  %v15343_v40 = vld [vmem:[#allocation6 + $0x1758] sm:$0xf0]  ;;  %v7433_v55 = vpop.f32.mrf.mxu3  ;;  %v20434_v37 = vld [vmem:[#allocation37_spill] sm:$0xff] }
 0x487   :  { %v19405_v16 = vmax.f32 %v7637_v19, 0.0  ;;  %v8073_v27 = vmul.f32 %v19358_v25, %v8048_v44  ;;  %v8213_v58 = vadd.f32 %v8193_v43, %v8088_v33  ;;  %v13699_v11 = vor.u32 %v15266_v31, %v13696_v12  ;;  %v15256_v33 = vld [vmem:[#allocation6 + $0x14a4] sm:$0xf]  ;;  %v13656_v12 = vld [vmem:[#allocation6 + $0x14b4] sm:$0xf0] }
 0x488   :  { %9669 = vmatpush.bf16.msra.mxu1 %v13719_v29  ;;  %9612 = vmatpush.bf16.msrb.mxu2 %v14035_v9  ;;  %v14015_v17 = vor.u32 %v15348_v38, %v14014_v45  ;;  %v7451_v23 = vadd.f32 %v7450_v1, %v7432_v5  ;;  %v8198_v43 = vmul.f32 %v19369_v36, %v8173_v56  ;;  %v13974_v45 = vld [vmem:[#allocation6 + $0x1720] sm:$0xf]  ;;  %v7452_v9 = vpop.f32.mrf.mxu0 }
 0x489   :  { %v7715_v61 = vrot.slane %v19405_v16, 6  ;;  %v7840_v34 = vrot.slane %v19405_v16, 7  ;;  %v8010_v39 = vrot.slane %v19405_v16, 1  ;;  %v8135_v54 = vrot.slane %v19405_v16, 2 }
 0x48a   :  { %v8093_v19 = vadd.f32 %v8073_v27, %v7968_v26  ;;  %v8246_v50 = vadd.f32 %v19403_v60, %v8213_v58  ;;  %v13679_v31 = vor.u32 %v15261_v6, %v13676_v0  ;;  %v13995_v44 = vor.u32 %v15343_v40, %v13994_v18  ;;  %v15338_v26 = vld [vmem:[#allocation6 + $0x1730] sm:$0xf0]  ;;  %v20435_v27 = vld [vmem:[#allocation44_spill] sm:$0xff] }
 0x48b   :  { %v7716_v38 = vsel %vm219_vm0, %v7705_v7, %v7715_v61  ;;  %v7758_v29 = vmul.f32 %v7706_v10, %v20434_v37  ;;  %v7470_v24 = vadd.f32 %v7469_v59, %v7451_v23  ;;  %v7414_v52 = vpop.f32.mrf.mxu2  ;;  %v13659_v1 = vor.u32 %v15256_v33, %v13656_v12  ;;  %v7471_v7 = vpop.f32.mrf.mxu1 }
 0x48c   :  { %v8218_v32 = vadd.f32 %v8198_v43, %v8093_v19  ;;  %9670 = vmatpush.bf16.msra.mxu1 %v13699_v11  ;;  %9613 = vmatpush.bf16.msrb.mxu2 %v14015_v17  ;;  %v8038_v5 = vsel %vm565_vm2, %v8010_v39, 0.0  ;;  %v7415_v56 = vadd.f32 %v7414_v52, %v20435_v27  ;;  %v13975_v40 = vor.u32 %v15338_v26, %v13974_v45  ;;  %v20437_v17 = vld [vmem:[#allocation45_spill] sm:$0xff] }
 0x48d   :  { %v7763_v6 = vmul.f32 %v7716_v38, %v20338_v46  ;;  %v7783_v58 = vmul.f32 %v19334_v13, %v7758_v29  ;;  %v7590_v10 = vmul.f32 %v19319_v41, %v7470_v24  ;;  %v20436_v0 = vrot.slane %v19360_v49, 7  ;;  %v20438_v24 = vld [vmem:[#allocation33_spill] sm:$0xff] }
 0x48e   :  { %v8251_v59 = vadd.f32 %v19403_v60, %v8218_v32  ;;  %v7883_v18 = vmul.f32 %v19386_v15, %v20437_v17  ;;  %v7434_v61 = vadd.f32 %v7433_v55, %v7415_v56  ;;  %v7958_v19 = vmul.f32 %v19191_v48, %v19405_v16  ;;  %v7436_v26 = vpop.f32.mrf.mxu3  ;;  %v15251_v56 = vld [vmem:[#allocation6 + $0x147c] sm:$0xf] }
 0x48f   :  { %v7841_v11 = vsel %vm369_vm1, %v20436_v0, %v7840_v34  ;;  %v7788_v52 = vmul.f32 %v19334_v13, %v7763_v6  ;;  %v7623_v43 = vadd.f32 %v19377_v28, %v7590_v10  ;;  %9658 = vmatmul.bf16.vlgmr.msra.gmra.mxu0 %v20438_v24  ;;  %v20440_v13 = vrot.slane %v19360_v49, 1  ;;  %v13636_v6 = vld [vmem:[#allocation6 + $0x148c] sm:$0xf0]  ;;  %v15333_v0 = vld [vmem:[#allocation6 + $0x1708] sm:$0xf0] }
 0x490   :  { %v7888_v23 = vmul.f32 %v7841_v11, %v20324_v62  ;;  %v19434_v32 = vpack.c.bf16 %v8251_v59, %v8246_v50  ;;  %9671 = vmatpush.bf16.msra.mxu1 %v13679_v31  ;;  %v7908_v34 = vmul.f32 %v19340_v22, %v7883_v18  ;;  %v7453_v33 = vadd.f32 %v7452_v9, %v7434_v61  ;;  %v13954_v59 = vld [vmem:[#allocation6 + $0x16f8] sm:$0xf]  ;;  %v7455_v11 = vpop.f32.mrf.mxu0  ;;  %v15246_v61 = vld [vmem:[#allocation6 + $0x1454] sm:$0xf] }
 0x491   :  { %9614 = vmatpush.bf16.msrb.mxu2 %v13995_v44  ;;  %v8011_v55 = vsel %vm565_vm2, %v20440_v13, %v8010_v39  ;;  %v8058_v12 = vmul.f32 %v8038_v5, %v16383_v47  ;;  %v19442_v16 = vmax.f32 %v7623_v43, 0.0  ;;  %v20441_v31 = vrot.slane %v19360_v49, 2 }
 0x492   :  { %20439 = vst [vmem:[#allocation41_spill] sm:$0xff] %v19434_v32  ;;  %v7913_v15 = vmul.f32 %v19340_v22, %v7888_v23  ;;  %9601 = vmatmul.bf16.vlgmr.msrb.gmra.mxu1 %v19434_v32  ;;  %v7928_v45 = vadd.f32 %v7908_v34, %v7783_v58  ;;  %v8053_v50 = vmul.f32 %v8011_v55, %v16335_v20  ;;  %v8163_v22 = vsel %vm716_vm3, %v8135_v54, 0.0 }
 0x493   :  { %v8136_v38 = vsel %vm716_vm3, %v20441_v31, %v8135_v54  ;;  %v7472_v44 = vadd.f32 %v7471_v7, %v7453_v33  ;;  %v7953_v39 = vmul.f32 %v19191_v48, %v19360_v49  ;;  %v7417_v5 = vpop.f32.mrf.mxu2  ;;  %v8083_v27 = vmul.f32 %v19358_v25, %v8058_v12  ;;  %v7474_v33 = vpop.f32.mrf.mxu1 }
 0x494   :  { %v7933_v29 = vadd.f32 %v7913_v15, %v7788_v52  ;;  %v8178_v9 = vmul.f32 %v8136_v38, %v16398_v30  ;;  %9672 = vmatpush.bf16.msra.mxu1 %v13659_v1  ;;  %v7689_v58 = vrot.slane %v19442_v16, 6  ;;  %v7418_v7 = vadd.f32 %v7417_v5, %v19284_v51  ;;  %v13616_v52 = vld [vmem:[#allocation6 + $0x1464] sm:$0xf0] }
 0x495   :  { %v7595_v10 = vmul.f32 %v19319_v41, %v7472_v44  ;;  %9615 = vmatpush.bf16.msrb.mxu2 %v13975_v40  ;;  %v7814_v48 = vrot.slane %v19442_v16, 7  ;;  %v7973_v49 = vadd.f32 %v7953_v39, %v7928_v45  ;;  %v8078_v1 = vmul.f32 %v19358_v25, %v8053_v50  ;;  %v13934_v40 = vld [vmem:[#allocation6 + $0x16d0] sm:$0xf]  ;;  %v19463_v45 = vld [vmem:[#allocation6 + $0x142c] sm:$0xf] }
 0x496   :  { %v7978_v54 = vadd.f32 %v7958_v19, %v7933_v29  ;;  %v8183_v18 = vmul.f32 %v8163_v22, %v16403_v14  ;;  %v7437_v43 = vadd.f32 %v7436_v26, %v7418_v7  ;;  %v8203_v51 = vmul.f32 %v19369_v36, %v8178_v9  ;;  %v15328_v19 = vld [vmem:[#allocation6 + $0x16e0] sm:$0xf0]  ;;  %v13596_v25 = vld [vmem:[#allocation6 + $0x143c] sm:$0xf0]  ;;  %v13914_v26 = vld [vmem:[#allocation6 + $0x16a8] sm:$0xf] }
 0x497   :  { %v7628_v23 = vadd.f32 %v19377_v28, %v7595_v10  ;;  %v8098_v15 = vadd.f32 %v8078_v1, %v7973_v49  ;;  %v13639_v55 = vor.u32 %v15251_v56, %v13636_v6  ;;  %v13955_v12 = vor.u32 %v15333_v0, %v13954_v59  ;;  %v19476_v10 = vld [vmem:[%s20066_s2 + $0x90] sm:$0x1f] }
 0x498   :  { %v8103_v34 = vadd.f32 %v8083_v27, %v7978_v54  ;;  %v8208_v13 = vmul.f32 %v19369_v36, %v8183_v18  ;;  %v7990_v50 = vrot.slane %v19442_v16, 1  ;;  %v7456_v38 = vadd.f32 %v7455_v11, %v7437_v43  ;;  %v15323_v36 = vld [vmem:[#allocation6 + $0x16b8] sm:$0xf0] }
 0x499   :  { %v19466_v31 = vmax.f32 %v7628_v23, 0.0  ;;  %v13619_v44 = vor.u32 %v15246_v61, %v13616_v52  ;;  %v7744_v29 = vsel %vm219_vm0, 0.0, %v7689_v58  ;;  %v8223_v22 = vadd.f32 %v8203_v51, %v8098_v15  ;;  %9673 = vmatpush.bf16.msra.mxu1 %v13639_v55  ;;  %9616 = vmatpush.bf16.msrb.mxu2 %v13955_v12  ;;  %v7438_v52 = vpop.f32.mrf.mxu3  ;;  %v20442_v12 = vld [vmem:[#allocation34_spill] sm:$0xff] }
 0x49a   :  { %v8228_v9 = vadd.f32 %v8208_v13, %v8103_v34  ;;  %v13935_v39 = vor.u32 %v15328_v19, %v13934_v40  ;;  %v7869_v5 = vsel %vm369_vm1, 0.0, %v7814_v48  ;;  %v13599_v6 = vor.u32 %v19463_v45, %v13596_v25  ;;  %v13894_v40 = vld [vmem:[#allocation6 + $0x1680] sm:$0xf]  ;;  %v15318_v19 = vld [vmem:[#allocation6 + $0x1690] sm:$0xf0]  ;;  %v7457_v13 = vpop.f32.mrf.mxu0 }
 0x49b   :  { %v7697_v27 = vrot.slane %v19466_v31, 6  ;;  %v7822_v56 = vrot.slane %v19466_v31, 7  ;;  %v7475_v7 = vadd.f32 %v7474_v33, %v7456_v38  ;;  %v7419_v54 = vpop.f32.mrf.mxu2  ;;  %v8256_v59 = vadd.f32 %v19403_v60, %v8223_v22  ;;  %v13576_v45 = vld [vmem:[#allocation6 + $0x1414] sm:$0xf0]  ;;  %v13562_v22 = vld [vmem:[#allocation6 + $0x13e0] sm:$0xf] }
 0x49c   :  { %v8261_v0 = vadd.f32 %v19403_v60, %v8228_v9  ;;  %v19481_v11 = vperm.slane %v19476_v10, 0  ;;  %v7991_v49 = vrot.slane %v19466_v31, 1  ;;  %v8116_v1 = vrot.slane %v19466_v31, 2  ;;  %v15234_v9 = vld [vmem:[#allocation6 + $0x13f0] sm:$0xf0] }
 0x49d   :  { %v7420_v18 = vadd.f32 %v7419_v54, %v19327_v53  ;;  %v13915_v61 = vor.u32 %v15323_v36, %v13914_v26  ;;  %v7600_v23 = vmul.f32 %v19319_v41, %v7475_v7  ;;  %9674 = vmatpush.bf16.msra.mxu1 %v13619_v44  ;;  %9617 = vmatpush.bf16.msrb.mxu2 %v13935_v39  ;;  %v19493_v34 = vperm.slane %v19476_v10, 1  ;;  %v7476_v36 = vpop.f32.mrf.mxu1 }
 0x49e   :  { %v19487_v43 = vpack.c.bf16 %v8261_v0, %v8256_v59  ;;  %v7698_v60 = vsel %vm219_vm0, %v7689_v58, %v7697_v27  ;;  %v7749_v53 = vmul.f32 %v7744_v29, %v20414_v42  ;;  %v7823_v15 = vsel %vm369_vm1, %v7814_v48, %v7822_v56  ;;  %v15236_v58 = vld [vmem:[#allocation6 + $0x1404] sm:$0xf] }
 0x49f   :  { %v7439_v51 = vadd.f32 %v7438_v52, %v7420_v18  ;;  %v7754_v33 = vmul.f32 %v7698_v60, %v20417_v63  ;;  %v7633_v55 = vadd.f32 %v19377_v28, %v7600_v23  ;;  %9663 = vmatmul.bf16.gmra.mxu0 %v20442_v12  ;;  %v7874_v25 = vmul.f32 %v7869_v5, %v20415_v35 }
 0x4a0   :  { %v7879_v38 = vmul.f32 %v7823_v15, %v20418_v21  ;;  %v19505_v44 = vperm.slane %v19476_v10, 2  ;;  %v7774_v39 = vmul.f32 %v19481_v11, %v7749_v53  ;;  %v7992_v26 = vsel %vm565_vm2, %v7990_v50, %v7991_v49 }
 0x4a1   :  { %v7458_v29 = vadd.f32 %v7457_v13, %v7439_v51  ;;  %v7779_v48 = vmul.f32 %v19481_v11, %v7754_v33  ;;  %v19510_v7 = vmax.f32 %v7633_v55, 0.0  ;;  %9618 = vmatpush.bf16.msrb.mxu2 %v13915_v61  ;;  %v13895_v5 = vor.u32 %v15318_v19, %v13894_v40  ;;  %9675 = vmatpush.bf16.msra.mxu1 %v13599_v6 }
 0x4a2   :  { %9606 = vmatmul.bf16.gmra.mxu1 %v19487_v43  ;;  %v7899_v54 = vmul.f32 %v19493_v34, %v7874_v25  ;;  %v7904_v59 = vmul.f32 %v19493_v34, %v7879_v38  ;;  %v13579_v18 = vor.u32 %v15236_v58, %v13576_v45  ;;  %v8044_v52 = vmul.f32 %v7992_v26, %v20419_v2  ;;  %v15311_v45 = vld [vmem:[#allocation6 + $0x165c] sm:$0xf]  ;;  %v15306_v26 = vld [vmem:[#allocation6 + $0x1634] sm:$0xf] }
 0x4a3   :  { %v7477_v0 = vadd.f32 %v7476_v36, %v7458_v29  ;;  %v19517_v23 = vperm.slane %v19476_v10, 3  ;;  %v8115_v50 = vrot.slane %v19442_v16, 2  ;;  %v20232_v60 = vrot.slane %v19510_v7, 1  ;;  %v19522_v61 = vpop.f32.mrf.mxu2  ;;  %v13856_v36 = vld [vmem:[#allocation6 + $0x1644] sm:$0xf0] }
 0x4a4   :  { %v20231_v51 = vrot.slane %v19510_v7, 2  ;;  %v13563_v40 = vor.u32 %v15234_v9, %v13562_v22  ;;  %v7919_v53 = vadd.f32 %v7899_v54, %v7774_v39  ;;  %v7924_v33 = vadd.f32 %v7904_v59, %v7779_v48  ;;  %v15229_v22 = vld [vmem:[#allocation6 + $0x13c8] sm:$0xf0] }
 0x4a5   :  { %v7605_v19 = vmul.f32 %v19319_v41, %v7477_v0  ;;  %v7944_v6 = vmul.f32 %v19505_v44, %v19442_v16  ;;  %9619 = vmatpush.bf16.msrb.mxu2 %v13895_v5  ;;  %v8003_v15 = vsel %vm565_vm2, %v7991_v49, %v20232_v60  ;;  %v8069_v13 = vmul.f32 %v19517_v23, %v8044_v52  ;;  %v13876_v41 = vld [vmem:[#allocation6 + $0x166c] sm:$0xf0]  ;;  %v13542_v49 = vld [vmem:[#allocation6 + $0x13b8] sm:$0xf] }
 0x4a6   :  { %v8117_v55 = vsel %vm716_vm3, %v8115_v50, %v8116_v1  ;;  %v8128_v58 = vsel %vm716_vm3, %v8116_v1, %v20231_v51  ;;  %v7707_v25 = vrot.slane %v19510_v7, 6  ;;  %9676 = vmatpush.bf16.msra.mxu1 %v13579_v18  ;;  %v7949_v16 = vmul.f32 %v19505_v44, %v19466_v31  ;;  %v13522_v0 = vld [vmem:[#allocation6 + $0x1390] sm:$0xf]  ;;  %v15224_v18 = vld [vmem:[#allocation6 + $0x13a0] sm:$0xf0] }
 0x4a7   :  { %v7638_v38 = vadd.f32 %v19377_v28, %v7605_v19  ;;  %v7964_v29 = vadd.f32 %v7944_v6, %v7919_v53  ;;  %v8049_v9 = vmul.f32 %v8003_v15, %v20431_v4  ;;  %v8169_v39 = vmul.f32 %v8117_v55, %v20428_v57  ;;  %v19552_v6 = vld [vmem:[#allocation4 + $0xf] sm:$0x1f]  ;;  %v15301_v55 = vld [vmem:[#allocation6 + $0x160c] sm:$0xf] }
 0x4a8   :  { %v8174_v1 = vmul.f32 %v8128_v58, %v20433_v8  ;;  %v19543_v48 = vperm.slane %v19476_v10, 4  ;;  %v7832_v28 = vrot.slane %v19510_v7, 7  ;;  %v13879_v59 = vor.u32 %v15311_v45, %v13876_v41  ;;  %v13836_v58 = vld [vmem:[#allocation6 + $0x161c] sm:$0xf0]  ;;  %v19557_v45 = vpop.f32.mrf.mxu3 }
 0x4a9   :  { %v19546_v5 = vmax.f32 %v7638_v38, 0.0  ;;  %v8089_v54 = vadd.f32 %v8069_v13, %v7964_v29  ;;  %v7969_v52 = vadd.f32 %v7949_v16, %v7924_v33  ;;  %v8074_v50 = vmul.f32 %v19517_v23, %v8049_v9 }
 0x4aa   :  { %9745 = vmatpush.bf16.msrb.mxu1 %v13563_v40  ;;  %v8194_v40 = vmul.f32 %v19543_v48, %v8169_v39  ;;  %v13543_v19 = vor.u32 %v15229_v22, %v13542_v49  ;;  %v8199_v10 = vmul.f32 %v19543_v48, %v8174_v1  ;;  %v19555_v15 = vperm.slane %v19552_v6, 3  ;;  %9688 = vmatpush.bf16.msra.mxu2 %v13879_v59  ;;  %v13502_v49 = vld [vmem:[#allocation6 + $0x1368] sm:$0xf]  ;;  %v15219_v22 = vld [vmem:[#allocation6 + $0x1378] sm:$0xf0] }
 0x4ab   :  { %v7717_v53 = vrot.slane %v19546_v5, 6  ;;  %v13859_v13 = vor.u32 %v15306_v26, %v13856_v36  ;;  %v7842_v33 = vrot.slane %v19546_v5, 7  ;;  %v19560_v41 = vpop.f32.mrf.mxu2  ;;  %v8094_v38 = vadd.f32 %v8074_v50, %v7969_v52  ;;  %v15296_v59 = vld [vmem:[#allocation6 + $0x15e4] sm:$0xf]  ;;  %v13816_v26 = vld [vmem:[#allocation6 + $0x15f4] sm:$0xf0]  ;;  %v19572_v52 = vpop.f32.mrf.mxu0 }
 0x4ac   :  { %v8214_v16 = vadd.f32 %v8194_v40, %v8089_v54  ;;  %v13523_v29 = vor.u32 %v15224_v18, %v13522_v0  ;;  %v8012_v9 = vrot.slane %v19546_v5, 1  ;;  %v13839_v1 = vor.u32 %v15301_v55, %v13836_v58 }
 0x4ad   :  { %v8219_v39 = vadd.f32 %v8199_v10, %v8094_v38  ;;  %v7708_v36 = vsel %vm219_vm0, %v7697_v27, %v7707_v25  ;;  %v7718_v51 = vsel %vm219_vm0, %v7707_v25, %v7717_v53  ;;  %v13503_v60 = vor.u32 %v15219_v22, %v13502_v49  ;;  %v13482_v53 = vld [vmem:[#allocation6 + $0x1340] sm:$0xf]  ;;  %v15214_v10 = vld [vmem:[#allocation6 + $0x1350] sm:$0xf0]  ;;  %v15291_v49 = vld [vmem:[#allocation6 + $0x15bc] sm:$0xf] }
 0x4ae   :  { %9746 = vmatpush.bf16.msrb.mxu1 %v13543_v19  ;;  %9689 = vmatpush.bf16.msra.mxu2 %v13859_v13  ;;  %v7759_v54 = vmul.f32 %v7708_v36, %v20434_v37  ;;  %v7764_v0 = vmul.f32 %v7718_v51, %v20338_v46  ;;  %v7833_v18 = vsel %vm369_vm1, %v7822_v56, %v7832_v28  ;;  %v20443_v58 = vrot.slane %v19510_v7, 1  ;;  %v13796_v22 = vld [vmem:[#allocation6 + $0x15cc] sm:$0xf0] }
 0x4af   :  { %v8247_v50 = vadd.f32 %v19555_v15, %v8214_v16  ;;  %v8252_v40 = vadd.f32 %v19555_v15, %v8219_v39  ;;  %v7843_v27 = vsel %vm369_vm1, %v7832_v28, %v7842_v33  ;;  %v7884_v25 = vmul.f32 %v7833_v18, %v20437_v17  ;;  %v19593_v39 = vpop.f32.mrf.mxu1 }
 0x4b0   :  { %v13819_v19 = vor.u32 %v15296_v59, %v13816_v26  ;;  %v7784_v51 = vmul.f32 %v19481_v11, %v7759_v54  ;;  %v7789_v31 = vmul.f32 %v19481_v11, %v7764_v0  ;;  %v7889_v56 = vmul.f32 %v7843_v27, %v20324_v62  ;;  %v19603_v0 = vpop.f32.mrf.mxu3 }
 0x4b1   :  { %v19582_v13 = vpack.c.bf16 %v8252_v40, %v8247_v50  ;;  %v7909_v55 = vmul.f32 %v19493_v34, %v7884_v25  ;;  %v8013_v28 = vsel %vm565_vm2, %v20443_v58, %v8012_v9  ;;  %v8039_v33 = vsel %vm565_vm2, %v8012_v9, 0.0  ;;  %v13462_v25 = vld [vmem:[#allocation6 + $0x1318] sm:$0xf] }
 0x4b2   :  { %9747 = vmatpush.bf16.msrb.mxu1 %v13523_v29  ;;  %9690 = vmatpush.bf16.msra.mxu2 %v13839_v1  ;;  %v7914_v38 = vmul.f32 %v19493_v34, %v7889_v56  ;;  %v8054_v16 = vmul.f32 %v8013_v28, %v16335_v20  ;;  %v8059_v11 = vmul.f32 %v8039_v33, %v16383_v47  ;;  %v8137_v29 = vrot.slane %v19546_v5, 2  ;;  %v15286_v56 = vld [vmem:[#allocation6 + $0x1594] sm:$0xf]  ;;  %v13442_v33 = vld [vmem:[#allocation6 + $0x12f0] sm:$0xf] }
 0x4b3   :  { %9677 = vmatmul.bf16.vlgmr.msra.gmra.mxu1 %v19275_v3  ;;  %9620 = vmatmul.bf16.vlgmr.msrb.gmra.mxu2 %v19582_v13  ;;  %v19596_v59 = vpop.f32.mrf.mxu2  ;;  %v13483_v26 = vor.u32 %v15214_v10, %v13482_v53  ;;  %v7929_v9 = vadd.f32 %v7909_v55, %v7784_v51  ;;  %v7954_v34 = vmul.f32 %v19505_v44, %v19510_v7  ;;  %v20444_v50 = vrot.slane %v19510_v7, 2  ;;  %v15209_v53 = vld [vmem:[#allocation6 + $0x1328] sm:$0xf0]  ;;  %v13776_v55 = vld [vmem:[#allocation6 + $0x15a4] sm:$0xf0] }
 0x4b4   :  { %v7934_v1 = vadd.f32 %v7914_v38, %v7789_v31  ;;  %v7959_v36 = vmul.f32 %v19505_v44, %v19546_v5  ;;  %v8079_v54 = vmul.f32 %v19517_v23, %v8054_v16  ;;  %v13799_v27 = vor.u32 %v15291_v49, %v13796_v22  ;;  %v15204_v38 = vld [vmem:[#allocation6 + $0x1300] sm:$0xf0]  ;;  %v14194_v16 = vld [vmem:[#allocation6 + $0x18d8] sm:$0xf]  ;;  %v15391_v49 = vld [vmem:[#allocation6 + $0x18dc] sm:$0xf] }
 0x4b5   :  { %v7974_v18 = vadd.f32 %v7954_v34, %v7929_v9  ;;  %v8138_v40 = vsel %vm716_vm3, %v20444_v50, %v8137_v29  ;;  %v8084_v51 = vmul.f32 %v19517_v23, %v8059_v11  ;;  %v13463_v28 = vor.u32 %v15209_v53, %v13462_v25  ;;  %v15393_v11 = vld [vmem:[#allocation6 + $0x18e8] sm:$0xf0]  ;;  %v14196_v22 = vld [vmem:[#allocation6 + $0x18ec] sm:$0xf0]  ;;  %v14176_v53 = vld [vmem:[#allocation6 + $0x18c4] sm:$0xf0] }
 0x4b6   :  { %9748 = vmatpush.bf16.msrb.mxu1 %v13503_v60  ;;  %v8164_v60 = vsel %vm716_vm3, %v8137_v29, 0.0  ;;  %9691 = vmatpush.bf16.msra.mxu2 %v13819_v19  ;;  %v7979_v10 = vadd.f32 %v7959_v36, %v7934_v1  ;;  %v8179_v44 = vmul.f32 %v8138_v40, %v16398_v30  ;;  %v19613_v29 = vpop.f32.mrf.mxu0  ;;  %v7508_v23 = vadd.f32 %v19557_v45, %v19522_v61  ;;  %v15281_v34 = vld [vmem:[#allocation6 + $0x156c] sm:$0xf]  ;;  %v13756_v1 = vld [vmem:[#allocation6 + $0x157c] sm:$0xf0] }
 0x4b7   :  { %v8184_v5 = vmul.f32 %v8164_v60, %v16403_v14  ;;  %v8099_v31 = vadd.f32 %v8079_v54, %v7974_v18  ;;  %v13779_v9 = vor.u32 %v15286_v56, %v13776_v55  ;;  %v14195_v36 = vor.u32 %v15393_v11, %v14194_v16  ;;  %v13422_v60 = vld [vmem:[#allocation6 + $0x12c8] sm:$0xf]  ;;  %v14174_v25 = vld [vmem:[#allocation6 + $0x18b0] sm:$0xf]  ;;  %v15388_v61 = vld [vmem:[#allocation6 + $0x18c0] sm:$0xf0] }
 0x4b8   :  { %v8104_v7 = vadd.f32 %v8084_v51, %v7979_v10  ;;  %v8204_v19 = vmul.f32 %v19543_v48, %v8179_v44  ;;  %v14199_v54 = vor.u32 %v15391_v49, %v14196_v22  ;;  %v13443_v40 = vor.u32 %v15204_v38, %v13442_v33  ;;  %v15386_v45 = vld [vmem:[#allocation6 + $0x18b4] sm:$0xf]  ;;  %v19620_v10 = vpop.f32.mrf.mxu1  ;;  %v15276_v33 = vld [vmem:[#allocation6 + $0x1544] sm:$0xf]  ;;  %v13736_v38 = vld [vmem:[#allocation6 + $0x1554] sm:$0xf0] }
 0x4b9   :  { %v8209_v58 = vmul.f32 %v19543_v48, %v8184_v5  ;;  %9631 = vmatpush.bf16.msrb.mxu3 %v14195_v36  ;;  %v15199_v48 = vld [vmem:[#allocation6 + $0x12d8] sm:$0xf0]  ;;  %v14175_v51 = vor.u32 %v15388_v61, %v14174_v25  ;;  %v14179_v44 = vor.u32 %v15386_v45, %v14176_v53  ;;  %v14202_v5 = vld [vmem:[#allocation6 + $0x18e0] sm:$0xf]  ;;  %v15394_v56 = vld [vmem:[#allocation6 + $0x18f0] sm:$0xf0]  ;;  %v13759_v55 = vor.u32 %v15281_v34, %v13756_v1 }
 0x4ba   :  { %9749 = vmatpush.bf16.msrb.mxu1 %v13483_v26  ;;  %9692 = vmatpush.bf16.msra.mxu2 %v13799_v27  ;;  %v8224_v50 = vadd.f32 %v8204_v19, %v8099_v31  ;;  %v7527_v31 = vadd.f32 %v19572_v52, %v7508_v23  ;;  %v14203_v16 = vor.u32 %v15394_v56, %v14202_v5  ;;  %v13722_v19 = vld [vmem:[#allocation6 + $0x1520] sm:$0xf]  ;;  %v15274_v11 = vld [vmem:[#allocation6 + $0x1530] sm:$0xf0]  ;;  %v15522_v23 = vld [vmem:[#allocation7 + $0xa] sm:$0x1f] }
 0x4bb   :  { %v8229_v26 = vadd.f32 %v8209_v58, %v8104_v7  ;;  %v19618_v18 = vpop.f32.mrf.mxu2  ;;  %9726 = vmatpush.bf16.msrb.mxu0 %v14199_v54  ;;  %v7512_v7 = vpop.f32.mrf.mxu3  ;;  %v20445_v49 = vld [vmem:[#allocation46_spill] sm:$0xff]  ;;  %v7510_v34 = vadd.f32 %v19603_v0, %v19560_v41  ;;  %v19637_v36 = vld [vmem:[%s20066_s2 + $0x98] sm:$0x1f]  ;;  %v13723_v54 = vor.u32 %v15274_v11, %v13722_v19  ;;  %v15383_v41 = vld [vmem:[#allocation6 + $0x1898] sm:$0xf0] }
 0x4bc   :  { %v8257_v58 = vadd.f32 %v19555_v15, %v8224_v50  ;;  %v7546_v52 = vadd.f32 %v19593_v39, %v7527_v31  ;;  %v15523_v50 = vld [vmem:[#allocation9 + $0xa] sm:$0x1f]  ;;  %v14154_v25 = vld [vmem:[#allocation6 + $0x1888] sm:$0xf]  ;;  %v15381_v0 = vld [vmem:[#allocation6 + $0x188c] sm:$0xf]  ;;  %v7513_v5 = vadd.f32 %v7512_v7, %v19596_v59 }
 0x4bd   :  { %v8262_v27 = vadd.f32 %v19555_v15, %v8229_v26  ;;  %9632 = vmatpush.bf16.msrb.mxu3 %v14175_v51  ;;  %v19629_v26 = vperm.slane %v15522_v23, 4  ;;  %v13739_v15 = vor.u32 %v15276_v33, %v13736_v38  ;;  %v14156_v45 = vld [vmem:[#allocation6 + $0x189c] sm:$0xf0]  ;;  %v14182_v53 = vld [vmem:[#allocation6 + $0x18b8] sm:$0xf] }
 0x4be   :  { %9750 = vmatpush.bf16.msrb.mxu1 %v13463_v28  ;;  %9693 = vmatpush.bf16.msra.mxu2 %v13779_v9  ;;  %v13423_v28 = vor.u32 %v15199_v48, %v13422_v60  ;;  %v7531_v9 = vpop.f32.mrf.mxu0  ;;  %v19642_v60 = vperm.slane %v19637_v36, 0  ;;  %v14155_v48 = vor.u32 %v15383_v41, %v14154_v25  ;;  %v14159_v56 = vor.u32 %v15381_v0, %v14156_v45  ;;  %v15376_v19 = vld [vmem:[#allocation6 + $0x1864] sm:$0xf]  ;;  %v14136_v11 = vld [vmem:[#allocation6 + $0x1874] sm:$0xf0] }
 0x4bf   :  { %9727 = vmatpush.bf16.msrb.mxu0 %v14179_v44  ;;  %v19626_v22 = vpack.c.bf16 %v8262_v27, %v8257_v58  ;;  %v15389_v27 = vld [vmem:[#allocation6 + $0x18c8] sm:$0xf0]  ;;  %v7529_v44 = vadd.f32 %v19613_v29, %v7510_v34  ;;  %v14139_v29 = vor.u32 %v15376_v19, %v14136_v11  ;;  %v15384_v59 = vld [vmem:[#allocation6 + $0x18a0] sm:$0xf0]  ;;  %v13682_v7 = vld [vmem:[#allocation6 + $0x14d0] sm:$0xf]  ;;  %v7532_v41 = vadd.f32 %v7531_v9, %v7513_v5 }
 0x4c0   :  { %v19645_v51 = vpop.f32.mrf.mxu1  ;;  %v14183_v31 = vor.u32 %v15389_v27, %v14182_v53  ;;  %v15269_v58 = vld [vmem:[#allocation6 + $0x1508] sm:$0xf0]  ;;  %v14114_v25 = vld [vmem:[#allocation6 + $0x1838] sm:$0xf]  ;;  %v15371_v53 = vld [vmem:[#allocation6 + $0x183c] sm:$0xf] }
 0x4c1   :  { %9633 = vmatpush.bf16.msrb.mxu3 %v14155_v48  ;;  %v7548_v0 = vadd.f32 %v19620_v10, %v7529_v44  ;;  %v15373_v45 = vld [vmem:[#allocation6 + $0x1848] sm:$0xf0]  ;;  %v14116_v27 = vld [vmem:[#allocation6 + $0x184c] sm:$0xf0]  ;;  %v15356_v10 = vld [vmem:[#allocation6 + $0x17c4] sm:$0xf] }
 0x4c2   :  { %9751 = vmatpush.bf16.msrb.mxu1 %v13443_v40  ;;  %9694 = vmatpush.bf16.msra.mxu2 %v13759_v55  ;;  %v19639_v40 = vperm.slane %v15523_v50, 4  ;;  %v13702_v55 = vld [vmem:[#allocation6 + $0x14f8] sm:$0xf]  ;;  %v15264_v50 = vld [vmem:[#allocation6 + $0x14e0] sm:$0xf0]  ;;  %v14115_v5 = vor.u32 %v15373_v45, %v14114_v25 }
 0x4c3   :  { %9682 = vmatmul.bf16.gmra.mxu1 %v20445_v49  ;;  %9625 = vmatmul.bf16.gmra.mxu2 %v19626_v22  ;;  %v7564_v1 = vpop.f32.mrf.mxu2  ;;  %v13703_v38 = vor.u32 %v15269_v58, %v13702_v55  ;;  %v13683_v48 = vor.u32 %v15264_v50, %v13682_v7  ;;  %v14142_v58 = vld [vmem:[#allocation6 + $0x1868] sm:$0xf]  ;;  %v14122_v45 = vld [vmem:[#allocation6 + $0x1840] sm:$0xf]  ;;  %v14056_v55 = vld [vmem:[#allocation6 + $0x17d4] sm:$0xf0] }
 0x4c4   :  { %v7565_v39 = vadd.f32 %v7564_v1, %v7546_v52  ;;  %v7514_v52 = vpop.f32.mrf.mxu3  ;;  %9728 = vmatpush.bf16.msrb.mxu0 %v14159_v56  ;;  %v14096_v50 = vld [vmem:[#allocation6 + $0x1824] sm:$0xf0] }
 0x4c5   :  { %v7515_v34 = vadd.f32 %v7514_v52, %v19618_v18 }
 0x4c6   :  { %9752 = vmatpush.bf16.msrb.mxu1 %v13423_v28  ;;  %v7591_v61 = vmul.f32 %v19629_v26, %v7565_v39  ;;  %9695 = vmatpush.bf16.msra.mxu2 %v13739_v15  ;;  %v14134_v28 = vld [vmem:[#allocation6 + $0x1860] sm:$0xf]  ;;  %v14162_v15 = vld [vmem:[#allocation6 + $0x1890] sm:$0xf]  ;;  %v7533_v9 = vpop.f32.mrf.mxu0 }
 0x4c7   :  { %v14163_v39 = vor.u32 %v15384_v59, %v14162_v15  ;;  %v14094_v15 = vld [vmem:[#allocation6 + $0x1810] sm:$0xf] }
 0x4c8   :  { %v7624_v33 = vadd.f32 %v19639_v40, %v7591_v61  ;;  %9729 = vmatpush.bf16.msrb.mxu0 %v14139_v29 }
 0x4ca   :  { %9821 = vmatpush.bf16.msra.mxu1 %v14203_v16  ;;  %9764 = vmatpush.bf16.msrb.mxu2 %v13723_v54  ;;  %v15378_v16 = vld [vmem:[#allocation6 + $0x1870] sm:$0xf0]  ;;  %v19651_v1 = vmax.f32 %v7624_v33, 0.0  ;;  %v19654_v54 = vperm.slane %v19637_v36, 1  ;;  %v15379_v33 = vld [vmem:[#allocation6 + $0x1878] sm:$0xf0] }
 0x4cb   :  { %v14135_v23 = vor.u32 %v15378_v16, %v14134_v28  ;;  %v7566_v61 = vpop.f32.mrf.mxu2  ;;  %v14119_v28 = vor.u32 %v15371_v53, %v14116_v27  ;;  %v7534_v16 = vadd.f32 %v7533_v9, %v7515_v34  ;;  %v14143_v52 = vor.u32 %v15379_v33, %v14142_v58  ;;  %v15366_v34 = vld [vmem:[#allocation6 + $0x1814] sm:$0xf]  ;;  %v13642_v27 = vld [vmem:[#allocation6 + $0x1480] sm:$0xf]  ;;  %v7552_v58 = vpop.f32.mrf.mxu1  ;;  %v15363_v33 = vld [vmem:[#allocation6 + $0x17f8] sm:$0xf0] }
 0x4cc   :  { %v7690_v56 = vrot.slane %v19651_v1, 6  ;;  %v20233_v18 = vrot.slane %v19651_v1, 7  ;;  %v7567_v44 = vadd.f32 %v7566_v61, %v7548_v0  ;;  %v14099_v61 = vor.u32 %v15366_v34, %v14096_v50  ;;  %v15374_v53 = vld [vmem:[#allocation6 + $0x1850] sm:$0xf0]  ;;  %v13622_v34 = vld [vmem:[#allocation6 + $0x1458] sm:$0xf] }
 0x4cd   :  { %9634 = vmatpush.bf16.msrb.mxu3 %v14135_v23  ;;  %v15259_v23 = vld [vmem:[#allocation6 + $0x14b8] sm:$0xf0]  ;;  %9730 = vmatpush.bf16.msrb.mxu0 %v14119_v28  ;;  %v15249_v50 = vld [vmem:[#allocation6 + $0x1468] sm:$0xf0] }
 0x4ce   :  { %9822 = vmatpush.bf16.msra.mxu1 %v14183_v31  ;;  %9765 = vmatpush.bf16.msrb.mxu2 %v13703_v38  ;;  %v19660_v31 = vperm.slane %v19637_v36, 2  ;;  %v13662_v38 = vld [vmem:[#allocation6 + $0x14a8] sm:$0xf]  ;;  %v7745_v19 = vsel %vm219_vm0, 0.0, %v7690_v56  ;;  %v7870_v11 = vsel %vm369_vm1, 0.0, %v20233_v18  ;;  %v7596_v7 = vmul.f32 %v19629_v26, %v7567_v44 }
 0x4cf   :  { %v7750_v59 = vmul.f32 %v7745_v19, %v20414_v42  ;;  %v7875_v29 = vmul.f32 %v7870_v11, %v20415_v35  ;;  %v13663_v25 = vor.u32 %v15259_v23, %v13662_v38  ;;  %v14074_v44 = vld [vmem:[#allocation6 + $0x17e8] sm:$0xf]  ;;  %v19678_v38 = vadd.f32 %v7552_v58, %v7534_v16  ;;  %v15361_v11 = vld [vmem:[#allocation6 + $0x17ec] sm:$0xf]  ;;  %v14076_v23 = vld [vmem:[#allocation6 + $0x17fc] sm:$0xf0] }
 0x4d0   :  { %v7629_v35 = vadd.f32 %v19639_v40, %v7596_v7  ;;  %v14123_v19 = vor.u32 %v15374_v53, %v14122_v45  ;;  %v14054_v45 = vld [vmem:[#allocation6 + $0x17c0] sm:$0xf]  ;;  %v15358_v53 = vld [vmem:[#allocation6 + $0x17d0] sm:$0xf0] }
 0x4d1   :  { %9635 = vmatpush.bf16.msrb.mxu3 %v14115_v5  ;;  %v7775_v9 = vmul.f32 %v19642_v60, %v7750_v59  ;;  %v7900_v42 = vmul.f32 %v19654_v54, %v7875_v29  ;;  %v7551_v5 = vadd.f32 %v19645_v51, %v7532_v41  ;;  %v7945_v29 = vmul.f32 %v19660_v31, %v19651_v1 }
 0x4d2   :  { %9823 = vmatpush.bf16.msra.mxu1 %v14163_v39  ;;  %9766 = vmatpush.bf16.msrb.mxu2 %v13683_v48  ;;  %v15368_v39 = vld [vmem:[#allocation6 + $0x1820] sm:$0xf0]  ;;  %v15254_v48 = vld [vmem:[#allocation6 + $0x1490] sm:$0xf0]  ;;  %v19682_v7 = vmax.f32 %v7629_v35, 0.0  ;;  %v19686_v51 = vperm.slane %v19637_v36, 3 }
 0x4d3   :  { %v14095_v0 = vor.u32 %v15368_v39, %v14094_v15  ;;  %9753 = vmatmul.bf16.vlgmr.msrb.gmra.mxu1 %v20438_v24  ;;  %v14102_v15 = vld [vmem:[#allocation6 + $0x1818] sm:$0xf]  ;;  %v7920_v59 = vadd.f32 %v7900_v42, %v7775_v9  ;;  %9696 = vmatmul.bf16.vlgmr.msra.gmra.mxu2 %v19434_v32  ;;  %v7569_v28 = vpop.f32.mrf.mxu2  ;;  %v15369_v39 = vld [vmem:[#allocation6 + $0x1828] sm:$0xf0]  ;;  %v13643_v16 = vor.u32 %v15254_v48, %v13642_v27  ;;  %v14082_v27 = vld [vmem:[#allocation6 + $0x17f0] sm:$0xf] }
 0x4d4   :  { %v7570_v41 = vadd.f32 %v7569_v28, %v7551_v5  ;;  %v7699_v58 = vrot.slane %v19682_v7, 6  ;;  %v7824_v9 = vrot.slane %v19682_v7, 7  ;;  %9731 = vmatpush.bf16.msrb.mxu0 %v14099_v61  ;;  %v14079_v42 = vor.u32 %v15361_v11, %v14076_v23  ;;  %v15364_v48 = vld [vmem:[#allocation6 + $0x1800] sm:$0xf0]  ;;  %v14036_v28 = vld [vmem:[#allocation6 + $0x17ac] sm:$0xf0] }
 0x4d5   :  { %9636 = vmatpush.bf16.msrb.mxu3 %v14095_v0  ;;  %v14103_v35 = vor.u32 %v15369_v39, %v14102_v15  ;;  %v19690_v18 = vadd.f32 %v7945_v29, %v7920_v59  ;;  %v7994_v5 = vrot.slane %v19682_v7, 1  ;;  %v20446_v61 = vrot.slane %v19651_v1, 7  ;;  %v14042_v39 = vld [vmem:[#allocation6 + $0x17a0] sm:$0xf]  ;;  %v15244_v32 = vld [vmem:[#allocation6 + $0x1440] sm:$0xf0] }
 0x4d6   :  { %9824 = vmatpush.bf16.msra.mxu1 %v14143_v52  ;;  %9767 = vmatpush.bf16.msrb.mxu2 %v13663_v25  ;;  %v14075_v52 = vor.u32 %v15363_v33, %v14074_v44  ;;  %v7601_v0 = vmul.f32 %v19629_v26, %v7570_v41  ;;  %v7700_v44 = vsel %vm219_vm0, %v7690_v56, %v7699_v58  ;;  %v13602_v25 = vld [vmem:[#allocation6 + $0x1430] sm:$0xf] }
 0x4d7   :  { %v7825_v33 = vsel %vm369_vm1, %v20446_v61, %v7824_v9  ;;  %v13623_v11 = vor.u32 %v15249_v50, %v13622_v34  ;;  %v14055_v23 = vor.u32 %v15358_v53, %v14054_v45  ;;  %v7755_v15 = vmul.f32 %v7700_v44, %v20417_v63 }
 0x4d8   :  { %v7880_v59 = vmul.f32 %v7825_v33, %v20418_v21  ;;  %v7634_v29 = vadd.f32 %v19639_v40, %v7601_v0  ;;  %9732 = vmatpush.bf16.msrb.mxu0 %v14079_v42  ;;  %v14059_v41 = vor.u32 %v15356_v10, %v14056_v55  ;;  %v14083_v56 = vor.u32 %v15364_v48, %v14082_v27 }
 0x4d9   :  { %9637 = vmatpush.bf16.msrb.mxu3 %v14075_v52  ;;  %v20447_v61 = vrot.slane %v19651_v1, 1  ;;  %v20448_v63 = vrot.slane %v19682_v7, 2  ;;  %v20449_v21 = vrot.slane %v19651_v1, 2  ;;  %v7780_v45 = vmul.f32 %v19642_v60, %v7755_v15 }
 0x4da   :  { %9825 = vmatpush.bf16.msra.mxu1 %v14123_v19  ;;  %9768 = vmatpush.bf16.msrb.mxu2 %v13643_v16  ;;  %v15351_v19 = vld [vmem:[#allocation6 + $0x179c] sm:$0xf]  ;;  %v15354_v16 = vld [vmem:[#allocation6 + $0x17b0] sm:$0xf0]  ;;  %v19712_v52 = vmax.f32 %v7634_v29, 0.0  ;;  %v7905_v55 = vmul.f32 %v19654_v54, %v7880_v59  ;;  %v19719_v0 = vperm.slane %v19637_v36, 4  ;;  %v13603_v33 = vor.u32 %v15244_v32, %v13602_v25 }
 0x4db   :  { %v7995_v34 = vsel %vm565_vm2, %v20447_v61, %v7994_v5  ;;  %v8120_v50 = vsel %vm716_vm3, %v20449_v21, %v20448_v63  ;;  %v7571_v53 = vpop.f32.mrf.mxu2  ;;  %v14039_v27 = vor.u32 %v15351_v19, %v14036_v28  ;;  %v14043_v1 = vor.u32 %v15354_v16, %v14042_v39  ;;  %v14062_v59 = vld [vmem:[#allocation6 + $0x17c8] sm:$0xf]  ;;  %v15359_v29 = vld [vmem:[#allocation6 + $0x17d8] sm:$0xf0]  ;;  %v15346_v61 = vld [vmem:[#allocation6 + $0x1774] sm:$0xf] }
 0x4dc   :  { %v8045_v10 = vmul.f32 %v7995_v34, %v20419_v2  ;;  %v8170_v42 = vmul.f32 %v8120_v50, %v20428_v57  ;;  %v7709_v48 = vrot.slane %v19712_v52, 6  ;;  %v7834_v44 = vrot.slane %v19712_v52, 7  ;;  %9733 = vmatpush.bf16.msrb.mxu0 %v14059_v41  ;;  %v14016_v34 = vld [vmem:[#allocation6 + $0x1784] sm:$0xf0] }
 0x4dd   :  { %9638 = vmatpush.bf16.msrb.mxu3 %v14055_v23  ;;  %v7950_v2 = vmul.f32 %v19660_v31, %v19682_v7  ;;  %v8129_v15 = vrot.slane %v19712_v52, 2  ;;  %v7572_v57 = vadd.f32 %v7571_v53, %v19678_v38  ;;  %v7925_v38 = vadd.f32 %v7905_v55, %v7780_v45  ;;  %v14044_v45 = vld [vmem:[#allocation6 + $0x17b4] sm:$0xf0] }
 0x4de   :  { %9826 = vmatpush.bf16.msra.mxu1 %v14103_v35  ;;  %v8004_v35 = vrot.slane %v19712_v52, 1  ;;  %9769 = vmatpush.bf16.msrb.mxu2 %v13623_v11  ;;  %v8070_v36 = vmul.f32 %v19686_v51, %v8045_v10  ;;  %v7710_v19 = vsel %vm219_vm0, %v7699_v58, %v7709_v48  ;;  %v7835_v32 = vsel %vm369_vm1, %v7824_v9, %v7834_v44  ;;  %v13582_v11 = vld [vmem:[#allocation6 + $0x1408] sm:$0xf]  ;;  %v15239_v58 = vld [vmem:[#allocation6 + $0x1418] sm:$0xf0] }
 0x4df   :  { %v7760_v23 = vmul.f32 %v7710_v19, %v20434_v37  ;;  %v7885_v28 = vmul.f32 %v7835_v32, %v20437_v17  ;;  %v7606_v39 = vmul.f32 %v19629_v26, %v7572_v57  ;;  %v8195_v41 = vmul.f32 %v19719_v0, %v8170_v42  ;;  %v15349_v26 = vld [vmem:[#allocation6 + $0x1788] sm:$0xf0]  ;;  %v15232_v42 = vld [vmem:[#allocation6 + $0x13e4] sm:$0xf]  ;;  %v14002_v19 = vld [vmem:[#allocation6 + $0x1750] sm:$0xf] }
 0x4e0   :  { %v8005_v25 = vsel %vm565_vm2, %v7994_v5, %v8004_v35  ;;  %9802 = vmatpush.bf16.msra.mxu0 %v14043_v1  ;;  %v8090_v5 = vadd.f32 %v8070_v36, %v19690_v18  ;;  %v14063_v17 = vor.u32 %v15359_v29, %v14062_v59  ;;  %v15352_v18 = vld [vmem:[#allocation6 + $0x17a4] sm:$0xf]  ;;  %v7970_v55 = vadd.f32 %v7950_v2, %v7925_v38  ;;  %v13996_v36 = vld [vmem:[#allocation6 + $0x175c] sm:$0xf0] }
 0x4e1   :  { %9707 = vmatpush.bf16.msra.mxu3 %v14039_v27  ;;  %v8050_v9 = vmul.f32 %v8005_v25, %v20431_v4  ;;  %v7785_v21 = vmul.f32 %v19642_v60, %v7760_v23  ;;  %v7910_v50 = vmul.f32 %v19654_v54, %v7885_v28  ;;  %v7639_v16 = vadd.f32 %v19639_v40, %v7606_v39  ;;  %v13564_v27 = vld [vmem:[#allocation6 + $0x13f4] sm:$0xf0]  ;;  %v15344_v32 = vld [vmem:[#allocation6 + $0x1760] sm:$0xf0]  ;;  %v15347_v25 = vld [vmem:[#allocation6 + $0x177c] sm:$0xf] }
 0x4e2   :  { %9827 = vmatpush.bf16.msra.mxu1 %v14083_v56  ;;  %9770 = vmatpush.bf16.msrb.mxu2 %v13603_v33  ;;  %v20450_v56 = vmov %v20448_v63  ;;  %v14022_v63 = vld [vmem:[#allocation6 + $0x1778] sm:$0xf]  ;;  %v13583_v10 = vor.u32 %v15239_v58, %v13582_v11  ;;  %v14019_v53 = vor.u32 %v15346_v61, %v14016_v34  ;;  %v8215_v33 = vadd.f32 %v8195_v41, %v8090_v5  ;;  %v14024_v28 = vld [vmem:[#allocation6 + $0x178c] sm:$0xf0]  ;;  %v15227_v39 = vld [vmem:[#allocation6 + $0x13bc] sm:$0xf] }
 0x4e3   :  { %v8130_v37 = vsel %vm716_vm3, %v20450_v56, %v8129_v15  ;;  %9758 = vmatmul.bf16.gmra.mxu1 %v20442_v12  ;;  %v8075_v7 = vmul.f32 %v19686_v51, %v8050_v9  ;;  %v19755_v1 = vmax.f32 %v7639_v16, 0.0  ;;  %9701 = vmatmul.bf16.gmra.mxu2 %v19487_v43  ;;  %v19759_v40 = vperm.slane %v19552_v6, 4  ;;  %v13544_v9 = vld [vmem:[#allocation6 + $0x13cc] sm:$0xf0]  ;;  %v15336_v5 = vld [vmem:[#allocation6 + $0x1724] sm:$0xf] }
 0x4e4   :  { %v8175_v4 = vmul.f32 %v8130_v37, %v20433_v8  ;;  %v14023_v57 = vor.u32 %v15349_v26, %v14022_v63  ;;  %v15341_v8 = vld [vmem:[#allocation6 + $0x174c] sm:$0xf]  ;;  %v14047_v29 = vor.u32 %v15352_v18, %v14044_v45  ;;  %v7930_v38 = vadd.f32 %v7910_v50, %v7785_v21  ;;  %v13976_v26 = vld [vmem:[#allocation6 + $0x1734] sm:$0xf0]  ;;  %v13982_v21 = vld [vmem:[#allocation6 + $0x1728] sm:$0xf] }
 0x4e5   :  { %v8095_v59 = vadd.f32 %v8075_v7, %v7970_v55  ;;  %9708 = vmatpush.bf16.msra.mxu3 %v14019_v53  ;;  %v7955_v11 = vmul.f32 %v19660_v31, %v19712_v52  ;;  %v7719_v23 = vrot.slane %v19755_v1, 6  ;;  %v7844_v6 = vrot.slane %v19755_v1, 7  ;;  %v15339_v50 = vld [vmem:[#allocation6 + $0x1738] sm:$0xf0]  ;;  %v15342_v55 = vld [vmem:[#allocation6 + $0x1754] sm:$0xf] }
 0x4e6   :  { %9828 = vmatpush.bf16.msra.mxu1 %v14063_v17  ;;  %v8200_v2 = vmul.f32 %v19719_v0, %v8175_v4  ;;  %9771 = vmatpush.bf16.msrb.mxu2 %v13583_v10  ;;  %v8014_v41 = vrot.slane %v19755_v1, 1  ;;  %v8139_v58 = vrot.slane %v19755_v1, 2  ;;  %v13567_v34 = vor.u32 %v15232_v42, %v13564_v27  ;;  %v15222_v42 = vld [vmem:[#allocation6 + $0x1394] sm:$0xf]  ;;  %v13524_v27 = vld [vmem:[#allocation6 + $0x13a4] sm:$0xf0] }
 0x4e7   :  { %9803 = vmatpush.bf16.msra.mxu0 %v14023_v57  ;;  %v7720_v56 = vsel %vm219_vm0, %v7709_v48, %v7719_v23  ;;  %v7845_v37 = vsel %vm369_vm1, %v7834_v44, %v7844_v6  ;;  %v13999_v17 = vor.u32 %v15341_v8, %v13996_v36  ;;  %v14003_v63 = vor.u32 %v15344_v32, %v14002_v19  ;;  %v14004_v48 = vld [vmem:[#allocation6 + $0x1764] sm:$0xf0]  ;;  %v13956_v19 = vld [vmem:[#allocation6 + $0x170c] sm:$0xf0]  ;;  %v13962_v32 = vld [vmem:[#allocation6 + $0x1700] sm:$0xf] }
 0x4e8   :  { %v8220_v61 = vadd.f32 %v8200_v2, %v8095_v59  ;;  %v7765_v16 = vmul.f32 %v7720_v56, %v20338_v46  ;;  %v7890_v4 = vmul.f32 %v7845_v37, %v20324_v62  ;;  %v8040_v18 = vsel %vm565_vm2, %v8014_v41, 0.0  ;;  %v15334_v23 = vld [vmem:[#allocation6 + $0x1710] sm:$0xf0]  ;;  %v13984_v6 = vld [vmem:[#allocation6 + $0x173c] sm:$0xf0] }
 0x4e9   :  { %v8248_v45 = vadd.f32 %v19759_v40, %v8215_v33  ;;  %v7975_v7 = vadd.f32 %v7955_v11, %v7930_v38  ;;  %v8165_v10 = vsel %vm716_vm3, %v8139_v58, 0.0  ;;  %9709 = vmatpush.bf16.msra.mxu3 %v13999_v17  ;;  %v14027_v53 = vor.u32 %v15347_v25, %v14024_v28  ;;  %v15217_v28 = vld [vmem:[#allocation6 + $0x136c] sm:$0xf]  ;;  %v15332_v37 = vld [vmem:[#allocation6 + $0x1704] sm:$0xf] }
 0x4ea   :  { %9897 = vmatpush.bf16.msrb.mxu1 %v14047_v29  ;;  %9840 = vmatpush.bf16.msra.mxu2 %v13567_v34  ;;  %v8253_v44 = vadd.f32 %v19759_v40, %v8220_v61  ;;  %v8060_v46 = vmul.f32 %v8040_v18, %v16383_v47  ;;  %v13547_v62 = vor.u32 %v15227_v39, %v13544_v9  ;;  %v15331_v29 = vld [vmem:[#allocation6 + $0x16fc] sm:$0xf]  ;;  %v13504_v39 = vld [vmem:[#allocation6 + $0x137c] sm:$0xf0]  ;;  %v15329_v56 = vld [vmem:[#allocation6 + $0x16e8] sm:$0xf0] }
 0x4eb   :  { %9804 = vmatpush.bf16.msra.mxu0 %v14003_v63  ;;  %v13979_v57 = vor.u32 %v15336_v5, %v13976_v26  ;;  %v13983_v8 = vor.u32 %v15339_v50, %v13982_v21  ;;  %v14007_v33 = vor.u32 %v15342_v55, %v14004_v48  ;;  %v7790_v59 = vmul.f32 %v19642_v60, %v7765_v16  ;;  %v15337_v60 = vld [vmem:[#allocation6 + $0x172c] sm:$0xf]  ;;  %v13936_v5 = vld [vmem:[#allocation6 + $0x16e4] sm:$0xf0]  ;;  %v13964_v17 = vld [vmem:[#allocation6 + $0x1714] sm:$0xf0] }
 0x4ec   :  { %v19781_v36 = vpack.c.bf16 %v8253_v44, %v8248_v45  ;;  %v7915_v2 = vmul.f32 %v19654_v54, %v7890_v4  ;;  %v7960_v25 = vmul.f32 %v19660_v31, %v19755_v1  ;;  %v13527_v38 = vor.u32 %v15222_v42, %v13524_v27  ;;  %v15212_v21 = vld [vmem:[#allocation6 + $0x1344] sm:$0xf]  ;;  %v13484_v50 = vld [vmem:[#allocation6 + $0x1354] sm:$0xf0]  ;;  %v15321_v4 = vld [vmem:[#allocation6 + $0x16ac] sm:$0xf] }
 0x4ed   :  { %v8015_v47 = vsel %vm565_vm2, %v8004_v35, %v8014_v41  ;;  %v8140_v11 = vsel %vm716_vm3, %v8129_v15, %v8139_v58  ;;  %v8185_v1 = vmul.f32 %v8165_v10, %v16403_v14  ;;  %9710 = vmatpush.bf16.msra.mxu3 %v13979_v57  ;;  %v8085_v52 = vmul.f32 %v19686_v51, %v8060_v46  ;;  %v15326_v41 = vld [vmem:[#allocation6 + $0x16d4] sm:$0xf]  ;;  %v13916_v48 = vld [vmem:[#allocation6 + $0x16bc] sm:$0xf0]  ;;  %v13922_v10 = vld [vmem:[#allocation6 + $0x16b0] sm:$0xf] }
 0x4ee   :  { %9898 = vmatpush.bf16.msrb.mxu1 %v14027_v53  ;;  %9841 = vmatpush.bf16.msra.mxu2 %v13547_v62  ;;  %v7935_v54 = vadd.f32 %v7915_v2, %v7790_v59  ;;  %v8055_v31 = vmul.f32 %v8015_v47, %v16335_v20  ;;  %v8180_v35 = vmul.f32 %v8140_v11, %v16398_v30  ;;  %v13942_v20 = vld [vmem:[#allocation6 + $0x16d8] sm:$0xf]  ;;  %v15327_v53 = vld [vmem:[#allocation6 + $0x16dc] sm:$0xf]  ;;  %v13944_v42 = vld [vmem:[#allocation6 + $0x16ec] sm:$0xf0] }
 0x4ef   :  { %9639 = vmatmul.bf16.vlgmr.msrb.gmra.mxu3 %v19781_v36  ;;  %9734 = vmatmul.bf16.vlgmr.msrb.gmra.mxu0 %v19781_v36  ;;  %v13959_v15 = vor.u32 %v15331_v29, %v13956_v19  ;;  %v13963_v34 = vor.u32 %v15334_v23, %v13962_v32  ;;  %v13987_v9 = vor.u32 %v15337_v60, %v13984_v6  ;;  %v15207_v46 = vld [vmem:[#allocation6 + $0x131c] sm:$0xf]  ;;  %v13464_v62 = vld [vmem:[#allocation6 + $0x132c] sm:$0xf0]  ;;  %v13896_v59 = vld [vmem:[#allocation6 + $0x1694] sm:$0xf0] }
 0x4f0   :  { %9805 = vmatpush.bf16.msra.mxu0 %v13983_v8  ;;  %v7980_v58 = vadd.f32 %v7960_v25, %v7935_v54  ;;  %v8080_v61 = vmul.f32 %v19686_v51, %v8055_v31  ;;  %v13507_v14 = vor.u32 %v15217_v28, %v13504_v39  ;;  %v8210_v30 = vmul.f32 %v19719_v0, %v8185_v1  ;;  %v15319_v19 = vld [vmem:[#allocation6 + $0x1698] sm:$0xf0]  ;;  %v15322_v32 = vld [vmem:[#allocation6 + $0x16b4] sm:$0xf]  ;;  %v13924_v25 = vld [vmem:[#allocation6 + $0x16c4] sm:$0xf0] }
 0x4f1   :  { %9711 = vmatpush.bf16.msra.mxu3 %v13959_v15  ;;  %v13939_v51 = vor.u32 %v15326_v41, %v13936_v5  ;;  %v13943_v16 = vor.u32 %v15329_v56, %v13942_v20  ;;  %v8205_v18 = vmul.f32 %v19719_v0, %v8180_v35  ;;  %v13967_v55 = vor.u32 %v15332_v37, %v13964_v17  ;;  %v13902_v0 = vld [vmem:[#allocation6 + $0x1688] sm:$0xf]  ;;  %v15202_v47 = vld [vmem:[#allocation6 + $0x12f4] sm:$0xf]  ;;  %v13882_v11 = vld [vmem:[#allocation6 + $0x1660] sm:$0xf] }
 0x4f2   :  { %9899 = vmatpush.bf16.msrb.mxu1 %v14007_v33  ;;  %9842 = vmatpush.bf16.msra.mxu2 %v13527_v38  ;;  %v8100_v63 = vadd.f32 %v8080_v61, %v7975_v7  ;;  %v8105_v26 = vadd.f32 %v8085_v52, %v7980_v58  ;;  %v15324_v7 = vld [vmem:[#allocation6 + $0x16c0] sm:$0xf0]  ;;  %v13487_v44 = vor.u32 %v15212_v21, %v13484_v50  ;;  %v15314_v23 = vld [vmem:[#allocation6 + $0x1670] sm:$0xf0]  ;;  %v13444_v6 = vld [vmem:[#allocation6 + $0x1304] sm:$0xf0] }
 0x4f3   :  { %9829 = vmatmul.bf16.vlgmr.msra.gmra.mxu1 %v19781_v36  ;;  %9772 = vmatmul.bf16.vlgmr.msrb.gmra.mxu2 %v19275_v3  ;;  %v13919_v57 = vor.u32 %v15321_v4, %v13916_v48  ;;  %v13923_v8 = vor.u32 %v15324_v7, %v13922_v10  ;;  %v15316_v33 = vld [vmem:[#allocation6 + $0x1684] sm:$0xf]  ;;  %v13947_v29 = vor.u32 %v15327_v53, %v13944_v42  ;;  %v13884_v31 = vld [vmem:[#allocation6 + $0x1674] sm:$0xf0]  ;;  %v15317_v15 = vld [vmem:[#allocation6 + $0x168c] sm:$0xf] }
 0x4f4   :  { %9806 = vmatpush.bf16.msra.mxu0 %v13963_v34  ;;  %v8230_v45 = vadd.f32 %v8210_v30, %v8105_v26  ;;  %v8225_v27 = vadd.f32 %v8205_v18, %v8100_v63  ;;  %v13467_v38 = vor.u32 %v15207_v46, %v13464_v62  ;;  %v15312_v54 = vld [vmem:[#allocation6 + $0x1664] sm:$0xf]  ;;  %v13899_v1 = vor.u32 %v15316_v33, %v13896_v59  ;;  %v13904_v61 = vld [vmem:[#allocation6 + $0x169c] sm:$0xf0]  ;;  %v15197_v34 = vld [vmem:[#allocation6 + $0x12cc] sm:$0xf] }
 0x4f5   :  { %9712 = vmatpush.bf16.msra.mxu3 %v13939_v51  ;;  %v13903_v28 = vor.u32 %v15319_v19, %v13902_v0  ;;  %v13927_v52 = vor.u32 %v15322_v32, %v13924_v25  ;;  %v13883_v35 = vor.u32 %v15314_v23, %v13882_v11  ;;  %v13447_v41 = vor.u32 %v15202_v47, %v13444_v6  ;;  %v15309_v5 = vld [vmem:[#allocation6 + $0x1648] sm:$0xf0]  ;;  %v15307_v20 = vld [vmem:[#allocation6 + $0x163c] sm:$0xf]  ;;  %v13864_v56 = vld [vmem:[#allocation6 + $0x164c] sm:$0xf0] }
 0x4f6   :  { %9900 = vmatpush.bf16.msrb.mxu1 %v13987_v9  ;;  %9843 = vmatpush.bf16.msra.mxu2 %v13507_v14  ;;  %v8263_v2 = vadd.f32 %v19759_v40, %v8230_v45  ;;  %v8258_v60 = vadd.f32 %v19759_v40, %v8225_v27  ;;  %v13887_v58 = vor.u32 %v15312_v54, %v13884_v31  ;;  %v13424_v9 = vld [vmem:[#allocation6 + $0x12dc] sm:$0xf0]  ;;  %v13862_v40 = vld [vmem:[#allocation6 + $0x1638] sm:$0xf]  ;;  %v13890_v14 = vld [vmem:[#allocation6 + $0x1668] sm:$0xf] }
 0x4f7   :  { %v15315_v37 = vld [vmem:[#allocation6 + $0x1678] sm:$0xf0]  ;;  %v13907_v17 = vor.u32 %v15317_v15, %v13904_v61  ;;  %v15392_v63 = vld [vmem:[#allocation6 + $0x18e4] sm:$0xf]  ;;  %v14204_v26 = vld [vmem:[#allocation6 + $0x18f4] sm:$0xf0]  ;;  %v13427_v30 = vor.u32 %v15197_v34, %v13424_v9  ;;  %v13863_v21 = vor.u32 %v15309_v5, %v13862_v40  ;;  %v13867_v50 = vor.u32 %v15307_v20, %v13864_v56 }
 0x4f8   :  { %9807 = vmatpush.bf16.msra.mxu0 %v13943_v16  ;;  %v19806_v39 = vpack.c.bf16 %v8263_v2, %v8258_v60  ;;  %v13891_v51 = vor.u32 %v15315_v37, %v13890_v14  ;;  %v13842_v16 = vld [vmem:[#allocation6 + $0x1610] sm:$0xf]  ;;  %v15304_v4 = vld [vmem:[#allocation6 + $0x1620] sm:$0xf0]  ;;  %v15302_v18 = vld [vmem:[#allocation6 + $0x1614] sm:$0xf]  ;;  %v14207_v45 = vor.u32 %v15392_v63, %v14204_v26 }
 0x4f9   :  { %9713 = vmatpush.bf16.msra.mxu3 %v13919_v57  ;;  %v13870_v48 = vld [vmem:[#allocation6 + $0x1640] sm:$0xf]  ;;  %v15310_v10 = vld [vmem:[#allocation6 + $0x1650] sm:$0xf0]  ;;  %v15387_v7 = vld [vmem:[#allocation6 + $0x18bc] sm:$0xf]  ;;  %v13843_v53 = vor.u32 %v15304_v4, %v13842_v16 }
 0x4fa   :  { %9901 = vmatpush.bf16.msrb.mxu1 %v13967_v55  ;;  %9844 = vmatpush.bf16.msra.mxu2 %v13487_v44  ;;  %v13844_v55 = vld [vmem:[#allocation6 + $0x1624] sm:$0xf0]  ;;  %v14184_v44 = vld [vmem:[#allocation6 + $0x18cc] sm:$0xf0]  ;;  %v13871_v27 = vor.u32 %v15310_v10, %v13870_v48  ;;  %v15299_v62 = vld [vmem:[#allocation6 + $0x15f8] sm:$0xf0] }
 0x4fb   :  { %v13847_v42 = vor.u32 %v15302_v18, %v13844_v55  ;;  %v13822_v46 = vld [vmem:[#allocation6 + $0x15e8] sm:$0xf]  ;;  %v14187_v57 = vor.u32 %v15387_v7, %v14184_v44  ;;  %v13824_v33 = vld [vmem:[#allocation6 + $0x15fc] sm:$0xf0]  ;;  %v13850_v59 = vld [vmem:[#allocation6 + $0x1618] sm:$0xf] }
 0x4fc   :  { %9808 = vmatpush.bf16.msra.mxu0 %v13923_v8  ;;  %v15297_v8 = vld [vmem:[#allocation6 + $0x15ec] sm:$0xf]  ;;  %v13823_v2 = vor.u32 %v15299_v62, %v13822_v46  ;;  %v14164_v19 = vld [vmem:[#allocation6 + $0x18a4] sm:$0xf0]  ;;  %v13802_v32 = vld [vmem:[#allocation6 + $0x15c0] sm:$0xf] }
 0x4fd   :  { %9714 = vmatpush.bf16.msra.mxu3 %v13899_v1  ;;  %v15305_v0 = vld [vmem:[#allocation6 + $0x1628] sm:$0xf0]  ;;  %v15294_v25 = vld [vmem:[#allocation6 + $0x15d0] sm:$0xf0]  ;;  %v15292_v11 = vld [vmem:[#allocation6 + $0x15c4] sm:$0xf] }
 0x4fe   :  { %9902 = vmatpush.bf16.msrb.mxu1 %v13947_v29  ;;  %9845 = vmatpush.bf16.msra.mxu2 %v13467_v38  ;;  %v15382_v29 = vld [vmem:[#allocation6 + $0x1894] sm:$0xf]  ;;  %v13827_v38 = vor.u32 %v15297_v8, %v13824_v33  ;;  %v13851_v47 = vor.u32 %v15305_v0, %v13850_v59  ;;  %v13804_v60 = vld [vmem:[#allocation6 + $0x15d4] sm:$0xf0]  ;;  %v13830_v6 = vld [vmem:[#allocation6 + $0x15f0] sm:$0xf]  ;;  %v13803_v31 = vor.u32 %v15294_v25, %v13802_v32 }
 0x4ff   :  { %9644 = vmatmul.bf16.gmra.mxu3 %v19806_v39  ;;  %9739 = vmatmul.bf16.gmra.mxu0 %v19806_v39  ;;  %v14167_v23 = vor.u32 %v15382_v29, %v14164_v19  ;;  %v15300_v54 = vld [vmem:[#allocation6 + $0x1600] sm:$0xf0]  ;;  %v15377_v1 = vld [vmem:[#allocation6 + $0x186c] sm:$0xf]  ;;  %v13807_v15 = vor.u32 %v15292_v11, %v13804_v60  ;;  %v13784_v61 = vld [vmem:[#allocation6 + $0x15ac] sm:$0xf0] }
 0x500   :  { %9809 = vmatpush.bf16.msra.mxu0 %v13903_v28  ;;  %v14144_v28 = vld [vmem:[#allocation6 + $0x187c] sm:$0xf0]  ;;  %v13810_v34 = vld [vmem:[#allocation6 + $0x15c8] sm:$0xf]  ;;  %v15295_v9 = vld [vmem:[#allocation6 + $0x15d8] sm:$0xf0] }
 0x501   :  { %9783 = vmatpush.bf16.msrb.mxu3 %v13883_v35  ;;  %v15289_v35 = vld [vmem:[#allocation6 + $0x15a8] sm:$0xf0]  ;;  %v14147_v40 = vor.u32 %v15377_v1, %v14144_v28  ;;  %v15372_v20 = vld [vmem:[#allocation6 + $0x1844] sm:$0xf]  ;;  %v14124_v56 = vld [vmem:[#allocation6 + $0x1854] sm:$0xf0]  ;;  %v13811_v63 = vor.u32 %v15295_v9, %v13810_v34 }
 0x502   :  { %9903 = vmatpush.bf16.msrb.mxu1 %v13927_v52  ;;  %9846 = vmatpush.bf16.msra.mxu2 %v13447_v41  ;;  %v13782_v52 = vld [vmem:[#allocation6 + $0x1598] sm:$0xf]  ;;  %v13831_v41 = vor.u32 %v15300_v54, %v13830_v6  ;;  %v13762_v14 = vld [vmem:[#allocation6 + $0x1570] sm:$0xf]  ;;  %v15284_v37 = vld [vmem:[#allocation6 + $0x1580] sm:$0xf0] }
 0x503   :  { %9834 = vmatmul.bf16.gmra.mxu1 %v19806_v39  ;;  %9777 = vmatmul.bf16.gmra.mxu2 %v20445_v49  ;;  %v13783_v5 = vor.u32 %v15289_v35, %v13782_v52  ;;  %v15282_v26 = vld [vmem:[#allocation6 + $0x1574] sm:$0xf]  ;;  %v13763_v16 = vor.u32 %v15284_v37, %v13762_v14  ;;  %v15367_v4 = vld [vmem:[#allocation6 + $0x181c] sm:$0xf]  ;;  %v14104_v18 = vld [vmem:[#allocation6 + $0x182c] sm:$0xf0] }
 0x504   :  { %9878 = vmatpush.bf16.msrb.mxu0 %v13887_v58  ;;  %v15287_v58 = vld [vmem:[#allocation6 + $0x159c] sm:$0xf]  ;;  %v15277_v7 = vld [vmem:[#allocation6 + $0x154c] sm:$0xf]  ;;  %v13744_v44 = vld [vmem:[#allocation6 + $0x155c] sm:$0xf0]  ;;  %v14107_v46 = vor.u32 %v15367_v4, %v14104_v18 }
 0x505   :  { %9784 = vmatpush.bf16.msrb.mxu3 %v13863_v21  ;;  %v13790_v21 = vld [vmem:[#allocation6 + $0x15a0] sm:$0xf]  ;;  %v15279_v55 = vld [vmem:[#allocation6 + $0x1558] sm:$0xf0]  ;;  %v13730_v8 = vld [vmem:[#allocation6 + $0x1528] sm:$0xf] }
 0x506   :  { %9904 = vmatpush.bf16.msrb.mxu1 %v13907_v17  ;;  %9847 = vmatpush.bf16.msra.mxu2 %v13427_v30  ;;  %v13787_v17 = vor.u32 %v15287_v58, %v13784_v61  ;;  %v13764_v30 = vld [vmem:[#allocation6 + $0x1584] sm:$0xf0]  ;;  %v15275_v33 = vld [vmem:[#allocation6 + $0x1538] sm:$0xf0]  ;;  %v15362_v59 = vld [vmem:[#allocation6 + $0x17f4] sm:$0xf] }
 0x507   :  { %v13767_v48 = vor.u32 %v15282_v26, %v13764_v30  ;;  %v14084_v0 = vld [vmem:[#allocation6 + $0x1804] sm:$0xf0]  ;;  %v13731_v32 = vor.u32 %v15275_v33, %v13730_v8  ;;  %v13750_v25 = vld [vmem:[#allocation6 + $0x1550] sm:$0xf]  ;;  %v15357_v11 = vld [vmem:[#allocation6 + $0x17cc] sm:$0xf]  ;;  %v19822_v8 = vpop.f32.mrf.mxu0 }
 0x508   :  { %9879 = vmatpush.bf16.msrb.mxu0 %v13867_v50  ;;  %v15290_v50 = vld [vmem:[#allocation6 + $0x15b0] sm:$0xf0]  ;;  %v13704_v60 = vld [vmem:[#allocation6 + $0x150c] sm:$0xf0]  ;;  %v14064_v6 = vld [vmem:[#allocation6 + $0x17dc] sm:$0xf0] }
 0x509   :  { %9785 = vmatpush.bf16.msrb.mxu3 %v13843_v53  ;;  %v13791_v10 = vor.u32 %v15290_v50, %v13790_v21  ;;  %v13770_v53 = vld [vmem:[#allocation6 + $0x1578] sm:$0xf]  ;;  %v13710_v54 = vld [vmem:[#allocation6 + $0x1500] sm:$0xf]  ;;  %v14050_v28 = vld [vmem:[#allocation6 + $0x17a8] sm:$0xf] }
 0x50a   :  { %9973 = vmatpush.bf16.msra.mxu1 %v13891_v51  ;;  %9916 = vmatpush.bf16.msrb.mxu2 %v14207_v45  ;;  %v14127_v51 = vor.u32 %v15372_v20, %v14124_v56  ;;  %v13742_v45 = vld [vmem:[#allocation6 + $0x1548] sm:$0xf]  ;;  %v15355_v52 = vld [vmem:[#allocation6 + $0x17b8] sm:$0xf0]  ;;  %v15262_v58 = vld [vmem:[#allocation6 + $0x14d4] sm:$0xf] }
 0x50b   :  { %v13743_v62 = vor.u32 %v15279_v55, %v13742_v45  ;;  %v13684_v61 = vld [vmem:[#allocation6 + $0x14e4] sm:$0xf0]  ;;  %v14051_v34 = vor.u32 %v15355_v52, %v14050_v28  ;;  %v13690_v9 = vld [vmem:[#allocation6 + $0x14d8] sm:$0xf]  ;;  %v15350_v20 = vld [vmem:[#allocation6 + $0x1790] sm:$0xf0] }
 0x50c   :  { %9880 = vmatpush.bf16.msrb.mxu0 %v13847_v42  ;;  %v15285_v42 = vld [vmem:[#allocation6 + $0x1588] sm:$0xf0]  ;;  %v13687_v56 = vor.u32 %v15262_v58, %v13684_v61  ;;  %v13670_v26 = vld [vmem:[#allocation6 + $0x14b0] sm:$0xf]  ;;  %v15260_v30 = vld [vmem:[#allocation6 + $0x14c0] sm:$0xf0] }
 0x50d   :  { %9786 = vmatpush.bf16.msrb.mxu3 %v13823_v2  ;;  %v13747_v2 = vor.u32 %v15277_v7, %v13744_v44  ;;  %v13771_v29 = vor.u32 %v15285_v42, %v13770_v53  ;;  %v15257_v37 = vld [vmem:[#allocation6 + $0x14ac] sm:$0xf]  ;;  %v14010_v50 = vld [vmem:[#allocation6 + $0x1758] sm:$0xf]  ;;  %v15252_v4 = vld [vmem:[#allocation6 + $0x1484] sm:$0xf] }
 0x50e   :  { %9974 = vmatpush.bf16.msra.mxu1 %v13871_v27  ;;  %9917 = vmatpush.bf16.msrb.mxu2 %v14187_v57  ;;  %v15272_v27 = vld [vmem:[#allocation6 + $0x1524] sm:$0xf]  ;;  %v13724_v57 = vld [vmem:[#allocation6 + $0x1534] sm:$0xf0]  ;;  %v13650_v45 = vld [vmem:[#allocation6 + $0x1488] sm:$0xf] }
 0x50f   :  { %9715 = vmatmul.bf16.vlgmr.msra.gmra.mxu3 %v19582_v13  ;;  %9810 = vmatmul.bf16.vlgmr.msra.gmra.mxu0 %v19582_v13  ;;  %v13727_v19 = vor.u32 %v15272_v27, %v13724_v57  ;;  %v13644_v18 = vld [vmem:[#allocation6 + $0x1494] sm:$0xf0]  ;;  %v15255_v55 = vld [vmem:[#allocation6 + $0x1498] sm:$0xf0]  ;;  %v13990_v7 = vld [vmem:[#allocation6 + $0x1730] sm:$0xf]  ;;  %v19824_v33 = vpop.f32.mrf.mxu1 }
 0x510   :  { %9881 = vmatpush.bf16.msrb.mxu0 %v13827_v38  ;;  %v15280_v38 = vld [vmem:[#allocation6 + $0x1560] sm:$0xf0]  ;;  %v13651_v53 = vor.u32 %v15255_v55, %v13650_v45  ;;  %v15247_v42 = vld [vmem:[#allocation6 + $0x145c] sm:$0xf]  ;;  %v13624_v27 = vld [vmem:[#allocation6 + $0x146c] sm:$0xf0] }
 0x511   :  { %9787 = vmatpush.bf16.msrb.mxu3 %v13803_v31  ;;  %v15270_v31 = vld [vmem:[#allocation6 + $0x1510] sm:$0xf0]  ;;  %v13751_v1 = vor.u32 %v15280_v38, %v13750_v25  ;;  %v15340_v44 = vld [vmem:[#allocation6 + $0x1740] sm:$0xf0]  ;;  %v13604_v25 = vld [vmem:[#allocation6 + $0x1444] sm:$0xf0] }
 0x512   :  { %9975 = vmatpush.bf16.msra.mxu1 %v13851_v47  ;;  %9918 = vmatpush.bf16.msrb.mxu2 %v14167_v23  ;;  %v14087_v47 = vor.u32 %v15362_v59, %v14084_v0  ;;  %v15267_v23 = vld [vmem:[#allocation6 + $0x14fc] sm:$0xf]  ;;  %v15250_v57 = vld [vmem:[#allocation6 + $0x1470] sm:$0xf0]  ;;  %v13991_v59 = vor.u32 %v15340_v44, %v13990_v7  ;;  %v13627_v0 = vor.u32 %v15247_v42, %v13624_v27  ;;  %v13610_v38 = vld [vmem:[#allocation6 + $0x1438] sm:$0xf] }
 0x513   :  { %9905 = vmatmul.bf16.vlgmr.msrb.gmra.mxu1 %v19582_v13  ;;  %9848 = vmatmul.bf16.vlgmr.msra.gmra.mxu2 %v20438_v24  ;;  %v13707_v35 = vor.u32 %v15267_v23, %v13704_v60  ;;  %v13950_v60 = vld [vmem:[#allocation6 + $0x16e0] sm:$0xf]  ;;  %v13590_v28 = vld [vmem:[#allocation6 + $0x1410] sm:$0xf]  ;;  %v15240_v52 = vld [vmem:[#allocation6 + $0x1420] sm:$0xf0] }
 0x514   :  { %9882 = vmatpush.bf16.msrb.mxu0 %v13807_v15  ;;  %v14067_v15 = vor.u32 %v15357_v11, %v14064_v6  ;;  %v15330_v6 = vld [vmem:[#allocation6 + $0x16f0] sm:$0xf0]  ;;  %v15220_v45 = vld [vmem:[#allocation6 + $0x1380] sm:$0xf0]  ;;  %v15411_v7 = vld [vmem:[#allocation10 + $0x74] sm:$0xf0] }
 0x515   :  { %9788 = vmatpush.bf16.msrb.mxu3 %v13783_v5  ;;  %v14030_v5 = vld [vmem:[#allocation6 + $0x1780] sm:$0xf]  ;;  %v13951_v58 = vor.u32 %v15330_v6, %v13950_v60  ;;  %v13490_v42 = vld [vmem:[#allocation6 + $0x1348] sm:$0xf]  ;;  %v15215_v27 = vld [vmem:[#allocation6 + $0x1358] sm:$0xf0] }
 0x516   :  { %9976 = vmatpush.bf16.msra.mxu1 %v13831_v41  ;;  %9919 = vmatpush.bf16.msrb.mxu2 %v14147_v40  ;;  %v13711_v41 = vor.u32 %v15270_v31, %v13710_v54  ;;  %v15265_v40 = vld [vmem:[#allocation6 + $0x14e8] sm:$0xf0] }
 0x517   :  { %v13691_v14 = vor.u32 %v15265_v40, %v13690_v9  ;;  %v15237_v31 = vld [vmem:[#allocation6 + $0x140c] sm:$0xf]  ;;  %v19830_v40 = vpop.f32.mrf.mxu0 }
 0x518   :  { %9883 = vmatpush.bf16.msrb.mxu0 %v13787_v17  ;;  %v13664_v17 = vld [vmem:[#allocation6 + $0x14bc] sm:$0xf0]  ;;  %v15325_v9 = vld [vmem:[#allocation6 + $0x16c8] sm:$0xf0] }
 0x519   :  { %9789 = vmatpush.bf16.msrb.mxu3 %v13763_v16  ;;  %v13667_v21 = vor.u32 %v15257_v37, %v13664_v17  ;;  %v13671_v16 = vor.u32 %v15260_v30, %v13670_v26  ;;  %v15230_v37 = vld [vmem:[#allocation6 + $0x13d0] sm:$0xf0]  ;;  %v15320_v26 = vld [vmem:[#allocation6 + $0x16a0] sm:$0xf0]  ;;  %v15205_v60 = vld [vmem:[#allocation6 + $0x1308] sm:$0xf0] }
 0x51a   :  { %9977 = vmatpush.bf16.msra.mxu1 %v13811_v63  ;;  %9920 = vmatpush.bf16.msrb.mxu2 %v14127_v51  ;;  %v14031_v63 = vor.u32 %v15350_v20, %v14030_v5  ;;  %v15345_v51 = vld [vmem:[#allocation6 + $0x1768] sm:$0xf0]  ;;  %v19832_v5 = vpop.f32.mrf.mxu1  ;;  %v13591_v20 = vor.u32 %v15240_v52, %v13590_v28  ;;  %v14210_v28 = vld [vmem:[#allocation6 + $0x18e8] sm:$0xf]  ;;  %v15395_v52 = vld [vmem:[#allocation6 + $0x18f8] sm:$0xf0] }
 0x51c   :  { %9884 = vmatpush.bf16.msrb.mxu0 %v13767_v48  ;;  %v14011_v48 = vor.u32 %v15345_v51, %v14010_v50  ;;  %v15225_v50 = vld [vmem:[#allocation6 + $0x13a8] sm:$0xf0] }
 0x51d   :  { %9790 = vmatpush.bf16.msrb.mxu3 %v13743_v62  ;;  %v13630_v62 = vld [vmem:[#allocation6 + $0x1460] sm:$0xf] }
 0x51e   :  { %9978 = vmatpush.bf16.msra.mxu1 %v13791_v10  ;;  %9921 = vmatpush.bf16.msrb.mxu2 %v14107_v46  ;;  %v13647_v10 = vor.u32 %v15252_v4, %v13644_v18  ;;  %v20451_v46 = vld [vmem:[#allocation41_spill] sm:$0xff] }
 0x51f   :  { %9720 = vmatmul.bf16.gmra.mxu3 %v19626_v22  ;;  %9815 = vmatmul.bf16.gmra.mxu0 %v19626_v22  ;;  %v13510_v18 = vld [vmem:[#allocation6 + $0x1370] sm:$0xf]  ;;  %v19839_v55 = vpop.f32.mrf.mxu0 }
 0x520   :  { %9885 = vmatpush.bf16.msrb.mxu0 %v13747_v2  ;;  %v13970_v2 = vld [vmem:[#allocation6 + $0x1708] sm:$0xf]  ;;  %v13511_v44 = vor.u32 %v15220_v45, %v13510_v18 }
 0x521   :  { %9859 = vmatpush.bf16.msra.mxu3 %v13727_v19  ;;  %v13631_v19 = vor.u32 %v15250_v57, %v13630_v62  ;;  %v15409_v62 = vld [vmem:[#allocation10 + $0x64] sm:$0xf0]  ;;  %v13491_v57 = vor.u32 %v15215_v27, %v13490_v42  ;;  %v14230_v45 = vld [vmem:[#allocation10 + $0x20] sm:$0xf]  ;;  %v15380_v42 = vld [vmem:[#allocation6 + $0x1880] sm:$0xf0] }
 0x522   :  { %9979 = vmatpush.bf16.msra.mxu1 %v13771_v29  ;;  %9922 = vmatpush.bf16.msrb.mxu2 %v14087_v47  ;;  %v15335_v29 = vld [vmem:[#allocation6 + $0x1718] sm:$0xf0]  ;;  %v15245_v47 = vld [vmem:[#allocation6 + $0x1448] sm:$0xf0]  ;;  %v14222_v27 = vld [vmem:[#allocation10 + $0x10] sm:$0xf] }
 0x523   :  { %9910 = vmatmul.bf16.gmra.mxu1 %v19626_v22  ;;  %9853 = vmatmul.bf16.gmra.mxu2 %v20442_v12  ;;  %v13971_v11 = vor.u32 %v15335_v29, %v13970_v2  ;;  %v13611_v54 = vor.u32 %v15245_v47, %v13610_v38  ;;  %v15210_v2 = vld [vmem:[#allocation6 + $0x1330] sm:$0xf0]  ;;  %v19846_v29 = vpop.f32.mrf.mxu3 }
 0x524   :  { %9954 = vmatpush.bf16.msra.mxu0 %v13731_v32  ;;  %v15242_v32 = vld [vmem:[#allocation6 + $0x1434] sm:$0xf] }
 0x525   :  { %9860 = vmatpush.bf16.msra.mxu3 %v13707_v35  ;;  %v13607_v23 = vor.u32 %v15242_v32, %v13604_v25  ;;  %v13570_v35 = vld [vmem:[#allocation6 + $0x13e8] sm:$0xf]  ;;  %v15407_v32 = vld [vmem:[#allocation10 + $0x54] sm:$0xf0] }
 0x526   :  { %9980 = vmatpush.bf16.msra.mxu1 %v13751_v1  ;;  %9923 = vmatpush.bf16.msrb.mxu2 %v14067_v15  ;;  %v13584_v1 = vld [vmem:[#allocation6 + $0x141c] sm:$0xf0]  ;;  %v15235_v15 = vld [vmem:[#allocation6 + $0x13f8] sm:$0xf0] }
 0x527   :  { %v13587_v61 = vor.u32 %v15237_v31, %v13584_v1  ;;  %v19848_v38 = vpop.f32.mrf.mxu0  ;;  %v13430_v31 = vld [vmem:[#allocation6 + $0x12d0] sm:$0xf]  ;;  %v15200_v1 = vld [vmem:[#allocation6 + $0x12e0] sm:$0xf0] }
 0x528   :  { %9955 = vmatpush.bf16.msra.mxu0 %v13711_v41 }
 0x529   :  { %9861 = vmatpush.bf16.msra.mxu3 %v13687_v56  ;;  %v13571_v56 = vor.u32 %v15235_v15, %v13570_v35  ;;  %v13431_v15 = vor.u32 %v15200_v1, %v13430_v31 }
 0x52a   :  { %9992 = vmatpush.bf16.msra.mxu2 %v14051_v34  ;;  %v13930_v34 = vld [vmem:[#allocation6 + $0x16b8] sm:$0xf] }
 0x52b   :  { %v13931_v17 = vor.u32 %v15325_v9, %v13930_v34  ;;  %v19857_v35 = vpop.f32.mrf.mxu3  ;;  %v14246_v34 = vld [vmem:[#allocation10 + $0x40] sm:$0xf]  ;;  %v15405_v9 = vld [vmem:[#allocation10 + $0x44] sm:$0xf0] }
 0x52c   :  { %9956 = vmatpush.bf16.msra.mxu0 %v13691_v14  ;;  %v13550_v14 = vld [vmem:[#allocation6 + $0x13c0] sm:$0xf] }
 0x52d   :  { %9862 = vmatpush.bf16.msra.mxu3 %v13667_v21  ;;  %v13551_v30 = vor.u32 %v15230_v37, %v13550_v14  ;;  %v13530_v21 = vld [vmem:[#allocation6 + $0x1398] sm:$0xf]  ;;  %v14247_v14 = vor.u32 %v15405_v9, %v14246_v34  ;;  %v15390_v37 = vld [vmem:[#allocation6 + $0x18d0] sm:$0xf0]  ;;  %v9584_v34 = vadd.f32 %v19822_v8, %v19846_v29  ;;  %v14326_v9 = vld [vmem:[#allocation10 + $0xe0] sm:$0xf]  ;;  %v9586_v29 = vadd.f32 %v19830_v40, %v19857_v35 }
 0x52e   :  { %9993 = vmatpush.bf16.msra.mxu2 %v14031_v63  ;;  %v13910_v63 = vld [vmem:[#allocation6 + $0x1690] sm:$0xf]  ;;  %v13531_v4 = vor.u32 %v15225_v50, %v13530_v21  ;;  %v15385_v21 = vld [vmem:[#allocation6 + $0x18a8] sm:$0xf0] }
 0x52f   :  { %9791 = vmatmul.bf16.vlgmr.msrb.gmra.mxu3 %v20451_v46  ;;  %9886 = vmatmul.bf16.vlgmr.msrb.gmra.mxu0 %v20451_v46 }
 0x530   :  { %9957 = vmatpush.bf16.msra.mxu0 %v13671_v16  ;;  %v13911_v16 = vor.u32 %v15320_v26, %v13910_v63  ;;  %v15403_v63 = vld [vmem:[#allocation10 + $0x34] sm:$0xf0] }
 0x531   :  { %9863 = vmatpush.bf16.msra.mxu3 %v13647_v10  ;;  %v14270_v10 = vld [vmem:[#allocation10 + $0x70] sm:$0xf] }
 0x532   :  { %9994 = vmatpush.bf16.msra.mxu2 %v14011_v48  ;;  %v19841_v48 = vpop.f32.mrf.mxu1 }
 0x533   :  { %9981 = vmatmul.bf16.vlgmr.msra.gmra.mxu1 %v20451_v46  ;;  %9924 = vmatmul.bf16.vlgmr.msrb.gmra.mxu2 %v19781_v36  ;;  %v19867_v50 = vpop.f32.mrf.mxu3 }
 0x534   :  { %9958 = vmatpush.bf16.msra.mxu0 %v13651_v53  ;;  %v14271_v53 = vor.u32 %v15411_v7, %v14270_v10  ;;  %v15401_v10 = vld [vmem:[#allocation10 + $0x24] sm:$0xf0] }
 0x535   :  { %9864 = vmatpush.bf16.msra.mxu3 %v13627_v0  ;;  %v13470_v0 = vld [vmem:[#allocation6 + $0x1320] sm:$0xf]  ;;  %v14150_v7 = vld [vmem:[#allocation6 + $0x1870] sm:$0xf] }
 0x536   :  { %9995 = vmatpush.bf16.msra.mxu2 %v13991_v59  ;;  %v19828_v41 = vpop.f32.mrf.mxu2 }
 0x538   :  { %9959 = vmatpush.bf16.msra.mxu0 %v13631_v19  ;;  %v14254_v19 = vld [vmem:[#allocation10 + $0x50] sm:$0xf] }
 0x539   :  { %9865 = vmatpush.bf16.msra.mxu3 %v13607_v23  ;;  %v14255_v25 = vor.u32 %v15407_v32, %v14254_v19  ;;  %v13450_v23 = vld [vmem:[#allocation6 + $0x12f8] sm:$0xf]  ;;  %v15397_v19 = vld [vmem:[#allocation10 + $0x4] sm:$0xf0]  ;;  %v14110_v32 = vld [vmem:[#allocation6 + $0x1820] sm:$0xf] }
 0x53a   :  { %9996 = vmatpush.bf16.msra.mxu2 %v13971_v11  ;;  %v19850_v47 = vpop.f32.mrf.mxu1  ;;  %v13471_v11 = vor.u32 %v15210_v2, %v13470_v0  ;;  %v14214_v2 = vld [vmem:[#allocation10] sm:$0xf] }
 0x53c   :  { %9960 = vmatpush.bf16.msra.mxu0 %v13611_v54  ;;  %v13451_v54 = vor.u32 %v15205_v60, %v13450_v23  ;;  %v15370_v23 = vld [vmem:[#allocation6 + $0x1830] sm:$0xf0]  ;;  %v14334_v60 = vld [vmem:[#allocation10 + $0xf0] sm:$0xf] }
 0x53d   :  { %9866 = vmatpush.bf16.msra.mxu3 %v13587_v61  ;;  %v19859_v61 = vpop.f32.mrf.mxu0  ;;  %v14111_v1 = vor.u32 %v15370_v23, %v14110_v32 }
 0x53e   :  { %9997 = vmatpush.bf16.msra.mxu2 %v13951_v58  ;;  %v19836_v51 = vpop.f32.mrf.mxu2  ;;  %v14211_v58 = vor.u32 %v15395_v52, %v14210_v28  ;;  %v14090_v52 = vld [vmem:[#allocation6 + $0x17f8] sm:$0xf] }
 0x53f   :  { %9796 = vmatmul.bf16.gmra.mxu3 %v19487_v43  ;;  %9891 = vmatmul.bf16.gmra.mxu0 %v19487_v43 }
 0x540   :  { %9961 = vmatpush.bf16.msra.mxu0 %v13591_v20  ;;  %v14190_v20 = vld [vmem:[#allocation6 + $0x18c0] sm:$0xf] }
 0x541   :  { %9935 = vmatpush.bf16.msrb.mxu3 %v13571_v56 }
 0x542   :  { %9998 = vmatpush.bf16.msra.mxu2 %v13931_v17  ;;  %v14238_v17 = vld [vmem:[#allocation10 + $0x30] sm:$0xf] }
 0x543   :  { %9986 = vmatmul.bf16.gmra.mxu1 %v19487_v43  ;;  %9929 = vmatmul.bf16.gmra.mxu2 %v19806_v39  ;;  %v14262_v43 = vld [vmem:[#allocation10 + $0x60] sm:$0xf]  ;;  %v14239_v26 = vor.u32 %v15403_v63, %v14238_v17  ;;  %v9603_v17 = vadd.f32 %v19824_v33, %v9584_v34  ;;  %v15360_v63 = vld [vmem:[#allocation6 + $0x17e0] sm:$0xf0] }
 0x544   :  { %10612 = vmatpush.bf16.msrb.mxu0 %v14271_v53  ;;  %v14263_v59 = vor.u32 %v15409_v62, %v14262_v43  ;;  %v14231_v53 = vor.u32 %v15401_v10, %v14230_v45  ;;  %v15399_v43 = vld [vmem:[#allocation10 + $0x14] sm:$0xf0]  ;;  %v14130_v62 = vld [vmem:[#allocation6 + $0x1848] sm:$0xf] }
 0x545   :  { %9936 = vmatpush.bf16.msrb.mxu3 %v13551_v30  ;;  %v14170_v30 = vld [vmem:[#allocation6 + $0x1898] sm:$0xf]  ;;  %v9622_v45 = vadd.f32 %v19828_v41, %v9603_v17  ;;  %v15415_v17 = vld [vmem:[#allocation10 + $0x94] sm:$0xf0] }
 0x546   :  { %9999 = vmatpush.bf16.msra.mxu2 %v13911_v16  ;;  %v19844_v46 = vpop.f32.mrf.mxu2  ;;  %v14171_v16 = vor.u32 %v15385_v21, %v14170_v30  ;;  %v15423_v30 = vld [vmem:[#allocation10 + $0xd4] sm:$0xf0] }
 0x548   :  { %10613 = vmatpush.bf16.msrb.mxu0 %v14263_v59  ;;  %v14223_v59 = vor.u32 %v15399_v43, %v14222_v27  ;;  %v9605_v27 = vadd.f32 %v19832_v5, %v9586_v29 }
 0x549   :  { %9937 = vmatpush.bf16.msrb.mxu3 %v13531_v4  ;;  %v19869_v4 = vpop.f32.mrf.mxu0 }
 0x54a   :  { %v9624_v43 = vadd.f32 %v19836_v51, %v9605_v27 }
 0x54c   :  { %10614 = vmatpush.bf16.msrb.mxu0 %v14255_v25  ;;  %v19876_v25 = vpop.f32.mrf.mxu3 }
 0x54d   :  { %9938 = vmatpush.bf16.msrb.mxu3 %v13511_v44 }
 0x54e   :  { %v19854_v6 = vpop.f32.mrf.mxu2 }
 0x54f   :  { %9867 = vmatmul.bf16.vlgmr.msra.gmra.mxu3 %v19275_v3  ;;  %9962 = vmatmul.bf16.vlgmr.msra.gmra.mxu0 %v19275_v3  ;;  %v19861_v3 = vpop.f32.mrf.mxu1 }
 0x550   :  { %10615 = vmatpush.bf16.msrb.mxu0 %v14247_v14  ;;  %v14070_v14 = vld [vmem:[#allocation6 + $0x17d0] sm:$0xf] }
 0x551   :  { %9939 = vmatpush.bf16.msrb.mxu3 %v13491_v57  ;;  %v15375_v57 = vld [vmem:[#allocation6 + $0x1858] sm:$0xf0]  ;;  %v19878_v31 = vpop.f32.mrf.mxu0 }
 0x552   :  { %v14131_v0 = vor.u32 %v15375_v57, %v14130_v62  ;;  %v14310_v57 = vld [vmem:[#allocation10 + $0xc0] sm:$0xf] }
 0x553   :  { %10000 = vmatmul.bf16.vlgmr.msra.gmra.mxu2 %v19582_v13  ;;  %v14191_v13 = vor.u32 %v15390_v37, %v14190_v20  ;;  %v15425_v37 = vld [vmem:[#allocation10 + $0xe4] sm:$0xf0] }
 0x554   :  { %10616 = vmatpush.bf16.msrb.mxu0 %v14239_v26  ;;  %v14318_v26 = vld [vmem:[#allocation10 + $0xd0] sm:$0xf] }
 0x555   :  { %9940 = vmatpush.bf16.msrb.mxu3 %v13471_v11  ;;  %v14215_v11 = vor.u32 %v15397_v19, %v14214_v2  ;;  %v14319_v8 = vor.u32 %v15423_v30, %v14318_v26  ;;  %v15419_v19 = vld [vmem:[#allocation10 + $0xb4] sm:$0xf0] }
 0x556   :  { %v19863_v56 = vpop.f32.mrf.mxu2 }
 0x557   :  { %v19871_v18 = vpop.f32.mrf.mxu1 }
 0x558   :  { %10617 = vmatpush.bf16.msrb.mxu0 %v14231_v53 }
 0x559   :  { %9941 = vmatpush.bf16.msrb.mxu3 %v13451_v54  ;;  %v15427_v54 = vld [vmem:[#allocation10 + $0xf4] sm:$0xf0]  ;;  %v19894_v33 = vpop.f32.mrf.mxu0 }
 0x55a   :  { %v14335_v28 = vor.u32 %v15427_v54, %v14334_v60  ;;  %v9589_v60 = vadd.f32 %v19839_v55, %v19867_v50  ;;  %v9591_v55 = vadd.f32 %v19848_v38, %v19876_v25  ;;  %v15410_v25 = vld [vmem:[#allocation10 + $0x74] sm:$0xf] }
 0x55c   :  { %10618 = vmatpush.bf16.msrb.mxu0 %v14223_v59  ;;  %10631 = vmatpush.bf16.msrb.mxu1 %v14335_v28  ;;  %v15421_v59 = vld [vmem:[#allocation10 + $0xc4] sm:$0xf0] }
 0x55d   :  { %9942 = vmatpush.bf16.msrb.mxu3 %v13431_v15  ;;  %v15365_v15 = vld [vmem:[#allocation6 + $0x1808] sm:$0xf0]  ;;  %v14311_v2 = vor.u32 %v15421_v59, %v14310_v57  ;;  %v15443_v57 = vld [vmem:[#allocation10 + $0x174] sm:$0xf0] }
 0x55e   :  { %v19873_v44 = vpop.f32.mrf.mxu2  ;;  %v14091_v20 = vor.u32 %v15365_v15, %v14090_v52  ;;  %v15408_v59 = vld [vmem:[#allocation10 + $0x64] sm:$0xf] }
 0x55f   :  { %9872 = vmatmul.bf16.gmra.mxu3 %v20445_v49  ;;  %9967 = vmatmul.bf16.gmra.mxu0 %v20445_v49  ;;  %v14151_v49 = vor.u32 %v15380_v42, %v14150_v7  ;;  %v19898_v42 = vld [vmem:[#allocation9 + $0xf] sm:$0x1f] }
 0x560   :  { %10619 = vmatpush.bf16.msrb.mxu0 %v14215_v11  ;;  %v10066_v40 = vperm.slane %v19898_v42, 0 }
 0x561   :  { %10011 = vmatpush.bf16.msra.mxu3 %v14211_v58 }
 0x563   :  { %10005 = vmatmul.bf16.gmra.mxu2 %v19626_v22  ;;  %v19880_v22 = vpop.f32.mrf.mxu1 }
 0x565   :  { %10012 = vmatpush.bf16.msra.mxu3 %v14191_v13  ;;  %v14327_v13 = vor.u32 %v15425_v37, %v14326_v9  ;;  %v14286_v37 = vld [vmem:[#allocation10 + $0x90] sm:$0xf] }
 0x566   :  { %v19882_v58 = vpop.f32.mrf.mxu2  ;;  %v14287_v26 = vor.u32 %v15415_v17, %v14286_v37 }
 0x567   :  { %10632 = vmatpush.bf16.msrb.mxu1 %v14327_v13 }
 0x569   :  { %10013 = vmatpush.bf16.msra.mxu3 %v14171_v16  ;;  %v19888_v16 = vld [vmem:[#allocation7 + $0xf] sm:$0x1f] }
 0x56a   :  { %v10033_v7 = vperm.slane %v19888_v16, 0 }
 0x56b   :  { %v19896_v53 = vpop.f32.mrf.mxu1  ;;  %10633 = vmatpush.bf16.msrb.mxu1 %v14319_v8 }
 0x56c   :  { %v19905_v23 = vpop.f32.mrf.mxu0 }
 0x56d   :  { %10014 = vmatpush.bf16.msra.mxu3 %v14151_v49 }
 0x56e   :  { %v19901_v41 = vpop.f32.mrf.mxu2 }
 0x56f   :  { %9943 = vmatmul.bf16.vlgmr.msrb.gmra.mxu3 %v20438_v24  ;;  %v14071_v24 = vor.u32 %v15360_v63, %v14070_v14  ;;  %10634 = vmatpush.bf16.msrb.mxu1 %v14311_v2  ;;  %v15417_v14 = vld [vmem:[#allocation10 + $0xa4] sm:$0xf0]  ;;  %v9610_v63 = vadd.f32 %v19850_v47, %v9591_v55  ;;  %v14264_v2 = vld [vmem:[#allocation10 + $0x68] sm:$0xf0] }
 0x571   :  { %10015 = vmatpush.bf16.msra.mxu3 %v14131_v0  ;;  %v14302_v0 = vld [vmem:[#allocation10 + $0xb0] sm:$0xf] }
 0x572   :  { %v9640_v21 = vpop.f32.mrf.mxu3  ;;  %v14303_v5 = vor.u32 %v15419_v19, %v14302_v0  ;;  %v14390_v19 = vld [vmem:[#allocation10 + $0x160] sm:$0xf] }
 0x573   :  { %v9641_v10 = vadd.f32 %v9640_v21, %v9622_v45  ;;  %v19910_v54 = vpop.f32.mrf.mxu1  ;;  %v14278_v21 = vld [vmem:[#allocation10 + $0x80] sm:$0xf]  ;;  %v15413_v45 = vld [vmem:[#allocation10 + $0x84] sm:$0xf0] }
 0x574   :  { %10635 = vmatpush.bf16.msrb.mxu1 %v14303_v5  ;;  %v9737_v13 = vpop.f32.mrf.mxu0  ;;  %v14279_v27 = vor.u32 %v15413_v45, %v14278_v21  ;;  %v14248_v21 = vld [vmem:[#allocation10 + $0x48] sm:$0xf0]  ;;  %v14374_v45 = vld [vmem:[#allocation10 + $0x140] sm:$0xf] }
 0x575   :  { %10016 = vmatpush.bf16.msra.mxu3 %v14111_v1  ;;  %v10043_v49 = vmul.f32 %v10033_v7, %v9641_v10  ;;  %v9608_v1 = vadd.f32 %v19841_v48, %v9589_v60 }
 0x576   :  { %v19913_v15 = vpop.f32.mrf.mxu2 }
 0x577   :  { %v10076_v32 = vadd.f32 %v10066_v40, %v10043_v49  ;;  %v9627_v9 = vadd.f32 %v19844_v46, %v9608_v1  ;;  %v9629_v46 = vadd.f32 %v19854_v6, %v9610_v63 }
 0x579   :  { %10017 = vmatpush.bf16.msra.mxu3 %v14091_v20  ;;  %v10096_v28 = vmax.f32 %v10076_v32, 0.0  ;;  %v15441_v32 = vld [vmem:[#allocation10 + $0x164] sm:$0xf0] }
 0x57a   :  { %v9642_v35 = vpop.f32.mrf.mxu3 }
 0x57b   :  { %v9643_v62 = vadd.f32 %v9642_v35, %v9624_v43  ;;  %v19923_v8 = vpop.f32.mrf.mxu1  ;;  %v9679_v35 = vadd.f32 %v19861_v3, %v19859_v61  ;;  %v14391_v3 = vor.u32 %v15441_v32, %v14390_v19 }
 0x57d   :  { %10018 = vmatpush.bf16.msra.mxu3 %v14071_v24  ;;  %v10048_v11 = vmul.f32 %v10033_v7, %v9643_v62  ;;  %v14272_v24 = vld [vmem:[#allocation10 + $0x78] sm:$0xf0]  ;;  %v14398_v62 = vld [vmem:[#allocation10 + $0x170] sm:$0xf] }
 0x57e   :  { %v19925_v10 = vpop.f32.mrf.mxu2  ;;  %v14275_v49 = vor.u32 %v15410_v25, %v14272_v24  ;;  %v14399_v0 = vor.u32 %v15443_v57, %v14398_v62 }
 0x57f   :  { %v10081_v51 = vadd.f32 %v10066_v40, %v10048_v11  ;;  %9948 = vmatmul.bf16.gmra.mxu3 %v20442_v12  ;;  %v14294_v12 = vld [vmem:[#allocation10 + $0xa0] sm:$0xf]  ;;  %v9698_v11 = vadd.f32 %v19863_v56, %v9679_v35 }
 0x580   :  { %v14295_v48 = vor.u32 %v15417_v14, %v14294_v12  ;;  %10650 = vmatpush.bf16.msrb.mxu2 %v14399_v0  ;;  %v15435_v0 = vld [vmem:[#allocation10 + $0x134] sm:$0xf0] }
 0x581   :  { %v10101_v52 = vmax.f32 %v10081_v51, 0.0  ;;  %v19931_v51 = vpop.f32.mrf.mxu0 }
 0x582   :  { %v9645_v34 = vpop.f32.mrf.mxu3  ;;  %10636 = vmatpush.bf16.msrb.mxu1 %v14295_v48  ;;  %v19949_v48 = vperm.slane %v19898_v42, 1 }
 0x583   :  { %v19916_v20 = vpack.c.bf16 %v10101_v52, %v10096_v28  ;;  %v9646_v50 = vadd.f32 %v9645_v34, %v9627_v9  ;;  %v19935_v52 = vpop.f32.mrf.mxu1  ;;  %v9681_v9 = vadd.f32 %v19871_v18, %v19869_v4  ;;  %v15404_v4 = vld [vmem:[#allocation10 + $0x44] sm:$0xf] }
 0x584   :  { %10651 = vmatpush.bf16.msrb.mxu2 %v14391_v3  ;;  %v15398_v3 = vld [vmem:[#allocation10 + $0x14] sm:$0xf] }
 0x585   :  { %10620 = vmatmul.bf16.vlgmr.msrb.gmra.mxu0 %v19916_v20  ;;  %v10053_v30 = vmul.f32 %v10033_v7, %v9646_v50  ;;  %v19944_v50 = vperm.slane %v19888_v16, 1  ;;  %v9700_v12 = vadd.f32 %v19873_v44, %v9681_v9  ;;  %v9684_v44 = vadd.f32 %v19880_v22, %v19878_v31 }
 0x586   :  { %10637 = vmatpush.bf16.msrb.mxu1 %v14287_v26  ;;  %v19938_v34 = vpop.f32.mrf.mxu2 }
 0x587   :  { %v10086_v43 = vadd.f32 %v10066_v40, %v10053_v30  ;;  %v15439_v30 = vld [vmem:[#allocation10 + $0x154] sm:$0xf0] }
 0x589   :  { %v10106_v5 = vmax.f32 %v10086_v43, 0.0  ;;  %v9742_v63 = vpop.f32.mrf.mxu0 }
 0x58a   :  { %v9647_v38 = vpop.f32.mrf.mxu3  ;;  %10638 = vmatpush.bf16.msrb.mxu1 %v14279_v27  ;;  %v14240_v27 = vld [vmem:[#allocation10 + $0x38] sm:$0xf0] }
 0x58b   :  { %v9648_v29 = vadd.f32 %v9647_v38, %v9629_v46  ;;  %v14382_v46 = vld [vmem:[#allocation10 + $0x150] sm:$0xf]  ;;  %v19951_v18 = vpop.f32.mrf.mxu1  ;;  %v15437_v38 = vld [vmem:[#allocation10 + $0x144] sm:$0xf0] }
 0x58d   :  { %v10058_v47 = vmul.f32 %v10033_v7, %v9648_v29  ;;  %v14267_v7 = vor.u32 %v15408_v59, %v14264_v2  ;;  %v14251_v29 = vor.u32 %v15404_v4, %v14248_v21  ;;  %v15400_v2 = vld [vmem:[#allocation10 + $0x24] sm:$0xf]  ;;  %v14342_v4 = vld [vmem:[#allocation10 + $0x100] sm:$0xf] }
 0x58e   :  { %10707 = vmatpush.bf16.msra.mxu1 %v14275_v49  ;;  %v19958_v43 = vpop.f32.mrf.mxu2  ;;  %v9703_v49 = vadd.f32 %v19882_v58, %v9684_v44  ;;  %v15433_v58 = vld [vmem:[#allocation10 + $0x124] sm:$0xf0]  ;;  %v9774_v44 = vadd.f32 %v19913_v15, %v19910_v54 }
 0x58f   :  { %v10091_v6 = vadd.f32 %v10066_v40, %v10058_v47  ;;  %10019 = vmatmul.bf16.vlgmr.msra.gmra.mxu3 %v19781_v36  ;;  %v15406_v36 = vld [vmem:[#allocation10 + $0x54] sm:$0xf]  ;;  %v14256_v40 = vld [vmem:[#allocation10 + $0x58] sm:$0xf0]  ;;  %v14375_v47 = vor.u32 %v15437_v38, %v14374_v45 }
 0x590   :  { %v14259_v56 = vor.u32 %v15406_v36, %v14256_v40  ;;  %v14224_v36 = vld [vmem:[#allocation10 + $0x18] sm:$0xf0] }
 0x591   :  { %v10111_v60 = vmax.f32 %v10091_v6, 0.0  ;;  %v9811_v19 = vpop.f32.mrf.mxu0  ;;  %v14227_v9 = vor.u32 %v15398_v3, %v14224_v36  ;;  %v19989_v3 = vperm.slane %v19898_v42, 2 }
 0x592   :  { %v9716_v61 = vpop.f32.mrf.mxu3  ;;  %10708 = vmatpush.bf16.msra.mxu1 %v14267_v7 }
 0x593   :  { %v9717_v1 = vadd.f32 %v9716_v61, %v9698_v11  ;;  %v19933_v28 = vpack.c.bf16 %v10111_v60, %v10106_v5  ;;  %v14232_v11 = vld [vmem:[#allocation10 + $0x28] sm:$0xf0]  ;;  %v14358_v5 = vld [vmem:[#allocation10 + $0x120] sm:$0xf]  ;;  %v9686_v60 = vadd.f32 %v19896_v53, %v19894_v33  ;;  %v9830_v40 = vpop.f32.mrf.mxu1  ;;  %v15396_v33 = vld [vmem:[#allocation10 + $0x4] sm:$0xf] }
 0x594   :  { %v14235_v61 = vor.u32 %v15400_v2, %v14232_v11  ;;  %v14216_v53 = vld [vmem:[#allocation10 + $0x8] sm:$0xf0] }
 0x595   :  { %10625 = vmatmul.bf16.gmra.mxu0 %v19933_v28  ;;  %v9736_v55 = vadd.f32 %v19905_v23, %v9717_v1  ;;  %v14383_v23 = vor.u32 %v15439_v30, %v14382_v46  ;;  %v14359_v1 = vor.u32 %v15433_v58, %v14358_v5  ;;  %v14219_v30 = vor.u32 %v15396_v33, %v14216_v53 }
 0x596   :  { %10709 = vmatpush.bf16.msra.mxu1 %v14259_v56  ;;  %v9705_v56 = vadd.f32 %v19901_v41, %v9686_v60  ;;  %v19985_v5 = vperm.slane %v19888_v16, 2  ;;  %v9779_v33 = vadd.f32 %v19938_v34, %v19935_v52 }
 0x597   :  { %v10044_v37 = vmul.f32 %v19944_v50, %v9736_v55  ;;  %10652 = vmatpush.bf16.msrb.mxu2 %v14383_v23  ;;  %v14350_v55 = vld [vmem:[#allocation10 + $0x110] sm:$0xf]  ;;  %v15429_v23 = vld [vmem:[#allocation10 + $0x104] sm:$0xf0] }
 0x598   :  { %v14343_v38 = vor.u32 %v15429_v23, %v14342_v4 }
 0x599   :  { %v10077_v25 = vadd.f32 %v19949_v48, %v10044_v37  ;;  %v9813_v45 = vpop.f32.mrf.mxu0 }
 0x59a   :  { %v9718_v14 = vpop.f32.mrf.mxu3  ;;  %10710 = vmatpush.bf16.msra.mxu1 %v14251_v29  ;;  %v14336_v29 = vld [vmem:[#allocation10 + $0xf8] sm:$0xf0] }
 0x59b   :  { %v9719_v17 = vadd.f32 %v9718_v14, %v9700_v12  ;;  %v10097_v22 = vmax.f32 %v10077_v25, 0.0  ;;  %10653 = vmatpush.bf16.msrb.mxu2 %v14375_v47  ;;  %v15431_v12 = vld [vmem:[#allocation10 + $0x114] sm:$0xf0]  ;;  %v19969_v14 = vpop.f32.mrf.mxu2 }
 0x59d   :  { %v9738_v26 = vadd.f32 %v9737_v13, %v9719_v17  ;;  %v15402_v13 = vld [vmem:[#allocation10 + $0x34] sm:$0xf] }
 0x59e   :  { %v14243_v6 = vor.u32 %v15402_v13, %v14240_v27  ;;  %v9832_v13 = vpop.f32.mrf.mxu1 }
 0x59f   :  { %v10049_v24 = vmul.f32 %v19944_v50, %v9738_v26  ;;  %10024 = vmatmul.bf16.gmra.mxu3 %v19806_v39  ;;  %v14366_v39 = vld [vmem:[#allocation10 + $0x130] sm:$0xf]  ;;  %v14351_v26 = vor.u32 %v15431_v12, %v14350_v55  ;;  %v15455_v55 = vld [vmem:[#allocation10 + $0x1d4] sm:$0xf0]  ;;  %v15420_v12 = vld [vmem:[#allocation10 + $0xc4] sm:$0xf] }
 0x5a0   :  { %10711 = vmatpush.bf16.msra.mxu1 %v14243_v6  ;;  %v14367_v32 = vor.u32 %v15435_v0, %v14366_v39  ;;  %v15457_v39 = vld [vmem:[#allocation10 + $0x1e4] sm:$0xf0] }
 0x5a1   :  { %v10082_v35 = vadd.f32 %v19949_v48, %v10049_v24  ;;  %v15426_v24 = vld [vmem:[#allocation10 + $0xf4] sm:$0xf]  ;;  %v9816_v58 = vpop.f32.mrf.mxu0 }
 0x5a2   :  { %v9721_v31 = vpop.f32.mrf.mxu3  ;;  %10654 = vmatpush.bf16.msrb.mxu2 %v14367_v32  ;;  %v14339_v47 = vor.u32 %v15426_v24, %v14336_v29  ;;  %v9776_v32 = vadd.f32 %v19925_v10, %v19923_v8  ;;  %v15422_v8 = vld [vmem:[#allocation10 + $0xd4] sm:$0xf]  ;;  %v14320_v10 = vld [vmem:[#allocation10 + $0xd8] sm:$0xf0] }
 0x5a3   :  { %v10102_v62 = vmax.f32 %v10082_v35, 0.0  ;;  %v9722_v57 = vadd.f32 %v9721_v31, %v9703_v49  ;;  %v15459_v49 = vld [vmem:[#allocation10 + $0x1f4] sm:$0xf0]  ;;  %v15424_v35 = vld [vmem:[#allocation10 + $0xe4] sm:$0xf]  ;;  %v19977_v0 = vpop.f32.mrf.mxu2 }
 0x5a4   :  { %10712 = vmatpush.bf16.msra.mxu1 %v14235_v61  ;;  %v15418_v24 = vld [vmem:[#allocation10 + $0xb4] sm:$0xf]  ;;  %v14304_v29 = vld [vmem:[#allocation10 + $0xb8] sm:$0xf0] }
 0x5a5   :  { %v19962_v59 = vpack.c.bf16 %v10102_v62, %v10097_v22  ;;  %v9741_v7 = vadd.f32 %v19931_v51, %v9722_v57  ;;  %v14454_v57 = vld [vmem:[#allocation10 + $0x1e0] sm:$0xf] }
 0x5a6   :  { %10655 = vmatpush.bf16.msrb.mxu2 %v14359_v1  ;;  %v14455_v2 = vor.u32 %v15457_v39, %v14454_v57 }
 0x5a7   :  { %10639 = vmatmul.bf16.vlgmr.msrb.gmra.mxu1 %v19962_v59  ;;  %v10054_v51 = vmul.f32 %v19944_v50, %v9741_v7 }
 0x5a8   :  { %10713 = vmatpush.bf16.msra.mxu1 %v14227_v9  ;;  %v14323_v9 = vor.u32 %v15422_v8, %v14320_v10  ;;  %v14406_v8 = vld [vmem:[#allocation10 + $0x180] sm:$0xf]  ;;  %v15445_v10 = vld [vmem:[#allocation10 + $0x184] sm:$0xf0] }
 0x5a9   :  { %v10087_v21 = vadd.f32 %v19949_v48, %v10054_v51 }
 0x5aa   :  { %v9723_v37 = vpop.f32.mrf.mxu3  ;;  %10656 = vmatpush.bf16.msrb.mxu2 %v14351_v26  ;;  %v14438_v26 = vld [vmem:[#allocation10 + $0x1c0] sm:$0xf] }
 0x5ab   :  { %v9724_v17 = vadd.f32 %v9723_v37, %v9705_v56  ;;  %v10107_v31 = vmax.f32 %v10087_v21, 0.0  ;;  %v19991_v1 = vpop.f32.mrf.mxu2  ;;  %v14312_v37 = vld [vmem:[#allocation10 + $0xc8] sm:$0xf0] }
 0x5ac   :  { %10714 = vmatpush.bf16.msra.mxu1 %v14219_v30  ;;  %v14315_v4 = vor.u32 %v15420_v12, %v14312_v37  ;;  %v14400_v12 = vld [vmem:[#allocation10 + $0x178] sm:$0xf0] }
 0x5ad   :  { %v9743_v46 = vadd.f32 %v9742_v63, %v9724_v17  ;;  %v14462_v63 = vld [vmem:[#allocation10 + $0x1f0] sm:$0xf] }
 0x5ae   :  { %v14463_v62 = vor.u32 %v15459_v49, %v14462_v63  ;;  %10657 = vmatpush.bf16.msrb.mxu2 %v14343_v38  ;;  %v14430_v63 = vld [vmem:[#allocation10 + $0x1b0] sm:$0xf]  ;;  %v15416_v49 = vld [vmem:[#allocation10 + $0xa4] sm:$0xf] }
 0x5af   :  { %v10059_v41 = vmul.f32 %v19944_v50, %v9743_v46  ;;  %v14328_v50 = vld [vmem:[#allocation10 + $0xe8] sm:$0xf0]  ;;  %v15453_v46 = vld [vmem:[#allocation10 + $0x1c4] sm:$0xf0] }
 0x5b0   :  { %v14331_v54 = vor.u32 %v15424_v35, %v14328_v50  ;;  %10669 = vmatpush.bf16.msrb.mxu3 %v14463_v62  ;;  %v14439_v21 = vor.u32 %v15453_v46, %v14438_v26  ;;  %v14296_v35 = vld [vmem:[#allocation10 + $0xa8] sm:$0xf0]  ;;  %v9781_v50 = vadd.f32 %v19958_v43, %v19951_v18  ;;  %v14407_v26 = vor.u32 %v15445_v10, %v14406_v8 }
 0x5b1   :  { %v10092_v25 = vadd.f32 %v19949_v48, %v10059_v41  ;;  %v14299_v57 = vor.u32 %v15416_v49, %v14296_v35  ;;  %v15436_v49 = vld [vmem:[#allocation10 + $0x144] sm:$0xf]  ;;  %v14376_v35 = vld [vmem:[#allocation10 + $0x148] sm:$0xf0] }
 0x5b2   :  { %v9792_v27 = vpop.f32.mrf.mxu3  ;;  %10726 = vmatpush.bf16.msra.mxu2 %v14339_v47  ;;  %v15451_v47 = vld [vmem:[#allocation10 + $0x1b4] sm:$0xf0] }
 0x5b3   :  { %v9793_v6 = vadd.f32 %v9792_v27, %v9774_v44  ;;  %v10112_v22 = vmax.f32 %v10092_v25, 0.0  ;;  %v14307_v27 = vor.u32 %v15418_v24, %v14304_v29  ;;  %v20016_v29 = vperm.slane %v19888_v16, 3 }
 0x5b4   :  { %10670 = vmatpush.bf16.msrb.mxu3 %v14455_v2  ;;  %v14288_v2 = vld [vmem:[#allocation10 + $0x98] sm:$0xf0] }
 0x5b5   :  { %v9812_v15 = vadd.f32 %v9811_v19, %v9793_v6  ;;  %v19979_v48 = vpack.c.bf16 %v10112_v22, %v10107_v31  ;;  %v9835_v19 = vpop.f32.mrf.mxu1  ;;  %v14431_v31 = vor.u32 %v15451_v47, %v14430_v63  ;;  %v15449_v22 = vld [vmem:[#allocation10 + $0x1a4] sm:$0xf0] }
 0x5b6   :  { %10727 = vmatpush.bf16.msra.mxu2 %v14331_v54 }
 0x5b7   :  { %10644 = vmatmul.bf16.gmra.mxu1 %v19979_v48  ;;  %v9831_v11 = vadd.f32 %v9830_v40, %v9812_v15  ;;  %v14446_v40 = vld [vmem:[#allocation10 + $0x1d0] sm:$0xf]  ;;  %v15414_v15 = vld [vmem:[#allocation10 + $0x94] sm:$0xf] }
 0x5b8   :  { %v14447_v17 = vor.u32 %v15455_v55, %v14446_v40  ;;  %v14291_v43 = vor.u32 %v15414_v15, %v14288_v2  ;;  %v15442_v55 = vld [vmem:[#allocation10 + $0x174] sm:$0xf] }
 0x5b9   :  { %v10045_v61 = vmul.f32 %v19985_v5, %v9831_v11  ;;  %v15447_v11 = vld [vmem:[#allocation10 + $0x194] sm:$0xf0]  ;;  %v14403_v46 = vor.u32 %v15442_v55, %v14400_v12  ;;  %v14518_v12 = vld [vmem:[#allocation10 + $0x260] sm:$0xf] }
 0x5ba   :  { %v9794_v60 = vpop.f32.mrf.mxu3  ;;  %10728 = vmatpush.bf16.msra.mxu2 %v14323_v9  ;;  %10671 = vmatpush.bf16.msrb.mxu3 %v14447_v17 }
 0x5bb   :  { %v9795_v7 = vadd.f32 %v9794_v60, %v9776_v32  ;;  %v10078_v53 = vadd.f32 %v19989_v3, %v10045_v61  ;;  %v14414_v32 = vld [vmem:[#allocation10 + $0x190] sm:$0xf]  ;;  %v15412_v61 = vld [vmem:[#allocation10 + $0x84] sm:$0xf] }
 0x5bd   :  { %v9814_v36 = vadd.f32 %v9813_v45, %v9795_v7  ;;  %v9818_v45 = vpop.f32.mrf.mxu0  ;;  %v10098_v38 = vmax.f32 %v10078_v53, 0.0  ;;  %v9837_v52 = vpop.f32.mrf.mxu1 }
 0x5be   :  { %10729 = vmatpush.bf16.msra.mxu2 %v14315_v4  ;;  %10672 = vmatpush.bf16.msrb.mxu3 %v14439_v21 }
 0x5bf   :  { %v9833_v56 = vadd.f32 %v9832_v13, %v9814_v36  ;;  %v20001_v13 = vpop.f32.mrf.mxu2  ;;  %v14280_v36 = vld [vmem:[#allocation10 + $0x88] sm:$0xf0] }
 0x5c0   :  { %v14283_v53 = vor.u32 %v15412_v61, %v14280_v36  ;;  %v15475_v61 = vld [vmem:[#allocation10 + $0x274] sm:$0xf0] }
 0x5c1   :  { %v10050_v51 = vmul.f32 %v19985_v5, %v9833_v56 }
 0x5c2   :  { %v9797_v30 = vpop.f32.mrf.mxu3  ;;  %10730 = vmatpush.bf16.msra.mxu2 %v14307_v27  ;;  %10673 = vmatpush.bf16.msrb.mxu3 %v14431_v31 }
 0x5c3   :  { %v10083_v23 = vadd.f32 %v19989_v3, %v10050_v51  ;;  %v9798_v41 = vadd.f32 %v9797_v30, %v9779_v33 }
 0x5c5   :  { %v10103_v44 = vmax.f32 %v10083_v23, 0.0  ;;  %v9817_v25 = vadd.f32 %v9816_v58, %v9798_v41  ;;  %v9887_v18 = vpop.f32.mrf.mxu0  ;;  %v9906_v56 = vpop.f32.mrf.mxu1  ;;  %v15440_v41 = vld [vmem:[#allocation10 + $0x164] sm:$0xf] }
 0x5c6   :  { %10731 = vmatpush.bf16.msra.mxu2 %v14299_v57  ;;  %v14368_v57 = vld [vmem:[#allocation10 + $0x138] sm:$0xf0] }
 0x5c7   :  { %10715 = vmatmul.bf16.vlgmr.msra.gmra.mxu1 %v19916_v20  ;;  %v19999_v34 = vpack.c.bf16 %v10103_v44, %v10098_v38  ;;  %v9836_v6 = vadd.f32 %v9835_v19, %v9817_v25  ;;  %v14422_v20 = vld [vmem:[#allocation10 + $0x1a0] sm:$0xf]  ;;  %v14415_v19 = vor.u32 %v15447_v11, %v14414_v32  ;;  %v9925_v37 = vpop.f32.mrf.mxu2  ;;  %v14384_v44 = vld [vmem:[#allocation10 + $0x158] sm:$0xf0] }
 0x5c8   :  { %v14423_v54 = vor.u32 %v15449_v22, %v14422_v20  ;;  %v14379_v20 = vor.u32 %v15436_v49, %v14376_v35 }
 0x5c9   :  { %10658 = vmatmul.bf16.vlgmr.msrb.gmra.mxu2 %v19999_v34  ;;  %v10055_v58 = vmul.f32 %v19985_v5, %v9836_v6  ;;  %v20021_v6 = vperm.slane %v19898_v42, 3 }
 0x5ca   :  { %v9799_v62 = vpop.f32.mrf.mxu3  ;;  %10674 = vmatpush.bf16.msrb.mxu3 %v14423_v54  ;;  %10732 = vmatpush.bf16.msra.mxu2 %v14291_v43  ;;  %v14360_v43 = vld [vmem:[#allocation10 + $0x128] sm:$0xf0] }
 0x5cb   :  { %v9800_v39 = vadd.f32 %v9799_v62, %v9781_v50  ;;  %v10088_v9 = vadd.f32 %v19989_v3, %v10055_v58  ;;  %v15434_v62 = vld [vmem:[#allocation10 + $0x134] sm:$0xf] }
 0x5cc   :  { %v14371_v11 = vor.u32 %v15434_v62, %v14368_v57 }
 0x5cd   :  { %v9819_v60 = vadd.f32 %v9818_v45, %v9800_v39  ;;  %v10108_v4 = vmax.f32 %v10088_v9, 0.0  ;;  %v9889_v38 = vpop.f32.mrf.mxu0  ;;  %v9908_v25 = vpop.f32.mrf.mxu1  ;;  %v14528_v9 = vld [vmem:[#allocation10 + $0x278] sm:$0xf0] }
 0x5ce   :  { %10675 = vmatpush.bf16.msrb.mxu3 %v14415_v19  ;;  %10733 = vmatpush.bf16.msra.mxu2 %v14283_v53  ;;  %v14526_v19 = vld [vmem:[#allocation10 + $0x270] sm:$0xf]  ;;  %v14352_v53 = vld [vmem:[#allocation10 + $0x118] sm:$0xf0] }
 0x5cf   :  { %v9838_v7 = vadd.f32 %v9837_v52, %v9819_v60  ;;  %v9927_v27 = vpop.f32.mrf.mxu2  ;;  %v14527_v10 = vor.u32 %v15475_v61, %v14526_v19  ;;  %v14486_v19 = vld [vmem:[#allocation10 + $0x220] sm:$0xf] }
 0x5d1   :  { %v10060_v40 = vmul.f32 %v19985_v5, %v9838_v7  ;;  %v14392_v5 = vld [vmem:[#allocation10 + $0x168] sm:$0xf0]  ;;  %10688 = vmatpush.bf16.msra.mxu0 %v14527_v10 }
 0x5d2   :  { %v9868_v33 = vpop.f32.mrf.mxu3  ;;  %10676 = vmatpush.bf16.msrb.mxu3 %v14407_v26  ;;  %v14488_v10 = vld [vmem:[#allocation10 + $0x228] sm:$0xf0] }
 0x5d3   :  { %v9869_v51 = vadd.f32 %v9868_v33, %v19969_v14  ;;  %v10093_v17 = vadd.f32 %v19989_v3, %v10060_v40  ;;  %v14395_v14 = vor.u32 %v15440_v41, %v14392_v5  ;;  %v15438_v3 = vld [vmem:[#allocation10 + $0x154] sm:$0xf]  ;;  %v15428_v41 = vld [vmem:[#allocation10 + $0x104] sm:$0xf]  ;;  %v14344_v5 = vld [vmem:[#allocation10 + $0x108] sm:$0xf0] }
 0x5d4   :  { %v15474_v40 = vld [vmem:[#allocation10 + $0x274] sm:$0xf]  ;;  %v14347_v35 = vor.u32 %v15428_v41, %v14344_v5 }
 0x5d5   :  { %v9888_v30 = vadd.f32 %v9887_v18, %v9869_v51  ;;  %v10113_v23 = vmax.f32 %v10093_v17, 0.0  ;;  %v9892_v39 = vpop.f32.mrf.mxu0  ;;  %v9911_v32 = vpop.f32.mrf.mxu1  ;;  %v15432_v18 = vld [vmem:[#allocation10 + $0x124] sm:$0xf]  ;;  %v15430_v33 = vld [vmem:[#allocation10 + $0x114] sm:$0xf] }
 0x5d6   :  { %10745 = vmatpush.bf16.msra.mxu3 %v14403_v46  ;;  %v14363_v55 = vor.u32 %v15432_v18, %v14360_v43  ;;  %v15473_v51 = vld [vmem:[#allocation10 + $0x264] sm:$0xf0]  ;;  %v15467_v18 = vld [vmem:[#allocation10 + $0x234] sm:$0xf0]  ;;  %v14496_v43 = vld [vmem:[#allocation10 + $0x238] sm:$0xf0] }
 0x5d7   :  { %v9907_v21 = vadd.f32 %v9906_v56, %v9888_v30  ;;  %10720 = vmatmul.bf16.gmra.mxu1 %v19933_v28  ;;  %v20012_v45 = vpack.c.bf16 %v10113_v23, %v10108_v4  ;;  %v14387_v28 = vor.u32 %v15438_v3, %v14384_v44  ;;  %v9930_v7 = vpop.f32.mrf.mxu2  ;;  %v14519_v26 = vor.u32 %v15473_v51, %v14518_v12  ;;  %v14480_v12 = vld [vmem:[#allocation10 + $0x218] sm:$0xf0]  ;;  %v15461_v51 = vld [vmem:[#allocation10 + $0x204] sm:$0xf0] }
 0x5d8   :  { %v14355_v23 = vor.u32 %v15430_v33, %v14352_v53  ;;  %v14470_v53 = vld [vmem:[#allocation10 + $0x200] sm:$0xf] }
 0x5d9   :  { %10663 = vmatmul.bf16.gmra.mxu2 %v20012_v45  ;;  %v9926_v24 = vadd.f32 %v9925_v37, %v9907_v21  ;;  %10689 = vmatpush.bf16.msra.mxu0 %v14519_v26  ;;  %v15472_v21 = vld [vmem:[#allocation10 + $0x264] sm:$0xf] }
 0x5da   :  { %v9870_v52 = vpop.f32.mrf.mxu3  ;;  %10746 = vmatpush.bf16.msra.mxu3 %v14395_v14  ;;  %v14510_v14 = vld [vmem:[#allocation10 + $0x250] sm:$0xf] }
 0x5db   :  { %v9871_v63 = vadd.f32 %v9870_v52, %v19977_v0  ;;  %v10046_v50 = vmul.f32 %v20016_v29, %v9926_v24  ;;  %v15470_v52 = vld [vmem:[#allocation10 + $0x254] sm:$0xf]  ;;  %v14512_v24 = vld [vmem:[#allocation10 + $0x258] sm:$0xf0] }
 0x5dd   :  { %v9890_v47 = vadd.f32 %v9889_v38, %v9871_v63  ;;  %v10079_v0 = vadd.f32 %v20021_v6, %v10046_v50  ;;  %v9894_v4 = vpop.f32.mrf.mxu0  ;;  %v14520_v38 = vld [vmem:[#allocation10 + $0x268] sm:$0xf0]  ;;  %v9913_v3 = vpop.f32.mrf.mxu1  ;;  %v14515_v50 = vor.u32 %v15470_v52, %v14512_v24 }
 0x5de   :  { %10747 = vmatpush.bf16.msra.mxu3 %v14387_v28  ;;  %v14523_v44 = vor.u32 %v15472_v21, %v14520_v38  ;;  %v14502_v28 = vld [vmem:[#allocation10 + $0x240] sm:$0xf]  ;;  %v14464_v21 = vld [vmem:[#allocation10 + $0x1f8] sm:$0xf0]  ;;  %v15456_v38 = vld [vmem:[#allocation10 + $0x1e4] sm:$0xf] }
 0x5df   :  { %v9909_v31 = vadd.f32 %v9908_v25, %v9890_v47  ;;  %v10099_v36 = vmax.f32 %v10079_v0, 0.0  ;;  %v15471_v25 = vld [vmem:[#allocation10 + $0x254] sm:$0xf0]  ;;  %v15469_v47 = vld [vmem:[#allocation10 + $0x244] sm:$0xf0]  ;;  %v9932_v49 = vpop.f32.mrf.mxu2 }
 0x5e1   :  { %v9928_v22 = vadd.f32 %v9927_v27, %v9909_v31  ;;  %v14511_v27 = vor.u32 %v15471_v25, %v14510_v14  ;;  %v14456_v14 = vld [vmem:[#allocation10 + $0x1e8] sm:$0xf0] }
 0x5e2   :  { %v9873_v54 = vpop.f32.mrf.mxu3  ;;  %10748 = vmatpush.bf16.msra.mxu3 %v14379_v20  ;;  %v14503_v20 = vor.u32 %v15469_v47, %v14502_v28  ;;  %v14459_v52 = vor.u32 %v15456_v38, %v14456_v14  ;;  %v14448_v28 = vld [vmem:[#allocation10 + $0x1d8] sm:$0xf0] }
 0x5e3   :  { %v10051_v15 = vmul.f32 %v20016_v29, %v9928_v22  ;;  %v9874_v2 = vadd.f32 %v9873_v54, %v19991_v1  ;;  %v14531_v1 = vor.u32 %v15474_v40, %v14528_v9  ;;  %10690 = vmatpush.bf16.msra.mxu0 %v14511_v27  ;;  %v14478_v40 = vld [vmem:[#allocation10 + $0x210] sm:$0xf]  ;;  %v15454_v27 = vld [vmem:[#allocation10 + $0x1d4] sm:$0xf] }
 0x5e5   :  { %v10084_v58 = vadd.f32 %v20021_v6, %v10051_v15  ;;  %v9893_v60 = vadd.f32 %v9892_v39, %v9874_v2  ;;  %10783 = vmatpush.bf16.msrb.mxu1 %v14531_v1  ;;  %v15468_v2 = vld [vmem:[#allocation10 + $0x244] sm:$0xf]  ;;  %v15462_v1 = vld [vmem:[#allocation10 + $0x214] sm:$0xf] }
 0x5e6   :  { %10749 = vmatpush.bf16.msra.mxu3 %v14371_v11  ;;  %v14494_v11 = vld [vmem:[#allocation10 + $0x230] sm:$0xf]  ;;  %v14483_v26 = vor.u32 %v15462_v1, %v14480_v12 }
 0x5e7   :  { %v10104_v56 = vmax.f32 %v10084_v58, 0.0  ;;  %v9912_v8 = vadd.f32 %v9911_v32, %v9893_v60  ;;  %10691 = vmatpush.bf16.msra.mxu0 %v14503_v20  ;;  %v14504_v32 = vld [vmem:[#allocation10 + $0x248] sm:$0xf0]  ;;  %v10001_v41 = vpop.f32.mrf.mxu2 }
 0x5e8   :  { %v14507_v60 = vor.u32 %v15468_v2, %v14504_v32  ;;  %v10070_v32 = vperm.slane %v19898_v42, 4  ;;  %v15446_v42 = vld [vmem:[#allocation10 + $0x194] sm:$0xf] }
 0x5e9   :  { %10734 = vmatmul.bf16.vlgmr.msra.gmra.mxu2 %v19962_v59  ;;  %v20028_v37 = vpack.c.bf16 %v10104_v56, %v10099_v36  ;;  %v9931_v46 = vadd.f32 %v9930_v7, %v9912_v8  ;;  %10784 = vmatpush.bf16.msrb.mxu1 %v14523_v44  ;;  %v14495_v7 = vor.u32 %v15467_v18, %v14494_v11  ;;  %v15464_v8 = vld [vmem:[#allocation10 + $0x224] sm:$0xf] }
 0x5ea   :  { %v9875_v17 = vpop.f32.mrf.mxu3  ;;  %10750 = vmatpush.bf16.msra.mxu3 %v14363_v55  ;;  %v14491_v9 = vor.u32 %v15464_v8, %v14488_v10  ;;  %v15463_v55 = vld [vmem:[#allocation10 + $0x214] sm:$0xf0]  ;;  %v14416_v10 = vld [vmem:[#allocation10 + $0x198] sm:$0xf0] }
 0x5eb   :  { %v9876_v30 = vadd.f32 %v9875_v17, %v20001_v13  ;;  %10677 = vmatmul.bf16.vlgmr.msrb.gmra.mxu3 %v20028_v37  ;;  %v10056_v13 = vmul.f32 %v20016_v29, %v9931_v46  ;;  %10692 = vmatpush.bf16.msra.mxu0 %v14495_v7  ;;  %v14479_v33 = vor.u32 %v15463_v55, %v14478_v40  ;;  %v9982_v17 = vpop.f32.mrf.mxu1 }
 0x5ec   :  { %v14471_v46 = vor.u32 %v15461_v51, %v14470_v53  ;;  %v15444_v51 = vld [vmem:[#allocation10 + $0x184] sm:$0xf] }
 0x5ed   :  { %v9895_v59 = vadd.f32 %v9894_v4, %v9876_v30  ;;  %v10089_v57 = vadd.f32 %v20021_v6, %v10056_v13  ;;  %10785 = vmatpush.bf16.msrb.mxu1 %v14515_v50  ;;  %v15460_v30 = vld [vmem:[#allocation10 + $0x204] sm:$0xf]  ;;  %v14472_v4 = vld [vmem:[#allocation10 + $0x208] sm:$0xf0] }
 0x5ee   :  { %10751 = vmatpush.bf16.msra.mxu3 %v14355_v23  ;;  %v15458_v23 = vld [vmem:[#allocation10 + $0x1f4] sm:$0xf]  ;;  %v14440_v50 = vld [vmem:[#allocation10 + $0x1c8] sm:$0xf0] }
 0x5ef   :  { %v9914_v63 = vadd.f32 %v9913_v3, %v9895_v59  ;;  %v10109_v54 = vmax.f32 %v10089_v57, 0.0  ;;  %v14475_v59 = vor.u32 %v15460_v30, %v14472_v4  ;;  %v14467_v44 = vor.u32 %v15458_v23, %v14464_v21  ;;  %v10003_v20 = vpop.f32.mrf.mxu2 }
 0x5f1   :  { %v9933_v31 = vadd.f32 %v9932_v49, %v9914_v63  ;;  %10786 = vmatpush.bf16.msrb.mxu1 %v14507_v60  ;;  %v14451_v49 = vor.u32 %v15454_v27, %v14448_v28  ;;  %v15481_v27 = vld [vmem:[#allocation13 + $0x28] sm:$0xff] }
 0x5f2   :  { %v9944_v22 = vpop.f32.mrf.mxu3  ;;  %10752 = vmatpush.bf16.msra.mxu3 %v14347_v35  ;;  %v15452_v35 = vld [vmem:[#allocation10 + $0x1c4] sm:$0xf] }
 0x5f3   :  { %v10061_v62 = vmul.f32 %v20016_v29, %v9933_v31  ;;  %v15466_v29 = vld [vmem:[#allocation10 + $0x234] sm:$0xf]  ;;  %v9984_v63 = vpop.f32.mrf.mxu1  ;;  %v14443_v57 = vor.u32 %v15452_v35, %v14440_v50  ;;  %v15479_v35 = vld [vmem:[#allocation13 + $0x18] sm:$0xff] }
 0x5f4   :  { %v14499_v61 = vor.u32 %v15466_v29, %v14496_v43  ;;  %v15448_v29 = vld [vmem:[#allocation10 + $0x1a4] sm:$0xf]  ;;  %v14424_v43 = vld [vmem:[#allocation10 + $0x1a8] sm:$0xf0] }
 0x5f5   :  { %v10094_v39 = vadd.f32 %v20021_v6, %v10061_v62  ;;  %v15465_v6 = vld [vmem:[#allocation10 + $0x224] sm:$0xf0]  ;;  %v10037_v62 = vperm.slane %v19888_v16, 4 }
 0x5f6   :  { %v14487_v36 = vor.u32 %v15465_v6, %v14486_v19  ;;  %10787 = vmatpush.bf16.msrb.mxu1 %v14499_v61  ;;  %v14427_v61 = vor.u32 %v15448_v29, %v14424_v43  ;;  %v15488_v43 = vld [vmem:[#allocation13 + $0x60] sm:$0xff] }
 0x5f7   :  { %v10114_v0 = vmax.f32 %v10094_v39, 0.0 }
 0x5f8   :  { %10693 = vmatpush.bf16.msra.mxu0 %v14487_v36  ;;  %v10006_v36 = vpop.f32.mrf.mxu2 }
 0x5f9   :  { %10739 = vmatmul.bf16.gmra.mxu2 %v19979_v48  ;;  %v20037_v15 = vpack.c.bf16 %v10114_v0, %v10109_v54  ;;  %v9963_v48 = vpop.f32.mrf.mxu0  ;;  %v15450_v54 = vld [vmem:[#allocation10 + $0x1b4] sm:$0xf]  ;;  %v14432_v0 = vld [vmem:[#allocation10 + $0x1b8] sm:$0xf0] }
 0x5fa   :  { %v9946_v58 = vpop.f32.mrf.mxu3  ;;  %10788 = vmatpush.bf16.msrb.mxu1 %v14491_v9  ;;  %v9964_v3 = vadd.f32 %v9963_v48, %v9944_v22 }
 0x5fb   :  { %10682 = vmatmul.bf16.gmra.mxu3 %v20037_v15  ;;  %v9987_v60 = vpop.f32.mrf.mxu1 }
 0x5fc   :  { %10694 = vmatpush.bf16.msra.mxu0 %v14479_v33  ;;  %v9983_v24 = vadd.f32 %v9982_v17, %v9964_v3  ;;  %v14419_v33 = vor.u32 %v15446_v42, %v14416_v10  ;;  %v15487_v10 = vld [vmem:[#allocation13 + $0x58] sm:$0xff] }
 0x5fe   :  { %10789 = vmatpush.bf16.msrb.mxu1 %v14483_v26  ;;  %v10002_v31 = vadd.f32 %v10001_v41, %v9983_v24  ;;  %v15483_v24 = vld [vmem:[#allocation13 + $0x38] sm:$0xff] }
 0x5ff   :  { %10946 = vmatpush.bf16.msrb.mxu2 %v15483_v24 }
 0x600   :  { %10695 = vmatpush.bf16.msra.mxu0 %v14471_v46  ;;  %v10008_v4 = vpop.f32.mrf.mxu2 }
 0x601   :  { %v9965_v25 = vpop.f32.mrf.mxu0 }
 0x602   :  { %v20040_v56 = vpop.f32.mrf.mxu3  ;;  %10790 = vmatpush.bf16.msrb.mxu1 %v14475_v59  ;;  %v9966_v13 = vadd.f32 %v9965_v25, %v9946_v58  ;;  %v14435_v58 = vor.u32 %v15450_v54, %v14432_v0  ;;  %v15490_v54 = vld [vmem:[#allocation13 + $0x70] sm:$0xff] }
 0x603   :  { %v9989_v17 = vpop.f32.mrf.mxu1 }
 0x604   :  { %10764 = vmatpush.bf16.msrb.mxu0 %v14467_v44  ;;  %v9985_v22 = vadd.f32 %v9984_v63, %v9966_v13  ;;  %v15482_v63 = vld [vmem:[#allocation13 + $0x30] sm:$0xff] }
 0x605   :  { %10947 = vmatpush.bf16.msrb.mxu2 %v15482_v63 }
 0x606   :  { %v10004_v11 = vadd.f32 %v10003_v20, %v9985_v22 }
 0x608   :  { %10765 = vmatpush.bf16.msrb.mxu0 %v14459_v52 }
 0x609   :  { %v9968_v39 = vpop.f32.mrf.mxu0  ;;  %10948 = vmatpush.bf16.msrb.mxu2 %v15481_v27 }
 0x60a   :  { %v9951_v5 = vpop.f32.mrf.mxu3  ;;  %v9969_v7 = vadd.f32 %v9968_v39, %v20040_v56 }
 0x60b   :  { %10753 = vmatmul.bf16.vlgmr.msra.gmra.mxu3 %v19999_v34 }
 0x60c   :  { %10766 = vmatpush.bf16.msrb.mxu0 %v14451_v49  ;;  %v9988_v48 = vadd.f32 %v9987_v60, %v9969_v7  ;;  %v15489_v60 = vld [vmem:[#allocation13 + $0x68] sm:$0xff] }
 0x60e   :  { %v10007_v53 = vadd.f32 %v10006_v36, %v9988_v48 }
 0x610   :  { %10767 = vmatpush.bf16.msrb.mxu0 %v14443_v57  ;;  %v15491_v57 = vld [vmem:[#allocation13 + $0x78] sm:$0xff] }
 0x611   :  { %v9970_v40 = vpop.f32.mrf.mxu0  ;;  %10965 = vmatpush.bf16.msrb.mxu3 %v15491_v57 }
 0x612   :  { %v10020_v47 = vpop.f32.mrf.mxu3  ;;  %v9971_v9 = vadd.f32 %v9970_v40, %v9951_v5 }
 0x613   :  { %v10021_v34 = vadd.f32 %v10020_v47, %v10002_v31  ;;  %v15480_v47 = vld [vmem:[#allocation13 + $0x20] sm:$0xff]  ;;  %v15478_v31 = vld [vmem:[#allocation13 + $0x10] sm:$0xff] }
 0x614   :  { %10768 = vmatpush.bf16.msrb.mxu0 %v14435_v58  ;;  %v9990_v26 = vadd.f32 %v9989_v17, %v9971_v9  ;;  %10949 = vmatpush.bf16.msrb.mxu2 %v15480_v47 }
 0x615   :  { %v10047_v2 = vmul.f32 %v10037_v62, %v10021_v34  ;;  %10966 = vmatpush.bf16.msrb.mxu3 %v15490_v54 }
 0x616   :  { %v10009_v41 = vadd.f32 %v10008_v4, %v9990_v26 }
 0x617   :  { %v10080_v16 = vadd.f32 %v10070_v32, %v10047_v2  ;;  %v10206_v2 = vld [vmem:[#allocation12] sm:$0x3] }
 0x618   :  { %10769 = vmatpush.bf16.msrb.mxu0 %v14427_v61  ;;  %10950 = vmatpush.bf16.msrb.mxu2 %v15479_v35  ;;  %v10208_v58 = vperm.slane %v10206_v2, 0 }
 0x619   :  { %v10100_v55 = vmax.f32 %v10080_v16, 0.0  ;;  %v10621_v28 = vpop.f32.mrf.mxu0  ;;  %10967 = vmatpush.bf16.msrb.mxu3 %v15489_v60 }
 0x61a   :  { %v10022_v18 = vpop.f32.mrf.mxu3 }
 0x61b   :  { %v10023_v19 = vadd.f32 %v10022_v18, %v10004_v11  ;;  %10758 = vmatmul.bf16.gmra.mxu3 %v20012_v45  ;;  %v14408_v45 = vld [vmem:[#allocation10 + $0x188] sm:$0xf0]  ;;  %v10622_v18 = vadd.f32 %v10621_v28, %v10208_v58 }
 0x61c   :  { %10770 = vmatpush.bf16.msrb.mxu0 %v14419_v33  ;;  %v14411_v30 = vor.u32 %v15444_v51, %v14408_v45  ;;  %10951 = vmatpush.bf16.msrb.mxu2 %v15478_v31 }
 0x61d   :  { %v10052_v6 = vmul.f32 %v10037_v62, %v10023_v19  ;;  %10968 = vmatpush.bf16.msrb.mxu3 %v15488_v43 }
 0x61f   :  { %v10085_v8 = vadd.f32 %v10070_v32, %v10052_v6 }
 0x620   :  { %10771 = vmatpush.bf16.msrb.mxu0 %v14411_v30 }
 0x621   :  { %v10105_v1 = vmax.f32 %v10085_v8, 0.0  ;;  %v10623_v50 = vpop.f32.mrf.mxu0  ;;  %10969 = vmatpush.bf16.msrb.mxu3 %v15487_v10 }
 0x622   :  { %v10025_v12 = vpop.f32.mrf.mxu3  ;;  %v10624_v16 = vadd.f32 %v10623_v50, %v10208_v58 }
 0x623   :  { %v10120_v56 = vpack.c.bf16 %v10105_v1, %v10100_v55  ;;  %v10026_v46 = vadd.f32 %v10025_v12, %v10007_v53  ;;  %v15486_v55 = vld [vmem:[#allocation13 + $0x50] sm:$0xff] }
 0x624   :  { %v10640_v52 = vpop.f32.mrf.mxu1 }
 0x625   :  { %10696 = vmatmul.bf16.vlgmr.msra.gmra.mxu0 %v10120_v56  ;;  %10791 = vmatmul.bf16.vlgmr.msrb.gmra.mxu1 %v10120_v56  ;;  %v10057_v23 = vmul.f32 %v10037_v62, %v10026_v46  ;;  %v10641_v6 = vadd.f32 %v10640_v52, %v10622_v18  ;;  %v15485_v46 = vld [vmem:[#allocation13 + $0x48] sm:$0xff] }
 0x626   :  { %10970 = vmatpush.bf16.msrb.mxu3 %v15486_v55 }
 0x627   :  { %v10090_v21 = vadd.f32 %v10070_v32, %v10057_v23 }
 0x629   :  { %v10110_v3 = vmax.f32 %v10090_v21, 0.0  ;;  %v10626_v22 = vpop.f32.mrf.mxu0 }
 0x62a   :  { %v10027_v5 = vpop.f32.mrf.mxu3  ;;  %v10627_v26 = vadd.f32 %v10626_v22, %v10208_v58  ;;  %10971 = vmatpush.bf16.msrb.mxu3 %v15485_v46 }
 0x62b   :  { %v10028_v59 = vadd.f32 %v10027_v5, %v10009_v41  ;;  %v15484_v41 = vld [vmem:[#allocation13 + $0x40] sm:$0xff] }
 0x62c   :  { %v10642_v13 = vpop.f32.mrf.mxu1 }
 0x62d   :  { %v10062_v38 = vmul.f32 %v10037_v62, %v10028_v59  ;;  %v15476_v62 = vld [vmem:[#allocation13] sm:$0xff]  ;;  %v10643_v36 = vadd.f32 %v10642_v13, %v10624_v16  ;;  %v10209_v13 = vperm.slane %v10206_v2, 1 }
 0x62e   :  { %10972 = vmatpush.bf16.msrb.mxu3 %v15484_v41 }
 0x62f   :  { %v10095_v14 = vadd.f32 %v10070_v32, %v10062_v38 }
 0x631   :  { %v10115_v44 = vmax.f32 %v10095_v14, 0.0  ;;  %v10628_v32 = vpop.f32.mrf.mxu0 }
 0x632   :  { %v10629_v4 = vadd.f32 %v10628_v32, %v10208_v58 }
 0x633   :  { %v10125_v25 = vpack.c.bf16 %v10115_v44, %v10110_v3 }
 0x634   :  { %v10645_v49 = vpop.f32.mrf.mxu1 }
 0x635   :  { %10701 = vmatmul.bf16.gmra.mxu0 %v10125_v25  ;;  %10796 = vmatmul.bf16.gmra.mxu1 %v10125_v25  ;;  %v10646_v23 = vadd.f32 %v10645_v49, %v10627_v26 }
 0x645   :  { %10772 = vmatmul.bf16.vlgmr.msrb.gmra.mxu0 %v20028_v37  ;;  %v10647_v37 = vpop.f32.mrf.mxu1 }
 0x646   :  { %v10648_v5 = vadd.f32 %v10647_v37, %v10629_v4 }
 0x64c   :  { %v10659_v20 = vpop.f32.mrf.mxu2 }
 0x64d   :  { %v20049_v39 = vpop.f32.mrf.mxu1  ;;  %v10660_v48 = vadd.f32 %v10659_v20, %v10641_v6 }
 0x64e   :  { %v10717_v50 = vadd.f32 %v20049_v39, %v10209_v13 }
 0x654   :  { %v10661_v0 = vpop.f32.mrf.mxu2 }
 0x655   :  { %10777 = vmatmul.bf16.gmra.mxu0 %v20037_v15  ;;  %v15477_v15 = vld [vmem:[#allocation13 + $0x8] sm:$0xff]  ;;  %v10718_v29 = vpop.f32.mrf.mxu1  ;;  %v10662_v8 = vadd.f32 %v10661_v0, %v10643_v36 }
 0x656   :  { %10952 = vmatpush.bf16.msrb.mxu2 %v15477_v15  ;;  %v10719_v15 = vadd.f32 %v10718_v29, %v10209_v13 }
 0x65a   :  { %10953 = vmatpush.bf16.msrb.mxu2 %v15476_v62 }
 0x65c   :  { %v10664_v7 = vpop.f32.mrf.mxu2 }
 0x65d   :  { %v10721_v33 = vpop.f32.mrf.mxu1  ;;  %v10665_v59 = vadd.f32 %v10664_v7, %v10646_v23 }
 0x65e   :  { %v10722_v7 = vadd.f32 %v10721_v33, %v10209_v13 }
 0x664   :  { %v10666_v56 = vpop.f32.mrf.mxu2 }
 0x665   :  { %v10723_v21 = vpop.f32.mrf.mxu1  ;;  %v10667_v14 = vadd.f32 %v10666_v56, %v10648_v5 }
 0x66c   :  { %v10735_v38 = vpop.f32.mrf.mxu2 }
 0x66d   :  { %v10736_v20 = vadd.f32 %v10735_v38, %v10717_v50 }
 0x66e   :  { %v10678_v34 = vpop.f32.mrf.mxu3 }
 0x66f   :  { %v10679_v42 = vadd.f32 %v10678_v34, %v10660_v48 }
 0x674   :  { %v10737_v49 = vpop.f32.mrf.mxu2 }
 0x675   :  { %v10738_v34 = vadd.f32 %v10737_v49, %v10719_v15 }
 0x676   :  { %v10680_v11 = vpop.f32.mrf.mxu3 }
 0x677   :  { %v10681_v40 = vadd.f32 %v10680_v11, %v10662_v8 }
 0x67c   :  { %v10740_v0 = vpop.f32.mrf.mxu2 }
 0x67d   :  { %v10741_v6 = vadd.f32 %v10740_v0, %v10722_v7 }
 0x67e   :  { %v10683_v61 = vpop.f32.mrf.mxu3 }
 0x67f   :  { %v10684_v3 = vadd.f32 %v10683_v61, %v10665_v59  ;;  %v10724_v61 = vadd.f32 %v10723_v21, %v10209_v13 }
 0x684   :  { %v10742_v29 = vpop.f32.mrf.mxu2 }
 0x685   :  { %v10743_v8 = vadd.f32 %v10742_v29, %v10724_v61 }
 0x686   :  { %v10685_v45 = vpop.f32.mrf.mxu3 }
 0x687   :  { %v10686_v25 = vadd.f32 %v10685_v45, %v10667_v14  ;;  %v15513_v45 = vld [vmem:[#allocation15] ss:$0 sm:$0xff] }
 0x68e   :  { %v10754_v44 = vpop.f32.mrf.mxu3 }
 0x68f   :  { %v10755_v22 = vadd.f32 %v10754_v44, %v10736_v20 }
 0x696   :  { %v10756_v31 = vpop.f32.mrf.mxu3 }
 0x697   :  { %v10757_v54 = vadd.f32 %v10756_v31, %v10738_v34 }
 0x69e   :  { %v10759_v58 = vpop.f32.mrf.mxu3 }
 0x69f   :  { %v10760_v36 = vadd.f32 %v10759_v58, %v10741_v6 }
 0x6a2   :  { %v10697_v19 = vpop.f32.mrf.mxu0  ;;  %v10792_v47 = vpop.f32.mrf.mxu1 }
 0x6a3   :  { %v10698_v9 = vadd.f32 %v10697_v19, %v10679_v42 }
 0x6a5   :  { %v10802_v53 = vmax.f32 %v10698_v9, 0.0 }
 0x6a6   :  { %v10761_v48 = vpop.f32.mrf.mxu3 }
 0x6a7   :  { %v10762_v10 = vadd.f32 %v10761_v48, %v10743_v8 }
 0x6aa   :  { %v10699_v1 = vpop.f32.mrf.mxu0  ;;  %v10794_v57 = vpop.f32.mrf.mxu1 }
 0x6ab   :  { %v10700_v12 = vadd.f32 %v10699_v1, %v10681_v40 }
 0x6ad   :  { %v10804_v51 = vmax.f32 %v10700_v12, 0.0 }
 0x6af   :  { %v10810_v17 = vpack.c.bf16 %v10804_v51, %v10802_v53 }
 0x6b1   :  { %10954 = vmatmul.bf16.vlgmr.msrb.gmra.mxu2 %v10810_v17 }
 0x6b2   :  { %v10702_v30 = vpop.f32.mrf.mxu0  ;;  %v10797_v19 = vpop.f32.mrf.mxu1 }
 0x6b3   :  { %v10703_v52 = vadd.f32 %v10702_v30, %v10684_v3 }
 0x6b5   :  { %v10806_v27 = vmax.f32 %v10703_v52, 0.0 }
 0x6ba   :  { %v10704_v24 = vpop.f32.mrf.mxu0  ;;  %v10799_v1 = vpop.f32.mrf.mxu1 }
 0x6bb   :  { %v10705_v63 = vadd.f32 %v10704_v24, %v10686_v25 }
 0x6bd   :  { %v10808_v28 = vmax.f32 %v10705_v63, 0.0 }
 0x6bf   :  { %v10812_v35 = vpack.c.bf16 %v10808_v28, %v10806_v27 }
 0x6c1   :  { %10959 = vmatmul.bf16.gmra.mxu2 %v10812_v35 }
 0x6c2   :  { %v10773_v37 = vpop.f32.mrf.mxu0 }
 0x6c3   :  { %v10774_v62 = vadd.f32 %v10773_v37, %v10755_v22 }
 0x6c5   :  { %v10793_v2 = vadd.f32 %v10792_v47, %v10774_v62 }
 0x6c7   :  { %v10803_v18 = vmax.f32 %v10793_v2, 0.0 }
 0x6ca   :  { %v10775_v32 = vpop.f32.mrf.mxu0 }
 0x6cb   :  { %v10776_v11 = vadd.f32 %v10775_v32, %v10757_v54 }
 0x6cd   :  { %v10795_v60 = vadd.f32 %v10794_v57, %v10776_v11 }
 0x6cf   :  { %v10805_v43 = vmax.f32 %v10795_v60, 0.0 }
 0x6d1   :  { %v10811_v39 = vpack.c.bf16 %v10805_v43, %v10803_v18 }
 0x6d2   :  { %v10778_v16 = vpop.f32.mrf.mxu0 }
 0x6d3   :  { %10973 = vmatmul.bf16.vlgmr.msrb.gmra.mxu3 %v10811_v39  ;;  %v10779_v42 = vadd.f32 %v10778_v16, %v10760_v36 }
 0x6d5   :  { %v10798_v9 = vadd.f32 %v10797_v19, %v10779_v42 }
 0x6d7   :  { %v10807_v56 = vmax.f32 %v10798_v9, 0.0 }
 0x6da   :  { %v10780_v40 = vpop.f32.mrf.mxu0 }
 0x6db   :  { %v10781_v55 = vadd.f32 %v10780_v40, %v10762_v10 }
 0x6dd   :  { %v10800_v12 = vadd.f32 %v10799_v1, %v10781_v55 }
 0x6df   :  { %v10809_v53 = vmax.f32 %v10800_v12, 0.0 }
 0x6e1   :  { %v10813_v33 = vpack.c.bf16 %v10809_v53, %v10807_v56 }
 0x6e3   :  { %10978 = vmatmul.bf16.gmra.mxu3 %v10813_v33 }
 0x734   :  { %v10955_v51 = vpop.f32.mrf.mxu2 }
 0x735   :  { %v10956_v17 = vadd.f32 %v15513_v45, %v10955_v51 }
 0x73c   :  { %v10957_v26 = vpop.f32.mrf.mxu2 }
 0x73d   :  { %v10958_v4 = vadd.f32 %v15513_v45, %v10957_v26 }
 0x744   :  { %v10960_v5 = vpop.f32.mrf.mxu2 }
 0x745   :  { %v10961_v59 = vadd.f32 %v15513_v45, %v10960_v5 }
 0x74c   :  { %v10962_v14 = vpop.f32.mrf.mxu2 }
 0x74d   :  { %v10963_v3 = vadd.f32 %v15513_v45, %v10962_v14 }
 0x756   :  { %v10974_v46 = vpop.f32.mrf.mxu3 }
 0x757   :  { %v10975_v30 = vadd.f32 %v10974_v46, %v10956_v17 }
 0x759   :  { %10984 = vst [vmem:[%s20075_s11] sm:$0xff] %v10975_v30 }
 0x75e   :  { %v10976_v23 = vpop.f32.mrf.mxu3 }
 0x75f   :  { %v10977_v41 = vadd.f32 %v10976_v23, %v10958_v4 }
 0x761   :  { %10985 = vst [vmem:[%s20075_s11 + $0x8] sm:$0xff] %v10977_v41 }
 0x766   :  { %v10979_v21 = vpop.f32.mrf.mxu3 }
 0x767   :  { %v10980_v38 = vadd.f32 %v10979_v21, %v10961_v59 }
 0x769   :  { %10986 = vst [vmem:[%s20075_s11 + $0x10] sm:$0xff] %v10980_v38 }
 0x76e   :  { %v10981_v44 = vpop.f32.mrf.mxu3 }
 0x76f   :  { %v10982_v25 = vadd.f32 %v10981_v44, %v10963_v3 }
 0x771   :  { %10987 = vst [vmem:[%s20075_s11 + $0x18] sm:$0xff] %v10982_v25 }
 0x772   :  { %10992 = vsyncpa [#allocation3], 1 }
 0x773   :  { %10993 = vsyncpa [#allocation5], 1 }
 0x774   :  { %10994 = vsyncpa [#allocation8], 1 }
 0x775   :  { %10995 = vsyncpa [#allocation11], 1 }
 0x776   :  { %10996 = vsyncpa [#allocation14], 1 }

</bundles_post_ra>
